<compile_context>
chip_gen: v7x
topology: tpu7x:2x2x1
jax: 0.10.0
libtpu: 0.0.40
codegen_flags: <defaults>
</compile_context>

<pallas_src>
import functools

import jax
import jax.numpy as jnp
from jax.experimental import pallas as pl
from jax.experimental.pallas import tpu as pltpu


C0, C1, C2, C3 = 3, 64, 128, 256
HIDDEN = 512
NUM_CLASSES = 3
K1 = 9 * C0           # 27 useful block-1 im2col columns
K1P = 32              # lane-padded block-1 im2col width (zero-padded)
OUT_PAD = 128         # lane-dense logits width (sliced to NUM_CLASSES outside)
MAX_B_TILE = 8        # samples per grid step


# ------------------------------ kernel helpers -------------------------------


def _pool2x2(y, H, W, C):
    """2x2 stride-2 maxpool on a flattened (H*W, C) activation -> (H//2, W//2, C)."""
    y = y.reshape(H // 2, 2, W, C)
    y = jnp.maximum(y[:, 0, :, :], y[:, 1, :, :])          # pool H (major axis)
    y = y.reshape(H // 2, W // 2, 2, C)
    y = jnp.maximum(y[:, :, 0, :], y[:, :, 1, :])          # pool W
    return y                                               # (H//2, W//2, C)


def _zero_border(xp_ref, B, Hc, Wc, C):
    """Zero only the 1-pixel padding frame of the (B, Hc+2, Wc+2, C) scratch."""
    z_row = jnp.zeros((B, 1, Wc + 2, C), jnp.float32)
    z_col = jnp.zeros((B, Hc + 2, 1, C), jnp.float32)
    xp_ref[:, 0:1, :, :] = z_row
    xp_ref[:, Hc + 1:Hc + 2, :, :] = z_row
    xp_ref[:, :, 0:1, :] = z_col
    xp_ref[:, :, Wc + 1:Wc + 2, :] = z_col


def _im2col_to_scratch(xp_ref, cols_ref, B, Hc, Wc, C):
    """Stage 3x3 im2col patches (cast to bf16) for all B samples into cols_ref."""
    hw = Hc * Wc
    for b in range(B):
        xb = xp_ref[b]                                     # (Hc+2, Wc+2, C) f32
        r0 = b * hw
        t = 0
        for dy in range(3):
            for dx in range(3):
                cols_ref[r0:r0 + hw, t * C:(t + 1) * C] = (
                    xb[dy:dy + Hc, dx:dx + Wc, :]
                    .reshape(hw, C).astype(jnp.bfloat16))
                t += 1


# ------------------------------ fused kernel ---------------------------------


def _cnn_fused_kernel(p1_ref,
                      w1_ref, s1_ref, b1_ref,
                      w2_ref, s2_ref, b2_ref,
                      w3_ref, s3_ref, b3_ref,
                      wf1_ref, bf1_ref, wf2_ref, bf2_ref,
                      out_ref,
                      xp2_ref, cols2_ref, xp3_ref, cols3_ref, fcin_ref,
                      *, B, H, W):
    H1, W1 = H, W
    H2, W2 = H // 2, W // 2
    H3, W3 = H // 4, W // 4
    H4, W4 = H // 8, W // 8
    f32, bf16 = jnp.float32, jnp.bfloat16

    # ----- block 1: conv(3->64)+BN+ReLU+pool. im2col pre-built in wrapper -----
    p1 = p1_ref[...]                                               # (B*H*W, 32) bf16
    a1 = jnp.dot(p1, w1_ref[...], preferred_element_type=f32)      # (B*H*W, 64)
    y1 = jnp.maximum(a1 * s1_ref[...] + b1_ref[...], 0.0)

    _zero_border(xp2_ref, B, H2, W2, C1)
    for b in range(B):
        pooled = _pool2x2(y1[b * H1 * W1:(b + 1) * H1 * W1, :], H1, W1, C1)
        xp2_ref[b:b + 1, 1:H2 + 1, 1:W2 + 1, :] = pooled.reshape(1, H2, W2, C1)

    # ----- block 2: conv(64->128)+BN+ReLU+pool (bf16 im2col staging) ----------
    _im2col_to_scratch(xp2_ref, cols2_ref, B, H2, W2, C1)
    a2 = jnp.dot(cols2_ref[...], w2_ref[...], preferred_element_type=f32)
    y2 = jnp.maximum(a2 * s2_ref[...] + b2_ref[...], 0.0)          # (B*H2*W2, 128)

    _zero_border(xp3_ref, B, H3, W3, C2)
    for b in range(B):
        pooled = _pool2x2(y2[b * H2 * W2:(b + 1) * H2 * W2, :], H2, W2, C2)
        xp3_ref[b:b + 1, 1:H3 + 1, 1:W3 + 1, :] = pooled.reshape(1, H3, W3, C2)

    # ----- block 3: conv(128->256)+BN+ReLU+pool (taps 128-lane aligned) -------
    _im2col_to_scratch(xp3_ref, cols3_ref, B, H3, W3, C2)
    a3 = jnp.dot(cols3_ref[...], w3_ref[...], preferred_element_type=f32)
    y3 = jnp.maximum(a3 * s3_ref[...] + b3_ref[...], 0.0)          # (B*H3*W3, 256)

    # flatten (the NCHW permutation is folded into wf1 at init) -> (B, 1024)
    for b in range(B):
        pooled = _pool2x2(y3[b * H3 * W3:(b + 1) * H3 * W3, :], H3, W3, C3)
        flat = pooled.reshape(H4 * W4, C3)                          # (4, 256) f32
        for r in range(H4 * W4):
            fcin_ref[b:b + 1, r * C3:(r + 1) * C3] = flat[r:r + 1, :]

    # ----- classifier: fc1 (single K=1024 MXU push) -> ReLU -> fc2 ------------
    # TODO(synk): Dropout(p=0.3) is identity (eval/inference semantics).
    h = jnp.dot(fcin_ref[...].astype(bf16), wf1_ref[...],
                preferred_element_type=f32)                         # (B, 512)
    h = jnp.maximum(h + bf1_ref[...], 0.0)
    logits = jnp.dot(h.astype(bf16), wf2_ref[...],
                     preferred_element_type=f32) + bf2_ref[...]     # (B, 128)
    out_ref[...] = logits                                           # lane-dense


# -------------------------------- wrapper ------------------------------------


def cnn_forward(x_nchw, params, *, b_tile=None):
    N, Cin, H, W = x_nchw.shape
    assert Cin == C0 and H % 8 == 0 and W % 8 == 0

    w1, s1, b1 = params["block1"]
    w2, s2, b2 = params["block2"]
    w3, s3, b3 = params["block3"]
    wf1, bf1, wf2, bf2 = params["fc"]

    B = b_tile if b_tile is not None else max(1, min(N, MAX_B_TILE))
    N_pad = ((N + B - 1) // B) * B

    # NCHW -> NHWC (channels on lanes); pad batch to a multiple of the tile.
    x = jnp.transpose(x_nchw, (0, 2, 3, 1))
    if N_pad != N:
        x = jnp.pad(x, ((0, N_pad - N), (0, 0), (0, 0), (0, 0)))

    # Block-1 im2col in XLA (Cin=3 is lane-hostile inside the kernel): build a
    # lane-padded bf16 patch tensor (N_pad*H*W, 32); w1 rows 27..31 are zero.
    xp = jnp.pad(x, ((0, 0), (1, 1), (1, 1), (0, 0)))
    taps = [xp[:, dy:dy + H, dx:dx + W, :] for dy in range(3) for dx in range(3)]
    patches = jnp.concatenate(taps, axis=-1)                       # (N_pad,H,W,27)
    patches = patches.reshape(N_pad * H * W, K1)
    patches = jnp.pad(patches, ((0, 0), (0, K1P - K1))).astype(jnp.bfloat16)

    fixed2 = lambda n: (0, 0)
    kernel = functools.partial(_cnn_fused_kernel, B=B, H=H, W=W)
    grid_spec = pltpu.PrefetchScalarGridSpec(
        num_scalar_prefetch=0,
        grid=(N_pad // B,),                       # B_TILE samples per grid step
        in_specs=[
            pl.BlockSpec((B * H * W, K1P), lambda n: (n, 0)),
            # Weights: constant block every step.
            # TODO(synk): mark these pipeline_mode=pl.Buffered(1) (single
            # buffer) once reliably supported; saves ~1.9 MiB of VMEM.
            pl.BlockSpec(w1.shape, fixed2), pl.BlockSpec(s1.shape, fixed2),
            pl.BlockSpec(b1.shape, fixed2),
            pl.BlockSpec(w2.shape, fixed2), pl.BlockSpec(s2.shape, fixed2),
            pl.BlockSpec(b2.shape, fixed2),
            pl.BlockSpec(w3.shape, fixed2), pl.BlockSpec(s3.shape, fixed2),
            pl.BlockSpec(b3.shape, fixed2),
            pl.BlockSpec(wf1.shape, fixed2), pl.BlockSpec(bf1.shape, fixed2),
            pl.BlockSpec(wf2.shape, fixed2), pl.BlockSpec(bf2.shape, fixed2),
        ],
        out_specs=pl.BlockSpec((B, OUT_PAD), lambda n: (n, 0)),
        scratch_shapes=[
            pltpu.VMEM((B, H // 2 + 2, W // 2 + 2, C1), jnp.float32),   # xp2
            pltpu.VMEM((B * (H // 2) * (W // 2), 9 * C1), jnp.bfloat16),  # cols2
            pltpu.VMEM((B, H // 4 + 2, W // 4 + 2, C2), jnp.float32),   # xp3
            pltpu.VMEM((B * (H // 4) * (W // 4), 9 * C2), jnp.bfloat16),  # cols3
            pltpu.VMEM((B, (H // 8) * (W // 8) * C3), jnp.float32),     # fc in
        ],
    )
    out = pl.pallas_call(
        kernel,
        out_shape=jax.ShapeDtypeStruct((N_pad, OUT_PAD), jnp.float32),
        grid_spec=grid_spec,
        compiler_params=pltpu.CompilerParams(
            # Batch axis is fully independent -> "parallel"; on v7x switch to
            # CORE_PARALLEL / core_map if xprof shows one TensorCore idle.
            dimension_semantics=("parallel",),
            vmem_limit_bytes=32 * 1024 * 1024),
    )(patches, w1, s1, b1, w2, s2, b2, w3, s3, b3, wf1, bf1, wf2, bf2)
    return out[:N, :NUM_CLASSES]


# --------------------------- parameter helpers --------------------------------


def init_conv_block_params(key, cin, cout, *, pad_k_to=None, eps=1e-5):
    k = jax.random.split(key, 6)
    # PyTorch conv weight (Cout, Cin, 3, 3) -> (ky, kx, Cin, Cout) -> (9*Cin, Cout)
    w_pt = jax.random.normal(k[0], (cout, cin, 3, 3), jnp.float32) * 0.05
    w = jnp.transpose(w_pt, (2, 3, 1, 0)).reshape(9 * cin, cout)
    if pad_k_to is not None and pad_k_to > 9 * cin:
        w = jnp.pad(w, ((0, pad_k_to - 9 * cin), (0, 0)))   # zero rows for pad lanes
    w = w.astype(jnp.bfloat16)
    b_conv = jax.random.normal(k[1], (cout,), jnp.float32) * 0.05
    gamma = jax.random.uniform(k[2], (cout,), jnp.float32, 0.5, 1.5)
    beta = jax.random.normal(k[3], (cout,), jnp.float32) * 0.1
    r_mean = jax.random.normal(k[4], (cout,), jnp.float32) * 0.1
    r_var = jax.random.uniform(k[5], (cout,), jnp.float32, 0.5, 1.5)
    # fold BatchNorm (eval mode) + conv bias into per-channel scale / bias
    scale = gamma / jnp.sqrt(r_var + eps)
    bias = (b_conv - r_mean) * scale + beta
    return w, scale.reshape(1, cout), bias.reshape(1, cout)


def init_fc_params(key, spatial, hidden, num_classes):
    k1, k2, k3, k4 = jax.random.split(key, 4)
    s = spatial
    fc_in = C3 * s * s   # NOTE: scaled spatial (2x2), not the original 32x32
    # PyTorch fc1 weight is (out, in) with in-index = c*(s*s) + h*s + w (NCHW
    # flatten).  Fold that permutation so the kernel contracts the
    # NHWC-flattened activation directly: (out, C, h, w) -> ((h*s+w)*C3+c, out).
    w_fc1_pt = jax.random.normal(k1, (hidden, fc_in), jnp.float32) * 0.02
    w_fc1 = jnp.transpose(w_fc1_pt.reshape(hidden, C3, s, s), (2, 3, 1, 0))
    w_fc1 = w_fc1.reshape(s * s * C3, hidden).astype(jnp.bfloat16)  # (1024, 512)
    b_fc1 = (jax.random.normal(k2, (hidden,), jnp.float32) * 0.02).reshape(1, hidden)
    # fc2 zero-padded to OUT_PAD lanes so the kernel's output store is lane-dense.
    w_fc2_pt = jax.random.normal(k3, (num_classes, hidden), jnp.float32) * 0.02
    w_fc2 = jnp.pad(jnp.transpose(w_fc2_pt, (1, 0)),
                    ((0, 0), (0, OUT_PAD - num_classes))).astype(jnp.bfloat16)
    b_fc2 = jnp.pad(jax.random.normal(k4, (num_classes,), jnp.float32) * 0.02,
                    (0, OUT_PAD - num_classes)).reshape(1, OUT_PAD)
    return w_fc1, b_fc1, w_fc2, b_fc2


# ---------------------------------- main --------------------------------------

if __name__ == "__main__":
    key = jax.random.PRNGKey(0)
    kx, k1, k2, k3, kfc = jax.random.split(key, 5)

    N, S = 2, 16                      # small shapes: batch=2, 3x16x16 input
    x = jax.random.normal(kx, (N, C0, S, S), jnp.float32)   # NCHW like PyTorch

    params = {
        "block1": init_conv_block_params(k1, C0, C1, pad_k_to=K1P),
        "block2": init_conv_block_params(k2, C1, C2),
        "block3": init_conv_block_params(k3, C2, C3),
        "fc": init_fc_params(kfc, S // 8, HIDDEN, NUM_CLASSES),
    }

    out = jax.jit(cnn_forward)(x, params)
    out = jax.block_until_ready(out)
    assert out.shape == (N, NUM_CLASSES) and out.dtype == jnp.float32
    assert bool(jnp.all(jnp.isfinite(out)))
    print("KERNEL_OK")
</pallas_src>

<mosaic_0001>
module attributes {stable_mosaic.version = 11 : i64} {
  func.func @_cnn_fused_kernel(%arg0: i32, %arg1: memref<512x32xbf16, #tpu.memory_space<vmem>>, %arg2: memref<32x64xbf16, #tpu.memory_space<vmem>>, %arg3: memref<1x64xf32, #tpu.memory_space<vmem>>, %arg4: memref<1x64xf32, #tpu.memory_space<vmem>>, %arg5: memref<576x128xbf16, #tpu.memory_space<vmem>>, %arg6: memref<1x128xf32, #tpu.memory_space<vmem>>, %arg7: memref<1x128xf32, #tpu.memory_space<vmem>>, %arg8: memref<1152x256xbf16, #tpu.memory_space<vmem>>, %arg9: memref<1x256xf32, #tpu.memory_space<vmem>>, %arg10: memref<1x256xf32, #tpu.memory_space<vmem>>, %arg11: memref<1024x512xbf16, #tpu.memory_space<vmem>>, %arg12: memref<1x512xf32, #tpu.memory_space<vmem>>, %arg13: memref<512x128xbf16, #tpu.memory_space<vmem>>, %arg14: memref<1x128xf32, #tpu.memory_space<vmem>>, %arg15: memref<2x128xf32, #tpu.memory_space<vmem>>, %arg16: memref<2x10x10x64xf32, #tpu.memory_space<vmem>>, %arg17: memref<128x576xbf16, #tpu.memory_space<vmem>>, %arg18: memref<2x6x6x128xf32, #tpu.memory_space<vmem>>, %arg19: memref<32x1152xbf16, #tpu.memory_space<vmem>>, %arg20: memref<2x1024xf32, #tpu.memory_space<vmem>>) attributes {dimension_semantics = [#tpu.dimension_semantics<parallel>], iteration_bounds = array<i64: 1>, scalar_prefetch = 0 : i64, scratch_operands = 5 : i64, tpu.core_type = #tpu.core_type<tc>, window_params = [{transform_indices = @transform_0, window_bounds = array<i64: 512, 32>}, {pipeline_mode = #tpu.pipeline_mode<synchronous>, transform_indices = @transform_1, window_bounds = array<i64: 32, 64>}, {pipeline_mode = #tpu.pipeline_mode<synchronous>, transform_indices = @transform_2, window_bounds = array<i64: 1, 64>}, {pipeline_mode = #tpu.pipeline_mode<synchronous>, transform_indices = @transform_3, window_bounds = array<i64: 1, 64>}, {pipeline_mode = #tpu.pipeline_mode<synchronous>, transform_indices = @transform_4, window_bounds = array<i64: 576, 128>}, {pipeline_mode = #tpu.pipeline_mode<synchronous>, transform_indices = @transform_5, window_bounds = array<i64: 1, 128>}, {pipeline_mode = #tpu.pipeline_mode<synchronous>, transform_indices = @transform_6, window_bounds = array<i64: 1, 128>}, {pipeline_mode = #tpu.pipeline_mode<synchronous>, transform_indices = @transform_7, window_bounds = array<i64: 1152, 256>}, {pipeline_mode = #tpu.pipeline_mode<synchronous>, transform_indices = @transform_8, window_bounds = array<i64: 1, 256>}, {pipeline_mode = #tpu.pipeline_mode<synchronous>, transform_indices = @transform_9, window_bounds = array<i64: 1, 256>}, {pipeline_mode = #tpu.pipeline_mode<synchronous>, transform_indices = @transform_10, window_bounds = array<i64: 1024, 512>}, {pipeline_mode = #tpu.pipeline_mode<synchronous>, transform_indices = @transform_11, window_bounds = array<i64: 1, 512>}, {pipeline_mode = #tpu.pipeline_mode<synchronous>, transform_indices = @transform_12, window_bounds = array<i64: 512, 128>}, {pipeline_mode = #tpu.pipeline_mode<synchronous>, transform_indices = @transform_13, window_bounds = array<i64: 1, 128>}, {transform_indices = @transform_14, window_bounds = array<i64: 2, 128>}]} {
    %c0 = arith.constant 0 : index
    %c0_0 = arith.constant 0 : index
    %0 = vector.load %arg1[%c0, %c0_0] : memref<512x32xbf16, #tpu.memory_space<vmem>>, vector<512x32xbf16>
    %c0_1 = arith.constant 0 : index
    %c0_2 = arith.constant 0 : index
    %1 = vector.load %arg2[%c0_1, %c0_2] : memref<32x64xbf16, #tpu.memory_space<vmem>>, vector<32x64xbf16>
    %cst = arith.constant dense<0.000000e+00> : vector<512x64xf32>
    %2 = tpu.matmul %0, %1, %cst {dimension_numbers = #tpu.dot_dimension_numbers<[1], [0], [0], [1], [0, 0, 1, 1], [], []>} : vector<512x32xbf16>, vector<32x64xbf16>, vector<512x64xf32> -> vector<512x64xf32>
    %c0_3 = arith.constant 0 : index
    %c0_4 = arith.constant 0 : index
    %3 = vector.load %arg3[%c0_3, %c0_4] : memref<1x64xf32, #tpu.memory_space<vmem>>, vector<1x64xf32>
    %4 = vector.broadcast %3 : vector<1x64xf32> to vector<512x64xf32>
    %5 = arith.mulf %2, %4 : vector<512x64xf32>
    %c0_5 = arith.constant 0 : index
    %c0_6 = arith.constant 0 : index
    %6 = vector.load %arg4[%c0_5, %c0_6] : memref<1x64xf32, #tpu.memory_space<vmem>>, vector<1x64xf32>
    %7 = vector.broadcast %6 : vector<1x64xf32> to vector<512x64xf32>
    %8 = arith.addf %5, %7 : vector<512x64xf32>
    %cst_7 = arith.constant 0.000000e+00 : f32
    %9 = vector.broadcast %cst_7 : f32 to vector<512x64xf32>
    %10 = arith.maximumf %8, %9 : vector<512x64xf32>
    %cst_8 = arith.constant 0.000000e+00 : f32
    %11 = vector.broadcast %cst_8 : f32 to vector<2x1x10x64xf32>
    %cst_9 = arith.constant 0.000000e+00 : f32
    %12 = vector.broadcast %cst_9 : f32 to vector<2x10x1x64xf32>
    %c0_10 = arith.constant 0 : index
    %c0_11 = arith.constant 0 : index
    %c0_12 = arith.constant 0 : index
    %c0_13 = arith.constant 0 : index
    %13 = vector.load %arg16[%c0_10, %c0_11, %c0_12, %c0_13] : memref<2x10x10x64xf32, #tpu.memory_space<vmem>>, vector<2x1x10x64xf32>
    tpu.vector_store %arg16[%c0_10, %c0_11, %c0_12, %c0_13], %11 {strides = array<i32>} : memref<2x10x10x64xf32, #tpu.memory_space<vmem>>, vector<2x1x10x64xf32>,
    %c0_14 = arith.constant 0 : index
    %c9 = arith.constant 9 : index
    %c0_15 = arith.constant 0 : index
    %c0_16 = arith.constant 0 : index
    %14 = vector.load %arg16[%c0_14, %c9, %c0_15, %c0_16] : memref<2x10x10x64xf32, #tpu.memory_space<vmem>>, vector<2x1x10x64xf32>
    tpu.vector_store %arg16[%c0_14, %c9, %c0_15, %c0_16], %11 {strides = array<i32>} : memref<2x10x10x64xf32, #tpu.memory_space<vmem>>, vector<2x1x10x64xf32>,
    %c0_17 = arith.constant 0 : index
    %c0_18 = arith.constant 0 : index
    %c0_19 = arith.constant 0 : index
    %c0_20 = arith.constant 0 : index
    %15 = vector.load %arg16[%c0_17, %c0_18, %c0_19, %c0_20] : memref<2x10x10x64xf32, #tpu.memory_space<vmem>>, vector<2x10x1x64xf32>
    tpu.vector_store %arg16[%c0_17, %c0_18, %c0_19, %c0_20], %12 {strides = array<i32>} : memref<2x10x10x64xf32, #tpu.memory_space<vmem>>, vector<2x10x1x64xf32>,
    %c0_21 = arith.constant 0 : index
    %c0_22 = arith.constant 0 : index
    %c9_23 = arith.constant 9 : index
    %c0_24 = arith.constant 0 : index
    %16 = vector.load %arg16[%c0_21, %c0_22, %c9_23, %c0_24] : memref<2x10x10x64xf32, #tpu.memory_space<vmem>>, vector<2x10x1x64xf32>
    tpu.vector_store %arg16[%c0_21, %c0_22, %c9_23, %c0_24], %12 {strides = array<i32>} : memref<2x10x10x64xf32, #tpu.memory_space<vmem>>, vector<2x10x1x64xf32>,
    %17 = vector.extract_strided_slice %10 {offsets = [0, 0], sizes = [256, 64], strides = [1, 1]} : vector<512x64xf32> to vector<256x64xf32>
    %18 = vector.shape_cast %17 : vector<256x64xf32> to vector<8x2x16x64xf32>
    %19 = vector.extract_strided_slice %18 {offsets = [0, 0, 0, 0], sizes = [8, 1, 16, 64], strides = [1, 1, 1, 1]} : vector<8x2x16x64xf32> to vector<8x1x16x64xf32>
    %20 = vector.shape_cast %19 : vector<8x1x16x64xf32> to vector<8x16x64xf32>
    %21 = vector.extract_strided_slice %18 {offsets = [0, 1, 0, 0], sizes = [8, 1, 16, 64], strides = [1, 1, 1, 1]} : vector<8x2x16x64xf32> to vector<8x1x16x64xf32>
    %22 = vector.shape_cast %21 : vector<8x1x16x64xf32> to vector<8x16x64xf32>
    %23 = arith.maximumf %20, %22 : vector<8x16x64xf32>
    %24 = vector.shape_cast %23 : vector<8x16x64xf32> to vector<8x8x2x64xf32>
    %25 = vector.extract_strided_slice %24 {offsets = [0, 0, 0, 0], sizes = [8, 8, 1, 64], strides = [1, 1, 1, 1]} : vector<8x8x2x64xf32> to vector<8x8x1x64xf32>
    %26 = vector.shape_cast %25 : vector<8x8x1x64xf32> to vector<8x8x64xf32>
    %27 = vector.extract_strided_slice %24 {offsets = [0, 0, 1, 0], sizes = [8, 8, 1, 64], strides = [1, 1, 1, 1]} : vector<8x8x2x64xf32> to vector<8x8x1x64xf32>
    %28 = vector.shape_cast %27 : vector<8x8x1x64xf32> to vector<8x8x64xf32>
    %29 = arith.maximumf %26, %28 : vector<8x8x64xf32>
    %30 = vector.shape_cast %29 : vector<8x8x64xf32> to vector<1x8x8x64xf32>
    %c0_25 = arith.constant 0 : index
    %c1 = arith.constant 1 : index
    %c1_26 = arith.constant 1 : index
    %c0_27 = arith.constant 0 : index
    %31 = vector.load %arg16[%c0_25, %c1, %c1_26, %c0_27] : memref<2x10x10x64xf32, #tpu.memory_space<vmem>>, vector<1x8x8x64xf32>
    tpu.vector_store %arg16[%c0_25, %c1, %c1_26, %c0_27], %30 {strides = array<i32>} : memref<2x10x10x64xf32, #tpu.memory_space<vmem>>, vector<1x8x8x64xf32>,
    %32 = vector.extract_strided_slice %10 {offsets = [256, 0], sizes = [256, 64], strides = [1, 1]} : vector<512x64xf32> to vector<256x64xf32>
    %33 = vector.shape_cast %32 : vector<256x64xf32> to vector<8x2x16x64xf32>
    %34 = vector.extract_strided_slice %33 {offsets = [0, 0, 0, 0], sizes = [8, 1, 16, 64], strides = [1, 1, 1, 1]} : vector<8x2x16x64xf32> to vector<8x1x16x64xf32>
    %35 = vector.shape_cast %34 : vector<8x1x16x64xf32> to vector<8x16x64xf32>
    %36 = vector.extract_strided_slice %33 {offsets = [0, 1, 0, 0], sizes = [8, 1, 16, 64], strides = [1, 1, 1, 1]} : vector<8x2x16x64xf32> to vector<8x1x16x64xf32>
    %37 = vector.shape_cast %36 : vector<8x1x16x64xf32> to vector<8x16x64xf32>
    %38 = arith.maximumf %35, %37 : vector<8x16x64xf32>
    %39 = vector.shape_cast %38 : vector<8x16x64xf32> to vector<8x8x2x64xf32>
    %40 = vector.extract_strided_slice %39 {offsets = [0, 0, 0, 0], sizes = [8, 8, 1, 64], strides = [1, 1, 1, 1]} : vector<8x8x2x64xf32> to vector<8x8x1x64xf32>
    %41 = vector.shape_cast %40 : vector<8x8x1x64xf32> to vector<8x8x64xf32>
    %42 = vector.extract_strided_slice %39 {offsets = [0, 0, 1, 0], sizes = [8, 8, 1, 64], strides = [1, 1, 1, 1]} : vector<8x8x2x64xf32> to vector<8x8x1x64xf32>
    %43 = vector.shape_cast %42 : vector<8x8x1x64xf32> to vector<8x8x64xf32>
    %44 = arith.maximumf %41, %43 : vector<8x8x64xf32>
    %45 = vector.shape_cast %44 : vector<8x8x64xf32> to vector<1x8x8x64xf32>
    %c1_28 = arith.constant 1 : index
    %c1_29 = arith.constant 1 : index
    %c1_30 = arith.constant 1 : index
    %c0_31 = arith.constant 0 : index
    %46 = vector.load %arg16[%c1_28, %c1_29, %c1_30, %c0_31] : memref<2x10x10x64xf32, #tpu.memory_space<vmem>>, vector<1x8x8x64xf32>
    tpu.vector_store %arg16[%c1_28, %c1_29, %c1_30, %c0_31], %45 {strides = array<i32>} : memref<2x10x10x64xf32, #tpu.memory_space<vmem>>, vector<1x8x8x64xf32>,
    %c0_32 = arith.constant 0 : index
    %c0_33 = arith.constant 0 : index
    %c0_34 = arith.constant 0 : index
    %c0_35 = arith.constant 0 : index
    %47 = vector.load %arg16[%c0_32, %c0_33, %c0_34, %c0_35] : memref<2x10x10x64xf32, #tpu.memory_space<vmem>>, vector<1x10x10x64xf32>
    %48 = vector.shape_cast %47 : vector<1x10x10x64xf32> to vector<10x10x64xf32>
    %49 = vector.extract_strided_slice %48 {offsets = [0, 0, 0], sizes = [8, 8, 64], strides = [1, 1, 1]} : vector<10x10x64xf32> to vector<8x8x64xf32>
    %50 = vector.shape_cast %49 : vector<8x8x64xf32> to vector<64x64xf32>
    %51 = arith.truncf %50 : vector<64x64xf32> to vector<64x64xbf16>
    %c0_36 = arith.constant 0 : index
    %c0_37 = arith.constant 0 : index
    %52 = vector.load %arg17[%c0_36, %c0_37] : memref<128x576xbf16, #tpu.memory_space<vmem>>, vector<64x64xbf16>
    tpu.vector_store %arg17[%c0_36, %c0_37], %51 {strides = array<i32>} : memref<128x576xbf16, #tpu.memory_space<vmem>>, vector<64x64xbf16>,
    %53 = vector.extract_strided_slice %48 {offsets = [0, 1, 0], sizes = [8, 8, 64], strides = [1, 1, 1]} : vector<10x10x64xf32> to vector<8x8x64xf32>
    %54 = vector.shape_cast %53 : vector<8x8x64xf32> to vector<64x64xf32>
    %55 = arith.truncf %54 : vector<64x64xf32> to vector<64x64xbf16>
    %c0_38 = arith.constant 0 : index
    %c64 = arith.constant 64 : index
    %56 = vector.load %arg17[%c0_38, %c64] : memref<128x576xbf16, #tpu.memory_space<vmem>>, vector<64x64xbf16>
    tpu.vector_store %arg17[%c0_38, %c64], %55 {strides = array<i32>} : memref<128x576xbf16, #tpu.memory_space<vmem>>, vector<64x64xbf16>,
    %57 = vector.extract_strided_slice %48 {offsets = [0, 2, 0], sizes = [8, 8, 64], strides = [1, 1, 1]} : vector<10x10x64xf32> to vector<8x8x64xf32>
    %58 = vector.shape_cast %57 : vector<8x8x64xf32> to vector<64x64xf32>
    %59 = arith.truncf %58 : vector<64x64xf32> to vector<64x64xbf16>
    %c0_39 = arith.constant 0 : index
    %c128 = arith.constant 128 : index
    %60 = vector.load %arg17[%c0_39, %c128] : memref<128x576xbf16, #tpu.memory_space<vmem>>, vector<64x64xbf16>
    tpu.vector_store %arg17[%c0_39, %c128], %59 {strides = array<i32>} : memref<128x576xbf16, #tpu.memory_space<vmem>>, vector<64x64xbf16>,
    %61 = vector.extract_strided_slice %48 {offsets = [1, 0, 0], sizes = [8, 8, 64], strides = [1, 1, 1]} : vector<10x10x64xf32> to vector<8x8x64xf32>
    %62 = vector.shape_cast %61 : vector<8x8x64xf32> to vector<64x64xf32>
    %63 = arith.truncf %62 : vector<64x64xf32> to vector<64x64xbf16>
    %c0_40 = arith.constant 0 : index
    %c192 = arith.constant 192 : index
    %64 = vector.load %arg17[%c0_40, %c192] : memref<128x576xbf16, #tpu.memory_space<vmem>>, vector<64x64xbf16>
    tpu.vector_store %arg17[%c0_40, %c192], %63 {strides = array<i32>} : memref<128x576xbf16, #tpu.memory_space<vmem>>, vector<64x64xbf16>,
    %65 = vector.extract_strided_slice %48 {offsets = [1, 1, 0], sizes = [8, 8, 64], strides = [1, 1, 1]} : vector<10x10x64xf32> to vector<8x8x64xf32>
    %66 = vector.shape_cast %65 : vector<8x8x64xf32> to vector<64x64xf32>
    %67 = arith.truncf %66 : vector<64x64xf32> to vector<64x64xbf16>
    %c0_41 = arith.constant 0 : index
    %c256 = arith.constant 256 : index
    %68 = vector.load %arg17[%c0_41, %c256] : memref<128x576xbf16, #tpu.memory_space<vmem>>, vector<64x64xbf16>
    tpu.vector_store %arg17[%c0_41, %c256], %67 {strides = array<i32>} : memref<128x576xbf16, #tpu.memory_space<vmem>>, vector<64x64xbf16>,
    %69 = vector.extract_strided_slice %48 {offsets = [1, 2, 0], sizes = [8, 8, 64], strides = [1, 1, 1]} : vector<10x10x64xf32> to vector<8x8x64xf32>
    %70 = vector.shape_cast %69 : vector<8x8x64xf32> to vector<64x64xf32>
    %71 = arith.truncf %70 : vector<64x64xf32> to vector<64x64xbf16>
    %c0_42 = arith.constant 0 : index
    %c320 = arith.constant 320 : index
    %72 = vector.load %arg17[%c0_42, %c320] : memref<128x576xbf16, #tpu.memory_space<vmem>>, vector<64x64xbf16>
    tpu.vector_store %arg17[%c0_42, %c320], %71 {strides = array<i32>} : memref<128x576xbf16, #tpu.memory_space<vmem>>, vector<64x64xbf16>,
    %73 = vector.extract_strided_slice %48 {offsets = [2, 0, 0], sizes = [8, 8, 64], strides = [1, 1, 1]} : vector<10x10x64xf32> to vector<8x8x64xf32>
    %74 = vector.shape_cast %73 : vector<8x8x64xf32> to vector<64x64xf32>
    %75 = arith.truncf %74 : vector<64x64xf32> to vector<64x64xbf16>
    %c0_43 = arith.constant 0 : index
    %c384 = arith.constant 384 : index
    %76 = vector.load %arg17[%c0_43, %c384] : memref<128x576xbf16, #tpu.memory_space<vmem>>, vector<64x64xbf16>
    tpu.vector_store %arg17[%c0_43, %c384], %75 {strides = array<i32>} : memref<128x576xbf16, #tpu.memory_space<vmem>>, vector<64x64xbf16>,
    %77 = vector.extract_strided_slice %48 {offsets = [2, 1, 0], sizes = [8, 8, 64], strides = [1, 1, 1]} : vector<10x10x64xf32> to vector<8x8x64xf32>
    %78 = vector.shape_cast %77 : vector<8x8x64xf32> to vector<64x64xf32>
    %79 = arith.truncf %78 : vector<64x64xf32> to vector<64x64xbf16>
    %c0_44 = arith.constant 0 : index
    %c448 = arith.constant 448 : index
    %80 = vector.load %arg17[%c0_44, %c448] : memref<128x576xbf16, #tpu.memory_space<vmem>>, vector<64x64xbf16>
    tpu.vector_store %arg17[%c0_44, %c448], %79 {strides = array<i32>} : memref<128x576xbf16, #tpu.memory_space<vmem>>, vector<64x64xbf16>,
    %81 = vector.extract_strided_slice %48 {offsets = [2, 2, 0], sizes = [8, 8, 64], strides = [1, 1, 1]} : vector<10x10x64xf32> to vector<8x8x64xf32>
    %82 = vector.shape_cast %81 : vector<8x8x64xf32> to vector<64x64xf32>
    %83 = arith.truncf %82 : vector<64x64xf32> to vector<64x64xbf16>
    %c0_45 = arith.constant 0 : index
    %c512 = arith.constant 512 : index
    %84 = vector.load %arg17[%c0_45, %c512] : memref<128x576xbf16, #tpu.memory_space<vmem>>, vector<64x64xbf16>
    tpu.vector_store %arg17[%c0_45, %c512], %83 {strides = array<i32>} : memref<128x576xbf16, #tpu.memory_space<vmem>>, vector<64x64xbf16>,
    %c1_46 = arith.constant 1 : index
    %c0_47 = arith.constant 0 : index
    %c0_48 = arith.constant 0 : index
    %c0_49 = arith.constant 0 : index
    %85 = vector.load %arg16[%c1_46, %c0_47, %c0_48, %c0_49] : memref<2x10x10x64xf32, #tpu.memory_space<vmem>>, vector<1x10x10x64xf32>
    %86 = vector.shape_cast %85 : vector<1x10x10x64xf32> to vector<10x10x64xf32>
    %87 = vector.extract_strided_slice %86 {offsets = [0, 0, 0], sizes = [8, 8, 64], strides = [1, 1, 1]} : vector<10x10x64xf32> to vector<8x8x64xf32>
    %88 = vector.shape_cast %87 : vector<8x8x64xf32> to vector<64x64xf32>
    %89 = arith.truncf %88 : vector<64x64xf32> to vector<64x64xbf16>
    %c64_50 = arith.constant 64 : index
    %c0_51 = arith.constant 0 : index
    %90 = vector.load %arg17[%c64_50, %c0_51] : memref<128x576xbf16, #tpu.memory_space<vmem>>, vector<64x64xbf16>
    tpu.vector_store %arg17[%c64_50, %c0_51], %89 {strides = array<i32>} : memref<128x576xbf16, #tpu.memory_space<vmem>>, vector<64x64xbf16>,
    %91 = vector.extract_strided_slice %86 {offsets = [0, 1, 0], sizes = [8, 8, 64], strides = [1, 1, 1]} : vector<10x10x64xf32> to vector<8x8x64xf32>
    %92 = vector.shape_cast %91 : vector<8x8x64xf32> to vector<64x64xf32>
    %93 = arith.truncf %92 : vector<64x64xf32> to vector<64x64xbf16>
    %c64_52 = arith.constant 64 : index
    %c64_53 = arith.constant 64 : index
    %94 = vector.load %arg17[%c64_52, %c64_53] : memref<128x576xbf16, #tpu.memory_space<vmem>>, vector<64x64xbf16>
    tpu.vector_store %arg17[%c64_52, %c64_53], %93 {strides = array<i32>} : memref<128x576xbf16, #tpu.memory_space<vmem>>, vector<64x64xbf16>,
    %95 = vector.extract_strided_slice %86 {offsets = [0, 2, 0], sizes = [8, 8, 64], strides = [1, 1, 1]} : vector<10x10x64xf32> to vector<8x8x64xf32>
    %96 = vector.shape_cast %95 : vector<8x8x64xf32> to vector<64x64xf32>
    %97 = arith.truncf %96 : vector<64x64xf32> to vector<64x64xbf16>
    %c64_54 = arith.constant 64 : index
    %c128_55 = arith.constant 128 : index
    %98 = vector.load %arg17[%c64_54, %c128_55] : memref<128x576xbf16, #tpu.memory_space<vmem>>, vector<64x64xbf16>
    tpu.vector_store %arg17[%c64_54, %c128_55], %97 {strides = array<i32>} : memref<128x576xbf16, #tpu.memory_space<vmem>>, vector<64x64xbf16>,
    %99 = vector.extract_strided_slice %86 {offsets = [1, 0, 0], sizes = [8, 8, 64], strides = [1, 1, 1]} : vector<10x10x64xf32> to vector<8x8x64xf32>
    %100 = vector.shape_cast %99 : vector<8x8x64xf32> to vector<64x64xf32>
    %101 = arith.truncf %100 : vector<64x64xf32> to vector<64x64xbf16>
    %c64_56 = arith.constant 64 : index
    %c192_57 = arith.constant 192 : index
    %102 = vector.load %arg17[%c64_56, %c192_57] : memref<128x576xbf16, #tpu.memory_space<vmem>>, vector<64x64xbf16>
    tpu.vector_store %arg17[%c64_56, %c192_57], %101 {strides = array<i32>} : memref<128x576xbf16, #tpu.memory_space<vmem>>, vector<64x64xbf16>,
    %103 = vector.extract_strided_slice %86 {offsets = [1, 1, 0], sizes = [8, 8, 64], strides = [1, 1, 1]} : vector<10x10x64xf32> to vector<8x8x64xf32>
    %104 = vector.shape_cast %103 : vector<8x8x64xf32> to vector<64x64xf32>
    %105 = arith.truncf %104 : vector<64x64xf32> to vector<64x64xbf16>
    %c64_58 = arith.constant 64 : index
    %c256_59 = arith.constant 256 : index
    %106 = vector.load %arg17[%c64_58, %c256_59] : memref<128x576xbf16, #tpu.memory_space<vmem>>, vector<64x64xbf16>
    tpu.vector_store %arg17[%c64_58, %c256_59], %105 {strides = array<i32>} : memref<128x576xbf16, #tpu.memory_space<vmem>>, vector<64x64xbf16>,
    %107 = vector.extract_strided_slice %86 {offsets = [1, 2, 0], sizes = [8, 8, 64], strides = [1, 1, 1]} : vector<10x10x64xf32> to vector<8x8x64xf32>
    %108 = vector.shape_cast %107 : vector<8x8x64xf32> to vector<64x64xf32>
    %109 = arith.truncf %108 : vector<64x64xf32> to vector<64x64xbf16>
    %c64_60 = arith.constant 64 : index
    %c320_61 = arith.constant 320 : index
    %110 = vector.load %arg17[%c64_60, %c320_61] : memref<128x576xbf16, #tpu.memory_space<vmem>>, vector<64x64xbf16>
    tpu.vector_store %arg17[%c64_60, %c320_61], %109 {strides = array<i32>} : memref<128x576xbf16, #tpu.memory_space<vmem>>, vector<64x64xbf16>,
    %111 = vector.extract_strided_slice %86 {offsets = [2, 0, 0], sizes = [8, 8, 64], strides = [1, 1, 1]} : vector<10x10x64xf32> to vector<8x8x64xf32>
    %112 = vector.shape_cast %111 : vector<8x8x64xf32> to vector<64x64xf32>
    %113 = arith.truncf %112 : vector<64x64xf32> to vector<64x64xbf16>
    %c64_62 = arith.constant 64 : index
    %c384_63 = arith.constant 384 : index
    %114 = vector.load %arg17[%c64_62, %c384_63] : memref<128x576xbf16, #tpu.memory_space<vmem>>, vector<64x64xbf16>
    tpu.vector_store %arg17[%c64_62, %c384_63], %113 {strides = array<i32>} : memref<128x576xbf16, #tpu.memory_space<vmem>>, vector<64x64xbf16>,
    %115 = vector.extract_strided_slice %86 {offsets = [2, 1, 0], sizes = [8, 8, 64], strides = [1, 1, 1]} : vector<10x10x64xf32> to vector<8x8x64xf32>
    %116 = vector.shape_cast %115 : vector<8x8x64xf32> to vector<64x64xf32>
    %117 = arith.truncf %116 : vector<64x64xf32> to vector<64x64xbf16>
    %c64_64 = arith.constant 64 : index
    %c448_65 = arith.constant 448 : index
    %118 = vector.load %arg17[%c64_64, %c448_65] : memref<128x576xbf16, #tpu.memory_space<vmem>>, vector<64x64xbf16>
    tpu.vector_store %arg17[%c64_64, %c448_65], %117 {strides = array<i32>} : memref<128x576xbf16, #tpu.memory_space<vmem>>, vector<64x64xbf16>,
    %119 = vector.extract_strided_slice %86 {offsets = [2, 2, 0], sizes = [8, 8, 64], strides = [1, 1, 1]} : vector<10x10x64xf32> to vector<8x8x64xf32>
    %120 = vector.shape_cast %119 : vector<8x8x64xf32> to vector<64x64xf32>
    %121 = arith.truncf %120 : vector<64x64xf32> to vector<64x64xbf16>
    %c64_66 = arith.constant 64 : index
    %c512_67 = arith.constant 512 : index
    %122 = vector.load %arg17[%c64_66, %c512_67] : memref<128x576xbf16, #tpu.memory_space<vmem>>, vector<64x64xbf16>
    tpu.vector_store %arg17[%c64_66, %c512_67], %121 {strides = array<i32>} : memref<128x576xbf16, #tpu.memory_space<vmem>>, vector<64x64xbf16>,
    %c0_68 = arith.constant 0 : index
    %c0_69 = arith.constant 0 : index
    %123 = vector.load %arg17[%c0_68, %c0_69] : memref<128x576xbf16, #tpu.memory_space<vmem>>, vector<128x576xbf16>
    %c0_70 = arith.constant 0 : index
    %c0_71 = arith.constant 0 : index
    %124 = vector.load %arg5[%c0_70, %c0_71] : memref<576x128xbf16, #tpu.memory_space<vmem>>, vector<576x128xbf16>
    %cst_72 = arith.constant dense<0.000000e+00> : vector<128x128xf32>
    %125 = tpu.matmul %123, %124, %cst_72 {dimension_numbers = #tpu.dot_dimension_numbers<[1], [0], [0], [1], [0, 0, 1, 1], [], []>} : vector<128x576xbf16>, vector<576x128xbf16>, vector<128x128xf32> -> vector<128x128xf32>
    %c0_73 = arith.constant 0 : index
    %c0_74 = arith.constant 0 : index
    %126 = vector.load %arg6[%c0_73, %c0_74] : memref<1x128xf32, #tpu.memory_space<vmem>>, vector<1x128xf32>
    %127 = vector.broadcast %126 : vector<1x128xf32> to vector<128x128xf32>
    %128 = arith.mulf %125, %127 : vector<128x128xf32>
    %c0_75 = arith.constant 0 : index
    %c0_76 = arith.constant 0 : index
    %129 = vector.load %arg7[%c0_75, %c0_76] : memref<1x128xf32, #tpu.memory_space<vmem>>, vector<1x128xf32>
    %130 = vector.broadcast %129 : vector<1x128xf32> to vector<128x128xf32>
    %131 = arith.addf %128, %130 : vector<128x128xf32>
    %cst_77 = arith.constant 0.000000e+00 : f32
    %132 = vector.broadcast %cst_77 : f32 to vector<128x128xf32>
    %133 = arith.maximumf %131, %132 : vector<128x128xf32>
    %cst_78 = arith.constant 0.000000e+00 : f32
    %134 = vector.broadcast %cst_78 : f32 to vector<2x1x6x128xf32>
    %cst_79 = arith.constant 0.000000e+00 : f32
    %135 = vector.broadcast %cst_79 : f32 to vector<2x6x1x128xf32>
    %c0_80 = arith.constant 0 : index
    %c0_81 = arith.constant 0 : index
    %c0_82 = arith.constant 0 : index
    %c0_83 = arith.constant 0 : index
    %136 = vector.load %arg18[%c0_80, %c0_81, %c0_82, %c0_83] : memref<2x6x6x128xf32, #tpu.memory_space<vmem>>, vector<2x1x6x128xf32>
    tpu.vector_store %arg18[%c0_80, %c0_81, %c0_82, %c0_83], %134 {strides = array<i32>} : memref<2x6x6x128xf32, #tpu.memory_space<vmem>>, vector<2x1x6x128xf32>,
    %c0_84 = arith.constant 0 : index
    %c5 = arith.constant 5 : index
    %c0_85 = arith.constant 0 : index
    %c0_86 = arith.constant 0 : index
    %137 = vector.load %arg18[%c0_84, %c5, %c0_85, %c0_86] : memref<2x6x6x128xf32, #tpu.memory_space<vmem>>, vector<2x1x6x128xf32>
    tpu.vector_store %arg18[%c0_84, %c5, %c0_85, %c0_86], %134 {strides = array<i32>} : memref<2x6x6x128xf32, #tpu.memory_space<vmem>>, vector<2x1x6x128xf32>,
    %c0_87 = arith.constant 0 : index
    %c0_88 = arith.constant 0 : index
    %c0_89 = arith.constant 0 : index
    %c0_90 = arith.constant 0 : index
    %138 = vector.load %arg18[%c0_87, %c0_88, %c0_89, %c0_90] : memref<2x6x6x128xf32, #tpu.memory_space<vmem>>, vector<2x6x1x128xf32>
    tpu.vector_store %arg18[%c0_87, %c0_88, %c0_89, %c0_90], %135 {strides = array<i32>} : memref<2x6x6x128xf32, #tpu.memory_space<vmem>>, vector<2x6x1x128xf32>,
    %c0_91 = arith.constant 0 : index
    %c0_92 = arith.constant 0 : index
    %c5_93 = arith.constant 5 : index
    %c0_94 = arith.constant 0 : index
    %139 = vector.load %arg18[%c0_91, %c0_92, %c5_93, %c0_94] : memref<2x6x6x128xf32, #tpu.memory_space<vmem>>, vector<2x6x1x128xf32>
    tpu.vector_store %arg18[%c0_91, %c0_92, %c5_93, %c0_94], %135 {strides = array<i32>} : memref<2x6x6x128xf32, #tpu.memory_space<vmem>>, vector<2x6x1x128xf32>,
    %140 = vector.extract_strided_slice %133 {offsets = [0, 0], sizes = [64, 128], strides = [1, 1]} : vector<128x128xf32> to vector<64x128xf32>
    %141 = vector.shape_cast %140 : vector<64x128xf32> to vector<4x2x8x128xf32>
    %142 = vector.extract_strided_slice %141 {offsets = [0, 0, 0, 0], sizes = [4, 1, 8, 128], strides = [1, 1, 1, 1]} : vector<4x2x8x128xf32> to vector<4x1x8x128xf32>
    %143 = vector.shape_cast %142 : vector<4x1x8x128xf32> to vector<4x8x128xf32>
    %144 = vector.extract_strided_slice %141 {offsets = [0, 1, 0, 0], sizes = [4, 1, 8, 128], strides = [1, 1, 1, 1]} : vector<4x2x8x128xf32> to vector<4x1x8x128xf32>
    %145 = vector.shape_cast %144 : vector<4x1x8x128xf32> to vector<4x8x128xf32>
    %146 = arith.maximumf %143, %145 : vector<4x8x128xf32>
    %147 = vector.shape_cast %146 : vector<4x8x128xf32> to vector<4x4x2x128xf32>
    %148 = vector.extract_strided_slice %147 {offsets = [0, 0, 0, 0], sizes = [4, 4, 1, 128], strides = [1, 1, 1, 1]} : vector<4x4x2x128xf32> to vector<4x4x1x128xf32>
    %149 = vector.shape_cast %148 : vector<4x4x1x128xf32> to vector<4x4x128xf32>
    %150 = vector.extract_strided_slice %147 {offsets = [0, 0, 1, 0], sizes = [4, 4, 1, 128], strides = [1, 1, 1, 1]} : vector<4x4x2x128xf32> to vector<4x4x1x128xf32>
    %151 = vector.shape_cast %150 : vector<4x4x1x128xf32> to vector<4x4x128xf32>
    %152 = arith.maximumf %149, %151 : vector<4x4x128xf32>
    %153 = vector.shape_cast %152 : vector<4x4x128xf32> to vector<1x4x4x128xf32>
    %c0_95 = arith.constant 0 : index
    %c1_96 = arith.constant 1 : index
    %c1_97 = arith.constant 1 : index
    %c0_98 = arith.constant 0 : index
    %154 = vector.load %arg18[%c0_95, %c1_96, %c1_97, %c0_98] : memref<2x6x6x128xf32, #tpu.memory_space<vmem>>, vector<1x4x4x128xf32>
    tpu.vector_store %arg18[%c0_95, %c1_96, %c1_97, %c0_98], %153 {strides = array<i32>} : memref<2x6x6x128xf32, #tpu.memory_space<vmem>>, vector<1x4x4x128xf32>,
    %155 = vector.extract_strided_slice %133 {offsets = [64, 0], sizes = [64, 128], strides = [1, 1]} : vector<128x128xf32> to vector<64x128xf32>
    %156 = vector.shape_cast %155 : vector<64x128xf32> to vector<4x2x8x128xf32>
    %157 = vector.extract_strided_slice %156 {offsets = [0, 0, 0, 0], sizes = [4, 1, 8, 128], strides = [1, 1, 1, 1]} : vector<4x2x8x128xf32> to vector<4x1x8x128xf32>
    %158 = vector.shape_cast %157 : vector<4x1x8x128xf32> to vector<4x8x128xf32>
    %159 = vector.extract_strided_slice %156 {offsets = [0, 1, 0, 0], sizes = [4, 1, 8, 128], strides = [1, 1, 1, 1]} : vector<4x2x8x128xf32> to vector<4x1x8x128xf32>
    %160 = vector.shape_cast %159 : vector<4x1x8x128xf32> to vector<4x8x128xf32>
    %161 = arith.maximumf %158, %160 : vector<4x8x128xf32>
    %162 = vector.shape_cast %161 : vector<4x8x128xf32> to vector<4x4x2x128xf32>
    %163 = vector.extract_strided_slice %162 {offsets = [0, 0, 0, 0], sizes = [4, 4, 1, 128], strides = [1, 1, 1, 1]} : vector<4x4x2x128xf32> to vector<4x4x1x128xf32>
    %164 = vector.shape_cast %163 : vector<4x4x1x128xf32> to vector<4x4x128xf32>
    %165 = vector.extract_strided_slice %162 {offsets = [0, 0, 1, 0], sizes = [4, 4, 1, 128], strides = [1, 1, 1, 1]} : vector<4x4x2x128xf32> to vector<4x4x1x128xf32>
    %166 = vector.shape_cast %165 : vector<4x4x1x128xf32> to vector<4x4x128xf32>
    %167 = arith.maximumf %164, %166 : vector<4x4x128xf32>
    %168 = vector.shape_cast %167 : vector<4x4x128xf32> to vector<1x4x4x128xf32>
    %c1_99 = arith.constant 1 : index
    %c1_100 = arith.constant 1 : index
    %c1_101 = arith.constant 1 : index
    %c0_102 = arith.constant 0 : index
    %169 = vector.load %arg18[%c1_99, %c1_100, %c1_101, %c0_102] : memref<2x6x6x128xf32, #tpu.memory_space<vmem>>, vector<1x4x4x128xf32>
    tpu.vector_store %arg18[%c1_99, %c1_100, %c1_101, %c0_102], %168 {strides = array<i32>} : memref<2x6x6x128xf32, #tpu.memory_space<vmem>>, vector<1x4x4x128xf32>,
    %c0_103 = arith.constant 0 : index
    %c0_104 = arith.constant 0 : index
    %c0_105 = arith.constant 0 : index
    %c0_106 = arith.constant 0 : index
    %170 = vector.load %arg18[%c0_103, %c0_104, %c0_105, %c0_106] : memref<2x6x6x128xf32, #tpu.memory_space<vmem>>, vector<1x6x6x128xf32>
    %171 = vector.shape_cast %170 : vector<1x6x6x128xf32> to vector<6x6x128xf32>
    %172 = vector.extract_strided_slice %171 {offsets = [0, 0, 0], sizes = [4, 4, 128], strides = [1, 1, 1]} : vector<6x6x128xf32> to vector<4x4x128xf32>
    %173 = vector.shape_cast %172 : vector<4x4x128xf32> to vector<16x128xf32>
    %174 = arith.truncf %173 : vector<16x128xf32> to vector<16x128xbf16>
    %c0_107 = arith.constant 0 : index
    %c0_108 = arith.constant 0 : index
    %175 = vector.load %arg19[%c0_107, %c0_108] : memref<32x1152xbf16, #tpu.memory_space<vmem>>, vector<16x128xbf16>
    tpu.vector_store %arg19[%c0_107, %c0_108], %174 {strides = array<i32>} : memref<32x1152xbf16, #tpu.memory_space<vmem>>, vector<16x128xbf16>,
    %176 = vector.extract_strided_slice %171 {offsets = [0, 1, 0], sizes = [4, 4, 128], strides = [1, 1, 1]} : vector<6x6x128xf32> to vector<4x4x128xf32>
    %177 = vector.shape_cast %176 : vector<4x4x128xf32> to vector<16x128xf32>
    %178 = arith.truncf %177 : vector<16x128xf32> to vector<16x128xbf16>
    %c0_109 = arith.constant 0 : index
    %c128_110 = arith.constant 128 : index
    %179 = vector.load %arg19[%c0_109, %c128_110] : memref<32x1152xbf16, #tpu.memory_space<vmem>>, vector<16x128xbf16>
    tpu.vector_store %arg19[%c0_109, %c128_110], %178 {strides = array<i32>} : memref<32x1152xbf16, #tpu.memory_space<vmem>>, vector<16x128xbf16>,
    %180 = vector.extract_strided_slice %171 {offsets = [0, 2, 0], sizes = [4, 4, 128], strides = [1, 1, 1]} : vector<6x6x128xf32> to vector<4x4x128xf32>
    %181 = vector.shape_cast %180 : vector<4x4x128xf32> to vector<16x128xf32>
    %182 = arith.truncf %181 : vector<16x128xf32> to vector<16x128xbf16>
    %c0_111 = arith.constant 0 : index
    %c256_112 = arith.constant 256 : index
    %183 = vector.load %arg19[%c0_111, %c256_112] : memref<32x1152xbf16, #tpu.memory_space<vmem>>, vector<16x128xbf16>
    tpu.vector_store %arg19[%c0_111, %c256_112], %182 {strides = array<i32>} : memref<32x1152xbf16, #tpu.memory_space<vmem>>, vector<16x128xbf16>,
    %184 = vector.extract_strided_slice %171 {offsets = [1, 0, 0], sizes = [4, 4, 128], strides = [1, 1, 1]} : vector<6x6x128xf32> to vector<4x4x128xf32>
    %185 = vector.shape_cast %184 : vector<4x4x128xf32> to vector<16x128xf32>
    %186 = arith.truncf %185 : vector<16x128xf32> to vector<16x128xbf16>
    %c0_113 = arith.constant 0 : index
    %c384_114 = arith.constant 384 : index
    %187 = vector.load %arg19[%c0_113, %c384_114] : memref<32x1152xbf16, #tpu.memory_space<vmem>>, vector<16x128xbf16>
    tpu.vector_store %arg19[%c0_113, %c384_114], %186 {strides = array<i32>} : memref<32x1152xbf16, #tpu.memory_space<vmem>>, vector<16x128xbf16>,
    %188 = vector.extract_strided_slice %171 {offsets = [1, 1, 0], sizes = [4, 4, 128], strides = [1, 1, 1]} : vector<6x6x128xf32> to vector<4x4x128xf32>
    %189 = vector.shape_cast %188 : vector<4x4x128xf32> to vector<16x128xf32>
    %190 = arith.truncf %189 : vector<16x128xf32> to vector<16x128xbf16>
    %c0_115 = arith.constant 0 : index
    %c512_116 = arith.constant 512 : index
    %191 = vector.load %arg19[%c0_115, %c512_116] : memref<32x1152xbf16, #tpu.memory_space<vmem>>, vector<16x128xbf16>
    tpu.vector_store %arg19[%c0_115, %c512_116], %190 {strides = array<i32>} : memref<32x1152xbf16, #tpu.memory_space<vmem>>, vector<16x128xbf16>,
    %192 = vector.extract_strided_slice %171 {offsets = [1, 2, 0], sizes = [4, 4, 128], strides = [1, 1, 1]} : vector<6x6x128xf32> to vector<4x4x128xf32>
    %193 = vector.shape_cast %192 : vector<4x4x128xf32> to vector<16x128xf32>
    %194 = arith.truncf %193 : vector<16x128xf32> to vector<16x128xbf16>
    %c0_117 = arith.constant 0 : index
    %c640 = arith.constant 640 : index
    %195 = vector.load %arg19[%c0_117, %c640] : memref<32x1152xbf16, #tpu.memory_space<vmem>>, vector<16x128xbf16>
    tpu.vector_store %arg19[%c0_117, %c640], %194 {strides = array<i32>} : memref<32x1152xbf16, #tpu.memory_space<vmem>>, vector<16x128xbf16>,
    %196 = vector.extract_strided_slice %171 {offsets = [2, 0, 0], sizes = [4, 4, 128], strides = [1, 1, 1]} : vector<6x6x128xf32> to vector<4x4x128xf32>
    %197 = vector.shape_cast %196 : vector<4x4x128xf32> to vector<16x128xf32>
    %198 = arith.truncf %197 : vector<16x128xf32> to vector<16x128xbf16>
    %c0_118 = arith.constant 0 : index
    %c768 = arith.constant 768 : index
    %199 = vector.load %arg19[%c0_118, %c768] : memref<32x1152xbf16, #tpu.memory_space<vmem>>, vector<16x128xbf16>
    tpu.vector_store %arg19[%c0_118, %c768], %198 {strides = array<i32>} : memref<32x1152xbf16, #tpu.memory_space<vmem>>, vector<16x128xbf16>,
    %200 = vector.extract_strided_slice %171 {offsets = [2, 1, 0], sizes = [4, 4, 128], strides = [1, 1, 1]} : vector<6x6x128xf32> to vector<4x4x128xf32>
    %201 = vector.shape_cast %200 : vector<4x4x128xf32> to vector<16x128xf32>
    %202 = arith.truncf %201 : vector<16x128xf32> to vector<16x128xbf16>
    %c0_119 = arith.constant 0 : index
    %c896 = arith.constant 896 : index
    %203 = vector.load %arg19[%c0_119, %c896] : memref<32x1152xbf16, #tpu.memory_space<vmem>>, vector<16x128xbf16>
    tpu.vector_store %arg19[%c0_119, %c896], %202 {strides = array<i32>} : memref<32x1152xbf16, #tpu.memory_space<vmem>>, vector<16x128xbf16>,
    %204 = vector.extract_strided_slice %171 {offsets = [2, 2, 0], sizes = [4, 4, 128], strides = [1, 1, 1]} : vector<6x6x128xf32> to vector<4x4x128xf32>
    %205 = vector.shape_cast %204 : vector<4x4x128xf32> to vector<16x128xf32>
    %206 = arith.truncf %205 : vector<16x128xf32> to vector<16x128xbf16>
    %c0_120 = arith.constant 0 : index
    %c1024 = arith.constant 1024 : index
    %207 = vector.load %arg19[%c0_120, %c1024] : memref<32x1152xbf16, #tpu.memory_space<vmem>>, vector<16x128xbf16>
    tpu.vector_store %arg19[%c0_120, %c1024], %206 {strides = array<i32>} : memref<32x1152xbf16, #tpu.memory_space<vmem>>, vector<16x128xbf16>,
    %c1_121 = arith.constant 1 : index
    %c0_122 = arith.constant 0 : index
    %c0_123 = arith.constant 0 : index
    %c0_124 = arith.constant 0 : index
    %208 = vector.load %arg18[%c1_121, %c0_122, %c0_123, %c0_124] : memref<2x6x6x128xf32, #tpu.memory_space<vmem>>, vector<1x6x6x128xf32>
    %209 = vector.shape_cast %208 : vector<1x6x6x128xf32> to vector<6x6x128xf32>
    %210 = vector.extract_strided_slice %209 {offsets = [0, 0, 0], sizes = [4, 4, 128], strides = [1, 1, 1]} : vector<6x6x128xf32> to vector<4x4x128xf32>
    %211 = vector.shape_cast %210 : vector<4x4x128xf32> to vector<16x128xf32>
    %212 = arith.truncf %211 : vector<16x128xf32> to vector<16x128xbf16>
    %c16 = arith.constant 16 : index
    %c0_125 = arith.constant 0 : index
    %213 = vector.load %arg19[%c16, %c0_125] : memref<32x1152xbf16, #tpu.memory_space<vmem>>, vector<16x128xbf16>
    tpu.vector_store %arg19[%c16, %c0_125], %212 {strides = array<i32>} : memref<32x1152xbf16, #tpu.memory_space<vmem>>, vector<16x128xbf16>,
    %214 = vector.extract_strided_slice %209 {offsets = [0, 1, 0], sizes = [4, 4, 128], strides = [1, 1, 1]} : vector<6x6x128xf32> to vector<4x4x128xf32>
    %215 = vector.shape_cast %214 : vector<4x4x128xf32> to vector<16x128xf32>
    %216 = arith.truncf %215 : vector<16x128xf32> to vector<16x128xbf16>
    %c16_126 = arith.constant 16 : index
    %c128_127 = arith.constant 128 : index
    %217 = vector.load %arg19[%c16_126, %c128_127] : memref<32x1152xbf16, #tpu.memory_space<vmem>>, vector<16x128xbf16>
    tpu.vector_store %arg19[%c16_126, %c128_127], %216 {strides = array<i32>} : memref<32x1152xbf16, #tpu.memory_space<vmem>>, vector<16x128xbf16>,
    %218 = vector.extract_strided_slice %209 {offsets = [0, 2, 0], sizes = [4, 4, 128], strides = [1, 1, 1]} : vector<6x6x128xf32> to vector<4x4x128xf32>
    %219 = vector.shape_cast %218 : vector<4x4x128xf32> to vector<16x128xf32>
    %220 = arith.truncf %219 : vector<16x128xf32> to vector<16x128xbf16>
    %c16_128 = arith.constant 16 : index
    %c256_129 = arith.constant 256 : index
    %221 = vector.load %arg19[%c16_128, %c256_129] : memref<32x1152xbf16, #tpu.memory_space<vmem>>, vector<16x128xbf16>
    tpu.vector_store %arg19[%c16_128, %c256_129], %220 {strides = array<i32>} : memref<32x1152xbf16, #tpu.memory_space<vmem>>, vector<16x128xbf16>,
    %222 = vector.extract_strided_slice %209 {offsets = [1, 0, 0], sizes = [4, 4, 128], strides = [1, 1, 1]} : vector<6x6x128xf32> to vector<4x4x128xf32>
    %223 = vector.shape_cast %222 : vector<4x4x128xf32> to vector<16x128xf32>
    %224 = arith.truncf %223 : vector<16x128xf32> to vector<16x128xbf16>
    %c16_130 = arith.constant 16 : index
    %c384_131 = arith.constant 384 : index
    %225 = vector.load %arg19[%c16_130, %c384_131] : memref<32x1152xbf16, #tpu.memory_space<vmem>>, vector<16x128xbf16>
    tpu.vector_store %arg19[%c16_130, %c384_131], %224 {strides = array<i32>} : memref<32x1152xbf16, #tpu.memory_space<vmem>>, vector<16x128xbf16>,
    %226 = vector.extract_strided_slice %209 {offsets = [1, 1, 0], sizes = [4, 4, 128], strides = [1, 1, 1]} : vector<6x6x128xf32> to vector<4x4x128xf32>
    %227 = vector.shape_cast %226 : vector<4x4x128xf32> to vector<16x128xf32>
    %228 = arith.truncf %227 : vector<16x128xf32> to vector<16x128xbf16>
    %c16_132 = arith.constant 16 : index
    %c512_133 = arith.constant 512 : index
    %229 = vector.load %arg19[%c16_132, %c512_133] : memref<32x1152xbf16, #tpu.memory_space<vmem>>, vector<16x128xbf16>
    tpu.vector_store %arg19[%c16_132, %c512_133], %228 {strides = array<i32>} : memref<32x1152xbf16, #tpu.memory_space<vmem>>, vector<16x128xbf16>,
    %230 = vector.extract_strided_slice %209 {offsets = [1, 2, 0], sizes = [4, 4, 128], strides = [1, 1, 1]} : vector<6x6x128xf32> to vector<4x4x128xf32>
    %231 = vector.shape_cast %230 : vector<4x4x128xf32> to vector<16x128xf32>
    %232 = arith.truncf %231 : vector<16x128xf32> to vector<16x128xbf16>
    %c16_134 = arith.constant 16 : index
    %c640_135 = arith.constant 640 : index
    %233 = vector.load %arg19[%c16_134, %c640_135] : memref<32x1152xbf16, #tpu.memory_space<vmem>>, vector<16x128xbf16>
    tpu.vector_store %arg19[%c16_134, %c640_135], %232 {strides = array<i32>} : memref<32x1152xbf16, #tpu.memory_space<vmem>>, vector<16x128xbf16>,
    %234 = vector.extract_strided_slice %209 {offsets = [2, 0, 0], sizes = [4, 4, 128], strides = [1, 1, 1]} : vector<6x6x128xf32> to vector<4x4x128xf32>
    %235 = vector.shape_cast %234 : vector<4x4x128xf32> to vector<16x128xf32>
    %236 = arith.truncf %235 : vector<16x128xf32> to vector<16x128xbf16>
    %c16_136 = arith.constant 16 : index
    %c768_137 = arith.constant 768 : index
    %237 = vector.load %arg19[%c16_136, %c768_137] : memref<32x1152xbf16, #tpu.memory_space<vmem>>, vector<16x128xbf16>
    tpu.vector_store %arg19[%c16_136, %c768_137], %236 {strides = array<i32>} : memref<32x1152xbf16, #tpu.memory_space<vmem>>, vector<16x128xbf16>,
    %238 = vector.extract_strided_slice %209 {offsets = [2, 1, 0], sizes = [4, 4, 128], strides = [1, 1, 1]} : vector<6x6x128xf32> to vector<4x4x128xf32>
    %239 = vector.shape_cast %238 : vector<4x4x128xf32> to vector<16x128xf32>
    %240 = arith.truncf %239 : vector<16x128xf32> to vector<16x128xbf16>
    %c16_138 = arith.constant 16 : index
    %c896_139 = arith.constant 896 : index
    %241 = vector.load %arg19[%c16_138, %c896_139] : memref<32x1152xbf16, #tpu.memory_space<vmem>>, vector<16x128xbf16>
    tpu.vector_store %arg19[%c16_138, %c896_139], %240 {strides = array<i32>} : memref<32x1152xbf16, #tpu.memory_space<vmem>>, vector<16x128xbf16>,
    %242 = vector.extract_strided_slice %209 {offsets = [2, 2, 0], sizes = [4, 4, 128], strides = [1, 1, 1]} : vector<6x6x128xf32> to vector<4x4x128xf32>
    %243 = vector.shape_cast %242 : vector<4x4x128xf32> to vector<16x128xf32>
    %244 = arith.truncf %243 : vector<16x128xf32> to vector<16x128xbf16>
    %c16_140 = arith.constant 16 : index
    %c1024_141 = arith.constant 1024 : index
    %245 = vector.load %arg19[%c16_140, %c1024_141] : memref<32x1152xbf16, #tpu.memory_space<vmem>>, vector<16x128xbf16>
    tpu.vector_store %arg19[%c16_140, %c1024_141], %244 {strides = array<i32>} : memref<32x1152xbf16, #tpu.memory_space<vmem>>, vector<16x128xbf16>,
    %c0_142 = arith.constant 0 : index
    %c0_143 = arith.constant 0 : index
    %246 = vector.load %arg19[%c0_142, %c0_143] : memref<32x1152xbf16, #tpu.memory_space<vmem>>, vector<32x1152xbf16>
    %c0_144 = arith.constant 0 : index
    %c0_145 = arith.constant 0 : index
    %247 = vector.load %arg8[%c0_144, %c0_145] : memref<1152x256xbf16, #tpu.memory_space<vmem>>, vector<1152x256xbf16>
    %cst_146 = arith.constant dense<0.000000e+00> : vector<32x256xf32>
    %248 = tpu.matmul %246, %247, %cst_146 {dimension_numbers = #tpu.dot_dimension_numbers<[1], [0], [0], [1], [0, 0, 1, 1], [], []>} : vector<32x1152xbf16>, vector<1152x256xbf16>, vector<32x256xf32> -> vector<32x256xf32>
    %c0_147 = arith.constant 0 : index
    %c0_148 = arith.constant 0 : index
    %249 = vector.load %arg9[%c0_147, %c0_148] : memref<1x256xf32, #tpu.memory_space<vmem>>, vector<1x256xf32>
    %250 = vector.broadcast %249 : vector<1x256xf32> to vector<32x256xf32>
    %251 = arith.mulf %248, %250 : vector<32x256xf32>
    %c0_149 = arith.constant 0 : index
    %c0_150 = arith.constant 0 : index
    %252 = vector.load %arg10[%c0_149, %c0_150] : memref<1x256xf32, #tpu.memory_space<vmem>>, vector<1x256xf32>
    %253 = vector.broadcast %252 : vector<1x256xf32> to vector<32x256xf32>
    %254 = arith.addf %251, %253 : vector<32x256xf32>
    %cst_151 = arith.constant 0.000000e+00 : f32
    %255 = vector.broadcast %cst_151 : f32 to vector<32x256xf32>
    %256 = arith.maximumf %254, %255 : vector<32x256xf32>
    %257 = vector.extract_strided_slice %256 {offsets = [0, 0], sizes = [16, 256], strides = [1, 1]} : vector<32x256xf32> to vector<16x256xf32>
    %258 = vector.shape_cast %257 : vector<16x256xf32> to vector<2x2x4x256xf32>
    %259 = vector.extract_strided_slice %258 {offsets = [0, 0, 0, 0], sizes = [2, 1, 4, 256], strides = [1, 1, 1, 1]} : vector<2x2x4x256xf32> to vector<2x1x4x256xf32>
    %260 = vector.shape_cast %259 : vector<2x1x4x256xf32> to vector<2x4x256xf32>
    %261 = vector.extract_strided_slice %258 {offsets = [0, 1, 0, 0], sizes = [2, 1, 4, 256], strides = [1, 1, 1, 1]} : vector<2x2x4x256xf32> to vector<2x1x4x256xf32>
    %262 = vector.shape_cast %261 : vector<2x1x4x256xf32> to vector<2x4x256xf32>
    %263 = arith.maximumf %260, %262 : vector<2x4x256xf32>
    %264 = vector.shape_cast %263 : vector<2x4x256xf32> to vector<2x2x2x256xf32>
    %265 = vector.extract_strided_slice %264 {offsets = [0, 0, 0, 0], sizes = [2, 2, 1, 256], strides = [1, 1, 1, 1]} : vector<2x2x2x256xf32> to vector<2x2x1x256xf32>
    %266 = vector.shape_cast %265 : vector<2x2x1x256xf32> to vector<2x2x256xf32>
    %267 = vector.extract_strided_slice %264 {offsets = [0, 0, 1, 0], sizes = [2, 2, 1, 256], strides = [1, 1, 1, 1]} : vector<2x2x2x256xf32> to vector<2x2x1x256xf32>
    %268 = vector.shape_cast %267 : vector<2x2x1x256xf32> to vector<2x2x256xf32>
    %269 = arith.maximumf %266, %268 : vector<2x2x256xf32>
    %270 = vector.shape_cast %269 : vector<2x2x256xf32> to vector<4x256xf32>
    %271 = vector.extract_strided_slice %270 {offsets = [0, 0], sizes = [1, 256], strides = [1, 1]} : vector<4x256xf32> to vector<1x256xf32>
    %c0_152 = arith.constant 0 : index
    %c0_153 = arith.constant 0 : index
    %272 = vector.load %arg20[%c0_152, %c0_153] : memref<2x1024xf32, #tpu.memory_space<vmem>>, vector<1x256xf32>
    tpu.vector_store %arg20[%c0_152, %c0_153], %271 {strides = array<i32>} : memref<2x1024xf32, #tpu.memory_space<vmem>>, vector<1x256xf32>,
    %273 = vector.extract_strided_slice %270 {offsets = [1, 0], sizes = [1, 256], strides = [1, 1]} : vector<4x256xf32> to vector<1x256xf32>
    %c0_154 = arith.constant 0 : index
    %c256_155 = arith.constant 256 : index
    %274 = vector.load %arg20[%c0_154, %c256_155] : memref<2x1024xf32, #tpu.memory_space<vmem>>, vector<1x256xf32>
    tpu.vector_store %arg20[%c0_154, %c256_155], %273 {strides = array<i32>} : memref<2x1024xf32, #tpu.memory_space<vmem>>, vector<1x256xf32>,
    %275 = vector.extract_strided_slice %270 {offsets = [2, 0], sizes = [1, 256], strides = [1, 1]} : vector<4x256xf32> to vector<1x256xf32>
    %c0_156 = arith.constant 0 : index
    %c512_157 = arith.constant 512 : index
    %276 = vector.load %arg20[%c0_156, %c512_157] : memref<2x1024xf32, #tpu.memory_space<vmem>>, vector<1x256xf32>
    tpu.vector_store %arg20[%c0_156, %c512_157], %275 {strides = array<i32>} : memref<2x1024xf32, #tpu.memory_space<vmem>>, vector<1x256xf32>,
    %277 = vector.extract_strided_slice %270 {offsets = [3, 0], sizes = [1, 256], strides = [1, 1]} : vector<4x256xf32> to vector<1x256xf32>
    %c0_158 = arith.constant 0 : index
    %c768_159 = arith.constant 768 : index
    %278 = vector.load %arg20[%c0_158, %c768_159] : memref<2x1024xf32, #tpu.memory_space<vmem>>, vector<1x256xf32>
    tpu.vector_store %arg20[%c0_158, %c768_159], %277 {strides = array<i32>} : memref<2x1024xf32, #tpu.memory_space<vmem>>, vector<1x256xf32>,
    %279 = vector.extract_strided_slice %256 {offsets = [16, 0], sizes = [16, 256], strides = [1, 1]} : vector<32x256xf32> to vector<16x256xf32>
    %280 = vector.shape_cast %279 : vector<16x256xf32> to vector<2x2x4x256xf32>
    %281 = vector.extract_strided_slice %280 {offsets = [0, 0, 0, 0], sizes = [2, 1, 4, 256], strides = [1, 1, 1, 1]} : vector<2x2x4x256xf32> to vector<2x1x4x256xf32>
    %282 = vector.shape_cast %281 : vector<2x1x4x256xf32> to vector<2x4x256xf32>
    %283 = vector.extract_strided_slice %280 {offsets = [0, 1, 0, 0], sizes = [2, 1, 4, 256], strides = [1, 1, 1, 1]} : vector<2x2x4x256xf32> to vector<2x1x4x256xf32>
    %284 = vector.shape_cast %283 : vector<2x1x4x256xf32> to vector<2x4x256xf32>
    %285 = arith.maximumf %282, %284 : vector<2x4x256xf32>
    %286 = vector.shape_cast %285 : vector<2x4x256xf32> to vector<2x2x2x256xf32>
    %287 = vector.extract_strided_slice %286 {offsets = [0, 0, 0, 0], sizes = [2, 2, 1, 256], strides = [1, 1, 1, 1]} : vector<2x2x2x256xf32> to vector<2x2x1x256xf32>
    %288 = vector.shape_cast %287 : vector<2x2x1x256xf32> to vector<2x2x256xf32>
    %289 = vector.extract_strided_slice %286 {offsets = [0, 0, 1, 0], sizes = [2, 2, 1, 256], strides = [1, 1, 1, 1]} : vector<2x2x2x256xf32> to vector<2x2x1x256xf32>
    %290 = vector.shape_cast %289 : vector<2x2x1x256xf32> to vector<2x2x256xf32>
    %291 = arith.maximumf %288, %290 : vector<2x2x256xf32>
    %292 = vector.shape_cast %291 : vector<2x2x256xf32> to vector<4x256xf32>
    %293 = vector.extract_strided_slice %292 {offsets = [0, 0], sizes = [1, 256], strides = [1, 1]} : vector<4x256xf32> to vector<1x256xf32>
    %c1_160 = arith.constant 1 : index
    %c0_161 = arith.constant 0 : index
    %294 = vector.load %arg20[%c1_160, %c0_161] : memref<2x1024xf32, #tpu.memory_space<vmem>>, vector<1x256xf32>
    tpu.vector_store %arg20[%c1_160, %c0_161], %293 {strides = array<i32>} : memref<2x1024xf32, #tpu.memory_space<vmem>>, vector<1x256xf32>,
    %295 = vector.extract_strided_slice %292 {offsets = [1, 0], sizes = [1, 256], strides = [1, 1]} : vector<4x256xf32> to vector<1x256xf32>
    %c1_162 = arith.constant 1 : index
    %c256_163 = arith.constant 256 : index
    %296 = vector.load %arg20[%c1_162, %c256_163] : memref<2x1024xf32, #tpu.memory_space<vmem>>, vector<1x256xf32>
    tpu.vector_store %arg20[%c1_162, %c256_163], %295 {strides = array<i32>} : memref<2x1024xf32, #tpu.memory_space<vmem>>, vector<1x256xf32>,
    %297 = vector.extract_strided_slice %292 {offsets = [2, 0], sizes = [1, 256], strides = [1, 1]} : vector<4x256xf32> to vector<1x256xf32>
    %c1_164 = arith.constant 1 : index
    %c512_165 = arith.constant 512 : index
    %298 = vector.load %arg20[%c1_164, %c512_165] : memref<2x1024xf32, #tpu.memory_space<vmem>>, vector<1x256xf32>
    tpu.vector_store %arg20[%c1_164, %c512_165], %297 {strides = array<i32>} : memref<2x1024xf32, #tpu.memory_space<vmem>>, vector<1x256xf32>,
    %299 = vector.extract_strided_slice %292 {offsets = [3, 0], sizes = [1, 256], strides = [1, 1]} : vector<4x256xf32> to vector<1x256xf32>
    %c1_166 = arith.constant 1 : index
    %c768_167 = arith.constant 768 : index
    %300 = vector.load %arg20[%c1_166, %c768_167] : memref<2x1024xf32, #tpu.memory_space<vmem>>, vector<1x256xf32>
    tpu.vector_store %arg20[%c1_166, %c768_167], %299 {strides = array<i32>} : memref<2x1024xf32, #tpu.memory_space<vmem>>, vector<1x256xf32>,
    %c0_168 = arith.constant 0 : index
    %c0_169 = arith.constant 0 : index
    %301 = vector.load %arg20[%c0_168, %c0_169] : memref<2x1024xf32, #tpu.memory_space<vmem>>, vector<2x1024xf32>
    %302 = arith.truncf %301 : vector<2x1024xf32> to vector<2x1024xbf16>
    %c0_170 = arith.constant 0 : index
    %c0_171 = arith.constant 0 : index
    %303 = vector.load %arg11[%c0_170, %c0_171] : memref<1024x512xbf16, #tpu.memory_space<vmem>>, vector<1024x512xbf16>
    %cst_172 = arith.constant dense<0.000000e+00> : vector<2x512xf32>
    %304 = tpu.matmul %302, %303, %cst_172 {dimension_numbers = #tpu.dot_dimension_numbers<[1], [0], [0], [1], [0, 0, 1, 1], [], []>} : vector<2x1024xbf16>, vector<1024x512xbf16>, vector<2x512xf32> -> vector<2x512xf32>
    %c0_173 = arith.constant 0 : index
    %c0_174 = arith.constant 0 : index
    %305 = vector.load %arg12[%c0_173, %c0_174] : memref<1x512xf32, #tpu.memory_space<vmem>>, vector<1x512xf32>
    %306 = vector.broadcast %305 : vector<1x512xf32> to vector<2x512xf32>
    %307 = arith.addf %304, %306 : vector<2x512xf32>
    %cst_175 = arith.constant 0.000000e+00 : f32
    %308 = vector.broadcast %cst_175 : f32 to vector<2x512xf32>
    %309 = arith.maximumf %307, %308 : vector<2x512xf32>
    %310 = arith.truncf %309 : vector<2x512xf32> to vector<2x512xbf16>
    %c0_176 = arith.constant 0 : index
    %c0_177 = arith.constant 0 : index
    %311 = vector.load %arg13[%c0_176, %c0_177] : memref<512x128xbf16, #tpu.memory_space<vmem>>, vector<512x128xbf16>
    %cst_178 = arith.constant dense<0.000000e+00> : vector<2x128xf32>
    %312 = tpu.matmul %310, %311, %cst_178 {dimension_numbers = #tpu.dot_dimension_numbers<[1], [0], [0], [1], [0, 0, 1, 1], [], []>} : vector<2x512xbf16>, vector<512x128xbf16>, vector<2x128xf32> -> vector<2x128xf32>
    %c0_179 = arith.constant 0 : index
    %c0_180 = arith.constant 0 : index
    %313 = vector.load %arg14[%c0_179, %c0_180] : memref<1x128xf32, #tpu.memory_space<vmem>>, vector<1x128xf32>
    %314 = vector.broadcast %313 : vector<1x128xf32> to vector<2x128xf32>
    %315 = arith.addf %312, %314 : vector<2x128xf32>
    %c0_181 = arith.constant 0 : index
    %c0_182 = arith.constant 0 : index
    %316 = vector.load %arg15[%c0_181, %c0_182] : memref<2x128xf32, #tpu.memory_space<vmem>>, vector<2x128xf32>
    tpu.vector_store %arg15[%c0_181, %c0_182], %315 {strides = array<i32>} : memref<2x128xf32, #tpu.memory_space<vmem>>, vector<2x128xf32>,
    return
  }
  func.func @transform_0(%arg0: i32) -> (i32, i32) {
    %c0_i32 = arith.constant 0 : i32
    %c0_i32_0 = arith.constant 0 : i32
    return %arg0, %c0_i32 : i32, i32
  }
  func.func @transform_1(%arg0: i32) -> (i32, i32) {
    %c0_i32 = arith.constant 0 : i32
    %c0_i32_0 = arith.constant 0 : i32
    %c0_i32_1 = arith.constant 0 : i32
    return %c0_i32, %c0_i32_0 : i32, i32
  }
  func.func @transform_2(%arg0: i32) -> (i32, i32) {
    %c0_i32 = arith.constant 0 : i32
    %c0_i32_0 = arith.constant 0 : i32
    %c0_i32_1 = arith.constant 0 : i32
    return %c0_i32, %c0_i32_0 : i32, i32
  }
  func.func @transform_3(%arg0: i32) -> (i32, i32) {
    %c0_i32 = arith.constant 0 : i32
    %c0_i32_0 = arith.constant 0 : i32
    %c0_i32_1 = arith.constant 0 : i32
    return %c0_i32, %c0_i32_0 : i32, i32
  }
  func.func @transform_4(%arg0: i32) -> (i32, i32) {
    %c0_i32 = arith.constant 0 : i32
    %c0_i32_0 = arith.constant 0 : i32
    %c0_i32_1 = arith.constant 0 : i32
    return %c0_i32, %c0_i32_0 : i32, i32
  }
  func.func @transform_5(%arg0: i32) -> (i32, i32) {
    %c0_i32 = arith.constant 0 : i32
    %c0_i32_0 = arith.constant 0 : i32
    %c0_i32_1 = arith.constant 0 : i32
    return %c0_i32, %c0_i32_0 : i32, i32
  }
  func.func @transform_6(%arg0: i32) -> (i32, i32) {
    %c0_i32 = arith.constant 0 : i32
    %c0_i32_0 = arith.constant 0 : i32
    %c0_i32_1 = arith.constant 0 : i32
    return %c0_i32, %c0_i32_0 : i32, i32
  }
  func.func @transform_7(%arg0: i32) -> (i32, i32) {
    %c0_i32 = arith.constant 0 : i32
    %c0_i32_0 = arith.constant 0 : i32
    %c0_i32_1 = arith.constant 0 : i32
    return %c0_i32, %c0_i32_0 : i32, i32
  }
  func.func @transform_8(%arg0: i32) -> (i32, i32) {
    %c0_i32 = arith.constant 0 : i32
    %c0_i32_0 = arith.constant 0 : i32
    %c0_i32_1 = arith.constant 0 : i32
    return %c0_i32, %c0_i32_0 : i32, i32
  }
  func.func @transform_9(%arg0: i32) -> (i32, i32) {
    %c0_i32 = arith.constant 0 : i32
    %c0_i32_0 = arith.constant 0 : i32
    %c0_i32_1 = arith.constant 0 : i32
    return %c0_i32, %c0_i32_0 : i32, i32
  }
  func.func @transform_10(%arg0: i32) -> (i32, i32) {
    %c0_i32 = arith.constant 0 : i32
    %c0_i32_0 = arith.constant 0 : i32
    %c0_i32_1 = arith.constant 0 : i32
    return %c0_i32, %c0_i32_0 : i32, i32
  }
  func.func @transform_11(%arg0: i32) -> (i32, i32) {
    %c0_i32 = arith.constant 0 : i32
    %c0_i32_0 = arith.constant 0 : i32
    %c0_i32_1 = arith.constant 0 : i32
    return %c0_i32, %c0_i32_0 : i32, i32
  }
  func.func @transform_12(%arg0: i32) -> (i32, i32) {
    %c0_i32 = arith.constant 0 : i32
    %c0_i32_0 = arith.constant 0 : i32
    %c0_i32_1 = arith.constant 0 : i32
    return %c0_i32, %c0_i32_0 : i32, i32
  }
  func.func @transform_13(%arg0: i32) -> (i32, i32) {
    %c0_i32 = arith.constant 0 : i32
    %c0_i32_0 = arith.constant 0 : i32
    %c0_i32_1 = arith.constant 0 : i32
    return %c0_i32, %c0_i32_0 : i32, i32
  }
  func.func @transform_14(%arg0: i32) -> (i32, i32) {
    %c0_i32 = arith.constant 0 : i32
    %c0_i32_0 = arith.constant 0 : i32
    return %arg0, %c0_i32 : i32, i32
  }
}

</mosaic_0001>

<bundles_post_ra>
// kernel: cnn_forward.1
= control target key start
LH: loop header
LB: loop body
LE: loop exit
PB: predicated region body
PF: predicated region fallthrough
CT: control target
= control target key end

     0   :  { %19 = vsyncpa [#allocation8], 0  ;;  %s13389_s0 = inlined_call_operand.vmem [shape: bf16[512,32], index: 0, kind: input, shape index: {}]   ;;  %s13390_s1 = inlined_call_operand.vmem [shape: bf16[32,64], index: 1, kind: input, shape index: {}]   ;;  %s13391_s2 = inlined_call_operand.vmem [shape: f32[1,64], index: 2, kind: input, shape index: {}]   ;;  %s13392_s3 = inlined_call_operand.vmem [shape: f32[1,64], index: 3, kind: input, shape index: {}]   ;;  %s13393_s4 = inlined_call_operand.hbm [shape: bf16[576,128], index: 4, kind: input, shape index: {}]   ;;  %s13394_s5 = inlined_call_operand.vmem [shape: f32[1,128], index: 5, kind: input, shape index: {}]   ;;  %s13395_s6 = inlined_call_operand.vmem [shape: f32[1,128], index: 6, kind: input, shape index: {}]   ;;  %s13396_s7 = inlined_call_operand.hbm [shape: bf16[1152,256], index: 7, kind: input, shape index: {}]   ;;  %s13397_s8 = inlined_call_operand.vmem [shape: f32[1,256], index: 8, kind: input, shape index: {}]   ;;  %s13398_s9 = inlined_call_operand.vmem [shape: f32[1,256], index: 9, kind: input, shape index: {}]   ;;  %s13399_s10 = inlined_call_operand.vmem [shape: bf16[1024,512], index: 10, kind: input, shape index: {}]   ;;  %s13400_s11 = inlined_call_operand.vmem [shape: f32[1,512], index: 11, kind: input, shape index: {}]   ;;  %s13401_s12 = inlined_call_operand.hbm [shape: bf16[512,128], index: 12, kind: input, shape index: {}]   ;;  %s13402_s13 = inlined_call_operand.vmem [shape: f32[1,128], index: 13, kind: input, shape index: {}]   ;;  %s13403_s14 = inlined_call_operand.hbm [shape: f32[2,128], index: 14, kind: output, shape index: {}]  }
   0x1   :  { %20 = vsyncpa [#allocation11], 0 }
   0x2   :  { %21 = vsyncpa [#allocation9], 0  ;;  %s10630_s29 = smov [#allocation10]   ;;  %s10536_s17 = scalar_lea.hbm %s13396_s7, 18432 }
   0x3   :  { %s51_s30 = sshll.u32 %s10630_s29, 4  ;;  %p10537_p0 = scmp.ne.s32.totalorder %s13396_s7, %s10536_s17  ;;  %s52_s30 = int_to_ptr.vmem [resolvable:$true] %s51_s30 }
   0x4   :  { %p10540_p1 = scmp.lt.u32.totalorder %s10536_s17, %s13396_s7 }
   0x6   :  { %p10542_p2 = pnand %p10540_p1, %p10537_p0 }
   0x8   :  { %10545 = shalt.err (!%p10542_p2)
}
   0x9   :  { %s10546_s22 = scalar_lea.vmem %s52_s30, 18432  ;;  %p10551_p4 = scmp.lt.s32.totalorder %s52_s30, %s52_s30 }
   0xa   :  { %p10547_p3 = scmp.ne.s32.totalorder %s52_s30, %s10546_s22  ;;  %p10552_p5 = scmp.lt.s32.totalorder %s10546_s22, %s10546_s22 }
   0xc   :  { %p10553_p6 = por %p10552_p5, %p10551_p4 }
   0xe   :  { %p10554_p7 = pnand %p10553_p6, %p10547_p3 }
  0x10   :  { %10557 = shalt.err (!%p10554_p7)
}
  0x11   :  { %s10631_s23 = smov 128   ;;  %s10632_s24 = smov 8  }
  0x12   :  { %57 = dma.hbm_to_vmem [thread:$0]  %s13396_s7, 18432, %s52_s30, [#allocation11], %s10631_s23, %s10631_s23, %s10632_s24  }
  0x13   :  { %s10633_s27 = smov [#allocation7]   ;;  %s10558_s16 = scalar_lea.hbm %s13393_s4, 4608 }
  0x14   :  { %s35_s28 = sshll.u32 %s10633_s27, 4  ;;  %p10559_p8 = scmp.ne.s32.totalorder %s13393_s4, %s10558_s16  ;;  %s36_s28 = int_to_ptr.vmem [resolvable:$true] %s35_s28 }
  0x15   :  { %p10562_p9 = scmp.lt.u32.totalorder %s10558_s16, %s13393_s4 }
  0x17   :  { %p10564_p10 = pnand %p10562_p9, %p10559_p8 }
  0x19   :  { %10567 = shalt.err (!%p10564_p10)
}
  0x1a   :  { %s10568_s21 = scalar_lea.vmem %s36_s28, 4608  ;;  %p10573_p12 = scmp.lt.s32.totalorder %s36_s28, %s36_s28 }
  0x1b   :  { %p10569_p11 = scmp.ne.s32.totalorder %s36_s28, %s10568_s21  ;;  %p10574_p13 = scmp.lt.s32.totalorder %s10568_s21, %s10568_s21 }
  0x1d   :  { %p10575_p0 = por %p10574_p13, %p10573_p12 }
  0x1f   :  { %p10576_p1 = pnand %p10575_p0, %p10569_p11 }
  0x21   :  { %10579 = shalt.err (!%p10576_p1)
}
  0x22   :  { %s10634_s7 = smov 64   ;;  %s10635_s30 = smov 4  }
  0x23   :  { %41 = dma.hbm_to_vmem [thread:$0]  %s13393_s4, 4608, %s36_s28, [#allocation8], %s10634_s7, %s10634_s7, %s10635_s30  }
  0x24   :  { %s10636_s24 = smov [#allocation12]   ;;  %s10580_s29 = scalar_lea.hbm %s13401_s12, 4096 }
  0x25   :  { %s71_s25 = sshll.u32 %s10636_s24, 4  ;;  %p10581_p2 = scmp.ne.s32.totalorder %s13401_s12, %s10580_s29  ;;  %s72_s25 = int_to_ptr.vmem [resolvable:$true] %s71_s25 }
  0x26   :  { %p10584_p3 = scmp.lt.u32.totalorder %s10580_s29, %s13401_s12 }
  0x28   :  { %p10586_p4 = pnand %p10584_p3, %p10581_p2 }
  0x2a   :  { %10589 = shalt.err (!%p10586_p4)
}
  0x2b   :  { %s10590_s19 = scalar_lea.vmem %s72_s25, 4096  ;;  %p10595_p6 = scmp.lt.s32.totalorder %s72_s25, %s72_s25 }
  0x2c   :  { %p10591_p5 = scmp.ne.s32.totalorder %s72_s25, %s10590_s19  ;;  %p10596_p7 = scmp.lt.s32.totalorder %s10590_s19, %s10590_s19 }
  0x2e   :  { %p10597_p8 = por %p10596_p7, %p10595_p6 }
  0x30   :  { %p10598_p9 = pnand %p10597_p8, %p10591_p5 }
  0x32   :  { %10601 = shalt.err (!%p10598_p9)
}
  0x33   :  { %77 = dma.hbm_to_vmem [thread:$0]  %s13401_s12, 4096, %s72_s25, [#allocation11], %s10634_s7, %s10634_s7, %s10635_s30  }
  0x34   :  { %10624 = dma.done.wait [#allocation8], 4608  }
  0x35   :  { %10625 = vsyncadd [#allocation8], 4294962688 }
  0x36   :  { %10626 = dma.done.wait [#allocation11], 22528  }
  0x37   :  { %10627 = vsyncadd [#allocation11], 4294944768  ;;  %v9791_v0 = vld [vmem:[%s13390_s1] sm:$0xff]   ;;  %v9792_v1 = vld [vmem:[%s13390_s1 + $0x8] sm:$0xff]   ;;  %vm330_vm0 = vcmask 261120   ;;  %vm922_vm1 = vcmask 523264   ;;  %v13404_v38 = vlaneseq }
  0x38   :  { %9627 = vmatprep.subr.bf16.mxu0 %v9791_v0  ;;  %v9793_v2 = vld [vmem:[%s13389_s0] sm:$0xff]   ;;  %v9794_v3 = vld [vmem:[%s13389_s0 + $0x8] sm:$0xff]   ;;  %v9795_v4 = vld [vmem:[%s13389_s0 + $0x10] sm:$0xff]   ;;  %v10637_v34 = vmov 0.0   ;;  %vm933_vm2 = vcmask 516096   ;;  %vm924_vm3 = vcmask 517120  }
  0x39   :  { %9628 = vmatpush3.bf16.msra.mxu0 %v9791_v0  ;;  %9631 = vmatprep.mubr.msk.bf16.mxu0 %vm330_vm0, %v9793_v2  ;;  %v9796_v5 = vld [vmem:[%s13389_s0 + $0x18] sm:$0xff]   ;;  %v9797_v6 = vld [vmem:[%s13389_s0 + $0x20] sm:$0xff]   ;;  %v9798_v7 = vld [vmem:[%s13389_s0 + $0x28] sm:$0xff]   ;;  %923 = vst.msk [vmem:[#allocation2] sm:$0xff] %vm922_vm1, %v10637_v34  ;;  %v10638_v36 = vmov 1983009808  }
  0x3a   :  { %9629 = vmatprep.subr.bf16.mxu0 %v9792_v1  ;;  %v9799_v8 = vld [vmem:[%s13389_s0 + $0x30] sm:$0xff]   ;;  %v9800_v9 = vld [vmem:[%s13389_s0 + $0x38] sm:$0xff]   ;;  %v9801_v10 = vld [vmem:[%s13389_s0 + $0x40] sm:$0xff]   ;;  %926 = vst.msk [vmem:[#allocation2 + $0xa0] sm:$0xff] %vm922_vm1, %v10637_v34  ;;  %v1008_v37 = vunpack.c.l.s4 %v10638_v36  ;;  %v11024_v45 = vshrl.u32 %v13404_v38, 7  ;;  %vm3059_vm4 = vcmask 1046528  }
  0x3b   :  { %v9802_v11 = vld [vmem:[%s13389_s0 + $0x48] sm:$0xff]   ;;  %v9803_v12 = vld [vmem:[%s13389_s0 + $0x50] sm:$0xff]   ;;  %v9804_v13 = vld [vmem:[%s13389_s0 + $0x58] sm:$0xff]   ;;  %929 = vst.msk [vmem:[#allocation2 + $0x90] sm:$0xff] %vm922_vm1, %v10637_v34  ;;  %vm1918_vm5 = vcmask 1041409   ;;  %vm1920_vm6 = vcmask 1042434  }
  0x3c   :  { %v9805_v14 = vld [vmem:[%s13389_s0 + $0x60] sm:$0xff]   ;;  %v9806_v15 = vld [vmem:[%s13389_s0 + $0x68] sm:$0xff]   ;;  %v9807_v16 = vld [vmem:[%s13389_s0 + $0x70] sm:$0xff]   ;;  %931 = vst.msk [vmem:[#allocation2 + $0x130] sm:$0xff] %vm922_vm1, %v10637_v34  ;;  %v1009_v44 = vunpack.c.0.s8 %v1008_v37  ;;  %vm1922_vm7 = vcmask 1043459   ;;  %vm1924_vm8 = vcmask 1044484  }
  0x3d   :  { %9630 = vmatpush3.bf16.msra.mxu0 %v9792_v1  ;;  %v9808_v17 = vld [vmem:[%s13389_s0 + $0x78] sm:$0xff]   ;;  %v9809_v18 = vld [vmem:[%s13389_s0 + $0x80] sm:$0xff]   ;;  %v9810_v19 = vld [vmem:[%s13389_s0 + $0x88] sm:$0xff]   ;;  %4194 = vst [vmem:[#allocation4] sm:$0x3f] %v10637_v34  ;;  %v11039_v1 = vsub.s32 0, %v11024_v45 }
  0x3e   :  { %v9811_v20 = vld [vmem:[%s13389_s0 + $0x90] sm:$0xff]   ;;  %v9812_v21 = vld [vmem:[%s13389_s0 + $0x98] sm:$0xff]   ;;  %v9813_v22 = vld [vmem:[%s13389_s0 + $0xa0] sm:$0xff]   ;;  %4195 = vst [vmem:[#allocation4 + $0x30] sm:$0x3f] %v10637_v34  ;;  %v11034_v57 = vsub.s32 %v1009_v44, %v11024_v45  ;;  %vm1926_vm9 = vcmask 1045509  }
  0x3f   :  { %v9814_v23 = vld [vmem:[%s13389_s0 + $0xa8] sm:$0xff]   ;;  %v9815_v24 = vld [vmem:[%s13389_s0 + $0xb0] sm:$0xff]   ;;  %v9816_v25 = vld [vmem:[%s13389_s0 + $0xb8] sm:$0xff]   ;;  %4197 = vst [vmem:[#allocation4 + $0x28] sm:$0x3f] %v10637_v34  ;;  %vm1928_vm10 = vcmask 1046534  }
  0x40   :  { %9632 = vmatmul.mubr.msk.bf16.vlgmr.msra.gmra.mrb[0].mxu0 %vm330_vm0, %v9794_v3  ;;  %v9817_v26 = vld [vmem:[%s13389_s0 + $0xc0] sm:$0xff]   ;;  %v9818_v27 = vld [vmem:[%s13389_s0 + $0xc8] sm:$0xff]   ;;  %v9819_v28 = vld [vmem:[%s13389_s0 + $0xd0] sm:$0xff]   ;;  %4198 = vst [vmem:[#allocation4 + $0x58] sm:$0x3f] %v10637_v34  ;;  %vm1930_vm11 = vcmask 1047559  }
  0x41   :  { %9635 = vmatprep.mubr.msk.bf16.mxu0 %vm330_vm0, %v9795_v4  ;;  %v9820_v29 = vld [vmem:[%s13389_s0 + $0xd8] sm:$0xff]   ;;  %v9821_v30 = vld [vmem:[%s13389_s0 + $0xe0] sm:$0xff]   ;;  %v9822_v31 = vld [vmem:[%s13389_s0 + $0xe8] sm:$0xff]   ;;  %4200 = vst [vmem:[#allocation4 + $0x8] sm:$0x1] %v10637_v34  ;;  %vm3117_vm12 = vcmask 1045504  }
  0x42   :  { %v9823_v32 = vld [vmem:[%s13389_s0 + $0xf0] sm:$0xff]   ;;  %v9824_v33 = vld [vmem:[%s13389_s0 + $0xf8] sm:$0xff]   ;;  %4201 = vst [vmem:[#allocation4 + $0x10] sm:$0x1] %v10637_v34  ;;  %4202 = vst [vmem:[#allocation4 + $0x18] sm:$0x1] %v10637_v34 }
  0x43   :  { %4203 = vst [vmem:[#allocation4 + $0x20] sm:$0x1] %v10637_v34  ;;  %4206 = vst [vmem:[#allocation4 + $0x38] sm:$0x1] %v10637_v34  ;;  %v11014_v35 = vld [vmem:[%s13391_s2] ss:$0 sm:$0xff] }
  0x44   :  { %4207 = vst [vmem:[#allocation4 + $0x40] sm:$0x1] %v10637_v34  ;;  %4208 = vst [vmem:[#allocation4 + $0x48] sm:$0x1] %v10637_v34  ;;  %v11019_v40 = vld [vmem:[%s13392_s3] ss:$0 sm:$0xff] }
  0x45   :  { %4209 = vst [vmem:[#allocation4 + $0x50] sm:$0x1] %v10637_v34  ;;  %4212 = vst [vmem:[#allocation4 + $0xd] sm:$0x1] %v10637_v34  ;;  %vm3112_vm13 = vcmask 1048064   ;;  %vm4757_vm14 = vcmask 1042432  }
  0x46   :  { %4213 = vst [vmem:[#allocation4 + $0x15] sm:$0x1] %v10637_v34  ;;  %4214 = vst [vmem:[#allocation4 + $0x1d] sm:$0x1] %v10637_v34  ;;  %vm4758_vm15 = vcmask 1046532   ;;  %s10641_s17 = smov [#allocation13]  }
  0x47   :  { %4215 = vst [vmem:[#allocation4 + $0x25] sm:$0x1] %v10637_v34  ;;  %4218 = vst [vmem:[#allocation4 + $0x3d] sm:$0x1] %v10637_v34  ;;  %s8660_s18 = sshll.u32 %s10641_s17, 4  ;;  %s8661_s18 = int_to_ptr.vmem [resolvable:$true] %s8660_s18 }
  0x48   :  { %9636 = vmatmul.mubr.msk.bf16.gmra.mrb[4].mxu0 %vm330_vm0, %v9796_v5  ;;  %4219 = vst [vmem:[#allocation4 + $0x45] sm:$0x1] %v10637_v34  ;;  %4220 = vst [vmem:[#allocation4 + $0x4d] sm:$0x1] %v10637_v34  ;;  %s10602_s19 = scalar_lea.vmem %s8661_s18, 32  ;;  %p10607_p11 = scmp.lt.s32.totalorder %s8661_s18, %s8661_s18 }
  0x49   :  { %9639 = vmatprep.mubr.msk.bf16.mxu0 %vm330_vm0, %v9797_v6  ;;  %4221 = vst [vmem:[#allocation4 + $0x55] sm:$0x1] %v10637_v34  ;;  %934 = vst.msk [vmem:[#allocation2] sm:$0x1] %vm933_vm2, %v10637_v34  ;;  %p10603_p10 = scmp.ne.s32.totalorder %s8661_s18, %s10602_s19  ;;  %p10608_p12 = scmp.lt.s32.totalorder %s10602_s19, %s10602_s19 }
  0x4a   :  { %935 = vst.msk [vmem:[#allocation2 + $0x10] sm:$0x1] %vm933_vm2, %v10637_v34  ;;  %936 = vst.msk [vmem:[#allocation2 + $0x20] sm:$0x1] %vm933_vm2, %v10637_v34 }
  0x4b   :  { %937 = vst.msk [vmem:[#allocation2 + $0x30] sm:$0x1] %vm933_vm2, %v10637_v34  ;;  %938 = vst.msk [vmem:[#allocation2 + $0x40] sm:$0x1] %vm933_vm2, %v10637_v34  ;;  %p10609_p13 = por %p10608_p12, %p10607_p11 }
  0x4c   :  { %939 = vst.msk [vmem:[#allocation2 + $0x50] sm:$0x1] %vm933_vm2, %v10637_v34  ;;  %940 = vst.msk [vmem:[#allocation2 + $0x60] sm:$0x1] %vm933_vm2, %v10637_v34 }
  0x4d   :  { %941 = vst.msk [vmem:[#allocation2 + $0x70] sm:$0x1] %vm933_vm2, %v10637_v34  ;;  %942 = vst.msk [vmem:[#allocation2 + $0x80] sm:$0x1] %vm933_vm2, %v10637_v34  ;;  %p10610_p0 = pnand %p10609_p13, %p10603_p10 }
  0x4e   :  { %945 = vst.msk [vmem:[#allocation2 + $0xb0] sm:$0x1] %vm933_vm2, %v10637_v34  ;;  %946 = vst.msk [vmem:[#allocation2 + $0xc0] sm:$0x1] %vm933_vm2, %v10637_v34 }
  0x4f   :  { %947 = vst.msk [vmem:[#allocation2 + $0xd0] sm:$0x1] %vm933_vm2, %v10637_v34  ;;  %948 = vst.msk [vmem:[#allocation2 + $0xe0] sm:$0x1] %vm933_vm2, %v10637_v34 }
  0x50   :  { %9640 = vmatmul.mubr.msk.bf16.gmra.mrb[8].mxu0 %vm330_vm0, %v9798_v7  ;;  %949 = vst.msk [vmem:[#allocation2 + $0xf0] sm:$0x1] %vm933_vm2, %v10637_v34  ;;  %950 = vst.msk [vmem:[#allocation2 + $0x100] sm:$0x1] %vm933_vm2, %v10637_v34  ;;  %v11030_v52 = vld [vmem:[#allocation2] sm:$0xff] }
  0x51   :  { %9643 = vmatprep.mubr.msk.bf16.mxu0 %vm330_vm0, %v9799_v8  ;;  %951 = vst.msk [vmem:[#allocation2 + $0x110] sm:$0x1] %vm933_vm2, %v10637_v34  ;;  %952 = vst.msk [vmem:[#allocation2 + $0x120] sm:$0x1] %vm933_vm2, %v10637_v34  ;;  %v3060_v60 = vrot.slane %v11030_v52, 1 }
  0x52   :  { %955 = vst.msk [vmem:[#allocation2 + $0x19] sm:$0x1] %vm933_vm2, %v10637_v34  ;;  %956 = vst.msk [vmem:[#allocation2 + $0x29] sm:$0x1] %vm933_vm2, %v10637_v34 }
  0x53   :  { %957 = vst.msk [vmem:[#allocation2 + $0x39] sm:$0x1] %vm933_vm2, %v10637_v34  ;;  %958 = vst.msk [vmem:[#allocation2 + $0x49] sm:$0x1] %vm933_vm2, %v10637_v34 }
  0x54   :  { %959 = vst.msk [vmem:[#allocation2 + $0x59] sm:$0x1] %vm933_vm2, %v10637_v34  ;;  %960 = vst.msk [vmem:[#allocation2 + $0x69] sm:$0x1] %vm933_vm2, %v10637_v34 }
  0x55   :  { %961 = vst.msk [vmem:[#allocation2 + $0x79] sm:$0x1] %vm933_vm2, %v10637_v34  ;;  %962 = vst.msk [vmem:[#allocation2 + $0x89] sm:$0x1] %vm933_vm2, %v10637_v34 }
  0x56   :  { %965 = vst.msk [vmem:[#allocation2 + $0xb9] sm:$0x1] %vm933_vm2, %v10637_v34  ;;  %966 = vst.msk [vmem:[#allocation2 + $0xc9] sm:$0x1] %vm933_vm2, %v10637_v34 }
  0x57   :  { %967 = vst.msk [vmem:[#allocation2 + $0xd9] sm:$0x1] %vm933_vm2, %v10637_v34  ;;  %968 = vst.msk [vmem:[#allocation2 + $0xe9] sm:$0x1] %vm933_vm2, %v10637_v34 }
  0x58   :  { %9644 = vmatmul.mubr.msk.bf16.gmra.mrb[12].mxu0 %vm330_vm0, %v9800_v9  ;;  %969 = vst.msk [vmem:[#allocation2 + $0xf9] sm:$0x1] %vm933_vm2, %v10637_v34  ;;  %970 = vst.msk [vmem:[#allocation2 + $0x109] sm:$0x1] %vm933_vm2, %v10637_v34 }
  0x59   :  { %9647 = vmatprep.mubr.msk.bf16.mxu0 %vm330_vm0, %v9801_v10  ;;  %971 = vst.msk [vmem:[#allocation2 + $0x119] sm:$0x1] %vm933_vm2, %v10637_v34  ;;  %972 = vst.msk [vmem:[#allocation2 + $0x129] sm:$0x1] %vm933_vm2, %v10637_v34 }
  0x5a   :  { %943 = vst.msk [vmem:[#allocation2 + $0x90] sm:$0x1] %vm933_vm2, %v10637_v34  ;;  %944 = vst.msk [vmem:[#allocation2 + $0xa0] sm:$0x1] %vm933_vm2, %v10637_v34 }
  0x5b   :  { %953 = vst.msk [vmem:[#allocation2 + $0x130] sm:$0x1] %vm933_vm2, %v10637_v34  ;;  %4199 = vst [vmem:[#allocation4] sm:$0x1] %v10637_v34 }
  0x5c   :  { %4204 = vst [vmem:[#allocation4 + $0x28] sm:$0x1] %v10637_v34  ;;  %4205 = vst [vmem:[#allocation4 + $0x30] sm:$0x1] %v10637_v34 }
  0x5d   :  { %4210 = vst [vmem:[#allocation4 + $0x58] sm:$0x1] %v10637_v34  ;;  %4211 = vst [vmem:[#allocation4 + $0x5] sm:$0x1] %v10637_v34 }
  0x5e   :  { %4216 = vst [vmem:[#allocation4 + $0x2d] sm:$0x1] %v10637_v34  ;;  %4217 = vst [vmem:[#allocation4 + $0x35] sm:$0x1] %v10637_v34 }
  0x5f   :  { %4222 = vst [vmem:[#allocation4 + $0x5d] sm:$0x1] %v10637_v34  ;;  %925 = vst.msk [vmem:[#allocation2 + $0x8] sm:$0x3] %vm924_vm3, %v10637_v34 }
  0x60   :  { %9648 = vmatmul.mubr.msk.bf16.gmra.mrb[16].mxu0 %vm330_vm0, %v9802_v11  ;;  %927 = vst.msk [vmem:[#allocation2 + $0xa8] sm:$0x3] %vm924_vm3, %v10637_v34  ;;  %930 = vst.msk [vmem:[#allocation2 + $0x98] sm:$0x3] %vm924_vm3, %v10637_v34 }
  0x61   :  { %9651 = vmatprep.mubr.msk.bf16.mxu0 %vm330_vm0, %v9803_v12  ;;  %932 = vst.msk [vmem:[#allocation2 + $0x138] sm:$0x3] %vm924_vm3, %v10637_v34 }
  0x62   :  { %954 = vst.msk [vmem:[#allocation2 + $0x9] sm:$0x1] %vm933_vm2, %v10637_v34  ;;  %963 = vst.msk [vmem:[#allocation2 + $0x99] sm:$0x1] %vm933_vm2, %v10637_v34 }
  0x63   :  { %964 = vst.msk [vmem:[#allocation2 + $0xa9] sm:$0x1] %vm933_vm2, %v10637_v34  ;;  %973 = vst.msk [vmem:[#allocation2 + $0x139] sm:$0x1] %vm933_vm2, %v10637_v34  ;;  %vm4783_vm2 = vcmask 1045508  }
  0x68   :  { %9652 = vmatmul.mubr.msk.bf16.gmra.mrb[20].mxu0 %vm330_vm0, %v9804_v13 }
  0x69   :  { %9655 = vmatprep.mubr.msk.bf16.mxu0 %vm330_vm0, %v9805_v14  ;;  %v3016_v53 = vld [vmem:[#allocation2 + $0x8] sm:$0x3] }
  0x6a   :  { %v3061_v61 = vrot.slane %v3016_v53, 1 }
  0x6c   :  { %v11047_v12 = vsel %vm3059_vm4, %v3060_v60, %v3061_v61 }
  0x70   :  { %9656 = vmatmul.mubr.msk.bf16.gmra.mrb[24].mxu0 %vm330_vm0, %v9806_v15 }
  0x71   :  { %9659 = vmatprep.mubr.msk.bf16.mxu0 %vm330_vm0, %v9807_v16 }
  0x78   :  { %9660 = vmatmul.mubr.msk.bf16.gmra.mrb[28].mxu0 %vm330_vm0, %v9808_v17 }
  0x79   :  { %9663 = vmatprep.mubr.msk.bf16.mxu0 %vm330_vm0, %v9809_v18 }
  0x80   :  { %9664 = vmatmul.mubr.msk.bf16.gmra.mrb[32].mxu0 %vm330_vm0, %v9810_v19 }
  0x81   :  { %9667 = vmatprep.mubr.msk.bf16.mxu0 %vm330_vm0, %v9811_v20 }
  0x88   :  { %9668 = vmatmul.mubr.msk.bf16.gmra.mrb[36].mxu0 %vm330_vm0, %v9812_v21 }
  0x89   :  { %9671 = vmatprep.mubr.msk.bf16.mxu0 %vm330_vm0, %v9813_v22 }
  0x90   :  { %9672 = vmatmul.mubr.msk.bf16.gmra.mrb[40].mxu0 %vm330_vm0, %v9814_v23 }
  0x91   :  { %9675 = vmatprep.mubr.msk.bf16.mxu0 %vm330_vm0, %v9815_v24 }
  0x98   :  { %9676 = vmatmul.mubr.msk.bf16.gmra.mrb[44].mxu0 %vm330_vm0, %v9816_v25 }
  0x99   :  { %9679 = vmatprep.mubr.msk.bf16.mxu0 %vm330_vm0, %v9817_v26 }
  0xa0   :  { %9680 = vmatmul.mubr.msk.bf16.gmra.mrb[48].mxu0 %vm330_vm0, %v9818_v27 }
  0xa1   :  { %9683 = vmatprep.mubr.msk.bf16.mxu0 %vm330_vm0, %v9819_v28 }
  0xa8   :  { %9684 = vmatmul.mubr.msk.bf16.gmra.mrb[52].mxu0 %vm330_vm0, %v9820_v29 }
  0xa9   :  { %9687 = vmatprep.mubr.msk.bf16.mxu0 %vm330_vm0, %v9821_v30 }
  0xb0   :  { %9688 = vmatmul.mubr.msk.bf16.gmra.mrb[56].mxu0 %vm330_vm0, %v9822_v31 }
  0xb1   :  { %9691 = vmatprep.mubr.msk.bf16.mxu0 %vm330_vm0, %v9823_v32 }
  0xb8   :  { %9692 = vmatmul.mubr.msk.bf16.gmra.mrb[60].mxu0 %vm330_vm0, %v9824_v33  ;;  %vm4782_vm0 = vcmask 1041408  }
  0xb9   :  { %vm12121_vm3 = vmor %vm4782_vm0, %vm4783_vm2 }
 0x113   :  { %v9633_v39 = vpop.f32.mrb[0].mxu0 }
 0x114   :  { %v725_v41 = vmul.f32 %v9633_v39, %v11014_v35  ;;  %v461_v42 = vpop.f32.mrb[1].mxu0 }
 0x115   :  { %v723_v43 = vmul.f32 %v11014_v35, %v461_v42  ;;  %v9634_v46 = vpop.f32.mrb[2].mxu0 }
 0x116   :  { %v796_v47 = vadd.f32 %v11019_v40, %v725_v41  ;;  %v726_v48 = vmul.f32 %v9634_v46, %v11014_v35  ;;  %v464_v49 = vpop.f32.mrb[3].mxu0 }
 0x117   :  { %v794_v50 = vadd.f32 %v11019_v40, %v723_v43  ;;  %v724_v51 = vmul.f32 %v11014_v35, %v464_v49 }
 0x118   :  { %v860_v54 = vmax.f32 %v796_v47, 0.0  ;;  %v797_v55 = vadd.f32 %v11019_v40, %v726_v48 }
 0x119   :  { %v858_v56 = vmax.f32 %v794_v50, 0.0  ;;  %v795_v58 = vadd.f32 %v11019_v40, %v724_v51 }
 0x11a   :  { %v861_v59 = vmax.f32 %v797_v55, 0.0 }
 0x11b   :  { %v974_v62 = vmax.f32 %v858_v56, %v860_v54  ;;  %v859_v63 = vmax.f32 %v795_v58, 0.0  ;;  %v9637_v0 = vpop.f32.mrb[4].mxu0 }
 0x11c   :  { %v729_v2 = vmul.f32 %v9637_v0, %v11014_v35  ;;  %v477_v3 = vpop.f32.mrb[5].mxu0 }
 0x11d   :  { %v1006_v4 = vcombine.high %v974_v62, %v974_v62  ;;  %v1013_v5 = vrot.slane %v974_v62, %v11034_v57  ;;  %v975_v6 = vmax.f32 %v859_v63, %v861_v59  ;;  %v727_v7 = vmul.f32 %v11014_v35, %v477_v3  ;;  %v9638_v8 = vpop.f32.mrb[6].mxu0 }
 0x11e   :  { %v800_v9 = vadd.f32 %v11019_v40, %v729_v2  ;;  %v730_v10 = vmul.f32 %v9638_v8, %v11014_v35  ;;  %v480_v11 = vpop.f32.mrb[7].mxu0 }
 0x11f   :  { %v1020_v13 = vrot.slane %v1006_v4, %v11034_v57  ;;  %v1021_v14 = vcombine.high %v1013_v5, %v1013_v5  ;;  %v8738_v15 = vrot.slane %v1013_v5, 9  ;;  %v1023_v16 = vcombine.high %v975_v6, %v975_v6 }
 0x120   :  { %v1030_v17 = vrot.slane %v975_v6, %v11034_v57  ;;  %v864_v18 = vmax.f32 %v800_v9, 0.0  ;;  %v798_v19 = vadd.f32 %v11019_v40, %v727_v7  ;;  %v11053_v20 = vadd.f32 %v11019_v40, %v730_v10 }
 0x121   :  { %v1022_v21 = vcombine.high %v1020_v13, %v1020_v13  ;;  %v8739_v22 = vrot.slane %v1021_v14, 9  ;;  %v8740_v23 = vrot.slane %v1020_v13, 9  ;;  %v1534_v24 = vmax.f32 %v1013_v5, %v8738_v15 }
 0x122   :  { %v1037_v25 = vrot.slane %v1023_v16, %v11034_v57  ;;  %v1038_v26 = vcombine.high %v1030_v17, %v1030_v17  ;;  %v8742_v27 = vrot.slane %v1030_v17, 9  ;;  %v862_v28 = vmax.f32 %v798_v19, 0.0 }
 0x123   :  { %v8741_v29 = vrot.slane %v1022_v21, 9  ;;  %v1535_v30 = vmax.f32 %v1021_v14, %v8739_v22  ;;  %v1536_v31 = vmax.f32 %v1020_v13, %v8740_v23  ;;  %v1665_v32 = vrot.slane %v1534_v24, %v11039_v1  ;;  %v9641_v33 = vpop.f32.mrb[8].mxu0 }
 0x124   :  { %v1039_v34 = vcombine.high %v1037_v25, %v1037_v25  ;;  %v8743_v36 = vrot.slane %v1038_v26, 9  ;;  %v8744_v37 = vrot.slane %v1037_v25, 9  ;;  %v1538_v39 = vmax.f32 %v1030_v17, %v8742_v27  ;;  %v493_v41 = vpop.f32.mrb[9].mxu0 }
 0x125   :  { %v1537_v42 = vmax.f32 %v1022_v21, %v8741_v29  ;;  %v1669_v43 = vrot.slane %v1535_v30, %v11039_v1  ;;  %v1673_v44 = vrot.slane %v1536_v31, %v11039_v1  ;;  %v976_v46 = vmax.f32 %v862_v28, %v864_v18  ;;  %v9642_v47 = vpop.f32.mrb[10].mxu0 }
 0x126   :  { %v8745_v48 = vrot.slane %v1039_v34, 9  ;;  %v1539_v49 = vmax.f32 %v1038_v26, %v8743_v36  ;;  %v1540_v50 = vmax.f32 %v1037_v25, %v8744_v37  ;;  %v1681_v51 = vrot.slane %v1538_v39, %v11039_v1  ;;  %v496_v53 = vpop.f32.mrb[11].mxu0 }
 0x127   :  { %v1677_v54 = vrot.slane %v1537_v42, %v11039_v1  ;;  %v1919_v55 = vsel %vm1918_vm5, %v1669_v43, %v1665_v32  ;;  %v1040_v56 = vcombine.high %v976_v46, %v976_v46  ;;  %v1047_v58 = vrot.slane %v976_v46, %v11034_v57 }
 0x128   :  { %v1921_v59 = vsel %vm1920_vm6, %v1673_v44, %v1919_v55  ;;  %v1541_v60 = vmax.f32 %v1039_v34, %v8745_v48  ;;  %v1685_v61 = vrot.slane %v1539_v49, %v11039_v1  ;;  %v1689_v62 = vrot.slane %v1540_v50, %v11039_v1 }
 0x129   :  { %v1923_v63 = vsel %vm1922_vm7, %v1677_v54, %v1921_v59  ;;  %v1054_v0 = vrot.slane %v1040_v56, %v11034_v57  ;;  %v1055_v2 = vcombine.high %v1047_v58, %v1047_v58  ;;  %v8746_v3 = vrot.slane %v1047_v58, 9 }
 0x12a   :  { %v1693_v4 = vrot.slane %v1541_v60, %v11039_v1  ;;  %v1925_v5 = vsel %vm1924_vm8, %v1681_v51, %v1923_v63  ;;  %v865_v6 = vmax.f32 %v11053_v20, 0.0  ;;  %v728_v7 = vmul.f32 %v11014_v35, %v480_v11 }
 0x12b   :  { %v1927_v8 = vsel %vm1926_vm9, %v1685_v61, %v1925_v5  ;;  %v1056_v9 = vcombine.high %v1054_v0, %v1054_v0  ;;  %v8747_v10 = vrot.slane %v1055_v2, 9  ;;  %v8748_v13 = vrot.slane %v1054_v0, 9  ;;  %v9645_v14 = vpop.f32.mrb[12].mxu0 }
 0x12c   :  { %v1929_v15 = vsel %vm1928_vm10, %v1689_v62, %v1927_v8  ;;  %v1542_v16 = vmax.f32 %v1047_v58, %v8746_v3  ;;  %v799_v17 = vadd.f32 %v11019_v40, %v728_v7  ;;  %v733_v18 = vmul.f32 %v9641_v33, %v11014_v35  ;;  %v509_v19 = vpop.f32.mrb[13].mxu0 }
 0x12d   :  { %v1931_v21 = vsel %vm1930_vm11, %v1693_v4, %v1929_v15  ;;  %v8749_v22 = vrot.slane %v1056_v9, 9  ;;  %v1543_v20 = vmax.f32 %v1055_v2, %v8747_v10  ;;  %v1544_v23 = vmax.f32 %v1054_v0, %v8748_v13  ;;  %v9646_v11 = vpop.f32.mrb[14].mxu0 }
 0x12e   :  { %1990 = vst.msk [vmem:[#allocation2 + $0x11] sm:$0xff] %vm922_vm1, %v1931_v21  ;;  %v1697_v24 = vrot.slane %v1542_v16, %v11039_v1  ;;  %v863_v25 = vmax.f32 %v799_v17, 0.0  ;;  %v804_v26 = vadd.f32 %v11019_v40, %v733_v18  ;;  %v731_v27 = vmul.f32 %v11014_v35, %v493_v41  ;;  %v11081_v28 = vpop.f32.mrb[15].mxu0 }
 0x12f   :  { %v1545_v29 = vmax.f32 %v1056_v9, %v8749_v22  ;;  %v1701_v30 = vrot.slane %v1543_v20, %v11039_v1  ;;  %v1705_v31 = vrot.slane %v1544_v23, %v11039_v1  ;;  %v734_v32 = vmul.f32 %v9642_v47, %v11014_v35 }
 0x130   :  { %v977_v33 = vmax.f32 %v863_v25, %v865_v6  ;;  %v868_v34 = vmax.f32 %v804_v26, 0.0  ;;  %v802_v36 = vadd.f32 %v11019_v40, %v731_v27  ;;  %v732_v37 = vmul.f32 %v11014_v35, %v496_v53 }
 0x131   :  { %v1709_v39 = vrot.slane %v1545_v29, %v11039_v1  ;;  %v1932_v42 = vsel %vm1918_vm5, %v1701_v30, %v1697_v24  ;;  %v805_v41 = vadd.f32 %v11019_v40, %v734_v32  ;;  %v737_v43 = vmul.f32 %v9645_v14, %v11014_v35 }
 0x132   :  { %v1933_v44 = vsel %vm1920_vm6, %v1705_v31, %v1932_v42  ;;  %v1057_v46 = vcombine.high %v977_v33, %v977_v33  ;;  %v1064_v48 = vrot.slane %v977_v33, %v11034_v57  ;;  %v866_v47 = vmax.f32 %v802_v36, 0.0 }
 0x133   :  { %v1934_v49 = vsel %vm1922_vm7, %v1709_v39, %v1933_v44  ;;  %v869_v50 = vmax.f32 %v805_v41, 0.0  ;;  %v803_v51 = vadd.f32 %v11019_v40, %v732_v37  ;;  %v11097_v53 = vadd.f32 %v11019_v40, %v737_v43  ;;  %v11099_v54 = vpop.f32.mrb[16].mxu0 }
 0x134   :  { %v1071_v55 = vrot.slane %v1057_v46, %v11034_v57  ;;  %v1072_v56 = vcombine.high %v1064_v48, %v1064_v48  ;;  %v8750_v58 = vrot.slane %v1064_v48, 9  ;;  %v978_v59 = vmax.f32 %v866_v47, %v868_v34  ;;  %v11102_v60 = vpop.f32.mrb[17].mxu0 }
 0x135   :  { %v867_v61 = vmax.f32 %v803_v51, 0.0  ;;  %v872_v62 = vmax.f32 %v11097_v53, 0.0  ;;  %v735_v63 = vmul.f32 %v11014_v35, %v509_v19  ;;  %v738_v0 = vmul.f32 %v9646_v11, %v11014_v35  ;;  %v11107_v2 = vpop.f32.mrb[18].mxu0 }
 0x136   :  { %v1073_v3 = vcombine.high %v1071_v55, %v1071_v55  ;;  %v8751_v4 = vrot.slane %v1072_v56, 9  ;;  %v8752_v5 = vrot.slane %v1071_v55, 9  ;;  %v1546_v6 = vmax.f32 %v1064_v48, %v8750_v58  ;;  %v11109_v7 = vpop.f32.mrb[19].mxu0 }
 0x137   :  { %v1074_v8 = vcombine.high %v978_v59, %v978_v59  ;;  %v1081_v9 = vrot.slane %v978_v59, %v11034_v57  ;;  %v979_v10 = vmax.f32 %v867_v61, %v869_v50  ;;  %v806_v13 = vadd.f32 %v11019_v40, %v735_v63 }
 0x138   :  { %v8753_v14 = vrot.slane %v1073_v3, 9  ;;  %v1547_v15 = vmax.f32 %v1072_v56, %v8751_v4  ;;  %v1548_v16 = vmax.f32 %v1071_v55, %v8752_v5  ;;  %v1713_v17 = vrot.slane %v1546_v6, %v11039_v1 }
 0x139   :  { %v1088_v18 = vrot.slane %v1074_v8, %v11034_v57  ;;  %v1089_v19 = vcombine.high %v1081_v9, %v1081_v9  ;;  %v8754_v21 = vrot.slane %v1081_v9, 9  ;;  %v1091_v22 = vcombine.high %v979_v10, %v979_v10 }
 0x13a   :  { %v1549_v20 = vmax.f32 %v1073_v3, %v8753_v14  ;;  %v1717_v23 = vrot.slane %v1547_v15, %v11039_v1  ;;  %v1721_v11 = vrot.slane %v1548_v16, %v11039_v1  ;;  %v1935_v24 = vsel %vm1924_vm8, %v1713_v17, %v1934_v49 }
 0x13b   :  { %v1090_v25 = vcombine.high %v1088_v18, %v1088_v18  ;;  %v8755_v26 = vrot.slane %v1089_v19, 9  ;;  %v8756_v27 = vrot.slane %v1088_v18, 9  ;;  %v1550_v29 = vmax.f32 %v1081_v9, %v8754_v21  ;;  %v11118_v30 = vpop.f32.mrb[20].mxu0 }
 0x13c   :  { %v1725_v31 = vrot.slane %v1549_v20, %v11039_v1  ;;  %v1936_v32 = vsel %vm1926_vm9, %v1717_v23, %v1935_v24  ;;  %v1098_v33 = vrot.slane %v979_v10, %v11034_v57  ;;  %v1105_v34 = vrot.slane %v1091_v22, %v11034_v57  ;;  %v11124_v36 = vpop.f32.mrb[21].mxu0 }
 0x13d   :  { %v1937_v37 = vsel %vm1928_vm10, %v1721_v11, %v1936_v32  ;;  %v8757_v39 = vrot.slane %v1090_v25, 9  ;;  %v1551_v42 = vmax.f32 %v1089_v19, %v8755_v26  ;;  %v1552_v41 = vmax.f32 %v1088_v18, %v8756_v27  ;;  %v11127_v43 = vpop.f32.mrb[22].mxu0 }
 0x13e   :  { %v1938_v44 = vsel %vm1930_vm11, %v1725_v31, %v1937_v37  ;;  %v1729_v46 = vrot.slane %v1550_v29, %v11039_v1  ;;  %v1106_v48 = vcombine.high %v1098_v33, %v1098_v33  ;;  %v1107_v47 = vcombine.high %v1105_v34, %v1105_v34  ;;  %v11131_v49 = vpop.f32.mrb[23].mxu0 }
 0x13f   :  { %1991 = vst.msk [vmem:[#allocation2 + $0x21] sm:$0xff] %vm922_vm1, %v1938_v44  ;;  %v1553_v50 = vmax.f32 %v1090_v25, %v8757_v39  ;;  %v1733_v51 = vrot.slane %v1551_v42, %v11039_v1  ;;  %v1737_v55 = vrot.slane %v1552_v41, %v11039_v1  ;;  %v8758_v56 = vrot.slane %v1098_v33, 9 }
 0x140   :  { %v8759_v58 = vrot.slane %v1106_v48, 9  ;;  %v8760_v59 = vrot.slane %v1105_v34, 9  ;;  %v8761_v61 = vrot.slane %v1107_v47, 9  ;;  %v870_v63 = vmax.f32 %v806_v13, 0.0 }
 0x141   :  { %v1741_v3 = vrot.slane %v1553_v50, %v11039_v1  ;;  %v1939_v4 = vsel %vm1918_vm5, %v1733_v51, %v1729_v46  ;;  %v1554_v5 = vmax.f32 %v1098_v33, %v8758_v56  ;;  %v809_v6 = vadd.f32 %v11019_v40, %v738_v0 }
 0x142   :  { %v1940_v8 = vsel %vm1920_vm6, %v1737_v55, %v1939_v4  ;;  %v1555_v9 = vmax.f32 %v1106_v48, %v8759_v58  ;;  %v1556_v10 = vmax.f32 %v1105_v34, %v8760_v59  ;;  %v1557_v14 = vmax.f32 %v1107_v47, %v8761_v61 }
 0x143   :  { %v1745_v15 = vrot.slane %v1554_v5, %v11039_v1  ;;  %v1941_v16 = vsel %vm1922_vm7, %v1741_v3, %v1940_v8  ;;  %v980_v17 = vmax.f32 %v870_v63, %v872_v62  ;;  %v873_v13 = vmax.f32 %v809_v6, 0.0  ;;  %v11144_v18 = vpop.f32.mrb[24].mxu0 }
 0x144   :  { %v1749_v19 = vrot.slane %v1555_v9, %v11039_v1  ;;  %v1753_v21 = vrot.slane %v1556_v10, %v11039_v1  ;;  %v1757_v0 = vrot.slane %v1557_v14, %v11039_v1  ;;  %v736_v22 = vmul.f32 %v11014_v35, %v11081_v28  ;;  %v11151_v20 = vpop.f32.mrb[25].mxu0 }
 0x145   :  { %v1942_v23 = vsel %vm1924_vm8, %v1745_v15, %v1941_v16  ;;  %v1108_v11 = vcombine.high %v980_v17, %v980_v17  ;;  %v1115_v53 = vrot.slane %v980_v17, %v11034_v57  ;;  %v741_v62 = vmul.f32 %v11099_v54, %v11014_v35  ;;  %v11157_v24 = vpop.f32.mrb[26].mxu0 }
 0x146   :  { %v1943_v25 = vsel %vm1926_vm9, %v1749_v19, %v1942_v23  ;;  %v807_v26 = vadd.f32 %v11019_v40, %v736_v22  ;;  %v739_v27 = vmul.f32 %v11014_v35, %v11102_v60  ;;  %v742_v28 = vmul.f32 %v11107_v2, %v11014_v35  ;;  %v11165_v29 = vpop.f32.mrb[27].mxu0 }
 0x147   :  { %v1944_v31 = vsel %vm1928_vm10, %v1753_v21, %v1943_v25  ;;  %v1122_v32 = vrot.slane %v1108_v11, %v11034_v57  ;;  %v1123_v33 = vcombine.high %v1115_v53, %v1115_v53  ;;  %v8762_v54 = vrot.slane %v1115_v53, 9  ;;  %v9825_v25 = vld [vmem:[#allocation7 + $0x40] sm:$0xff]  }
 0x148   :  { %v1945_v34 = vsel %vm1930_vm11, %v1757_v0, %v1944_v31  ;;  %v871_v37 = vmax.f32 %v807_v26, 0.0  ;;  %v812_v39 = vadd.f32 %v11019_v40, %v741_v62  ;;  %v810_v42 = vadd.f32 %v11019_v40, %v739_v27  ;;  %9443 = vmatprep.subr.bf16.mxu0 %v9825_v25 }
 0x149   :  { %1992 = vst.msk [vmem:[#allocation2 + $0x31] sm:$0xff] %vm922_vm1, %v1945_v34  ;;  %v1124_v60 = vcombine.high %v1122_v32, %v1122_v32  ;;  %v8763_v41 = vrot.slane %v1123_v33, 9  ;;  %v8764_v2 = vrot.slane %v1122_v32, 9  ;;  %v1558_v44 = vmax.f32 %v1115_v53, %v8762_v54 }
 0x14a   :  { %v981_v46 = vmax.f32 %v871_v37, %v873_v13  ;;  %v876_v48 = vmax.f32 %v812_v39, 0.0  ;;  %v874_v47 = vmax.f32 %v810_v42, 0.0  ;;  %v11174_v50 = vadd.f32 %v11019_v40, %v742_v28  ;;  %v9826_v37 = vld [vmem:[#allocation7] sm:$0xff]  }
 0x14b   :  { %v8765_v51 = vrot.slane %v1124_v60, 9  ;;  %v1559_v55 = vmax.f32 %v1123_v33, %v8763_v41  ;;  %v1560_v56 = vmax.f32 %v1122_v32, %v8764_v2  ;;  %v1761_v58 = vrot.slane %v1558_v44, %v11039_v1  ;;  %v11177_v59 = vpop.f32.mrb[28].mxu0  ;;  %9444 = vmatpush3.bf16.msra.mxu0 %v9826_v37 }
 0x14c   :  { %v1125_v61 = vcombine.high %v981_v46, %v981_v46  ;;  %v1132_v63 = vrot.slane %v981_v46, %v11034_v57  ;;  %v982_v3 = vmax.f32 %v874_v47, %v876_v48  ;;  %v877_v4 = vmax.f32 %v11174_v50, 0.0  ;;  %v11181_v5 = vpop.f32.mrb[29].mxu0 }
 0x14d   :  { %v1561_v6 = vmax.f32 %v1124_v60, %v8765_v51  ;;  %v1765_v8 = vrot.slane %v1559_v55, %v11039_v1  ;;  %v1769_v9 = vrot.slane %v1560_v56, %v11039_v1  ;;  %v740_v10 = vmul.f32 %v11014_v35, %v11109_v7  ;;  %v11187_v14 = vpop.f32.mrb[30].mxu0 }
 0x14e   :  { %v1139_v15 = vrot.slane %v1125_v61, %v11034_v57  ;;  %v1140_v16 = vcombine.high %v1132_v63, %v1132_v63  ;;  %v8766_v17 = vrot.slane %v1132_v63, 9  ;;  %v1142_v13 = vcombine.high %v982_v3, %v982_v3  ;;  %v11190_v19 = vpop.f32.mrb[31].mxu0 }
 0x14f   :  { %v1773_v21 = vrot.slane %v1561_v6, %v11039_v1  ;;  %v1946_v0 = vsel %vm1918_vm5, %v1765_v8, %v1761_v58  ;;  %v1149_v22 = vrot.slane %v982_v3, %v11034_v57  ;;  %v811_v23 = vadd.f32 %v11019_v40, %v740_v10 }
 0x150   :  { %v1947_v11 = vsel %vm1920_vm6, %v1769_v9, %v1946_v0  ;;  %v1141_v7 = vcombine.high %v1139_v15, %v1139_v15  ;;  %v8767_v53 = vrot.slane %v1140_v16, 9  ;;  %v8768_v62 = vrot.slane %v1139_v15, 9 }
 0x151   :  { %v1562_v26 = vmax.f32 %v1132_v63, %v8766_v17  ;;  %v1948_v27 = vsel %vm1922_vm7, %v1773_v21, %v1947_v11  ;;  %v1156_v28 = vrot.slane %v1142_v13, %v11034_v57  ;;  %v1157_v31 = vcombine.high %v1149_v22, %v1149_v22 }
 0x152   :  { %v8769_v32 = vrot.slane %v1141_v7, 9  ;;  %v1563_v33 = vmax.f32 %v1140_v16, %v8767_v53  ;;  %v1564_v54 = vmax.f32 %v1139_v15, %v8768_v62  ;;  %v8770_v34 = vrot.slane %v1149_v22, 9 }
 0x153   :  { %v1777_v39 = vrot.slane %v1562_v26, %v11039_v1  ;;  %v1158_v42 = vcombine.high %v1156_v28, %v1156_v28  ;;  %v8771_v60 = vrot.slane %v1157_v31, 9  ;;  %v8772_v41 = vrot.slane %v1156_v28, 9  ;;  %v11200_v2 = vpop.f32.mrb[32].mxu0 }
 0x154   :  { %v1565_v44 = vmax.f32 %v1141_v7, %v8769_v32  ;;  %v1781_v46 = vrot.slane %v1563_v33, %v11039_v1  ;;  %v1785_v48 = vrot.slane %v1564_v54, %v11039_v1  ;;  %v1566_v47 = vmax.f32 %v1149_v22, %v8770_v34  ;;  %v11204_v50 = vpop.f32.mrb[33].mxu0  ;;  %v11241_v34 = vld [vmem:[#allocation2 + $0x20] sm:$0xff] }
 0x155   :  { %v1949_v51 = vsel %vm1924_vm8, %v1777_v39, %v1948_v27  ;;  %v8773_v55 = vrot.slane %v1158_v42, 9  ;;  %v1567_v56 = vmax.f32 %v1157_v31, %v8771_v60  ;;  %v1568_v58 = vmax.f32 %v1156_v28, %v8772_v41  ;;  %v11207_v61 = vpop.f32.mrb[34].mxu0 }
 0x156   :  { %v1789_v63 = vrot.slane %v1565_v44, %v11039_v1  ;;  %v1950_v3 = vsel %vm1926_vm9, %v1781_v46, %v1949_v51  ;;  %v1793_v6 = vrot.slane %v1566_v47, %v11039_v1  ;;  %v875_v8 = vmax.f32 %v811_v23, 0.0  ;;  %v11212_v9 = vpop.f32.mrb[35].mxu0 }
 0x157   :  { %v1951_v10 = vsel %vm1928_vm10, %v1785_v48, %v1950_v3  ;;  %v1569_v15 = vmax.f32 %v1158_v42, %v8773_v55  ;;  %v1797_v16 = vrot.slane %v1567_v56, %v11039_v1  ;;  %v1801_v17 = vrot.slane %v1568_v58, %v11039_v1 }
 0x158   :  { %v1952_v13 = vsel %vm1930_vm11, %v1789_v63, %v1951_v10  ;;  %v983_v21 = vmax.f32 %v875_v8, %v877_v4  ;;  %v745_v0 = vmul.f32 %v11118_v30, %v11014_v35  ;;  %v743_v22 = vmul.f32 %v11014_v35, %v11124_v36  ;;  %v11232_v36 = vld [vmem:[#allocation2 + $0x10] sm:$0xff] }
 0x159   :  { %1993 = vst.msk [vmem:[#allocation2 + $0x41] sm:$0xff] %vm922_vm1, %v1952_v13  ;;  %v1805_v23 = vrot.slane %v1569_v15, %v11039_v1  ;;  %v1953_v11 = vsel %vm1918_vm5, %v1797_v16, %v1793_v6  ;;  %v746_v7 = vmul.f32 %v11127_v43, %v11014_v35  ;;  %v744_v53 = vmul.f32 %v11014_v35, %v11131_v49 }
 0x15a   :  { %v1954_v4 = vsel %vm1920_vm6, %v1801_v17, %v1953_v11  ;;  %v1159_v62 = vcombine.high %v983_v21, %v983_v21  ;;  %v1166_v30 = vrot.slane %v983_v21, %v11034_v57  ;;  %v816_v25 = vadd.f32 %v11019_v40, %v745_v0 }
 0x15b   :  { %v1955_v26 = vsel %vm1922_vm7, %v1805_v23, %v1954_v4  ;;  %v814_v27 = vadd.f32 %v11019_v40, %v743_v22  ;;  %v817_v28 = vadd.f32 %v11019_v40, %v746_v7  ;;  %v815_v43 = vadd.f32 %v11019_v40, %v744_v53  ;;  %v11238_v31 = vpop.f32.mrb[36].mxu0 }
 0x15c   :  { %v1173_v49 = vrot.slane %v1159_v62, %v11034_v57  ;;  %v1174_v32 = vcombine.high %v1166_v30, %v1166_v30  ;;  %v8774_v33 = vrot.slane %v1166_v30, 9  ;;  %v880_v54 = vmax.f32 %v816_v25, 0.0  ;;  %v11243_v37 = vpop.f32.mrb[37].mxu0 }
 0x15d   :  { %v878_v39 = vmax.f32 %v814_v27, 0.0  ;;  %v881_v42 = vmax.f32 %v817_v28, 0.0  ;;  %v879_v60 = vmax.f32 %v815_v43, 0.0  ;;  %v3035_v41 = vpack.c.bf16 %v11232_v36, %v11030_v52  ;;  %v11247_v44 = vpop.f32.mrb[38].mxu0 }
 0x15e   :  { %v1175_v46 = vcombine.high %v1173_v49, %v1173_v49  ;;  %v8775_v48 = vrot.slane %v1174_v32, 9  ;;  %v8776_v47 = vrot.slane %v1173_v49, 9  ;;  %v1570_v51 = vmax.f32 %v1166_v30, %v8774_v33  ;;  %v11249_v55 = vpop.f32.mrb[39].mxu0 }
 0x15f   :  { %v984_v56 = vmax.f32 %v878_v39, %v880_v54  ;;  %v985_v58 = vmax.f32 %v879_v60, %v881_v42  ;;  %v3158_v63 = vpack.c.bf16 %v11241_v34, %v11232_v36  ;;  %3039 = vst.msk [vmem:[#allocation3] sm:$0xff] %vm922_vm1, %v3035_v41  ;;  %v749_v3 = vmul.f32 %v11144_v18, %v11014_v35 }
 0x160   :  { %v8777_v6 = vrot.slane %v1175_v46, 9  ;;  %v1571_v52 = vmax.f32 %v1174_v32, %v8775_v48  ;;  %v1572_v8 = vmax.f32 %v1173_v49, %v8776_v47  ;;  %v1809_v10 = vrot.slane %v1570_v51, %v11039_v1 }
 0x161   :  { %v1176_v15 = vcombine.high %v984_v56, %v984_v56  ;;  %v1183_v16 = vrot.slane %v984_v56, %v11034_v57  ;;  %v1193_v17 = vcombine.high %v985_v58, %v985_v58  ;;  %v1200_v13 = vrot.slane %v985_v58, %v11034_v57  ;;  %3166 = vrot.lane.b32.xlu0 %v3158_v63, %s10634_s7 }
 0x162   :  { %v1573_v21 = vmax.f32 %v1175_v46, %v8777_v6  ;;  %v1813_v0 = vrot.slane %v1571_v52, %v11039_v1  ;;  %v1817_v22 = vrot.slane %v1572_v8, %v11039_v1  ;;  %v1956_v18 = vsel %vm1924_vm8, %v1809_v10, %v1955_v26 }
 0x163   :  { %v1190_v23 = vrot.slane %v1176_v15, %v11034_v57  ;;  %v1191_v11 = vcombine.high %v1183_v16, %v1183_v16  ;;  %v8778_v7 = vrot.slane %v1183_v16, 9  ;;  %v1207_v53 = vrot.slane %v1193_v17, %v11034_v57  ;;  %v11265_v4 = vpop.f32.mrb[40].mxu0 }
 0x164   :  { %v1821_v62 = vrot.slane %v1573_v21, %v11039_v1  ;;  %v1957_v30 = vsel %vm1926_vm9, %v1813_v0, %v1956_v18  ;;  %v1208_v25 = vcombine.high %v1200_v13, %v1200_v13  ;;  %v8782_v27 = vrot.slane %v1200_v13, 9  ;;  %v11269_v28 = vpop.f32.mrb[41].mxu0 }
 0x165   :  { %v1958_v43 = vsel %vm1928_vm10, %v1817_v22, %v1957_v30  ;;  %v1192_v49 = vcombine.high %v1190_v23, %v1190_v23  ;;  %v8779_v26 = vrot.slane %v1191_v11, 9  ;;  %v8780_v32 = vrot.slane %v1190_v23, 9  ;;  %v11272_v33 = vpop.f32.mrb[42].mxu0 }
 0x166   :  { %v1959_v54 = vsel %vm1930_vm11, %v1821_v62, %v1958_v43  ;;  %v1574_v39 = vmax.f32 %v1183_v16, %v8778_v7  ;;  %v1209_v42 = vcombine.high %v1207_v53, %v1207_v53  ;;  %v8783_v60 = vrot.slane %v1208_v25, 9  ;;  %v11275_v41 = vpop.f32.mrb[43].mxu0  ;;  %v3018_v16 = vld [vmem:[#allocation2 + $0x18] sm:$0x3] }
 0x167   :  { %1994 = vst.msk [vmem:[#allocation2 + $0x51] sm:$0xff] %vm922_vm1, %v1959_v54  ;;  %v8781_v46 = vrot.slane %v1192_v49, 9  ;;  %v1575_v48 = vmax.f32 %v1191_v11, %v8779_v26  ;;  %v1576_v47 = vmax.f32 %v1190_v23, %v8780_v32  ;;  %v8784_v51 = vrot.slane %v1207_v53, 9 }
 0x168   :  { %v1825_v56 = vrot.slane %v1574_v39, %v11039_v1  ;;  %v8785_v58 = vrot.slane %v1209_v42, 9  ;;  %v1578_v63 = vmax.f32 %v1200_v13, %v8782_v27  ;;  %v1579_v6 = vmax.f32 %v1208_v25, %v8783_v60  ;;  %v9827_v60 = vld [vmem:[#allocation7 + $0x48] sm:$0xff]  }
 0x169   :  { %v1577_v52 = vmax.f32 %v1192_v49, %v8781_v46  ;;  %v1829_v8 = vrot.slane %v1575_v48, %v11039_v1  ;;  %v1833_v10 = vrot.slane %v1576_v47, %v11039_v1  ;;  %v1580_v15 = vmax.f32 %v1207_v53, %v8784_v51  ;;  %9445 = vmatprep.subr.bf16.mxu0 %v9827_v60 }
 0x16a   :  { %v1581_v17 = vmax.f32 %v1209_v42, %v8785_v58  ;;  %v1841_v21 = vrot.slane %v1578_v63, %v11039_v1  ;;  %v1845_v0 = vrot.slane %v1579_v6, %v11039_v1  ;;  %v820_v22 = vadd.f32 %v11019_v40, %v749_v3  ;;  %v11324_v58 = vld [vmem:[#allocation2 + $0x40] sm:$0xff] }
 0x16b   :  { %v1837_v18 = vrot.slane %v1577_v52, %v11039_v1  ;;  %v1960_v23 = vsel %vm1918_vm5, %v1829_v8, %v1825_v56  ;;  %v1849_v13 = vrot.slane %v1580_v15, %v11039_v1  ;;  %v3063_v11 = vrot.slane %v11232_v36, 1  ;;  %v11288_v7 = vpop.f32.mrb[44].mxu0  ;;  %v11322_v56 = vld [vmem:[#allocation2 + $0x30] sm:$0xff] }
 0x16c   :  { %v1961_v53 = vsel %vm1920_vm6, %v1833_v10, %v1960_v23  ;;  %v1853_v62 = vrot.slane %v1581_v17, %v11039_v1  ;;  %v884_v30 = vmax.f32 %v820_v22, 0.0  ;;  %v3064_v25 = vrot.slane %v3018_v16, 1  ;;  %v11292_v27 = vpop.f32.mrb[45].mxu0 }
 0x16d   :  { %v1962_v3 = vsel %vm1922_vm7, %v1837_v18, %v1961_v53  ;;  %v747_v43 = vmul.f32 %v11014_v35, %v11151_v20  ;;  %v750_v49 = vmul.f32 %v11157_v24, %v11014_v35  ;;  %v748_v36 = vmul.f32 %v11014_v35, %v11165_v29  ;;  %v11301_v26 = vpop.f32.mrb[46].mxu0 }
 0x16e   :  { %v1963_v32 = vsel %vm1924_vm8, %v1841_v21, %v1962_v3  ;;  %v11305_v54 = vsel %vm3059_vm4, %v3063_v11, %v3064_v25  ;;  %v753_v39 = vmul.f32 %v11177_v59, %v11014_v35  ;;  %v751_v42 = vmul.f32 %v11014_v35, %v11181_v5  ;;  %v11311_v20 = vpop.f32.mrb[47].mxu0  ;;  %v11330_v8 = vld [vmem:[#allocation2 + $0x50] sm:$0xff]  ;;  %v9828_v21 = vld [vmem:[#allocation7 + $0x8] sm:$0xff]  }
 0x16f   :  { %v1964_v24 = vsel %vm1926_vm9, %v1845_v0, %v1963_v32  ;;  %v3092_v29 = vpack.c.bf16 %v11305_v54, %v11047_v12  ;;  %v818_v46 = vadd.f32 %v11019_v40, %v747_v43  ;;  %v821_v48 = vadd.f32 %v11019_v40, %v750_v49  ;;  %9446 = vmatpush3.bf16.msra.mxu0 %v9828_v21 }
 0x170   :  { %v1965_v47 = vsel %vm1928_vm10, %v1849_v13, %v1964_v24  ;;  %v819_v51 = vadd.f32 %v11019_v40, %v748_v36  ;;  %v824_v59 = vadd.f32 %v11019_v40, %v753_v39  ;;  %v822_v5 = vadd.f32 %v11019_v40, %v751_v42 }
 0x171   :  { %v1966_v63 = vsel %vm1930_vm11, %v1853_v62, %v1965_v47  ;;  %3100 = vrot.lane.b32.xlu0 %v3092_v29, %s10634_s7  ;;  %v882_v12 = vmax.f32 %v818_v46, 0.0  ;;  %v885_v6 = vmax.f32 %v821_v48, 0.0  ;;  %v754_v52 = vmul.f32 %v11187_v14, %v11014_v35 }
 0x172   :  { %1995 = vst.msk [vmem:[#allocation2 + $0x61] sm:$0xff] %vm922_vm1, %v1966_v63  ;;  %v883_v10 = vmax.f32 %v819_v51, 0.0  ;;  %v888_v15 = vmax.f32 %v824_v59, 0.0  ;;  %v886_v16 = vmax.f32 %v822_v5, 0.0  ;;  %v752_v17 = vmul.f32 %v11014_v35, %v11190_v19 }
 0x173   :  { %v986_v0 = vmax.f32 %v882_v12, %v884_v30  ;;  %v11336_v22 = vadd.f32 %v11019_v40, %v754_v52  ;;  %v3036_v18 = vpack.c.bf16 %v11322_v56, %v11241_v34  ;;  %v3159_v14 = vpack.c.bf16 %v11324_v58, %v11322_v56  ;;  %v11342_v23 = vpop.f32.mrb[48].mxu0 }
 0x174   :  { %v987_v13 = vmax.f32 %v883_v10, %v885_v6  ;;  %v988_v11 = vmax.f32 %v886_v16, %v888_v15  ;;  %v11345_v53 = vadd.f32 %v11019_v40, %v752_v17  ;;  %v3037_v19 = vpack.c.bf16 %v11330_v8, %v11324_v58  ;;  %v11349_v62 = vpop.f32.mrb[49].mxu0 }
 0x175   :  { %v1210_v30 = vcombine.high %v986_v0, %v986_v0  ;;  %v1217_v25 = vrot.slane %v986_v0, %v11034_v57  ;;  %v889_v3 = vmax.f32 %v11336_v22, 0.0  ;;  %3168 = vrot.lane.b32.xlu1 %v3159_v14, %s10634_s7  ;;  %3040 = vst.msk [vmem:[#allocation3 + $0x28] sm:$0xff] %vm922_vm1, %v3036_v18  ;;  %3225 = vst.msk [vmem:[#allocation3 + $0x18] sm:$0xff] %vm922_vm1, %v3036_v18  ;;  %v11358_v43 = vpop.f32.mrb[50].mxu0 }
 0x176   :  { %v757_v40 = vmul.f32 %v11200_v2, %v11014_v35  ;;  %v1227_v49 = vcombine.high %v987_v13, %v987_v13  ;;  %v1234_v36 = vrot.slane %v987_v13, %v11034_v57  ;;  %v1244_v32 = vcombine.high %v988_v11, %v988_v11  ;;  %3041 = vst.msk [vmem:[#allocation3 + $0x50] sm:$0xff] %vm922_vm1, %v3037_v19  ;;  %v11364_v42 = vpop.f32.mrb[51].mxu0 }
 0x177   :  { %v1251_v39 = vrot.slane %v988_v11, %v11034_v57  ;;  %3226 = vst.msk [vmem:[#allocation3 + $0x40] sm:$0xff] %vm922_vm1, %v3037_v19  ;;  %v1224_v60 = vrot.slane %v1210_v30, %v11034_v57  ;;  %v1225_v24 = vcombine.high %v1217_v25, %v1217_v25  ;;  %v8786_v29 = vrot.slane %v1217_v25, 9 }
 0x178   :  { %v887_v35 = vmax.f32 %v11345_v53, 0.0  ;;  %v1241_v2 = vrot.slane %v1227_v49, %v11034_v57  ;;  %v1242_v46 = vcombine.high %v1234_v36, %v1234_v36  ;;  %v8790_v48 = vrot.slane %v1234_v36, 9 }
 0x179   :  { %v1258_v47 = vrot.slane %v1244_v32, %v11034_v57  ;;  %v1226_v51 = vcombine.high %v1224_v60, %v1224_v60  ;;  %v8787_v59 = vrot.slane %v1225_v24, 9  ;;  %v8788_v5 = vrot.slane %v1224_v60, 9 }
 0x17a   :  { %v1582_v63 = vmax.f32 %v1217_v25, %v8786_v29  ;;  %v1243_v12 = vcombine.high %v1241_v2, %v1241_v2  ;;  %v8791_v6 = vrot.slane %v1242_v46, 9  ;;  %v8792_v52 = vrot.slane %v1241_v2, 9 }
 0x17b   :  { %v1586_v10 = vmax.f32 %v1234_v36, %v8790_v48  ;;  %v8789_v15 = vrot.slane %v1226_v51, 9  ;;  %v1583_v16 = vmax.f32 %v1225_v24, %v8787_v59  ;;  %v1584_v17 = vmax.f32 %v1224_v60, %v8788_v5  ;;  %v11371_v0 = vpop.f32.mrb[52].mxu0 }
 0x17c   :  { %v1857_v21 = vrot.slane %v1582_v63, %v11039_v1  ;;  %v8793_v22 = vrot.slane %v1243_v12, 9  ;;  %v1587_v18 = vmax.f32 %v1242_v46, %v8791_v6  ;;  %v1588_v14 = vmax.f32 %v1241_v2, %v8792_v52  ;;  %v11374_v11 = vpop.f32.mrb[53].mxu0 }
 0x17d   :  { %v1873_v13 = vrot.slane %v1586_v10, %v11039_v1  ;;  %v1585_v53 = vmax.f32 %v1226_v51, %v8789_v15  ;;  %v1861_v19 = vrot.slane %v1583_v16, %v11039_v1  ;;  %v1865_v30 = vrot.slane %v1584_v17, %v11039_v1  ;;  %v11378_v49 = vpop.f32.mrb[54].mxu0 }
 0x17e   :  { %v1259_v25 = vcombine.high %v1251_v39, %v1251_v39  ;;  %v1589_v36 = vmax.f32 %v1243_v12, %v8793_v22  ;;  %v1877_v32 = vrot.slane %v1587_v18, %v11039_v1  ;;  %v1881_v60 = vrot.slane %v1588_v14, %v11039_v1  ;;  %v11382_v29 = vpop.f32.mrb[55].mxu0 }
 0x17f   :  { %v1260_v24 = vcombine.high %v1258_v47, %v1258_v47  ;;  %v1869_v2 = vrot.slane %v1585_v53, %v11039_v1  ;;  %v1967_v46 = vsel %vm1918_vm5, %v1861_v19, %v1857_v21  ;;  %v8794_v48 = vrot.slane %v1251_v39, 9  ;;  %v11393_v21 = vld [vmem:[%s13392_s3] ss:$0 sm:$0xff] }
 0x180   :  { %v8795_v51 = vrot.slane %v1259_v25, 9  ;;  %v1968_v59 = vsel %vm1920_vm6, %v1865_v30, %v1967_v46  ;;  %v1885_v5 = vrot.slane %v1589_v36, %v11039_v1  ;;  %v8796_v63 = vrot.slane %v1258_v47, 9  ;;  %v3022_v46 = vld [vmem:[#allocation2 + $0x38] sm:$0x3] }
 0x181   :  { %v8797_v6 = vrot.slane %v1260_v24, 9  ;;  %v1969_v12 = vsel %vm1922_vm7, %v1869_v2, %v1968_v59  ;;  %v1590_v52 = vmax.f32 %v1251_v39, %v8794_v48  ;;  %v989_v15 = vmax.f32 %v887_v35, %v889_v3 }
 0x182   :  { %v1591_v10 = vmax.f32 %v1259_v25, %v8795_v51  ;;  %v1970_v16 = vsel %vm1924_vm8, %v1873_v13, %v1969_v12  ;;  %v1592_v17 = vmax.f32 %v1258_v47, %v8796_v63  ;;  %v11396_v18 = vadd.f32 %v11393_v21, %v757_v40  ;;  %v3020_v25 = vld [vmem:[#allocation2 + $0x28] sm:$0x3] }
 0x183   :  { %v1593_v22 = vmax.f32 %v1260_v24, %v8797_v6  ;;  %v1971_v14 = vsel %vm1926_vm9, %v1877_v32, %v1970_v16  ;;  %v1889_v53 = vrot.slane %v1590_v52, %v11039_v1  ;;  %v1261_v19 = vcombine.high %v989_v15, %v989_v15  ;;  %v11401_v3 = vpop.f32.mrb[56].mxu0 }
 0x184   :  { %v1893_v39 = vrot.slane %v1591_v10, %v11039_v1  ;;  %v1972_v35 = vsel %vm1928_vm10, %v1881_v60, %v1971_v14  ;;  %v1897_v47 = vrot.slane %v1592_v17, %v11039_v1  ;;  %v1268_v30 = vrot.slane %v989_v15, %v11034_v57  ;;  %v11407_v40 = vpop.f32.mrb[57].mxu0 }
 0x185   :  { %v1901_v13 = vrot.slane %v1593_v22, %v11039_v1  ;;  %v1973_v36 = vsel %vm1930_vm11, %v1885_v5, %v1972_v35  ;;  %v1275_v24 = vrot.slane %v1261_v19, %v11034_v57  ;;  %v892_v2 = vmax.f32 %v11396_v18, 0.0  ;;  %v11413_v48 = vpop.f32.mrb[58].mxu0 }
 0x186   :  { %v1974_v32 = vsel %vm1918_vm5, %v1893_v39, %v1889_v53  ;;  %1996 = vst.msk [vmem:[#allocation2 + $0x71] sm:$0xff] %vm922_vm1, %v1973_v36  ;;  %v1276_v51 = vcombine.high %v1268_v30, %v1268_v30  ;;  %v8798_v59 = vrot.slane %v1268_v30, 9  ;;  %v3066_v63 = vrot.slane %v11241_v34, 1  ;;  %v11418_v6 = vpop.f32.mrb[59].mxu0  ;;  %v11426_v34 = vld [vmem:[%s13391_s2] ss:$0 sm:$0xff] }
 0x187   :  { %v1975_v60 = vsel %vm1920_vm6, %v1897_v47, %v1974_v32  ;;  %v1277_v5 = vcombine.high %v1275_v24, %v1275_v24  ;;  %v8800_v12 = vrot.slane %v1275_v24, 9  ;;  %v3067_v10 = vrot.slane %v3020_v25, 1 }
 0x188   :  { %v1976_v52 = vsel %vm1922_vm7, %v1901_v13, %v1975_v60  ;;  %v8799_v15 = vrot.slane %v1276_v51, 9  ;;  %v1594_v16 = vmax.f32 %v1268_v30, %v8798_v59  ;;  %v3069_v17 = vrot.slane %v11322_v56, 1  ;;  %v3024_v13 = vld [vmem:[#allocation2 + $0x48] sm:$0x3] }
 0x189   :  { %v3070_v22 = vrot.slane %v3022_v46, 1  ;;  %v8801_v18 = vrot.slane %v1277_v5, 9  ;;  %v1596_v14 = vmax.f32 %v1275_v24, %v8800_v12  ;;  %v3068_v53 = vsel %vm3059_vm4, %v3066_v63, %v3067_v10 }
 0x18a   :  { %v755_v39 = vmul.f32 %v11426_v34, %v11204_v50  ;;  %v1595_v19 = vmax.f32 %v1276_v51, %v8799_v15  ;;  %v1905_v35 = vrot.slane %v1594_v16, %v11039_v1  ;;  %v3188_v56 = vpack.c.bf16 %v3068_v53, %v11305_v54  ;;  %v3026_v51 = vld [vmem:[#allocation2 + $0x58] sm:$0x3] }
 0x18b   :  { %v3071_v47 = vsel %vm3059_vm4, %v3069_v17, %v3070_v22  ;;  %v1597_v30 = vmax.f32 %v1277_v5, %v8801_v18  ;;  %v1913_v25 = vrot.slane %v1596_v14, %v11039_v1  ;;  %v11435_v24 = vpop.f32.mrb[60].mxu0  ;;  %v758_v60 = vmul.f32 %v11426_v34, %v11207_v61  ;;  %v9829_v17 = vld [vmem:[#allocation7 + $0x50] sm:$0xff]   ;;  %v9831_v18 = vld [vmem:[#allocation7 + $0x58] sm:$0xff]  }
 0x18c   :  { %v3093_v36 = vpack.c.bf16 %v3071_v47, %v3068_v53  ;;  %v826_v32 = vadd.f32 %v11393_v21, %v755_v39  ;;  %v1909_v46 = vrot.slane %v1595_v19, %v11039_v1  ;;  %v1977_v50 = vsel %vm1924_vm8, %v1905_v35, %v1976_v52  ;;  %3192 = vst.msk [vmem:[#allocation3 + $0x10] sm:$0xff] %vm922_vm1, %v3188_v56  ;;  %v11444_v59 = vpop.f32.mrb[61].mxu0  ;;  %v9830_v22 = vld [vmem:[#allocation7 + $0x10] sm:$0xff]  }
 0x18d   :  { %v756_v54 = vmul.f32 %v11426_v34, %v11212_v9  ;;  %v1917_v63 = vrot.slane %v1597_v30, %v11039_v1  ;;  %v3072_v12 = vrot.slane %v11324_v58, 1  ;;  %v3073_v10 = vrot.slane %v3024_v13, 1  ;;  %v11453_v9 = vpop.f32.mrb[62].mxu0  ;;  %9447 = vmatprep.subr.bf16.mxu0 %v9829_v17 }
 0x18e   :  { %3102 = vrot.lane.b32.xlu1 %v3093_v36, %s10634_s7  ;;  %v890_v5 = vmax.f32 %v826_v32, 0.0  ;;  %v1978_v52 = vsel %vm1926_vm9, %v1909_v46, %v1977_v50  ;;  %v829_v15 = vadd.f32 %v11393_v21, %v758_v60  ;;  %v3075_v16 = vrot.slane %v11330_v8, 1  ;;  %v11457_v19 = vpop.f32.mrb[63].mxu0  ;;  %9448 = vmatpush3.bf16.msra.mxu0 %v9830_v22  ;;  %v9834_v22 = vld [vmem:[#allocation7 + $0x20] sm:$0xff]  }
 0x18f   :  { %v827_v61 = vadd.f32 %v11393_v21, %v756_v54  ;;  %v1979_v14 = vsel %vm1928_vm10, %v1913_v25, %v1978_v52  ;;  %v3074_v39 = vsel %vm3059_vm4, %v3072_v12, %v3073_v10  ;;  %v3076_v58 = vrot.slane %v3026_v51, 1  ;;  %v9832_v25 = vld [vmem:[#allocation7 + $0x18] sm:$0xff]   ;;  %9449 = vmatprep.subr.bf16.mxu0 %v9831_v18  ;;  %v9833_v51 = vld [vmem:[#allocation7 + $0x60] sm:$0xff]  }
 0x190   :  { %v1998_v53 = vmax.f32 %v890_v5, %v892_v2  ;;  %v1980_v35 = vsel %vm1930_vm11, %v1917_v63, %v1979_v14  ;;  %v893_v56 = vmax.f32 %v829_v15, 0.0  ;;  %v3189_v30 = vpack.c.bf16 %v3074_v39, %v3071_v47 }
 0x191   :  { %v891_v13 = vmax.f32 %v827_v61, 0.0  ;;  %1997 = vst.msk [vmem:[#allocation2 + $0x81] sm:$0xff] %vm922_vm1, %v1980_v35  ;;  %v11463_v46 = vsel %vm3059_vm4, %v3075_v16, %v3076_v58  ;;  %v761_v2 = vmul.f32 %v11426_v34, %v11238_v31  ;;  %v759_v47 = vmul.f32 %v11426_v34, %v11243_v37 }
 0x192   :  { %v2030_v36 = vcombine.high %v1998_v53, %v1998_v53  ;;  %v2037_v32 = vrot.slane %v1998_v53, %v11034_v57  ;;  %v3094_v60 = vpack.c.bf16 %v11463_v46, %v3074_v39  ;;  %3193 = vst.msk [vmem:[#allocation3 + $0x38] sm:$0xff] %vm922_vm1, %v3189_v30  ;;  %v762_v54 = vmul.f32 %v11426_v34, %v11247_v44 }
 0x193   :  { %v1999_v50 = vmax.f32 %v891_v13, %v893_v56  ;;  %v832_v31 = vadd.f32 %v11393_v21, %v761_v2  ;;  %v830_v15 = vadd.f32 %v11393_v21, %v759_v47  ;;  %9450 = vmatpush3.bf16.msra.mxu0 %v9832_v25 }
 0x194   :  { %v2044_v63 = vrot.slane %v2030_v36, %v11034_v57  ;;  %v2045_v5 = vcombine.high %v2037_v32, %v2037_v32  ;;  %v8802_v12 = vrot.slane %v2037_v32, 9  ;;  %3104 = vrot.lane.b32.xlu1 %v3094_v60, %s10634_s7  ;;  %v11479_v37 = vadd.f32 %v11393_v21, %v762_v54  ;;  %9451 = vmatprep.subr.bf16.mxu0 %v9833_v51  ;;  %v9835_v60 = vld [vmem:[#allocation7 + $0x68] sm:$0xff]  }
 0x195   :  { %v2047_v10 = vcombine.high %v1999_v50, %v1999_v50  ;;  %v2054_v52 = vrot.slane %v1999_v50, %v11034_v57  ;;  %v896_v39 = vmax.f32 %v832_v31, 0.0  ;;  %v894_v54 = vmax.f32 %v830_v15, 0.0 }
 0x196   :  { %v2046_v61 = vcombine.high %v2044_v63, %v2044_v63  ;;  %v8803_v44 = vrot.slane %v2045_v5, 9  ;;  %v8804_v16 = vrot.slane %v2044_v63, 9  ;;  %v2558_v17 = vmax.f32 %v2037_v32, %v8802_v12  ;;  %v9836_v12 = vld [vmem:[#allocation7 + $0x28] sm:$0xff]  }
 0x197   :  { %v2061_v18 = vrot.slane %v2047_v10, %v11034_v57  ;;  %v2062_v14 = vcombine.high %v2054_v52, %v2054_v52  ;;  %v8806_v53 = vrot.slane %v2054_v52, 9  ;;  %9452 = vmatpush3.bf16.msra.mxu0 %v9834_v22 }
 0x198   :  { %v8805_v58 = vrot.slane %v2046_v61, 9  ;;  %v2559_v35 = vmax.f32 %v2045_v5, %v8803_v44  ;;  %v2560_v56 = vmax.f32 %v2044_v63, %v8804_v16  ;;  %v2689_v13 = vrot.slane %v2558_v17, %v11039_v1  ;;  %9453 = vmatprep.subr.bf16.mxu0 %v9835_v60  ;;  %v11489_v16 = vld [vmem:[#allocation2 + $0x60] sm:$0xff]  ;;  %v11491_v17 = vld [vmem:[#allocation2 + $0x70] sm:$0xff] }
 0x199   :  { %v2063_v30 = vcombine.high %v2061_v18, %v2061_v18  ;;  %v8807_v36 = vrot.slane %v2062_v14, 9  ;;  %v8808_v2 = vrot.slane %v2061_v18, 9  ;;  %v2562_v50 = vmax.f32 %v2054_v52, %v8806_v53  ;;  %v9837_v53 = vld [vmem:[#allocation7 + $0x70] sm:$0xff]  }
 0x19a   :  { %v2561_v47 = vmax.f32 %v2046_v61, %v8805_v58  ;;  %v2693_v32 = vrot.slane %v2559_v35, %v11039_v1  ;;  %v2697_v25 = vrot.slane %v2560_v56, %v11039_v1  ;;  %v2000_v52 = vmax.f32 %v894_v54, %v896_v39  ;;  %v9838_v39 = vld [vmem:[#allocation7 + $0x30] sm:$0xff]  }
 0x19b   :  { %v8809_v31 = vrot.slane %v2063_v30, 9  ;;  %v2563_v51 = vmax.f32 %v2062_v14, %v8807_v36  ;;  %v2564_v10 = vmax.f32 %v2061_v18, %v8808_v2  ;;  %v2705_v63 = vrot.slane %v2562_v50, %v11039_v1  ;;  %9454 = vmatpush3.bf16.msra.mxu0 %v9836_v12  ;;  %v9839_v12 = vld [vmem:[#allocation7 + $0x78] sm:$0xff]  }
 0x19c   :  { %v2701_v5 = vrot.slane %v2561_v47, %v11039_v1  ;;  %v2942_v44 = vsel %vm1918_vm5, %v2693_v32, %v2689_v13  ;;  %v897_v61 = vmax.f32 %v11479_v37, 0.0  ;;  %v2064_v35 = vcombine.high %v2000_v52, %v2000_v52  ;;  %9455 = vmatprep.subr.bf16.mxu0 %v9837_v53 }
 0x19d   :  { %v2943_v15 = vsel %vm1920_vm6, %v2697_v25, %v2942_v44  ;;  %v2565_v22 = vmax.f32 %v2063_v30, %v8809_v31  ;;  %v2709_v14 = vrot.slane %v2563_v51, %v11039_v1  ;;  %v2713_v18 = vrot.slane %v2564_v10, %v11039_v1 }
 0x19e   :  { %v2944_v58 = vsel %vm1922_vm7, %v2701_v5, %v2943_v15  ;;  %v2071_v56 = vrot.slane %v2000_v52, %v11034_v57  ;;  %v760_v37 = vmul.f32 %v11426_v34, %v11249_v55  ;;  %v3160_v30 = vpack.c.bf16 %v11489_v16, %v11330_v8  ;;  %v9840_v5 = vld [vmem:[#allocation7 + $0x38] sm:$0xff]  }
 0x19f   :  { %v2717_v13 = vrot.slane %v2565_v22, %v11039_v1  ;;  %v2945_v36 = vsel %vm1924_vm8, %v2705_v63, %v2944_v58  ;;  %v3038_v2 = vpack.c.bf16 %v11491_v17, %v11489_v16  ;;  %v2078_v60 = vrot.slane %v2064_v35, %v11034_v57  ;;  %9456 = vmatpush3.bf16.msra.mxu0 %v9838_v39 }
 0x1a0   :  { %v2946_v50 = vsel %vm1926_vm9, %v2709_v14, %v2945_v36  ;;  %v2079_v47 = vcombine.high %v2071_v56, %v2071_v56  ;;  %v8810_v32 = vrot.slane %v2071_v56, 9  ;;  %v831_v25 = vadd.f32 %v11393_v21, %v760_v37  ;;  %3170 = vrot.lane.b32.xlu0 %v3160_v30, %s10634_s7  ;;  %9457 = vmatprep.subr.bf16.mxu0 %v9839_v12 }
 0x1a1   :  { %v2947_v55 = vsel %vm1928_vm10, %v2713_v18, %v2946_v50  ;;  %3042 = vst.msk [vmem:[#allocation3 + $0x78] sm:$0xff] %vm922_vm1, %v3038_v2  ;;  %3227 = vst.msk [vmem:[#allocation3 + $0x68] sm:$0xff] %vm922_vm1, %v3038_v2  ;;  %v765_v8 = vmul.f32 %v11426_v34, %v11265_v4  ;;  %v763_v54 = vmul.f32 %v11426_v34, %v11269_v28  ;;  %v8812_v63 = vrot.slane %v2078_v60, 9 }
 0x1a2   :  { %v2948_v31 = vsel %vm1930_vm11, %v2717_v13, %v2947_v55  ;;  %v2080_v51 = vcombine.high %v2078_v60, %v2078_v60  ;;  %v8811_v10 = vrot.slane %v2079_v47, 9  ;;  %v2566_v44 = vmax.f32 %v2071_v56, %v8810_v32 }
 0x1a3   :  { %3007 = vst.msk [vmem:[#allocation2 + $0xb1] sm:$0xff] %vm922_vm1, %v2948_v31  ;;  %v895_v52 = vmax.f32 %v831_v25, 0.0  ;;  %v836_v15 = vadd.f32 %v11393_v21, %v765_v8  ;;  %v834_v22 = vadd.f32 %v11393_v21, %v763_v54  ;;  %v2568_v28 = vmax.f32 %v2078_v60, %v8812_v63  ;;  %9458 = vmatpush3.bf16.msra.mxu0 %v9840_v5 }
 0x1a4   :  { %v8813_v4 = vrot.slane %v2080_v51, 9  ;;  %v2567_v14 = vmax.f32 %v2079_v47, %v8811_v10  ;;  %v766_v18 = vmul.f32 %v11426_v34, %v11272_v33  ;;  %v2721_v53 = vrot.slane %v2566_v44, %v11039_v1 }
 0x1a5   :  { %v2001_v58 = vmax.f32 %v895_v52, %v897_v61  ;;  %v900_v35 = vmax.f32 %v836_v15, 0.0  ;;  %v898_v37 = vmax.f32 %v834_v22, 0.0  ;;  %v2729_v13 = vrot.slane %v2568_v28, %v11039_v1 }
 0x1a6   :  { %v2569_v39 = vmax.f32 %v2080_v51, %v8813_v4  ;;  %v2725_v56 = vrot.slane %v2567_v14, %v11039_v1  ;;  %v837_v36 = vadd.f32 %v11393_v21, %v766_v18  ;;  %v764_v33 = vmul.f32 %v11426_v34, %v11275_v41 }
 0x1a7   :  { %v2081_v30 = vcombine.high %v2001_v58, %v2001_v58  ;;  %v2088_v2 = vrot.slane %v2001_v58, %v11034_v57  ;;  %v2002_v50 = vmax.f32 %v898_v37, %v900_v35  ;;  %v3078_v32 = vrot.slane %v11489_v16, 1 }
 0x1a8   :  { %v2733_v60 = vrot.slane %v2569_v39, %v11039_v1  ;;  %v2949_v61 = vsel %vm1918_vm5, %v2725_v56, %v2721_v53  ;;  %v901_v47 = vmax.f32 %v837_v36, 0.0  ;;  %v835_v41 = vadd.f32 %v11393_v21, %v764_v33  ;;  %v11540_v39 = vld [vmem:[#allocation2 + $0x68] sm:$0x3] }
 0x1a9   :  { %v2950_v55 = vsel %vm1920_vm6, %v2729_v13, %v2949_v61  ;;  %v2095_v25 = vrot.slane %v2081_v30, %v11034_v57  ;;  %v2096_v8 = vcombine.high %v2088_v2, %v2088_v2  ;;  %v8814_v54 = vrot.slane %v2088_v2, 9 }
 0x1aa   :  { %v2951_v12 = vsel %vm1922_vm7, %v2733_v60, %v2950_v55  ;;  %v2098_v31 = vcombine.high %v2002_v50, %v2002_v50  ;;  %v2105_v51 = vrot.slane %v2002_v50, %v11034_v57  ;;  %v899_v22 = vmax.f32 %v835_v41, 0.0 }
 0x1ab   :  { %v2097_v10 = vcombine.high %v2095_v25, %v2095_v25  ;;  %v8815_v63 = vrot.slane %v2096_v8, 9  ;;  %v8816_v5 = vrot.slane %v2095_v25, 9  ;;  %v2570_v44 = vmax.f32 %v2088_v2, %v8814_v54 }
 0x1ac   :  { %v2112_v52 = vrot.slane %v2098_v31, %v11034_v57  ;;  %v2113_v16 = vcombine.high %v2105_v51, %v2105_v51  ;;  %v8818_v15 = vrot.slane %v2105_v51, 9  ;;  %v3079_v54 = vrot.slane %v11540_v39, 1 }
 0x1ad   :  { %v8817_v4 = vrot.slane %v2097_v10, 9  ;;  %v2571_v14 = vmax.f32 %v2096_v8, %v8815_v63  ;;  %v2572_v28 = vmax.f32 %v2095_v25, %v8816_v5  ;;  %v2737_v18 = vrot.slane %v2570_v44, %v11039_v1  ;;  %v11548_v8 = vld [vmem:[#allocation2 + $0x78] sm:$0x3] }
 0x1ae   :  { %v2114_v53 = vcombine.high %v2112_v52, %v2112_v52  ;;  %v8819_v58 = vrot.slane %v2113_v16, 9  ;;  %v8820_v35 = vrot.slane %v2112_v52, 9  ;;  %v2574_v37 = vmax.f32 %v2105_v51, %v8818_v15 }
 0x1af   :  { %v2573_v56 = vmax.f32 %v2097_v10, %v8817_v4  ;;  %v2741_v13 = vrot.slane %v2571_v14, %v11039_v1  ;;  %v2745_v36 = vrot.slane %v2572_v28, %v11039_v1  ;;  %v2952_v30 = vsel %vm1924_vm8, %v2737_v18, %v2951_v12 }
 0x1b0   :  { %v8821_v2 = vrot.slane %v2114_v53, 9  ;;  %v2575_v50 = vmax.f32 %v2113_v16, %v8819_v58  ;;  %v2576_v33 = vmax.f32 %v2112_v52, %v8820_v35  ;;  %v2753_v60 = vrot.slane %v2574_v37, %v11039_v1 }
 0x1b1   :  { %v2749_v61 = vrot.slane %v2573_v56, %v11039_v1  ;;  %v2953_v55 = vsel %vm1926_vm9, %v2741_v13, %v2952_v30  ;;  %v2003_v25 = vmax.f32 %v899_v22, %v901_v47  ;;  %v3080_v44 = vsel %vm3059_vm4, %v3078_v32, %v3079_v54 }
 0x1b2   :  { %v2954_v31 = vsel %vm1928_vm10, %v2745_v36, %v2953_v55  ;;  %v2577_v51 = vmax.f32 %v2114_v53, %v8821_v2  ;;  %v2757_v41 = vrot.slane %v2575_v50, %v11039_v1  ;;  %v2761_v12 = vrot.slane %v2576_v33, %v11039_v1 }
 0x1b3   :  { %v2955_v10 = vsel %vm1930_vm11, %v2749_v61, %v2954_v31  ;;  %v2115_v63 = vcombine.high %v2003_v25, %v2003_v25  ;;  %v2122_v5 = vrot.slane %v2003_v25, %v11034_v57  ;;  %v3081_v16 = vrot.slane %v11491_v17, 1  ;;  %v11579_v61 = vld [vmem:[#allocation2 + $0x80] sm:$0xff] }
 0x1b4   :  { %3008 = vst.msk [vmem:[#allocation2 + $0xc1] sm:$0xff] %vm922_vm1, %v2955_v10  ;;  %v2765_v47 = vrot.slane %v2577_v51, %v11039_v1  ;;  %v2956_v52 = vsel %vm1918_vm5, %v2757_v41, %v2753_v60  ;;  %v3082_v15 = vrot.slane %v11548_v8, 1  ;;  %v3190_v53 = vpack.c.bf16 %v3080_v44, %v11463_v46 }
 0x1b5   :  { %v2957_v22 = vsel %vm1920_vm6, %v2761_v12, %v2956_v52  ;;  %v2129_v4 = vrot.slane %v2115_v63, %v11034_v57  ;;  %v2130_v14 = vcombine.high %v2122_v5, %v2122_v5  ;;  %v8822_v28 = vrot.slane %v2122_v5, 9 }
 0x1b6   :  { %v2958_v18 = vsel %vm1922_vm7, %v2765_v47, %v2957_v22  ;;  %v11566_v32 = vsel %vm3059_vm4, %v3081_v16, %v3082_v15  ;;  %v769_v58 = vmul.f32 %v11426_v34, %v11288_v7  ;;  %3194 = vst.msk [vmem:[#allocation3 + $0x60] sm:$0xff] %vm922_vm1, %v3190_v53  ;;  %v767_v2 = vmul.f32 %v11426_v34, %v11292_v27 }
 0x1b7   :  { %v2131_v35 = vcombine.high %v2129_v4, %v2129_v4  ;;  %v8823_v37 = vrot.slane %v2130_v14, 9  ;;  %v8824_v56 = vrot.slane %v2129_v4, 9  ;;  %v2578_v13 = vmax.f32 %v2122_v5, %v8822_v28 }
 0x1b8   :  { %v3095_v36 = vpack.c.bf16 %v11566_v32, %v3080_v44  ;;  %v840_v30 = vadd.f32 %v11393_v21, %v769_v58  ;;  %v770_v50 = vmul.f32 %v11426_v34, %v11301_v26  ;;  %v838_v25 = vadd.f32 %v11393_v21, %v767_v2 }
 0x1b9   :  { %v8825_v46 = vrot.slane %v2131_v35, 9  ;;  %v2579_v33 = vmax.f32 %v2130_v14, %v8823_v37  ;;  %v2580_v60 = vmax.f32 %v2129_v4, %v8824_v56  ;;  %v2769_v7 = vrot.slane %v2578_v13, %v11039_v1 }
 0x1ba   :  { %3106 = vrot.lane.b32.xlu1 %v3095_v36, %s10634_s7  ;;  %v904_v55 = vmax.f32 %v840_v30, 0.0  ;;  %v841_v54 = vadd.f32 %v11393_v21, %v770_v50  ;;  %v768_v27 = vmul.f32 %v11426_v34, %v11311_v20  ;;  %v902_v12 = vmax.f32 %v838_v25, 0.0 }
 0x1bb   :  { %v2581_v31 = vmax.f32 %v2131_v35, %v8825_v46  ;;  %v2773_v26 = vrot.slane %v2579_v33, %v11039_v1  ;;  %v2777_v51 = vrot.slane %v2580_v60, %v11039_v1  ;;  %v2959_v41 = vsel %vm1924_vm8, %v2769_v7, %v2958_v18 }
 0x1bc   :  { %v905_v10 = vmax.f32 %v841_v54, 0.0  ;;  %v839_v63 = vadd.f32 %v11393_v21, %v768_v27  ;;  %v3161_v5 = vpack.c.bf16 %v11579_v61, %v11491_v17  ;;  %v773_v20 = vmul.f32 %v11426_v34, %v11342_v23  ;;  %v11602_v17 = vld [vmem:[#allocation2 + $0xa0] sm:$0xff] }
 0x1bd   :  { %v2781_v44 = vrot.slane %v2581_v31, %v11039_v1  ;;  %v2960_v47 = vsel %vm1926_vm9, %v2773_v26, %v2959_v41  ;;  %v771_v52 = vmul.f32 %v11426_v34, %v11349_v62  ;;  %v2004_v15 = vmax.f32 %v902_v12, %v904_v55 }
 0x1be   :  { %v2961_v16 = vsel %vm1928_vm10, %v2777_v51, %v2960_v47  ;;  %v903_v22 = vmax.f32 %v839_v63, 0.0  ;;  %3172 = vrot.lane.b32.xlu0 %v3161_v5, %s10634_s7  ;;  %v774_v4 = vmul.f32 %v11426_v34, %v11358_v43  ;;  %v844_v28 = vadd.f32 %v11393_v21, %v773_v20 }
 0x1bf   :  { %v2962_v14 = vsel %vm1930_vm11, %v2781_v44, %v2961_v16  ;;  %v842_v23 = vadd.f32 %v11393_v21, %v771_v52  ;;  %v772_v62 = vmul.f32 %v11426_v34, %v11364_v42  ;;  %v2132_v18 = vcombine.high %v2004_v15, %v2004_v15 }
 0x1c0   :  { %3009 = vst.msk [vmem:[#allocation2 + $0xd1] sm:$0xff] %vm922_vm1, %v2962_v14  ;;  %v2139_v53 = vrot.slane %v2004_v15, %v11034_v57  ;;  %v2005_v58 = vmax.f32 %v903_v22, %v905_v10  ;;  %v845_v35 = vadd.f32 %v11393_v21, %v774_v4  ;;  %v908_v43 = vmax.f32 %v844_v28, 0.0 }
 0x1c1   :  { %v906_v37 = vmax.f32 %v842_v23, 0.0  ;;  %v843_v56 = vadd.f32 %v11393_v21, %v772_v62  ;;  %v3298_v13 = vrot.slane %v11602_v17, 1  ;;  %v2146_v36 = vrot.slane %v2132_v18, %v11034_v57 }
 0x1c2   :  { %v2147_v30 = vcombine.high %v2139_v53, %v2139_v53  ;;  %v8826_v2 = vrot.slane %v2139_v53, 9  ;;  %v2149_v50 = vcombine.high %v2005_v58, %v2005_v58  ;;  %v2156_v42 = vrot.slane %v2005_v58, %v11034_v57 }
 0x1c3   :  { %v2006_v46 = vmax.f32 %v906_v37, %v908_v43  ;;  %v909_v33 = vmax.f32 %v845_v35, 0.0  ;;  %v907_v60 = vmax.f32 %v843_v56, 0.0  ;;  %v2148_v7 = vcombine.high %v2146_v36, %v2146_v36 }
 0x1c4   :  { %v8827_v55 = vrot.slane %v2147_v30, 9  ;;  %v8828_v25 = vrot.slane %v2146_v36, 9  ;;  %v2582_v54 = vmax.f32 %v2139_v53, %v8826_v2  ;;  %v2163_v27 = vrot.slane %v2149_v50, %v11034_v57 }
 0x1c5   :  { %v2164_v31 = vcombine.high %v2156_v42, %v2156_v42  ;;  %v8830_v26 = vrot.slane %v2156_v42, 9  ;;  %v2166_v51 = vcombine.high %v2006_v46, %v2006_v46  ;;  %v8829_v41 = vrot.slane %v2148_v7, 9 }
 0x1c6   :  { %v2583_v12 = vmax.f32 %v2147_v30, %v8827_v55  ;;  %v2584_v10 = vmax.f32 %v2146_v36, %v8828_v25  ;;  %v2785_v63 = vrot.slane %v2582_v54, %v11039_v1  ;;  %v2165_v5 = vcombine.high %v2163_v27, %v2163_v27 }
 0x1c7   :  { %v8831_v44 = vrot.slane %v2164_v31, 9  ;;  %v8832_v47 = vrot.slane %v2163_v27, 9  ;;  %v2586_v20 = vmax.f32 %v2156_v42, %v8830_v26  ;;  %v2585_v52 = vmax.f32 %v2148_v7, %v8829_v41  ;;  %v11632_v26 = vld [vmem:[#allocation7 + $0x100] sm:$0xff]  }
 0x1c8   :  { %v2789_v16 = vrot.slane %v2583_v12, %v11039_v1  ;;  %v2793_v15 = vrot.slane %v2584_v10, %v11039_v1  ;;  %v2173_v22 = vrot.slane %v2006_v46, %v11034_v57  ;;  %v8833_v4 = vrot.slane %v2165_v5, 9  ;;  %9695 = vmatprep.subr.bf16.mxu0 %v11632_v26 }
 0x1c9   :  { %v2587_v14 = vmax.f32 %v2164_v31, %v8831_v44  ;;  %v2588_v28 = vmax.f32 %v2163_v27, %v8832_v47  ;;  %v2801_v23 = vrot.slane %v2586_v20, %v11039_v1  ;;  %v2797_v62 = vrot.slane %v2585_v52, %v11039_v1 }
 0x1ca   :  { %v2963_v18 = vsel %vm1918_vm5, %v2789_v16, %v2785_v63  ;;  %v2180_v53 = vrot.slane %v2166_v51, %v11034_v57  ;;  %v2181_v58 = vcombine.high %v2173_v22, %v2173_v22  ;;  %v2589_v43 = vmax.f32 %v2165_v5, %v8833_v4  ;;  %v11636_v63 = vld [vmem:[#allocation2 + $0xa8] sm:$0x3]  ;;  %v11638_v5 = vld [vmem:[#allocation2 + $0xb0] sm:$0xff] }
 0x1cb   :  { %v2964_v35 = vsel %vm1920_vm6, %v2793_v15, %v2963_v18  ;;  %v2805_v37 = vrot.slane %v2587_v14, %v11039_v1  ;;  %v2809_v56 = vrot.slane %v2588_v28, %v11039_v1  ;;  %v8834_v2 = vrot.slane %v2173_v22, 9 }
 0x1cc   :  { %v2965_v36 = vsel %vm1922_vm7, %v2797_v62, %v2964_v35  ;;  %v2182_v30 = vcombine.high %v2180_v53, %v2180_v53  ;;  %v8835_v50 = vrot.slane %v2181_v58, 9  ;;  %v2813_v42 = vrot.slane %v2589_v43, %v11039_v1 }
 0x1cd   :  { %v2966_v46 = vsel %vm1924_vm8, %v2801_v23, %v2965_v36  ;;  %v8836_v7 = vrot.slane %v2180_v53, 9  ;;  %v2007_v55 = vmax.f32 %v907_v60, %v909_v33  ;;  %v2590_v27 = vmax.f32 %v2173_v22, %v8834_v2  ;;  %v11647_v22 = vld [vmem:[#allocation2 + $0xb8] sm:$0x3] }
 0x1ce   :  { %v2967_v25 = vsel %vm1926_vm9, %v2805_v37, %v2966_v46  ;;  %v8837_v54 = vrot.slane %v2182_v30, 9  ;;  %v2591_v31 = vmax.f32 %v2181_v58, %v8835_v50  ;;  %v3299_v28 = vrot.slane %v11636_v63, 1 }
 0x1cf   :  { %v2968_v51 = vsel %vm1928_vm10, %v2809_v56, %v2967_v25  ;;  %v2592_v41 = vmax.f32 %v2180_v53, %v8836_v7  ;;  %v2183_v12 = vcombine.high %v2007_v55, %v2007_v55  ;;  %v2190_v10 = vrot.slane %v2007_v55, %v11034_v57 }
 0x1d0   :  { %v2969_v44 = vsel %vm1930_vm11, %v2813_v42, %v2968_v51  ;;  %v2593_v33 = vmax.f32 %v2182_v30, %v8837_v54  ;;  %v2817_v60 = vrot.slane %v2590_v27, %v11039_v1  ;;  %v2821_v47 = vrot.slane %v2591_v31, %v11039_v1 }
 0x1d1   :  { %3010 = vst.msk [vmem:[#allocation2 + $0xe1] sm:$0xff] %vm922_vm1, %v2969_v44  ;;  %v2825_v20 = vrot.slane %v2592_v41, %v11039_v1  ;;  %v2197_v52 = vrot.slane %v2183_v12, %v11034_v57  ;;  %v2198_v16 = vcombine.high %v2190_v10, %v2190_v10  ;;  %v8838_v15 = vrot.slane %v2190_v10, 9  ;;  %v11680_v12 = vld [vmem:[#allocation2 + $0xd0] sm:$0xff] }
 0x1d2   :  { %v2829_v4 = vrot.slane %v2593_v33, %v11039_v1  ;;  %v2970_v14 = vsel %vm1918_vm5, %v2821_v47, %v2817_v60  ;;  %v3301_v23 = vrot.slane %v11638_v5, 1  ;;  %v3300_v37 = vsel %vm3059_vm4, %v3298_v13, %v3299_v28  ;;  %v11669_v13 = vld [vmem:[#allocation2 + $0xc0] sm:$0xff] }
 0x1d3   :  { %v2971_v62 = vsel %vm1920_vm6, %v2825_v20, %v2970_v14  ;;  %v2199_v18 = vcombine.high %v2197_v52, %v2197_v52  ;;  %v8839_v53 = vrot.slane %v2198_v16, 9  ;;  %v8840_v58 = vrot.slane %v2197_v52, 9 }
 0x1d4   :  { %v2594_v35 = vmax.f32 %v2190_v10, %v8838_v15  ;;  %v2972_v43 = vsel %vm1922_vm7, %v2829_v4, %v2971_v62  ;;  %v3302_v56 = vrot.slane %v11647_v22, 1  ;;  %v3274_v50 = vpack.c.bf16 %v11638_v5, %v11602_v17 }
 0x1d5   :  { %v8841_v36 = vrot.slane %v2199_v18, 9  ;;  %v2595_v30 = vmax.f32 %v2198_v16, %v8839_v53  ;;  %v2596_v2 = vmax.f32 %v2197_v52, %v8840_v58  ;;  %v777_v7 = vmul.f32 %v11426_v34, %v11371_v0 }
 0x1d6   :  { %v2833_v42 = vrot.slane %v2594_v35, %v11039_v1  ;;  %v11663_v46 = vsel %vm3059_vm4, %v3301_v23, %v3302_v56  ;;  %v775_v55 = vmul.f32 %v11426_v34, %v11374_v11  ;;  %3278 = vst.msk [vmem:[#allocation3 + $0xa0] sm:$0xff] %vm922_vm1, %v3274_v50  ;;  %v778_v11 = vmul.f32 %v11426_v34, %v11378_v49 }
 0x1d7   :  { %v2597_v25 = vmax.f32 %v2199_v18, %v8841_v36  ;;  %v2837_v54 = vrot.slane %v2595_v30, %v11039_v1  ;;  %v2841_v27 = vrot.slane %v2596_v2, %v11039_v1  ;;  %v3330_v31 = vpack.c.bf16 %v11663_v46, %v3300_v37  ;;  %v11703_v18 = vld [vmem:[#allocation2 + $0xc8] sm:$0x3] }
 0x1d8   :  { %v2973_v51 = vsel %vm1924_vm8, %v2833_v42, %v2972_v43  ;;  %v848_v41 = vadd.f32 %v11393_v21, %v777_v7  ;;  %v846_v0 = vadd.f32 %v11393_v21, %v775_v55  ;;  %v776_v33 = vmul.f32 %v11426_v34, %v11382_v29 }
 0x1d9   :  { %v2845_v10 = vrot.slane %v2597_v25, %v11039_v1  ;;  %v2974_v44 = vsel %vm1926_vm9, %v2837_v54, %v2973_v51  ;;  %3338 = vrot.lane.b32.xlu1 %v3330_v31, %s10634_s7  ;;  %v3394_v60 = vpack.c.bf16 %v11669_v13, %v11638_v5  ;;  %v849_v49 = vadd.f32 %v11393_v21, %v778_v11 }
 0x1da   :  { %v2975_v47 = vsel %vm1928_vm10, %v2841_v27, %v2974_v44  ;;  %v912_v20 = vmax.f32 %v848_v41, 0.0  ;;  %v910_v52 = vmax.f32 %v846_v0, 0.0  ;;  %v847_v15 = vadd.f32 %v11393_v21, %v776_v33 }
 0x1db   :  { %v2976_v16 = vsel %vm1930_vm11, %v2845_v10, %v2975_v47  ;;  %3402 = vrot.lane.b32.xlu0 %v3394_v60, %s10634_s7  ;;  %v3275_v4 = vpack.c.bf16 %v11680_v12, %v11669_v13  ;;  %v781_v29 = vmul.f32 %v11426_v34, %v11401_v3  ;;  %v913_v28 = vmax.f32 %v849_v49, 0.0 }
 0x1dc   :  { %3011 = vst.msk [vmem:[#allocation2 + $0xf1] sm:$0xff] %vm922_vm1, %v2976_v16  ;;  %v2008_v14 = vmax.f32 %v910_v52, %v912_v20  ;;  %v779_v23 = vmul.f32 %v11426_v34, %v11407_v40  ;;  %v782_v62 = vmul.f32 %v11426_v34, %v11413_v48  ;;  %v911_v53 = vmax.f32 %v847_v15, 0.0 }
 0x1dd   :  { %3279 = vst.msk [vmem:[#allocation3 + $0xc8] sm:$0xff] %vm922_vm1, %v3275_v4  ;;  %3461 = vst.msk [vmem:[#allocation3 + $0xb8] sm:$0xff] %vm922_vm1, %v3275_v4  ;;  %v852_v58 = vadd.f32 %v11393_v21, %v781_v29  ;;  %v780_v3 = vmul.f32 %v11426_v34, %v11418_v6  ;;  %v3304_v35 = vrot.slane %v11669_v13, 1  ;;  %v3305_v2 = vrot.slane %v11703_v18, 1 }
 0x1de   :  { %v2200_v43 = vcombine.high %v2008_v14, %v2008_v14  ;;  %v2207_v40 = vrot.slane %v2008_v14, %v11034_v57  ;;  %v850_v37 = vadd.f32 %v11393_v21, %v779_v23  ;;  %v853_v48 = vadd.f32 %v11393_v21, %v782_v62 }
 0x1df   :  { %v2009_v56 = vmax.f32 %v911_v53, %v913_v28  ;;  %v916_v36 = vmax.f32 %v852_v58, 0.0  ;;  %v851_v30 = vadd.f32 %v11393_v21, %v780_v3 }
 0x1e0   :  { %v2214_v50 = vrot.slane %v2200_v43, %v11034_v57  ;;  %v2215_v42 = vcombine.high %v2207_v40, %v2207_v40  ;;  %v8842_v7 = vrot.slane %v2207_v40, 9  ;;  %v914_v6 = vmax.f32 %v850_v37, 0.0 }
 0x1e1   :  { %v2217_v55 = vcombine.high %v2009_v56, %v2009_v56  ;;  %v2224_v25 = vrot.slane %v2009_v56, %v11034_v57  ;;  %v917_v54 = vmax.f32 %v853_v48, 0.0  ;;  %v915_v27 = vmax.f32 %v851_v30, 0.0 }
 0x1e2   :  { %v2216_v31 = vcombine.high %v2214_v50, %v2214_v50  ;;  %v8843_v51 = vrot.slane %v2215_v42, 9  ;;  %v8844_v41 = vrot.slane %v2214_v50, 9  ;;  %v2598_v0 = vmax.f32 %v2207_v40, %v8842_v7 }
 0x1e3   :  { %v2231_v11 = vrot.slane %v2217_v55, %v11034_v57  ;;  %v2232_v10 = vcombine.high %v2224_v25, %v2224_v25  ;;  %v8846_v21 = vrot.slane %v2224_v25, 9  ;;  %v2010_v44 = vmax.f32 %v914_v6, %v916_v36  ;;  %v9842_v55 = vld [vmem:[#allocation7 + $0xc0] sm:$0xff]  }
 0x1e4   :  { %v8845_v33 = vrot.slane %v2216_v31, 9  ;;  %v2599_v60 = vmax.f32 %v2215_v42, %v8843_v51  ;;  %v2600_v47 = vmax.f32 %v2214_v50, %v8844_v41  ;;  %v2849_v20 = vrot.slane %v2598_v0, %v11039_v1  ;;  %9507 = vmatprep.subr.bf16.mxu1 %v9842_v55 }
 0x1e5   :  { %v2233_v52 = vcombine.high %v2231_v11, %v2231_v11  ;;  %v8847_v49 = vrot.slane %v2232_v10, 9  ;;  %v8848_v16 = vrot.slane %v2231_v11, 9  ;;  %v2602_v15 = vmax.f32 %v2224_v25, %v8846_v21  ;;  %v9843_v25 = vld [vmem:[#allocation7 + $0x80] sm:$0xff]  }
 0x1e6   :  { %v2601_v4 = vmax.f32 %v2216_v31, %v8845_v33  ;;  %v2853_v29 = vrot.slane %v2599_v60, %v11039_v1  ;;  %v2857_v14 = vrot.slane %v2600_v47, %v11039_v1  ;;  %v2234_v28 = vcombine.high %v2010_v44, %v2010_v44  ;;  %v9844_v33 = vld [vmem:[#allocation7 + $0xc8] sm:$0xff]   ;;  %9508 = vmatpush3.bf16.msra.mxu1 %v9843_v25 }
 0x1e7   :  { %v8849_v23 = vrot.slane %v2233_v52, 9  ;;  %v2603_v62 = vmax.f32 %v2232_v10, %v8847_v49  ;;  %v2604_v53 = vmax.f32 %v2231_v11, %v8848_v16  ;;  %v2865_v58 = vrot.slane %v2602_v15, %v11039_v1  ;;  %v9846_v49 = vld [vmem:[#allocation7 + $0x88] sm:$0xff]   ;;  %9509 = vmatprep.subr.bf16.mxu1 %v9844_v33  ;;  %v9850_v33 = vld [vmem:[#allocation7 + $0x98] sm:$0xff]  }
 0x1e8   :  { %v2861_v3 = vrot.slane %v2601_v4, %v11039_v1  ;;  %v2977_v43 = vsel %vm1918_vm5, %v2853_v29, %v2849_v20  ;;  %v2241_v40 = vrot.slane %v2010_v44, %v11034_v57  ;;  %v2248_v37 = vrot.slane %v2234_v28, %v11034_v57 }
 0x1e9   :  { %v2978_v48 = vsel %vm1920_vm6, %v2857_v14, %v2977_v43  ;;  %v2605_v56 = vmax.f32 %v2233_v52, %v8849_v23  ;;  %v2869_v36 = vrot.slane %v2603_v62, %v11039_v1  ;;  %v2873_v30 = vrot.slane %v2604_v53, %v11039_v1  ;;  %v11741_v62 = vld [vmem:[#allocation2 + $0xd8] sm:$0x3] }
 0x1ea   :  { %v2979_v50 = vsel %vm1922_vm7, %v2861_v3, %v2978_v48  ;;  %v2249_v42 = vcombine.high %v2241_v40, %v2241_v40  ;;  %v2250_v7 = vcombine.high %v2248_v37, %v2248_v37  ;;  %v8850_v6 = vrot.slane %v2241_v40, 9  ;;  %9510 = vmatpush3.bf16.msra.mxu1 %v9846_v49 }
 0x1eb   :  { %v2877_v31 = vrot.slane %v2605_v56, %v11039_v1  ;;  %v2980_v51 = vsel %vm1924_vm8, %v2865_v58, %v2979_v50  ;;  %v8852_v41 = vrot.slane %v2248_v37, 9  ;;  %v2011_v0 = vmax.f32 %v915_v27, %v917_v54  ;;  %v9847_v27 = vld [vmem:[#allocation7 + $0xd0] sm:$0xff]  }
 0x1ec   :  { %v2981_v11 = vsel %vm1926_vm9, %v2869_v36, %v2980_v51  ;;  %v8851_v10 = vrot.slane %v2249_v42, 9  ;;  %v8853_v21 = vrot.slane %v2250_v7, 9  ;;  %v2606_v44 = vmax.f32 %v2241_v40, %v8850_v6  ;;  %v9848_v36 = vld [vmem:[#allocation7 + $0x90] sm:$0xff]   ;;  %9511 = vmatprep.subr.bf16.mxu1 %v9847_v27 }
 0x1ed   :  { %v2982_v60 = vsel %vm1928_vm10, %v2873_v30, %v2981_v11  ;;  %v2608_v47 = vmax.f32 %v2248_v37, %v8852_v41  ;;  %v2251_v20 = vcombine.high %v2011_v0, %v2011_v0  ;;  %v2258_v52 = vrot.slane %v2011_v0, %v11034_v57  ;;  %v9849_v41 = vld [vmem:[#allocation7 + $0xd8] sm:$0xff]  }
 0x1ee   :  { %v2983_v16 = vsel %vm1930_vm11, %v2877_v31, %v2982_v60  ;;  %v2607_v15 = vmax.f32 %v2249_v42, %v8851_v10  ;;  %v2609_v4 = vmax.f32 %v2250_v7, %v8853_v21  ;;  %v2881_v54 = vrot.slane %v2606_v44, %v11039_v1  ;;  %v11771_v44 = vld [vmem:[#allocation2 + $0xf0] sm:$0xff]  ;;  %9512 = vmatpush3.bf16.msra.mxu1 %v9848_v36 }
 0x1ef   :  { %3012 = vst.msk [vmem:[#allocation2 + $0x101] sm:$0xff] %vm922_vm1, %v2983_v16  ;;  %v2889_v29 = vrot.slane %v2608_v47, %v11039_v1  ;;  %v2265_v14 = vrot.slane %v2251_v20, %v11034_v57  ;;  %v2266_v28 = vcombine.high %v2258_v52, %v2258_v52  ;;  %v8854_v23 = vrot.slane %v2258_v52, 9  ;;  %v10520_v20 = vld [vmem:[%s13391_s2] ss:$0 sm:$0xff]  ;;  %v11779_v16 = vld [vmem:[#allocation2 + $0xe8] sm:$0x3]  ;;  %9513 = vmatprep.subr.bf16.mxu1 %v9849_v41 }
 0x1f0   :  { %v2885_v53 = vrot.slane %v2607_v15, %v11039_v1  ;;  %v2893_v58 = vrot.slane %v2609_v4, %v11039_v1  ;;  %v3306_v3 = vsel %vm3059_vm4, %v3304_v35, %v3305_v2  ;;  %v3307_v43 = vrot.slane %v11680_v12, 1  ;;  %v9851_v15 = vld [vmem:[#allocation7 + $0xe0] sm:$0xff]  }
 0x1f1   :  { %v2267_v40 = vcombine.high %v2265_v14, %v2265_v14  ;;  %v8855_v37 = vrot.slane %v2266_v28, 9  ;;  %v8856_v48 = vrot.slane %v2265_v14, 9  ;;  %v2610_v56 = vmax.f32 %v2258_v52, %v8854_v23 }
 0x1f2   :  { %v2984_v30 = vsel %vm1918_vm5, %v2885_v53, %v2881_v54  ;;  %v3308_v50 = vrot.slane %v11741_v62, 1  ;;  %v3424_v42 = vpack.c.bf16 %v3306_v3, %v11663_v46  ;;  %v785_v7 = vmul.f32 %v11426_v34, %v11435_v24  ;;  %v10519_v46 = vld [vmem:[%s13392_s3] ss:$0 sm:$0xff]  ;;  %9514 = vmatpush3.bf16.msra.mxu1 %v9850_v33 }
 0x1f3   :  { %v2985_v35 = vsel %vm1920_vm6, %v2889_v29, %v2984_v30  ;;  %v8857_v2 = vrot.slane %v2267_v40, 9  ;;  %v2611_v6 = vmax.f32 %v2266_v28, %v8855_v37  ;;  %v2612_v55 = vmax.f32 %v2265_v14, %v8856_v48  ;;  %v11766_v24 = vld [vmem:[#allocation2 + $0xe0] sm:$0xff]  ;;  %v11787_v14 = vld [vmem:[#allocation2 + $0xf8] sm:$0x3]  ;;  %9515 = vmatprep.subr.bf16.mxu1 %v9851_v15 }
 0x1f4   :  { %v2897_v25 = vrot.slane %v2610_v56, %v11039_v1  ;;  %v2986_v31 = vsel %vm1922_vm7, %v2893_v58, %v2985_v35  ;;  %v11760_v51 = vsel %vm3059_vm4, %v3307_v43, %v3308_v50  ;;  %3428 = vst.msk [vmem:[#allocation3 + $0xb0] sm:$0xff] %vm922_vm1, %v3424_v42  ;;  %v856_v34 = vadd.f32 %v10519_v46, %v785_v7  ;;  %v9853_v30 = vld [vmem:[#allocation7 + $0xe8] sm:$0xff]  }
 0x1f5   :  { %v2613_v0 = vmax.f32 %v2267_v40, %v8857_v2  ;;  %v2901_v11 = vrot.slane %v2611_v6, %v11039_v1  ;;  %v2905_v10 = vrot.slane %v2612_v55, %v11039_v1  ;;  %v3331_v21 = vpack.c.bf16 %v11760_v51, %v3306_v3  ;;  %v9852_v40 = vld [vmem:[#allocation7 + $0xa0] sm:$0xff]   ;;  %v10521_v55 = vld [vmem:[#allocation2] sm:$0xff] }
 0x1f6   :  { %v2987_v60 = vsel %vm1924_vm8, %v2897_v25, %v2986_v31  ;;  %v920_v47 = vmax.f32 %v856_v34, 0.0  ;;  %v783_v52 = vmul.f32 %v10520_v20, %v11444_v59  ;;  %v786_v49 = vmul.f32 %v10520_v20, %v11453_v9  ;;  %v11792_v53 = vld [vmem:[#allocation2 + $0x100] sm:$0xff]  ;;  %v10522_v34 = vld [vmem:[#allocation2 + $0x8] sm:$0x3]  ;;  %9516 = vmatpush3.bf16.msra.mxu1 %v9852_v40 }
 0x1f7   :  { %v2909_v4 = vrot.slane %v2613_v0, %v11039_v1  ;;  %v2988_v54 = vsel %vm1926_vm9, %v2901_v11, %v2987_v60  ;;  %3340 = vrot.lane.b32.xlu1 %v3331_v21, %s10634_s7  ;;  %v784_v27 = vmul.f32 %v10520_v20, %v11457_v19  ;;  %v3395_v29 = vpack.c.bf16 %v11766_v24, %v11680_v12  ;;  %v10523_v0 = vld [vmem:[#allocation2 + $0x10] sm:$0xff]  ;;  %v10524_v60 = vld [vmem:[#allocation2 + $0x18] sm:$0x3]  ;;  %v9857_v40 = vld [vmem:[#allocation7 + $0xb0] sm:$0xff]  }
 0x1f8   :  { %v2989_v59 = vsel %vm1928_vm10, %v2905_v10, %v2988_v54  ;;  %v854_v9 = vadd.f32 %v10519_v46, %v783_v52  ;;  %v857_v28 = vadd.f32 %v10519_v46, %v786_v49  ;;  %v3276_v23 = vpack.c.bf16 %v11771_v44, %v11766_v24  ;;  %v9855_v10 = vld [vmem:[#allocation7 + $0xa8] sm:$0xff]   ;;  %9517 = vmatprep.subr.bf16.mxu1 %v9853_v30  ;;  %v9856_v52 = vld [vmem:[#allocation7 + $0xf0] sm:$0xff]   ;;  %v10526_v54 = vld [vmem:[#allocation2 + $0x28] sm:$0x3] }
 0x1f9   :  { %v2990_v58 = vsel %vm1930_vm11, %v2909_v4, %v2989_v59  ;;  %v855_v3 = vadd.f32 %v10519_v46, %v784_v27  ;;  %3404 = vrot.lane.b32.xlu0 %v3395_v29, %s10634_s7  ;;  %v3310_v19 = vrot.slane %v11766_v24, 1  ;;  %v3311_v43 = vrot.slane %v11779_v16, 1  ;;  %v9858_v30 = vld [vmem:[#allocation7 + $0xf8] sm:$0xff]  }
 0x1fa   :  { %3013 = vst.msk [vmem:[#allocation2 + $0x111] sm:$0xff] %vm922_vm1, %v2990_v58  ;;  %v918_v37 = vmax.f32 %v854_v9, 0.0  ;;  %v921_v48 = vmax.f32 %v857_v28, 0.0  ;;  %3280 = vst.msk [vmem:[#allocation3 + $0xf0] sm:$0xff] %vm922_vm1, %v3276_v23  ;;  %v3313_v56 = vrot.slane %v11771_v44, 1  ;;  %v3314_v36 = vrot.slane %v11787_v14, 1  ;;  %9518 = vmatpush3.bf16.msra.mxu1 %v9855_v10  ;;  %v3167_v10 = vpop.permute.xlu0 %3166 }
 0x1fb   :  { %3462 = vst.msk [vmem:[#allocation3 + $0xe0] sm:$0xff] %vm922_vm1, %v3276_v23  ;;  %v919_v50 = vmax.f32 %v855_v3, 0.0  ;;  %v3312_v42 = vsel %vm3059_vm4, %v3310_v19, %v3311_v43  ;;  %v3396_v7 = vpack.c.bf16 %v11792_v53, %v11771_v44  ;;  %v3118_v25 = vrot.slane %v10521_v55, 2  ;;  %v11823_v43 = vpop.permute.xlu1 %3168  ;;  %9519 = vmatprep.subr.bf16.mxu1 %v9856_v52 }
 0x1fc   :  { %v2012_v35 = vmax.f32 %v918_v37, %v920_v47  ;;  %v11807_v2 = vsel %vm3059_vm4, %v3313_v56, %v3314_v36  ;;  %v3425_v6 = vpack.c.bf16 %v3312_v42, %v11760_v51  ;;  %v3119_v41 = vrot.slane %v10522_v34, 2  ;;  %v10525_v47 = vld [vmem:[#allocation2 + $0x20] sm:$0xff] }
 0x1fd   :  { %v2013_v31 = vmax.f32 %v919_v50, %v921_v48  ;;  %v3332_v46 = vpack.c.bf16 %v11807_v2, %v3312_v42  ;;  %3406 = vrot.lane.b32.xlu0 %v3396_v7, %s10634_s7  ;;  %v3121_v11 = vrot.slane %v10523_v0, 2  ;;  %v3122_v51 = vrot.slane %v10524_v60, 2 }
 0x1fe   :  { %v2268_v21 = vcombine.high %v2012_v35, %v2012_v35  ;;  %v2275_v33 = vrot.slane %v2012_v35, %v11034_v57  ;;  %3429 = vst.msk [vmem:[#allocation3 + $0xd8] sm:$0xff] %vm922_vm1, %v3425_v6  ;;  %v3124_v20 = vrot.slane %v10525_v47, 2  ;;  %v3120_v4 = vsel %vm3117_vm12, %v3118_v25, %v3119_v41  ;;  %9520 = vmatpush3.bf16.msra.mxu1 %v9857_v40 }
 0x1ff   :  { %v2285_v49 = vcombine.high %v2013_v31, %v2013_v31  ;;  %v2292_v15 = vrot.slane %v2013_v31, %v11034_v57  ;;  %3342 = vrot.lane.b32.xlu1 %v3332_v46, %s10634_s7  ;;  %v3125_v27 = vrot.slane %v10526_v54, 2  ;;  %v3123_v28 = vsel %vm3117_vm12, %v3121_v11, %v3122_v51  ;;  %9521 = vmatprep.subr.bf16.mxu1 %v9858_v30  ;;  %v10528_v30 = vld [vmem:[#allocation2 + $0x58] sm:$0x3] }
 0x200   :  { %v2282_v29 = vrot.slane %v2268_v21, %v11034_v57  ;;  %v2283_v59 = vcombine.high %v2275_v33, %v2275_v33  ;;  %v8858_v9 = vrot.slane %v2275_v33, 9  ;;  %v9859_v21 = vld [vmem:[#allocation7 + $0xb8] sm:$0xff]   ;;  %v3150_v54 = vpack.c.bf16 %v3123_v28, %v3120_v4 }
 0x201   :  { %v2299_v23 = vrot.slane %v2285_v49, %v11034_v57  ;;  %v2300_v58 = vcombine.high %v2292_v15, %v2292_v15  ;;  %v8862_v3 = vrot.slane %v2292_v15, 9  ;;  %v11821_v19 = vsel %vm3117_vm12, %v3124_v20, %v3125_v27  ;;  %v11825_v6 = vld [vmem:[#allocation2 + $0x110] sm:$0xff]  ;;  %v11833_v20 = vld [vmem:[#allocation2 + $0x108] sm:$0x3]  ;;  %v11837_v27 = vld [vmem:[#allocation2 + $0x118] sm:$0x3] }
 0x202   :  { %v2284_v37 = vcombine.high %v2282_v29, %v2282_v29  ;;  %v8859_v48 = vrot.slane %v2283_v59, 9  ;;  %v8860_v56 = vrot.slane %v2282_v29, 9  ;;  %v2614_v36 = vmax.f32 %v2275_v33, %v8858_v9  ;;  %3154 = vst.msk [vmem:[#allocation3 + $0x8] sm:$0xff] %vm922_vm1, %v3150_v54  ;;  %9522 = vmatpush3.bf16.msra.mxu1 %v9859_v21 }
 0x203   :  { %v2301_v50 = vcombine.high %v2299_v23, %v2299_v23  ;;  %v8863_v42 = vrot.slane %v2300_v58, 9  ;;  %v8864_v7 = vrot.slane %v2299_v23, 9  ;;  %v2618_v35 = vmax.f32 %v2292_v15, %v8862_v3  ;;  %3178 = vst.msk [vmem:[#allocation3 + $0x8] sm:$0xff] %vm3112_vm13, %v3167_v10 }
 0x204   :  { %v8861_v55 = vrot.slane %v2284_v37, 9  ;;  %v2615_v25 = vmax.f32 %v2283_v59, %v8859_v48  ;;  %v2616_v31 = vmax.f32 %v2282_v29, %v8860_v56  ;;  %v2913_v46 = vrot.slane %v2614_v36, %v11039_v1  ;;  %v3103_v29 = vpop.permute.xlu1 %3102 }
 0x205   :  { %v8865_v34 = vrot.slane %v2301_v50, 9  ;;  %v2619_v41 = vmax.f32 %v2300_v58, %v8863_v42  ;;  %v2620_v0 = vmax.f32 %v2299_v23, %v8864_v7  ;;  %v2929_v11 = vrot.slane %v2618_v35, %v11039_v1  ;;  %v10529_v35 = vld [vmem:[#allocation2 + $0x60] sm:$0xff]  ;;  %3114 = vst.msk [vmem:[#allocation3 + $0x28] sm:$0xff] %vm3112_vm13, %v3103_v29  ;;  %3240 = vst.msk [vmem:[#allocation3 + $0x18] sm:$0xff] %vm3112_vm13, %v3103_v29 }
 0x206   :  { %v2617_v33 = vmax.f32 %v2284_v37, %v8861_v55  ;;  %v2917_v60 = vrot.slane %v2615_v25, %v11039_v1  ;;  %v2921_v51 = vrot.slane %v2616_v31, %v11039_v1  ;;  %v3277_v47 = vpack.c.bf16 %v11825_v6, %v11792_v53  ;;  %v3101_v31 = vpop.permute.xlu0 %3100 }
 0x207   :  { %v2621_v52 = vmax.f32 %v2301_v50, %v8865_v34  ;;  %v2933_v49 = vrot.slane %v2619_v41, %v11039_v1  ;;  %v2937_v15 = vrot.slane %v2620_v0, %v11039_v1  ;;  %v3200_v23 = vpack.c.bf16 %v11821_v19, %v3123_v28  ;;  %v10527_v28 = vld [vmem:[#allocation2 + $0x50] sm:$0xff]  ;;  %3113 = vst.msk [vmem:[#allocation3] sm:$0xff] %vm3112_vm13, %v3101_v31 }
 0x208   :  { %v2925_v59 = vrot.slane %v2617_v33, %v11039_v1  ;;  %v2991_v9 = vsel %vm1918_vm5, %v2917_v60, %v2913_v46  ;;  %3281 = vst.msk [vmem:[#allocation3 + $0x118] sm:$0xff] %vm922_vm1, %v3277_v47  ;;  %3463 = vst.msk [vmem:[#allocation3 + $0x108] sm:$0xff] %vm922_vm1, %v3277_v47  ;;  %v3316_v58 = vrot.slane %v11792_v53, 1  ;;  %v3317_v4 = vrot.slane %v11833_v20, 1  ;;  %v3105_v46 = vpop.permute.xlu1 %3104  ;;  %v11862_v33 = vld [vmem:[#allocation2 + $0x88] sm:$0x3] }
 0x209   :  { %v2992_v3 = vsel %vm1920_vm6, %v2921_v51, %v2991_v9  ;;  %v2941_v40 = vrot.slane %v2621_v52, %v11039_v1  ;;  %v3319_v37 = vrot.slane %v11825_v6, 1  ;;  %3208 = vrot.lane.b32.xlu0 %v3200_v23, %s10634_s7  ;;  %v3320_v56 = vrot.slane %v11837_v27, 1  ;;  %v11866_v60 = vld [vmem:[#allocation2 + $0x98] sm:$0x3]  ;;  %3115 = vst.msk [vmem:[#allocation3 + $0x50] sm:$0xff] %vm3112_vm13, %v3105_v46  ;;  %3241 = vst.msk [vmem:[#allocation3 + $0x40] sm:$0xff] %vm3112_vm13, %v3105_v46 }
 0x20a   :  { %v2993_v48 = vsel %vm1922_vm7, %v2925_v59, %v2992_v3  ;;  %v3133_v36 = vrot.slane %v10527_v28, 2  ;;  %v3134_v50 = vrot.slane %v10528_v30, 2  ;;  %v3318_v7 = vsel %vm3059_vm4, %v3316_v58, %v3317_v4  ;;  %v10531_v58 = vld [vmem:[#allocation2 + $0x30] sm:$0xff]  ;;  %v10532_v3 = vld [vmem:[#allocation2 + $0x38] sm:$0x3]  ;;  %v10533_v4 = vld [vmem:[#allocation2 + $0x40] sm:$0xff] }
 0x20b   :  { %v2994_v42 = vsel %vm1924_vm8, %v2929_v11, %v2993_v48  ;;  %v3136_v55 = vrot.slane %v10529_v35, 2  ;;  %v3137_v25 = vrot.slane %v11540_v39, 2  ;;  %v11858_v41 = vsel %vm3059_vm4, %v3319_v37, %v3320_v56  ;;  %v11864_v11 = vld [vmem:[#allocation2 + $0x90] sm:$0xff] }
 0x20c   :  { %v2995_v34 = vsel %vm1926_vm9, %v2933_v49, %v2994_v42  ;;  %v3426_v0 = vpack.c.bf16 %v3318_v7, %v11807_v2  ;;  %v3135_v21 = vsel %vm3117_vm12, %v3133_v36, %v3134_v50  ;;  %v3333_v39 = vpack.c.bf16 %v11858_v41, %v3318_v7  ;;  %v10530_v49 = vld [vmem:[#allocation2 + $0x70] sm:$0xff]  ;;  %v10534_v36 = vld [vmem:[#allocation2 + $0x48] sm:$0x3] }
 0x20d   :  { %v2996_v51 = vsel %vm1928_vm10, %v2937_v15, %v2995_v34  ;;  %v3138_v47 = vsel %vm3117_vm12, %v3136_v55, %v3137_v25  ;;  %v3139_v54 = vrot.slane %v10530_v49, 2  ;;  %v3140_v59 = vrot.slane %v11548_v8, 2  ;;  %v11903_v46 = vld [vmem:[#allocation2 + $0x130] sm:$0xff]  ;;  %v11905_v34 = vld [vmem:[#allocation2 + $0x138] sm:$0x3] }
 0x20e   :  { %v2997_v52 = vsel %vm1930_vm11, %v2941_v40, %v2996_v51  ;;  %3430 = vst.msk [vmem:[#allocation3 + $0x100] sm:$0xff] %vm922_vm1, %v3426_v0  ;;  %v3202_v2 = vpack.c.bf16 %v3138_v47, %v3135_v21  ;;  %3344 = vrot.lane.b32.xlu0 %v3333_v39, %s10634_s7  ;;  %v3196_v10 = vrot.slane %v11579_v61, 2  ;;  %v3197_v15 = vrot.slane %v11862_v33, 2 }
 0x20f   :  { %3014 = vst.msk [vmem:[#allocation2 + $0x121] sm:$0xff] %vm922_vm1, %v2997_v52  ;;  %v3244_v8 = vrot.slane %v11864_v11, 2  ;;  %v3245_v9 = vrot.slane %v11866_v60, 2  ;;  %v3141_v23 = vsel %vm3117_vm12, %v3139_v54, %v3140_v59  ;;  %v3127_v29 = vrot.slane %v10531_v58, 2  ;;  %v3490_v52 = vld [vmem:[#allocation3 + $0x8] sm:$0xff] }
 0x210   :  { %v3128_v40 = vrot.slane %v10532_v3, 2  ;;  %v3130_v37 = vrot.slane %v10533_v4, 2  ;;  %v3153_v48 = vpack.c.bf16 %v3141_v23, %v3138_v47  ;;  %v3198_v56 = vsel %vm3117_vm12, %v3196_v10, %v3197_v15  ;;  %3873 = vmatprep.mubr.bf16.mxu0 %v3490_v52 }
 0x211   :  { %v3246_v28 = vsel %vm3117_vm12, %v3244_v8, %v3245_v9  ;;  %v3131_v30 = vrot.slane %v10534_v36, 2  ;;  %v3363_v7 = vrot.slane %v11680_v12, 2  ;;  %v3364_v25 = vrot.slane %v11741_v62, 2 }
 0x212   :  { %v3248_v50 = vpack.c.bf16 %v3246_v28, %v3198_v56  ;;  %v11890_v42 = vsel %vm3117_vm12, %v3127_v29, %v3128_v40  ;;  %3212 = vrot.lane.b32.xlu0 %v3202_v2, %s10634_s7  ;;  %3251 = vst.msk [vmem:[#allocation3 + $0x70] sm:$0xff] %vm922_vm1, %v3153_v48  ;;  %3157 = vst.msk [vmem:[#allocation3 + $0x80] sm:$0xff] %vm922_vm1, %v3153_v48  ;;  %v3366_v31 = vrot.slane %v11766_v24, 2  ;;  %v3367_v0 = vrot.slane %v11779_v16, 2  ;;  %v3171_v39 = vpop.permute.xlu0 %3170  ;;  %v3489_v2 = vld [vmem:[#allocation3] sm:$0xff] }
 0x213   :  { %v11897_v35 = vsel %vm3117_vm12, %v3130_v37, %v3131_v30  ;;  %v3151_v55 = vpack.c.bf16 %v11890_v42, %v11821_v19  ;;  %v3184_v51 = vrot.slane %v11579_v61, 1  ;;  %v3203_v47 = vpack.c.bf16 %v3198_v56, %v3141_v23  ;;  %v3492_v23 = vld [vmem:[#allocation3 + $0x18] sm:$0xff]  ;;  %3874 = vmatmul.mubr.bf16.vlgmr.msra.gmra.mrb[64].mxu0 %v3489_v2  ;;  %v9854_v28 = vld [vmem:[#allocation7 + $0x110] sm:$0xff]  }
 0x214   :  { %3252 = vst.msk [vmem:[#allocation3 + $0x98] sm:$0xff] %vm922_vm1, %v3248_v50  ;;  %v3152_v12 = vpack.c.bf16 %v3135_v21, %v11897_v35  ;;  %v3201_v19 = vpack.c.bf16 %v11897_v35, %v11890_v42  ;;  %v3365_v62 = vsel %vm3117_vm12, %v3363_v7, %v3364_v25  ;;  %v3185_v24 = vrot.slane %v11862_v33, 1  ;;  %v9845_v21 = vld [vmem:[#allocation7 + $0x108] sm:$0xff]   ;;  %3970 = vmatprep.mubr.bf16.mxu1 %v3492_v23 }
 0x215   :  { %3249 = vst.msk [vmem:[#allocation3 + $0x20] sm:$0xff] %vm922_vm1, %v3151_v55  ;;  %3155 = vst.msk [vmem:[#allocation3 + $0x30] sm:$0xff] %vm922_vm1, %v3151_v55  ;;  %v11922_v61 = vsel %vm3117_vm12, %v3366_v31, %v3367_v0  ;;  %v3231_v16 = vrot.slane %v11864_v11, 1  ;;  %v3467_v59 = vrot.slane %v11903_v46, 1  ;;  %v3468_v33 = vrot.slane %v11905_v34, 1  ;;  %9696 = vmatpush3.bf16.msra.mxu0 %v11632_v26  ;;  %v3494_v55 = vld [vmem:[#allocation3 + $0x28] sm:$0xff] }
 0x216   :  { %v11917_v49 = vld [vmem:[#allocation2 + $0x120] sm:$0xff]  ;;  %3250 = vst.msk [vmem:[#allocation3 + $0x48] sm:$0xff] %vm922_vm1, %v3152_v12  ;;  %3156 = vst.msk [vmem:[#allocation3 + $0x58] sm:$0xff] %vm922_vm1, %v3152_v12  ;;  %v11925_v54 = vld [vmem:[#allocation2 + $0x128] sm:$0x3]  ;;  %3214 = vrot.lane.b32.xlu0 %v3203_v47, %s10634_s7  ;;  %v11935_v15 = vsel %vm3059_vm4, %v3184_v51, %v3185_v24  ;;  %v3232_v8 = vrot.slane %v11866_v60, 1  ;;  %v3437_v58 = vpack.c.bf16 %v11922_v61, %v3365_v62  ;;  %9697 = vmatprep.subr.bf16.mxu0 %v9845_v21 }
 0x217   :  { %3179 = vst.msk [vmem:[#allocation3 + $0x30] sm:$0xff] %vm3112_vm13, %v11823_v43  ;;  %v3397_v10 = vpack.c.bf16 %v11917_v49, %v11825_v6  ;;  %v3354_v9 = vrot.slane %v11602_v17, 2  ;;  %3180 = vst.msk [vmem:[#allocation3 + $0x58] sm:$0xff] %vm3112_vm13, %v3171_v39  ;;  %v3191_v43 = vpack.c.bf16 %v11935_v15, %v11566_v32  ;;  %v3420_v29 = vrot.slane %v11917_v49, 1  ;;  %v9860_v0 = vld [vmem:[#allocation7 + $0x118] sm:$0xff]  }
 0x218   :  { %v3421_v3 = vrot.slane %v11925_v54, 1  ;;  %v3460_v60 = vpack.c.bf16 %v11903_v46, %v11917_v49  ;;  %v3469_v17 = vsel %vm3059_vm4, %v3467_v59, %v3468_v33  ;;  %v3355_v40 = vrot.slane %v11636_v63, 2 }
 0x219   :  { %3408 = vrot.lane.b32.xlu1 %v3397_v10, %s10634_s7  ;;  %v3357_v4 = vrot.slane %v11638_v5, 2  ;;  %3195 = vst.msk [vmem:[#allocation3 + $0x88] sm:$0xff] %vm922_vm1, %v3191_v43  ;;  %v3358_v37 = vrot.slane %v11647_v22, 2  ;;  %v3360_v48 = vrot.slane %v11669_v13, 2  ;;  %v3361_v56 = vrot.slane %v11703_v18, 2  ;;  %9698 = vmatpush3.bf16.msra.mxu0 %v9845_v21  ;;  %v3499_v21 = vld [vmem:[#allocation3 + $0x50] sm:$0xff] }
 0x21a   :  { %v3422_v32 = vsel %vm3059_vm4, %v3420_v29, %v3421_v3  ;;  %3446 = vrot.lane.b32.xlu0 %v3437_v58, %s10634_s7  ;;  %v3233_v63 = vsel %vm3059_vm4, %v3231_v16, %v3232_v8  ;;  %3464 = vst.msk [vmem:[#allocation3 + $0x130] sm:$0xff] %vm922_vm1, %v3460_v60  ;;  %v3356_v26 = vsel %vm3117_vm12, %v3354_v9, %v3355_v40  ;;  %v3369_v36 = vrot.slane %v11771_v44, 2 }
 0x21b   :  { %v3427_v5 = vpack.c.bf16 %v3422_v32, %v11858_v41  ;;  %v3359_v22 = vsel %vm3117_vm12, %v3357_v4, %v3358_v37  ;;  %v3362_v13 = vsel %vm3117_vm12, %v3360_v48, %v3361_v56  ;;  %v3370_v18 = vrot.slane %v11787_v14, 2  ;;  %9699 = vmatprep.subr.bf16.mxu0 %v9854_v28  ;;  %v3497_v37 = vld [vmem:[#allocation3 + $0x40] sm:$0xff] }
 0x21c   :  { %v3372_v30 = vrot.slane %v11792_v53, 2  ;;  %v3471_v50 = vpack.c.bf16 %v3469_v17, %v3422_v32  ;;  %v3386_v41 = vpack.c.bf16 %v3359_v22, %v3356_v26  ;;  %v3387_v42 = vpack.c.bf16 %v3365_v62, %v3362_v13 }
 0x21d   :  { %3210 = vrot.lane.b32.xlu1 %v3201_v19, %s10634_s7  ;;  %3431 = vst.msk [vmem:[#allocation3 + $0x128] sm:$0xff] %vm922_vm1, %v3427_v5  ;;  %v3373_v7 = vrot.slane %v11833_v20, 2  ;;  %v3371_v44 = vsel %vm3117_vm12, %v3369_v36, %v3370_v18  ;;  %v3375_v25 = vrot.slane %v11825_v6, 2  ;;  %v3376_v14 = vrot.slane %v11837_v27, 2  ;;  %v10535_v19 = vld [vmem:[#allocation2 + $0x80] sm:$0xff]  ;;  %9700 = vmatpush3.bf16.msra.mxu0 %v9854_v28 }
 0x21e   :  { %v3495_v35 = vld [vmem:[#allocation3 + $0x30] sm:$0xff]  ;;  %v3432_v53 = vrot.slane %v11917_v49, 2  ;;  %v3500_v31 = vld [vmem:[#allocation3 + $0x58] sm:$0xff]  ;;  %v3235_v12 = vpack.c.bf16 %v3233_v63, %v11935_v15  ;;  %3473 = vrot.lane.b32.xlu0 %v3471_v50, %s10634_s7  ;;  %3485 = vst.msk [vmem:[#allocation3 + $0xc0] sm:$0xff] %vm922_vm1, %v3387_v42  ;;  %3390 = vst.msk [vmem:[#allocation3 + $0xa8] sm:$0xff] %vm922_vm1, %v3386_v41  ;;  %v3388_v20 = vpack.c.bf16 %v3371_v44, %v11922_v61  ;;  %v3433_v6 = vrot.slane %v11925_v54, 2 }
 0x21f   :  { %3881 = vmatprep.mubr.bf16.mxu0 %v3495_v35  ;;  %3391 = vst.msk [vmem:[#allocation3 + $0xd0] sm:$0xff] %vm922_vm1, %v3387_v42  ;;  %v3480_v27 = vrot.slane %v11903_v46, 2  ;;  %v3374_v51 = vsel %vm3117_vm12, %v3372_v30, %v3373_v7  ;;  %v3377_v39 = vsel %vm3117_vm12, %v3375_v25, %v3376_v14  ;;  %v3481_v47 = vrot.slane %v11905_v34, 2  ;;  %9701 = vmatprep.subr.bf16.mxu0 %v9860_v0  ;;  %v3493_v18 = vld [vmem:[#allocation3 + $0x20] sm:$0xff]  ;;  %v3498_v7 = vld [vmem:[#allocation3 + $0x48] sm:$0xff]  ;;  %v3503_v35 = vld [vmem:[#allocation3 + $0x70] sm:$0xff] }
 0x220   :  { %3882 = vmatmul.mubr.bf16.gmra.mrb[68].mxu0 %v3494_v55  ;;  %v3224_v62 = vpack.c.bf16 %v11864_v11, %v10535_v19  ;;  %3486 = vst.msk [vmem:[#allocation3 + $0xe8] sm:$0xff] %vm922_vm1, %v3388_v20  ;;  %3392 = vst.msk [vmem:[#allocation3 + $0xf8] sm:$0xff] %vm922_vm1, %v3388_v20  ;;  %v3389_v24 = vpack.c.bf16 %v3377_v39, %v3374_v51  ;;  %v3434_v46 = vsel %vm3117_vm12, %v3432_v53, %v3433_v6  ;;  %v3508_v14 = vld [vmem:[#allocation3 + $0x98] sm:$0xff] }
 0x221   :  { %3237 = vrot.lane.b32.xlu1 %v3235_v12, %s10634_s7  ;;  %3889 = vmatprep.mubr.bf16.mxu0 %v3500_v31  ;;  %v3482_v52 = vsel %vm3117_vm12, %v3480_v27, %v3481_v47  ;;  %v3436_v34 = vpack.c.bf16 %v3362_v13, %v3359_v22  ;;  %v3438_v11 = vpack.c.bf16 %v3374_v51, %v3371_v44 }
 0x222   :  { %3228 = vst.msk [vmem:[#allocation3 + $0x90] sm:$0xff] %vm922_vm1, %v3224_v62  ;;  %v3484_v2 = vpack.c.bf16 %v3482_v52, %v3434_v46  ;;  %3487 = vst.msk [vmem:[#allocation3 + $0x110] sm:$0xff] %vm922_vm1, %v3389_v24  ;;  %9702 = vmatpush3.bf16.msra.mxu0 %v9860_v0  ;;  %v3439_v49 = vpack.c.bf16 %v3434_v46, %v3377_v39  ;;  %v9861_v46 = vld [vmem:[#allocation10] ss:$8 sps:$4 sm:$0xff]   ;;  %v9863_v52 = vld [vmem:[#allocation10 + $0x4] ss:$8 sps:$4 sm:$0xff]  }
 0x223   :  { %3393 = vst.msk [vmem:[#allocation3 + $0x120] sm:$0xff] %vm922_vm1, %v3389_v24  ;;  %5854 = vmatprep.subr.bf16.mxu1 %v9863_v52  ;;  %v9906_v52 = vld [vmem:[#allocation10 + $0xc0] ss:$8 sps:$4 sm:$0xff]  }
 0x224   :  { %3488 = vst.msk [vmem:[#allocation3 + $0x138] sm:$0xff] %vm922_vm1, %v3484_v2  ;;  %v9866_v2 = vld [vmem:[#allocation10 + $0x14] ss:$8 sps:$4 sm:$0xff]  }
 0x225   :  { %3444 = vrot.lane.b32.xlu1 %v3436_v34, %s10634_s7  ;;  %v3513_v53 = vld [vmem:[#allocation3 + $0xc0] sm:$0xff] }
 0x226   :  { %v9864_v34 = vld [vmem:[#allocation10 + $0x10] ss:$8 sps:$4 sm:$0xff]  }
 0x227   :  { %v3518_v20 = vld [vmem:[#allocation3 + $0xe8] sm:$0xff] }
 0x228   :  { %3890 = vmatmul.mubr.bf16.gmra.mrb[72].mxu0 %v3499_v21 }
 0x229   :  { %3448 = vrot.lane.b32.xlu1 %v3438_v11, %s10634_s7  ;;  %v3523_v6 = vld [vmem:[#allocation3 + $0x110] sm:$0xff] }
 0x22b   :  { %v3528_v51 = vld [vmem:[#allocation3 + $0x138] sm:$0xff] }
 0x22c   :  { %v3107_v61 = vpop.permute.xlu1 %3106 }
 0x22d   :  { %3450 = vrot.lane.b32.xlu1 %v3439_v49, %s10634_s7  ;;  %3116 = vst.msk [vmem:[#allocation3 + $0x78] sm:$0xff] %vm3112_vm13, %v3107_v61  ;;  %3242 = vst.msk [vmem:[#allocation3 + $0x68] sm:$0xff] %vm3112_vm13, %v3107_v61 }
 0x230   :  { %v3173_v16 = vpop.permute.xlu0 %3172 }
 0x231   :  { %3181 = vst.msk [vmem:[#allocation3 + $0x80] sm:$0xff] %vm3112_vm13, %v3173_v16  ;;  %v9867_v16 = vld [vmem:[#allocation10 + $0x20] ss:$8 sps:$4 sm:$0xff]  }
 0x234   :  { %v3504_v59 = vld [vmem:[#allocation3 + $0x78] sm:$0xff]  ;;  %v3502_v41 = vld [vmem:[#allocation3 + $0x68] sm:$0xff] }
 0x238   :  { %v3505_v54 = vld [vmem:[#allocation3 + $0x80] sm:$0xff] }
 0x239   :  { %3897 = vmatprep.mubr.bf16.mxu0 %v3505_v54  ;;  %v9869_v54 = vld [vmem:[#allocation10 + $0x24] ss:$8 sps:$4 sm:$0xff]  }
 0x23a   :  { %3898 = vmatmul.mubr.bf16.gmra.mrb[76].mxu0 %v3504_v59 }
 0x24b   :  { %v3339_v33 = vpop.permute.xlu1 %3338 }
 0x24c   :  { %3350 = vst.msk [vmem:[#allocation3 + $0xa0] sm:$0xff] %vm3112_vm13, %v3339_v33 }
 0x24d   :  { %v3403_v10 = vpop.permute.xlu0 %3402 }
 0x24e   :  { %3414 = vst.msk [vmem:[#allocation3 + $0xa8] sm:$0xff] %vm3112_vm13, %v3403_v10 }
 0x253   :  { %v3509_v8 = vld [vmem:[#allocation3 + $0xa0] sm:$0xff] }
 0x255   :  { %v3510_v15 = vld [vmem:[#allocation3 + $0xa8] sm:$0xff] }
 0x256   :  { %3905 = vmatprep.mubr.bf16.mxu0 %v3510_v15 }
 0x257   :  { %3906 = vmatmul.mubr.bf16.gmra.mrb[80].mxu0 %v3509_v8 }
 0x269   :  { %v3341_v9 = vpop.permute.xlu1 %3340 }
 0x26a   :  { %3351 = vst.msk [vmem:[#allocation3 + $0xc8] sm:$0xff] %vm3112_vm13, %v3341_v9  ;;  %3476 = vst.msk [vmem:[#allocation3 + $0xb8] sm:$0xff] %vm3112_vm13, %v3341_v9 }
 0x26b   :  { %v3405_v23 = vpop.permute.xlu0 %3404 }
 0x26c   :  { %3415 = vst.msk [vmem:[#allocation3 + $0xd0] sm:$0xff] %vm3112_vm13, %v3405_v23 }
 0x26f   :  { %v3407_v58 = vpop.permute.xlu0 %3406 }
 0x270   :  { %3416 = vst.msk [vmem:[#allocation3 + $0xf8] sm:$0xff] %vm3112_vm13, %v3407_v58 }
 0x271   :  { %v3343_v43 = vpop.permute.xlu1 %3342  ;;  %v3514_v3 = vld [vmem:[#allocation3 + $0xc8] sm:$0xff]  ;;  %v3512_v12 = vld [vmem:[#allocation3 + $0xb8] sm:$0xff] }
 0x272   :  { %3352 = vst.msk [vmem:[#allocation3 + $0xf0] sm:$0xff] %vm3112_vm13, %v3343_v43  ;;  %3477 = vst.msk [vmem:[#allocation3 + $0xe0] sm:$0xff] %vm3112_vm13, %v3343_v43  ;;  %v9870_v43 = vld [vmem:[#allocation10 + $0x30] ss:$8 sps:$4 sm:$0xff]  }
 0x273   :  { %v3515_v29 = vld [vmem:[#allocation3 + $0xd0] sm:$0xff] }
 0x274   :  { %3913 = vmatprep.mubr.bf16.mxu0 %v3515_v29  ;;  %v9872_v29 = vld [vmem:[#allocation10 + $0x34] ss:$8 sps:$4 sm:$0xff]  }
 0x275   :  { %3914 = vmatmul.mubr.bf16.gmra.mrb[84].mxu0 %v3514_v3 }
 0x277   :  { %v3520_v60 = vld [vmem:[#allocation3 + $0xf8] sm:$0xff] }
 0x278   :  { %3921 = vmatprep.mubr.bf16.mxu0 %v3520_v60 }
 0x279   :  { %v3519_v40 = vld [vmem:[#allocation3 + $0xf0] sm:$0xff]  ;;  %v3517_v0 = vld [vmem:[#allocation3 + $0xe0] sm:$0xff] }
 0x27b   :  { %v3209_v17 = vpop.permute.xlu0 %3208 }
 0x27c   :  { %3220 = vst.msk [vmem:[#allocation3 + $0x10] sm:$0xff] %vm3112_vm13, %v3209_v17 }
 0x27d   :  { %3922 = vmatmul.mubr.bf16.gmra.mrb[88].mxu0 %v3519_v40 }
 0x280   :  { %v3345_v4 = vpop.permute.xlu0 %3344 }
 0x281   :  { %3353 = vst.msk [vmem:[#allocation3 + $0x118] sm:$0xff] %vm3112_vm13, %v3345_v4  ;;  %3478 = vst.msk [vmem:[#allocation3 + $0x108] sm:$0xff] %vm3112_vm13, %v3345_v4 }
 0x283   :  { %v3491_v32 = vld [vmem:[#allocation3 + $0x10] sm:$0xff] }
 0x284   :  { %3971 = vmatmul.mubr.bf16.vlgmr.msra.gmra.mrb[0].mxu1 %v3491_v32  ;;  %v3213_v48 = vpop.permute.xlu0 %3212 }
 0x285   :  { %3978 = vmatprep.mubr.bf16.mxu1 %v3497_v37  ;;  %3222 = vst.msk [vmem:[#allocation3 + $0x60] sm:$0xff] %vm3112_vm13, %v3213_v48  ;;  %5855 = vmatpush1.bf16.msra.mxu1 %v9861_v46  ;;  %v9873_v37 = vld [vmem:[#allocation10 + $0x40] ss:$8 sps:$4 sm:$0xff]   ;;  %v9875_v48 = vld [vmem:[#allocation10 + $0x44] ss:$8 sps:$4 sm:$0xff]  }
 0x286   :  { %5856 = vmatprep.subr.bf16.mxu1 %v9866_v2  ;;  %v9908_v46 = vld [vmem:[#allocation10 + $0xc4] ss:$8 sps:$4 sm:$0xff]   ;;  %v9911_v2 = vld [vmem:[#allocation10 + $0x434] ss:$8 sps:$4 sm:$0xff]  }
 0x288   :  { %v3215_v56 = vpop.permute.xlu0 %3214  ;;  %v3524_v13 = vld [vmem:[#allocation3 + $0x118] sm:$0xff]  ;;  %v3522_v47 = vld [vmem:[#allocation3 + $0x108] sm:$0xff] }
 0x289   :  { %3223 = vst.msk [vmem:[#allocation3 + $0x88] sm:$0xff] %vm3112_vm13, %v3215_v56  ;;  %5857 = vmatpush1.bf16.msra.mxu1 %v9864_v34  ;;  %v9878_v56 = vld [vmem:[#allocation10 + $0x54] ss:$8 sps:$4 sm:$0xff]   ;;  %v9909_v34 = vld [vmem:[#allocation10 + $0x430] ss:$8 sps:$4 sm:$0xff]  }
 0x28a   :  { %5858 = vmatprep.subr.bf16.mxu1 %v9869_v54  ;;  %v9915_v54 = vld [vmem:[#allocation10 + $0x440] ss:$8 sps:$4 sm:$0xff]  }
 0x28b   :  { %v3409_v28 = vpop.permute.xlu1 %3408 }
 0x28c   :  { %3417 = vst.msk [vmem:[#allocation3 + $0x120] sm:$0xff] %vm3112_vm13, %v3409_v28  ;;  %v3447_v63 = vpop.permute.xlu0 %3446  ;;  %v3501_v44 = vld [vmem:[#allocation3 + $0x60] sm:$0xff] }
 0x28d   :  { %3457 = vst.msk [vmem:[#allocation3 + $0xd8] sm:$0xff] %vm3112_vm13, %v3447_v63  ;;  %5859 = vmatpush1.bf16.msra.mxu1 %v9867_v16  ;;  %v9920_v16 = vld [vmem:[#allocation10 + $0xe4] ss:$8 sps:$4 sm:$0xff]  }
 0x28e   :  { %5860 = vmatprep.subr.bf16.mxu1 %v9872_v29  ;;  %v9937_v29 = vld [vmem:[#allocation10 + $0x104] ss:$8 sps:$4 sm:$0xff]  }
 0x28f   :  { %v3211_v5 = vpop.permute.xlu1 %3210 }
 0x290   :  { %3221 = vst.msk [vmem:[#allocation3 + $0x38] sm:$0xff] %vm3112_vm13, %v3211_v5  ;;  %v3474_v26 = vpop.permute.xlu0 %3473  ;;  %v3506_v31 = vld [vmem:[#allocation3 + $0x88] sm:$0xff] }
 0x291   :  { %3479 = vst.msk [vmem:[#allocation3 + $0x130] sm:$0xff] %vm3112_vm13, %v3474_v26  ;;  %5861 = vmatpush1.bf16.msra.mxu1 %v9870_v43  ;;  %v9876_v5 = vld [vmem:[#allocation10 + $0x50] ss:$8 sps:$4 sm:$0xff]   ;;  %v9929_v43 = vld [vmem:[#allocation10 + $0x464] ss:$8 sps:$4 sm:$0xff]  }
 0x292   :  { %5862 = vmatprep.subr.bf16.mxu1 %v9875_v48 }
 0x293   :  { %v3238_v36 = vpop.permute.xlu1 %3237  ;;  %v3525_v22 = vld [vmem:[#allocation3 + $0x120] sm:$0xff] }
 0x294   :  { %3243 = vst.msk [vmem:[#allocation3 + $0x90] sm:$0xff] %vm3112_vm13, %v3238_v36  ;;  %3929 = vmatprep.mubr.bf16.mxu0 %v3525_v22  ;;  %v3516_v39 = vld [vmem:[#allocation3 + $0xd8] sm:$0xff] }
 0x295   :  { %3930 = vmatmul.mubr.bf16.gmra.mrb[92].mxu0 %v3524_v13  ;;  %5863 = vmatpush1.bf16.msra.mxu1 %v9873_v37 }
 0x296   :  { %9703 = vmatprep.mubr.msk.bf16.mxu0 %vm922_vm1, %v3493_v18  ;;  %5864 = vmatprep.subr.bf16.mxu1 %v9878_v56  ;;  %v9879_v18 = vld [vmem:[#allocation10 + $0x60] ss:$8 sps:$4 sm:$0xff]   ;;  %v9942_v56 = vld [vmem:[#allocation10 + $0x474] ss:$8 sps:$4 sm:$0xff]  }
 0x297   :  { %v3445_v30 = vpop.permute.xlu1 %3444  ;;  %v3496_v50 = vld [vmem:[#allocation3 + $0x38] sm:$0xff] }
 0x298   :  { %3456 = vst.msk [vmem:[#allocation3 + $0xb0] sm:$0xff] %vm3112_vm13, %v3445_v30  ;;  %3979 = vmatmul.mubr.bf16.gmra.mrb[4].mxu1 %v3496_v50  ;;  %v3527_v62 = vld [vmem:[#allocation3 + $0x130] sm:$0xff]  ;;  %v9882_v50 = vld [vmem:[#allocation10 + $0x70] ss:$8 sps:$4 sm:$0xff]  }
 0x299   :  { %3986 = vmatprep.mubr.bf16.mxu1 %v3502_v41  ;;  %5865 = vmatpush1.bf16.msra.mxu1 %v9876_v5  ;;  %v9881_v30 = vld [vmem:[#allocation10 + $0x64] ss:$8 sps:$4 sm:$0xff]   ;;  %v9884_v41 = vld [vmem:[#allocation10 + $0x74] ss:$8 sps:$4 sm:$0xff]   ;;  %v9940_v5 = vld [vmem:[#allocation10 + $0x470] ss:$8 sps:$4 sm:$0xff]  }
 0x29a   :  { %5866 = vmatprep.subr.bf16.mxu1 %v9881_v30 }
 0x29b   :  { %v3449_v42 = vpop.permute.xlu1 %3448  ;;  %v3507_v25 = vld [vmem:[#allocation3 + $0x90] sm:$0xff] }
 0x29c   :  { %3458 = vst.msk [vmem:[#allocation3 + $0x100] sm:$0xff] %vm3112_vm13, %v3449_v42  ;;  %v9887_v42 = vld [vmem:[#allocation10 + $0x84] ss:$8 sps:$4 sm:$0xff]  }
 0x29d   :  { %9704 = vmatmul.mubr.msk.bf16.vlgmr.msra.gmra.mrb[96].mxu0 %vm922_vm1, %v3498_v7  ;;  %5867 = vmatpush1.bf16.msra.mxu1 %v9879_v18  ;;  %v9885_v7 = vld [vmem:[#allocation10 + $0x80] ss:$8 sps:$4 sm:$0xff]  }
 0x29e   :  { %9707 = vmatprep.mubr.msk.bf16.mxu0 %vm922_vm1, %v3503_v35  ;;  %5868 = vmatprep.subr.bf16.mxu1 %v9884_v41  ;;  %v9891_v35 = vld [vmem:[#allocation10 + $0x400] ss:$8 sps:$4 sm:$0xff]  }
 0x29f   :  { %v3451_v55 = vpop.permute.xlu1 %3450  ;;  %v3511_v27 = vld [vmem:[#allocation3 + $0xb0] sm:$0xff] }
 0x2a0   :  { %3459 = vst.msk [vmem:[#allocation3 + $0x128] sm:$0xff] %vm3112_vm13, %v3451_v55  ;;  %3987 = vmatmul.mubr.bf16.gmra.mrb[8].mxu1 %v3501_v44  ;;  %v9890_v55 = vld [vmem:[#allocation10 + $0x94] ss:$8 sps:$4 sm:$0xff]   ;;  %v9893_v44 = vld [vmem:[#allocation10 + $0x404] ss:$8 sps:$4 sm:$0xff]  }
 0x2a1   :  { %3994 = vmatprep.mubr.bf16.mxu1 %v3507_v25  ;;  %5869 = vmatpush1.bf16.msra.mxu1 %v9882_v50 }
 0x2a2   :  { %5870 = vmatprep.subr.bf16.mxu1 %v9887_v42  ;;  %6066 = vmatprep.subr.bf16.mxu0 %v9893_v44 }
 0x2a3   :  { %v3521_v19 = vld [vmem:[#allocation3 + $0x100] sm:$0xff]  ;;  %6067 = vmatpush1.bf16.msra.mxu0 %v9891_v35 }
 0x2a5   :  { %9708 = vmatmul.mubr.msk.bf16.gmra.mrb[100].mxu0 %vm922_vm1, %v3508_v14  ;;  %5871 = vmatpush1.bf16.msra.mxu1 %v9885_v7  ;;  %v9888_v14 = vld [vmem:[#allocation10 + $0x90] ss:$8 sps:$4 sm:$0xff]  }
 0x2a6   :  { %9711 = vmatprep.mubr.msk.bf16.mxu0 %vm922_vm1, %v3513_v53  ;;  %5872 = vmatprep.subr.bf16.mxu1 %v9890_v55 }
 0x2a7   :  { %v3526_v24 = vld [vmem:[#allocation3 + $0x128] sm:$0xff] }
 0x2a8   :  { %3995 = vmatmul.mubr.bf16.gmra.mrb[12].mxu1 %v3506_v31  ;;  %v9896_v31 = vld [vmem:[#allocation10 + $0xa4] ss:$8 sps:$4 sm:$0xff]  }
 0x2a9   :  { %4002 = vmatprep.mubr.bf16.mxu1 %v3512_v12  ;;  %5873 = vmatpush1.bf16.msra.mxu1 %v9888_v14 }
 0x2aa   :  { %5874 = vmatprep.subr.bf16.mxu1 %v9896_v31 }
 0x2ad   :  { %9712 = vmatmul.mubr.msk.bf16.gmra.mrb[104].mxu0 %vm922_vm1, %v3518_v20 }
 0x2ae   :  { %9715 = vmatprep.mubr.msk.bf16.mxu0 %vm922_vm1, %v3523_v6 }
 0x2b0   :  { %4003 = vmatmul.mubr.bf16.gmra.mrb[16].mxu1 %v3511_v27 }
 0x2b1   :  { %4010 = vmatprep.mubr.bf16.mxu1 %v3517_v0  ;;  %v9894_v0 = vld [vmem:[#allocation10 + $0xa0] ss:$8 sps:$4 sm:$0xff]  }
 0x2b2   :  { %5875 = vmatpush1.bf16.msra.mxu1 %v9894_v0 }
 0x2b5   :  { %9716 = vmatmul.mubr.msk.bf16.gmra.mrb[108].mxu0 %vm922_vm1, %v3528_v51  ;;  %v9897_v51 = vld [vmem:[#allocation10 + $0x410] ss:$8 sps:$4 sm:$0xff]   ;;  %vm12103_vm1 = vmor %vm4757_vm14, %vm4758_vm15 }
 0x2b8   :  { %4011 = vmatmul.mubr.bf16.gmra.mrb[20].mxu1 %v3516_v39  ;;  %v9899_v39 = vld [vmem:[#allocation10 + $0x414] ss:$8 sps:$4 sm:$0xff]  }
 0x2b9   :  { %4018 = vmatprep.mubr.bf16.mxu1 %v3522_v47  ;;  %v9902_v47 = vld [vmem:[#allocation10 + $0xb4] ss:$8 sps:$4 sm:$0xff]   ;;  %6068 = vmatprep.subr.bf16.mxu0 %v9899_v39 }
 0x2ba   :  { %6069 = vmatpush1.bf16.msra.mxu0 %v9897_v51  ;;  %5876 = vmatprep.subr.bf16.mxu1 %v9902_v47 }
 0x2c0   :  { %4019 = vmatmul.mubr.bf16.gmra.mrb[24].mxu1 %v3521_v19  ;;  %v9905_v19 = vld [vmem:[#allocation10 + $0x424] ss:$8 sps:$4 sm:$0xff]  }
 0x2c1   :  { %4026 = vmatprep.mubr.bf16.mxu1 %v3527_v62  ;;  %v9900_v62 = vld [vmem:[#allocation10 + $0xb0] ss:$8 sps:$4 sm:$0xff]   ;;  %6070 = vmatprep.subr.bf16.mxu0 %v9905_v19 }
 0x2c2   :  { %5877 = vmatpush1.bf16.msra.mxu1 %v9900_v62 }
 0x2c3   :  { %5878 = vmatprep.subr.bf16.mxu1 %v9908_v46 }
 0x2c6   :  { %5879 = vmatpush1.bf16.msra.mxu1 %v9906_v52 }
 0x2c8   :  { %4027 = vmatmul.mubr.bf16.gmra.mrb[28].mxu1 %v3526_v24  ;;  %v9903_v24 = vld [vmem:[#allocation10 + $0x420] ss:$8 sps:$4 sm:$0xff]  }
 0x2c9   :  { %6071 = vmatpush1.bf16.msra.mxu0 %v9903_v24 }
 0x2ca   :  { %6072 = vmatprep.subr.bf16.mxu0 %v9911_v2  ;;  %v12066_v2 = vld [vmem:[#allocation4] sm:$0x3f] }
 0x2cd   :  { %6073 = vmatpush1.bf16.msra.mxu0 %v9909_v34 }
 0x2e6   :  { %v9459_v11 = vpop.f32.mrb[64].mxu0 }
 0x2e7   :  { %v9460_v21 = vpop.f32.mrb[65].mxu0 }
 0x2e8   :  { %v12030_v49 = vadd.f32 %v9460_v21, %v9459_v11  ;;  %v9462_v61 = vpop.f32.mrb[66].mxu0  ;;  %v9912_v11 = vld [vmem:[#allocation10 + $0xd0] ss:$8 sps:$4 sm:$0xff]   ;;  %v9914_v21 = vld [vmem:[#allocation10 + $0xd4] ss:$8 sps:$4 sm:$0xff]  }
 0x2e9   :  { %v9463_v59 = vpop.f32.mrb[67].mxu0  ;;  %5880 = vmatprep.subr.bf16.mxu1 %v9914_v21 }
 0x2ea   :  { %v12032_v33 = vadd.f32 %v9463_v59, %v9462_v61  ;;  %v9917_v61 = vld [vmem:[#allocation10 + $0x444] ss:$8 sps:$4 sm:$0xff]   ;;  %5881 = vmatpush1.bf16.msra.mxu1 %v9912_v11  ;;  %v9918_v59 = vld [vmem:[#allocation10 + $0xe0] ss:$8 sps:$4 sm:$0xff]  }
 0x2eb   :  { %6074 = vmatprep.subr.bf16.mxu0 %v9917_v61  ;;  %5882 = vmatprep.subr.bf16.mxu1 %v9920_v16  ;;  %v12074_v16 = vld [vmem:[#allocation4 + $0x28] sm:$0x3f] }
 0x2ec   :  { %6075 = vmatpush1.bf16.msra.mxu0 %v9915_v54  ;;  %v12079_v54 = vld [vmem:[%s13395_s6] ss:$0 sm:$0xff] }
 0x2ee   :  { %5883 = vmatpush1.bf16.msra.mxu1 %v9918_v59 }
 0x2f3   :  { %v9465_v10 = vpop.f32.mrb[68].mxu0 }
 0x2f4   :  { %v9466_v15 = vpop.f32.mrb[69].mxu0 }
 0x2f5   :  { %v12034_v8 = vadd.f32 %v9466_v15, %v9465_v10  ;;  %v9468_v9 = vpop.f32.mrb[70].mxu0  ;;  %v9923_v10 = vld [vmem:[#allocation10 + $0x454] ss:$8 sps:$4 sm:$0xff]  }
 0x2f6   :  { %v9469_v23 = vpop.f32.mrb[71].mxu0  ;;  %v9926_v15 = vld [vmem:[#allocation10 + $0xf4] ss:$8 sps:$4 sm:$0xff]   ;;  %6076 = vmatprep.subr.bf16.mxu0 %v9923_v10  ;;  %v12083_v10 = vcombine.high %v12066_v2, %v12066_v2 }
 0x2f7   :  { %v12036_v58 = vadd.f32 %v9469_v23, %v9468_v9  ;;  %v9921_v9 = vld [vmem:[#allocation10 + $0x450] ss:$8 sps:$4 sm:$0xff]   ;;  %5884 = vmatprep.subr.bf16.mxu1 %v9926_v15 }
 0x2f8   :  { %v9924_v23 = vld [vmem:[#allocation10 + $0xf0] ss:$8 sps:$4 sm:$0xff]   ;;  %6077 = vmatpush1.bf16.msra.mxu0 %v9921_v9 }
 0x2f9   :  { %5885 = vmatpush1.bf16.msra.mxu1 %v9924_v23  ;;  %6078 = vmatprep.subr.bf16.mxu0 %v9929_v43 }
 0x2fa   :  { %5907 = vmatprep.subr.bf16.mxu1 %v9937_v29 }
 0x2fb   :  { %v9471_v3 = vpop.f32.mrb[72].mxu0 }
 0x2fc   :  { %v9472_v60 = vpop.f32.mrb[73].mxu0 }
 0x2fd   :  { %v12038_v17 = vadd.f32 %v9472_v60, %v9471_v3  ;;  %v9474_v40 = vpop.f32.mrb[74].mxu0  ;;  %v10639_v3 = vmov 0  }
 0x2fe   :  { %v9475_v4 = vpop.f32.mrb[75].mxu0  ;;  %6098 = vmatprep.mubr.bf16.mxu0 %v10639_v3 }
 0x2ff   :  { %v12040_v32 = vadd.f32 %v9475_v4, %v9474_v40  ;;  %v9927_v4 = vld [vmem:[#allocation10 + $0x460] ss:$8 sps:$4 sm:$0xff]  }
 0x300   :  { %6079 = vmatpush1.bf16.msra.mxu0 %v9927_v4 }
 0x301   :  { %6080 = vmatprep.subr.bf16.mxu0 %v9942_v56 }
 0x304   :  { %6081 = vmatpush1.bf16.msra.mxu0 %v9940_v5 }
 0x30d   :  { %v9477_v28 = vpop.f32.mrb[76].mxu0 }
 0x30e   :  { %v9478_v63 = vpop.f32.mrb[77].mxu0 }
 0x30f   :  { %v12042_v26 = vadd.f32 %v9478_v63, %v9477_v28  ;;  %v9480_v36 = vpop.f32.mrb[78].mxu0 }
 0x310   :  { %v9481_v22 = vpop.f32.mrb[79].mxu0 }
 0x311   :  { %v12044_v13 = vadd.f32 %v9481_v22, %v9480_v36 }
 0x32a   :  { %v9483_v25 = vpop.f32.mrb[80].mxu0 }
 0x32b   :  { %v9484_v53 = vpop.f32.mrb[81].mxu0 }
 0x32c   :  { %v12046_v12 = vadd.f32 %v9484_v53, %v9483_v25  ;;  %v9486_v20 = vpop.f32.mrb[82].mxu0 }
 0x32d   :  { %v9487_v6 = vpop.f32.mrb[83].mxu0 }
 0x32e   :  { %v12048_v27 = vadd.f32 %v9487_v6, %v9486_v20 }
 0x348   :  { %v9489_v60 = vpop.f32.mrb[84].mxu0 }
 0x349   :  { %v9490_v40 = vpop.f32.mrb[85].mxu0 }
 0x34a   :  { %v12051_v37 = vadd.f32 %v9490_v40, %v9489_v60  ;;  %v9492_v48 = vpop.f32.mrb[86].mxu0  ;;  %v12089_v40 = vcombine.high %v12074_v16, %v12074_v16 }
 0x34b   :  { %v9493_v28 = vpop.f32.mrb[87].mxu0 }
 0x34c   :  { %v12053_v63 = vadd.f32 %v9493_v28, %v9492_v48 }
 0x350   :  { %v9495_v36 = vpop.f32.mrb[88].mxu0 }
 0x351   :  { %v9496_v22 = vpop.f32.mrb[89].mxu0 }
 0x352   :  { %v12055_v18 = vadd.f32 %v9496_v22, %v9495_v36  ;;  %v9498_v30 = vpop.f32.mrb[90].mxu0 }
 0x353   :  { %v9499_v50 = vpop.f32.mrb[91].mxu0 }
 0x354   :  { %v12057_v41 = vadd.f32 %v9499_v50, %v9498_v30  ;;  %v8944_v30 = vrot.slane %v12066_v2, 9  ;;  %v4762_v50 = vrot.slane %v12083_v10, 5 }
 0x357   :  { %v9523_v42 = vpop.f32.mrb[0].mxu1 }
 0x358   :  { %v9524_v7 = vpop.f32.mrb[1].mxu1 }
 0x359   :  { %v9525_v35 = vadd.f32 %v9524_v7, %v9523_v42  ;;  %v9526_v55 = vpop.f32.mrb[2].mxu1 }
 0x35a   :  { %v9527_v44 = vpop.f32.mrb[3].mxu1 }
 0x35b   :  { %v9528_v25 = vadd.f32 %v9527_v44, %v9526_v55  ;;  %v3973_v14 = vadd.f32 %v9525_v35, %v12030_v49 }
 0x35d   :  { %v3976_v53 = vadd.f32 %v9528_v25, %v12032_v33  ;;  %v12071_v33 = vld [vmem:[%s13394_s5] ss:$0 sm:$0xff]  ;;  %v9973_v25 = vld [vmem:[#allocation10 + $0x184] ss:$8 sps:$4 sm:$0xff]  }
 0x368   :  { %v9501_v31 = vpop.f32.mrb[92].mxu0 }
 0x369   :  { %v9502_v20 = vpop.f32.mrb[93].mxu0 }
 0x36a   :  { %v12061_v6 = vadd.f32 %v9502_v20, %v9501_v31  ;;  %v9504_v0 = vpop.f32.mrb[94].mxu0 }
 0x36b   :  { %v9505_v51 = vpop.f32.mrb[95].mxu0  ;;  %v9529_v39 = vpop.f32.mrb[4].mxu1 }
 0x36c   :  { %v12063_v47 = vadd.f32 %v9505_v51, %v9504_v0  ;;  %v9530_v19 = vpop.f32.mrb[5].mxu1 }
 0x36d   :  { %v9531_v62 = vadd.f32 %v9530_v19, %v9529_v39  ;;  %v9532_v24 = vpop.f32.mrb[6].mxu1 }
 0x36e   :  { %v9533_v46 = vpop.f32.mrb[7].mxu1 }
 0x36f   :  { %v9534_v52 = vadd.f32 %v9533_v46, %v9532_v24  ;;  %v3981_v34 = vadd.f32 %v9531_v62, %v12034_v8  ;;  %v12112_v24 = vld [vmem:[#allocation4 + $0x30] sm:$0x3f] }
 0x370   :  { %v9705_v49 = vpop.f32.mrb[96].mxu0 }
 0x371   :  { %v4078_v11 = vadd.f32 %v9705_v49, %v3981_v34  ;;  %v4069_v21 = vpop.f32.mrb[97].mxu0  ;;  %v3984_v61 = vadd.f32 %v9534_v52, %v12036_v58  ;;  %v12116_v49 = vsel %vm12103_vm1, %v8944_v30, %v4762_v50 }
 0x372   :  { %v4070_v8 = vadd.f32 %v4069_v21, %v3973_v14  ;;  %v9706_v59 = vpop.f32.mrb[98].mxu0  ;;  %v8955_v14 = vrot.slane %v12074_v16, 10 }
 0x373   :  { %v4141_v15 = vmul.f32 %v12071_v33, %v4078_v11  ;;  %v4081_v9 = vadd.f32 %v9706_v59, %v3984_v61  ;;  %v9535_v23 = vpop.f32.mrb[8].mxu1  ;;  %v4072_v43 = vpop.f32.mrb[99].mxu0  ;;  %v4787_v11 = vrot.slane %v12083_v10, 6 }
 0x374   :  { %v4139_v58 = vmul.f32 %v12071_v33, %v4070_v8  ;;  %v4073_v29 = vadd.f32 %v4072_v43, %v3976_v53  ;;  %v9536_v60 = vpop.f32.mrb[9].mxu1  ;;  %v4851_v53 = vrot.slane %v12089_v40, 6 }
 0x375   :  { %v4164_v4 = vadd.f32 %v12079_v54, %v4141_v15  ;;  %v4142_v48 = vmul.f32 %v12071_v33, %v4081_v9  ;;  %v9537_v56 = vadd.f32 %v9536_v60, %v9535_v23  ;;  %v9538_v28 = vpop.f32.mrb[10].mxu1 }
 0x376   :  { %v4162_v5 = vadd.f32 %v12079_v54, %v4139_v58  ;;  %v4140_v36 = vmul.f32 %v12071_v33, %v4073_v29  ;;  %v9539_v22 = vpop.f32.mrb[11].mxu1  ;;  %v12128_v15 = vsel %vm12121_vm3, %v8955_v14, %v4851_v53  ;;  %v12133_v29 = vcombine.high %v12112_v24, %v12112_v24 }
 0x377   :  { %v4165_v42 = vadd.f32 %v12079_v54, %v4142_v48  ;;  %v9540_v7 = vadd.f32 %v9539_v22, %v9538_v28  ;;  %v3989_v35 = vadd.f32 %v9537_v56, %v12038_v17  ;;  %v4180_v31 = vmax.f32 %v4164_v4, 0.0 }
 0x378   :  { %v4163_v55 = vadd.f32 %v12079_v54, %v4140_v36  ;;  %v12100_v44 = vpop.f32.mrb[100].mxu0  ;;  %v4178_v51 = vmax.f32 %v4162_v5, 0.0 }
 0x379   :  { %v4181_v20 = vmax.f32 %v4165_v42, 0.0  ;;  %v4085_v0 = vpop.f32.mrb[101].mxu0  ;;  %v3992_v17 = vadd.f32 %v9540_v7, %v12040_v32  ;;  %v10010_v32 = vld [vmem:[#allocation10 + $0x230] ss:$8 sps:$4 sm:$0xff]  }
 0x37a   :  { %v4179_v39 = vmax.f32 %v4163_v55, 0.0  ;;  %v4086_v19 = vadd.f32 %v4085_v0, %v3989_v35  ;;  %v12110_v62 = vpop.f32.mrb[102].mxu0 }
 0x37b   :  { %v4224_v46 = vmax.f32 %v4180_v31, %v4181_v20  ;;  %v9541_v52 = vpop.f32.mrb[12].mxu1  ;;  %v4088_v34 = vpop.f32.mrb[103].mxu0 }
 0x37c   :  { %v4223_v21 = vmax.f32 %v4178_v51, %v4179_v39  ;;  %v4143_v61 = vmul.f32 %v12071_v33, %v4086_v19  ;;  %v4089_v8 = vadd.f32 %v4088_v34, %v3992_v17  ;;  %v9542_v59 = vpop.f32.mrb[13].mxu1 }
 0x37d   :  { %v4248_v9 = vcombine.high %v4224_v46, %v4224_v46  ;;  %v4255_v23 = vrot.slane %v4224_v46, %v11034_v57  ;;  %v9543_v43 = vadd.f32 %v9542_v59, %v9541_v52  ;;  %v9544_v58 = vpop.f32.mrb[14].mxu1 }
 0x37e   :  { %v4231_v60 = vcombine.high %v4223_v21, %v4223_v21  ;;  %v4238_v4 = vrot.slane %v4223_v21, %v11034_v57  ;;  %v4166_v48 = vadd.f32 %v12079_v54, %v4143_v61  ;;  %v4144_v56 = vmul.f32 %v12071_v33, %v4089_v8  ;;  %v9545_v28 = vpop.f32.mrb[15].mxu1 }
 0x37f   :  { %v4262_v5 = vrot.slane %v4248_v9, %v11034_v57  ;;  %v4263_v36 = vcombine.high %v4255_v23, %v4255_v23  ;;  %v8916_v22 = vrot.slane %v4255_v23, 9  ;;  %v3997_v30 = vadd.f32 %v9543_v43, %v12042_v26 }
 0x380   :  { %v4245_v50 = vrot.slane %v4231_v60, %v11034_v57  ;;  %v4246_v42 = vcombine.high %v4238_v4, %v4238_v4  ;;  %v8912_v7 = vrot.slane %v4238_v4, 9  ;;  %v4182_v35 = vmax.f32 %v4166_v48, 0.0  ;;  %v12141_v55 = vpop.f32.mrb[104].mxu0 }
 0x381   :  { %v4264_v14 = vcombine.high %v4262_v5, %v4262_v5  ;;  %v8917_v53 = vrot.slane %v4263_v36, 9  ;;  %v8918_v31 = vrot.slane %v4262_v5, 9  ;;  %v4367_v20 = vmax.f32 %v4255_v23, %v8916_v22  ;;  %v12143_v0 = vpop.f32.mrb[105].mxu0 }
 0x382   :  { %v4247_v17 = vcombine.high %v4245_v50, %v4245_v50  ;;  %v8913_v51 = vrot.slane %v4246_v42, 9  ;;  %v8914_v39 = vrot.slane %v4245_v50, 9  ;;  %v4363_v19 = vmax.f32 %v4238_v4, %v8912_v7  ;;  %v12145_v46 = vpop.f32.mrb[106].mxu0 }
 0x383   :  { %v8919_v26 = vrot.slane %v4264_v14, 9  ;;  %v4368_v52 = vmax.f32 %v4263_v36, %v8917_v53  ;;  %v4369_v34 = vmax.f32 %v4262_v5, %v8918_v31  ;;  %v4414_v21 = vrot.slane %v4367_v20, %v11039_v1  ;;  %v9547_v61 = vpop.f32.mrb[16].mxu1  ;;  %v4104_v8 = vpop.f32.mrb[107].mxu0 }
 0x384   :  { %v8915_v59 = vrot.slane %v4247_v17, 9  ;;  %v4364_v9 = vmax.f32 %v4246_v42, %v8913_v51  ;;  %v4365_v43 = vmax.f32 %v4245_v50, %v8914_v39  ;;  %v4398_v23 = vrot.slane %v4363_v19, %v11039_v1  ;;  %v9548_v60 = vpop.f32.mrb[17].mxu1 }
 0x385   :  { %v4370_v48 = vmax.f32 %v4264_v14, %v8919_v26  ;;  %v4418_v22 = vrot.slane %v4368_v52, %v11039_v1  ;;  %v4422_v4 = vrot.slane %v4369_v34, %v11039_v1  ;;  %v4167_v7 = vadd.f32 %v12079_v54, %v4144_v56  ;;  %v9550_v38 = vpop.f32.mrb[18].mxu1 }
 0x386   :  { %v4366_v36 = vmax.f32 %v4247_v17, %v8915_v59  ;;  %v4402_v5 = vrot.slane %v4364_v9, %v11039_v1  ;;  %v4406_v53 = vrot.slane %v4365_v43, %v11039_v1  ;;  %v4094_v31 = vadd.f32 %v12100_v44, %v3997_v30  ;;  %v9551_v42 = vpop.f32.mrb[19].mxu1 }
 0x387   :  { %v4426_v50 = vrot.slane %v4370_v48, %v11039_v1  ;;  %v4462_v20 = vsel %vm1918_vm5, %v4418_v22, %v4414_v21  ;;  %v4183_v14 = vmax.f32 %v4167_v7, 0.0  ;;  %v9546_v51 = vadd.f32 %v9545_v28, %v9544_v58  ;;  %v12168_v58 = vld [vmem:[#allocation4 + $0x58] sm:$0x3f] }
 0x388   :  { %v4463_v39 = vsel %vm1920_vm6, %v4422_v4, %v4462_v20  ;;  %v4410_v19 = vrot.slane %v4366_v36, %v11039_v1  ;;  %v4459_v56 = vsel %vm1918_vm5, %v4402_v5, %v4398_v23  ;;  %v4145_v17 = vmul.f32 %v12071_v33, %v4094_v31  ;;  %v12161_v26 = vpop.f32.mrb[108].mxu0 }
 0x389   :  { %v4464_v52 = vsel %vm1922_vm7, %v4426_v50, %v4463_v39  ;;  %v4460_v44 = vsel %vm1920_vm6, %v4406_v53, %v4459_v56  ;;  %v4225_v30 = vmax.f32 %v4182_v35, %v4183_v14  ;;  %v4000_v34 = vadd.f32 %v9546_v51, %v12044_v13  ;;  %v12166_v21 = vpop.f32.mrb[109].mxu0 }
 0x38a   :  { %4477 = vst [vmem:[#allocation4 + $0x11] sm:$0xf] %v4464_v52  ;;  %v4461_v28 = vsel %vm1922_vm7, %v4410_v19, %v4460_v44  ;;  %v4168_v59 = vadd.f32 %v12079_v54, %v4145_v17  ;;  %v9549_v9 = vadd.f32 %v9548_v60, %v9547_v61  ;;  %v9552_v43 = vadd.f32 %v9551_v42, %v9550_v38  ;;  %v12172_v23 = vpop.f32.mrb[110].mxu0 }
 0x38b   :  { %4476 = vst [vmem:[#allocation4 + $0x9] sm:$0xf] %v4461_v28  ;;  %v4265_v48 = vcombine.high %v4225_v30, %v4225_v30  ;;  %v4272_v22 = vrot.slane %v4225_v30, %v11034_v57  ;;  %v4097_v35 = vadd.f32 %v12110_v62, %v4000_v34  ;;  %v9553_v13 = vpop.f32.mrb[20].mxu1  ;;  %v12176_v4 = vpop.f32.mrb[111].mxu0  ;;  %v8956_v7 = vrot.slane %v12112_v24, 9 }
 0x38c   :  { %v4005_v36 = vadd.f32 %v9549_v9, %v12046_v12  ;;  %v4008_v5 = vadd.f32 %v9552_v43, %v12048_v27  ;;  %v9554_v53 = vpop.f32.mrb[21].mxu1  ;;  %v4880_v38 = vrot.slane %v12133_v29, 5  ;;  %v12184_v61 = vcombine.high %v12168_v58, %v12168_v58 }
 0x38d   :  { %v4279_v60 = vrot.slane %v4265_v48, %v11034_v57  ;;  %v4280_v31 = vcombine.high %v4272_v22, %v4272_v22  ;;  %v8920_v62 = vrot.slane %v4272_v22, 9  ;;  %v4146_v42 = vmul.f32 %v12071_v33, %v4097_v35  ;;  %v9556_v50 = vpop.f32.mrb[22].mxu1 }
 0x38e   :  { %v4184_v20 = vmax.f32 %v4168_v59, 0.0  ;;  %v4102_v14 = vadd.f32 %v12143_v0, %v4005_v36  ;;  %v4105_v12 = vadd.f32 %v4104_v8, %v4008_v5  ;;  %v9555_v51 = vadd.f32 %v9554_v53, %v9553_v13  ;;  %v9557_v27 = vpop.f32.mrb[23].mxu1 }
 0x38f   :  { %v4281_v39 = vcombine.high %v4279_v60, %v4279_v60  ;;  %v8921_v19 = vrot.slane %v4280_v31, 9  ;;  %v8922_v56 = vrot.slane %v4279_v60, 9  ;;  %v4371_v17 = vmax.f32 %v4272_v22, %v8920_v62 }
 0x390   :  { %v4169_v52 = vadd.f32 %v12079_v54, %v4146_v42  ;;  %v4147_v44 = vmul.f32 %v12071_v33, %v4102_v14  ;;  %v4148_v30 = vmul.f32 %v12071_v33, %v4105_v12  ;;  %v4013_v34 = vadd.f32 %v9555_v51, %v12051_v37 }
 0x391   :  { %v8923_v28 = vrot.slane %v4281_v39, 9  ;;  %v4372_v9 = vmax.f32 %v4280_v31, %v8921_v19  ;;  %v4373_v59 = vmax.f32 %v4279_v60, %v8922_v56  ;;  %v4430_v0 = vrot.slane %v4371_v17, %v11039_v1 }
 0x392   :  { %v4185_v8 = vmax.f32 %v4169_v52, 0.0  ;;  %v4170_v43 = vadd.f32 %v12079_v54, %v4147_v44  ;;  %v4171_v48 = vadd.f32 %v12079_v54, %v4148_v30  ;;  %v4110_v22 = vadd.f32 %v12141_v55, %v4013_v34 }
 0x393   :  { %v4374_v35 = vmax.f32 %v4281_v39, %v8923_v28  ;;  %v4434_v13 = vrot.slane %v4372_v9, %v11039_v1  ;;  %v4438_v36 = vrot.slane %v4373_v59, %v11039_v1  ;;  %v9558_v5 = vadd.f32 %v9557_v27, %v9556_v50  ;;  %v9559_v53 = vpop.f32.mrb[24].mxu1 }
 0x394   :  { %v4226_v37 = vmax.f32 %v4184_v20, %v4185_v8  ;;  %v4186_v62 = vmax.f32 %v4170_v43, 0.0  ;;  %v4187_v31 = vmax.f32 %v4171_v48, 0.0  ;;  %v4149_v60 = vmul.f32 %v12071_v33, %v4110_v22  ;;  %v9560_v42 = vpop.f32.mrb[25].mxu1 }
 0x395   :  { %v4442_v14 = vrot.slane %v4374_v35, %v11039_v1  ;;  %v4465_v12 = vsel %vm1918_vm5, %v4434_v13, %v4430_v0  ;;  %v4016_v51 = vadd.f32 %v9558_v5, %v12053_v63  ;;  %v9561_v55 = vadd.f32 %v9560_v42, %v9559_v53  ;;  %v12203_v39 = vpop.f32.mrb[26].mxu1 }
 0x396   :  { %v4466_v19 = vsel %vm1920_vm6, %v4438_v36, %v4465_v12  ;;  %v4282_v56 = vcombine.high %v4226_v37, %v4226_v37  ;;  %v4289_v50 = vrot.slane %v4226_v37, %v11034_v57  ;;  %v4480_v20 = vmax.f32 %v4186_v62, %v4187_v31  ;;  %v9563_v27 = vpop.f32.mrb[27].mxu1 }
 0x397   :  { %v4467_v17 = vsel %vm1922_vm7, %v4442_v14, %v4466_v19  ;;  %v4172_v52 = vadd.f32 %v12079_v54, %v4149_v60  ;;  %v4113_v44 = vadd.f32 %v12145_v46, %v4016_v51  ;;  %v4021_v30 = vadd.f32 %v9561_v55, %v12055_v18 }
 0x398   :  { %4478 = vst [vmem:[#allocation4 + $0x19] sm:$0xf] %v4467_v17  ;;  %v4296_v63 = vrot.slane %v4282_v56, %v11034_v57  ;;  %v4297_v34 = vcombine.high %v4289_v50, %v4289_v50  ;;  %v8924_v28 = vrot.slane %v4289_v50, 9  ;;  %v4488_v9 = vcombine.high %v4480_v20, %v4480_v20 }
 0x399   :  { %v4495_v59 = vrot.slane %v4480_v20, %v11034_v57  ;;  %v4188_v0 = vmax.f32 %v4172_v52, 0.0  ;;  %v4150_v8 = vmul.f32 %v12071_v33, %v4113_v44  ;;  %v4118_v43 = vadd.f32 %v12166_v21, %v4021_v30 }
 0x39a   :  { %v4298_v48 = vcombine.high %v4296_v63, %v4296_v63  ;;  %v8925_v22 = vrot.slane %v4297_v34, 9  ;;  %v8926_v35 = vrot.slane %v4296_v63, 9  ;;  %v4375_v13 = vmax.f32 %v4289_v50, %v8924_v28 }
 0x39b   :  { %v4502_v46 = vrot.slane %v4488_v9, %v11034_v57  ;;  %v4503_v18 = vcombine.high %v4495_v59, %v4495_v59  ;;  %v8928_v36 = vrot.slane %v4495_v59, 9  ;;  %v4173_v5 = vadd.f32 %v12079_v54, %v4150_v8  ;;  %v9565_v53 = vpop.f32.mrb[28].mxu1 }
 0x39c   :  { %v8927_v37 = vrot.slane %v4298_v48, 9  ;;  %v4376_v62 = vmax.f32 %v4297_v34, %v8925_v22  ;;  %v4377_v31 = vmax.f32 %v4296_v63, %v8926_v35  ;;  %v4446_v60 = vrot.slane %v4375_v13, %v11039_v1  ;;  %v9566_v42 = vpop.f32.mrb[29].mxu1 }
 0x39d   :  { %v4504_v14 = vcombine.high %v4502_v46, %v4502_v46  ;;  %v8929_v12 = vrot.slane %v4503_v18, 9  ;;  %v8930_v21 = vrot.slane %v4502_v46, 9  ;;  %v4620_v51 = vmax.f32 %v4495_v59, %v8928_v36  ;;  %v9568_v55 = vpop.f32.mrb[30].mxu1 }
 0x39e   :  { %v4378_v19 = vmax.f32 %v4298_v48, %v8927_v37  ;;  %v4450_v56 = vrot.slane %v4376_v62, %v11039_v1  ;;  %v4454_v50 = vrot.slane %v4377_v31, %v11039_v1  ;;  %v4189_v20 = vmax.f32 %v4173_v5, 0.0  ;;  %v9569_v17 = vpop.f32.mrb[31].mxu1 }
 0x39f   :  { %v8931_v52 = vrot.slane %v4504_v14, 9  ;;  %v4621_v44 = vmax.f32 %v4503_v18, %v8929_v12  ;;  %v4622_v30 = vmax.f32 %v4502_v46, %v8930_v21  ;;  %v8967_v63 = vrot.slane %v12168_v58, 10 }
 0x3a0   :  { %v4458_v34 = vrot.slane %v4378_v19, %v11039_v1  ;;  %v4468_v28 = vsel %vm1918_vm5, %v4450_v56, %v4446_v60  ;;  %v4655_v9 = vrot.slane %v4620_v51, %v11039_v1  ;;  %v4481_v59 = vmax.f32 %v4188_v0, %v4189_v20  ;;  %v12238_v19 = vld [vmem:[#allocation4 + $0x8] sm:$0x3f] }
 0x3a1   :  { %v4469_v8 = vsel %vm1920_vm6, %v4454_v50, %v4468_v28  ;;  %v4623_v48 = vmax.f32 %v4504_v14, %v8931_v52  ;;  %v4659_v22 = vrot.slane %v4621_v44, %v11039_v1  ;;  %v4663_v35 = vrot.slane %v4622_v30, %v11039_v1  ;;  %v12244_v30 = vld [vmem:[#allocation4 + $0x10] sm:$0x3f]  ;;  %v12246_v28 = vld [vmem:[#allocation4 + $0x18] sm:$0x3f] }
 0x3a2   :  { %v4470_v13 = vsel %vm1922_vm7, %v4458_v34, %v4469_v8  ;;  %v4505_v18 = vcombine.high %v4481_v59, %v4481_v59  ;;  %v4512_v46 = vrot.slane %v4481_v59, %v11034_v57  ;;  %v4151_v36 = vmul.f32 %v12071_v33, %v4118_v43 }
 0x3a3   :  { %4479 = vst [vmem:[#allocation4 + $0x21] sm:$0xf] %v4470_v13  ;;  %v4667_v5 = vrot.slane %v4623_v48, %v11039_v1  ;;  %v4716_v37 = vsel %vm1918_vm5, %v4659_v22, %v4655_v9  ;;  %v9564_v0 = vadd.f32 %v9563_v27, %v12203_v39  ;;  %v9567_v62 = vadd.f32 %v9566_v42, %v9565_v53 }
 0x3a4   :  { %v4717_v31 = vsel %vm1920_vm6, %v4663_v35, %v4716_v37  ;;  %v4519_v60 = vrot.slane %v4505_v18, %v11034_v57  ;;  %v4520_v14 = vcombine.high %v4512_v46, %v4512_v46  ;;  %v8932_v12 = vrot.slane %v4512_v46, 9 }
 0x3a5   :  { %v4718_v21 = vsel %vm1922_vm7, %v4667_v5, %v4717_v31  ;;  %v4024_v51 = vadd.f32 %v9564_v0, %v12057_v41  ;;  %v4029_v43 = vadd.f32 %v9567_v62, %v12061_v6  ;;  %v4966_v56 = vrot.slane %v12184_v61, 6 }
 0x3a6   :  { %4733 = vst [vmem:[#allocation4 + $0x39] sm:$0xf] %v4718_v21  ;;  %v4521_v50 = vcombine.high %v4519_v60, %v4519_v60  ;;  %v8933_v39 = vrot.slane %v4520_v14, 9  ;;  %v8934_v27 = vrot.slane %v4519_v60, 9  ;;  %v4624_v53 = vmax.f32 %v4512_v46, %v8932_v12 }
 0x3a7   :  { %v4174_v42 = vadd.f32 %v12079_v54, %v4151_v36  ;;  %v4121_v20 = vadd.f32 %v12176_v4, %v4024_v51  ;;  %v4126_v52 = vadd.f32 %v12161_v26, %v4029_v43  ;;  %v9570_v44 = vadd.f32 %v9569_v17, %v9568_v55 }
 0x3a8   :  { %v8935_v41 = vrot.slane %v4521_v50, 9  ;;  %v4625_v6 = vmax.f32 %v4520_v14, %v8933_v39  ;;  %v4626_v34 = vmax.f32 %v4519_v60, %v8934_v27  ;;  %v12250_v9 = vcombine.high %v12238_v19, %v12238_v19 }
 0x3a9   :  { %v4671_v59 = vrot.slane %v4624_v53, %v11039_v1  ;;  %v4152_v8 = vmul.f32 %v12071_v33, %v4121_v20  ;;  %v4153_v4 = vmul.f32 %v12071_v33, %v4126_v52  ;;  %v4032_v26 = vadd.f32 %v9570_v44, %v12063_v47 }
 0x3aa   :  { %v4627_v55 = vmax.f32 %v4521_v50, %v8935_v41  ;;  %v4675_v17 = vrot.slane %v4625_v6, %v11039_v1  ;;  %v4679_v48 = vrot.slane %v4626_v34, %v11039_v1  ;;  %v12260_v22 = vcombine.high %v12244_v30, %v12244_v30  ;;  %v12281_v50 = vld [vmem:[#allocation4 + $0x20] sm:$0x3f] }
 0x3ab   :  { %v4175_v35 = vadd.f32 %v12079_v54, %v4152_v8  ;;  %v4176_v13 = vadd.f32 %v12079_v54, %v4153_v4  ;;  %v4129_v18 = vadd.f32 %v12172_v23, %v4032_v26  ;;  %v12267_v46 = vcombine.high %v12246_v28, %v12246_v28 }
 0x3ac   :  { %v4683_v47 = vrot.slane %v4627_v55, %v11039_v1  ;;  %v4719_v36 = vsel %vm1918_vm5, %v4675_v17, %v4671_v59  ;;  %v8945_v5 = vrot.slane %v12238_v19, 9  ;;  %v4766_v37 = vrot.slane %v12250_v9, 5 }
 0x3ad   :  { %v4720_v0 = vsel %vm1920_vm6, %v4679_v48, %v4719_v36  ;;  %v4190_v62 = vmax.f32 %v4174_v42, 0.0  ;;  %v4191_v31 = vmax.f32 %v4175_v35, 0.0  ;;  %v4154_v60 = vmul.f32 %v12071_v33, %v4129_v18 }
 0x3ae   :  { %v4721_v23 = vsel %vm1922_vm7, %v4683_v47, %v4720_v0  ;;  %v4767_v14 = vsel %vm12103_vm1, %v8945_v5, %v4766_v37  ;;  %v8946_v12 = vrot.slane %v12244_v30, 9  ;;  %v4770_v21 = vrot.slane %v12260_v22, 5 }
 0x3af   :  { %4734 = vst [vmem:[#allocation4 + $0x41] sm:$0xf] %v4721_v23  ;;  %v4482_v51 = vmax.f32 %v4190_v62, %v4191_v31  ;;  %v4177_v43 = vadd.f32 %v12079_v54, %v4154_v60  ;;  %v8947_v39 = vrot.slane %v12246_v28, 9  ;;  %v4774_v27 = vrot.slane %v12267_v46, 5 }
 0x3b0   :  { %v4192_v33 = vmax.f32 %v4176_v13, 0.0  ;;  %v4771_v53 = vsel %vm12103_vm1, %v8946_v12, %v4770_v21  ;;  %v4776_v42 = vcombine.low %v12116_v49, %v4767_v14  ;;  %v4795_v20 = vrot.slane %v12260_v22, 6  ;;  %v9952_v22 = vld [vmem:[#allocation10 + $0x134] ss:$8 sps:$4 sm:$0xff]  }
 0x3b1   :  { %v4522_v52 = vcombine.high %v4482_v51, %v4482_v51  ;;  %v4529_v44 = vrot.slane %v4482_v51, %v11034_v57  ;;  %v4193_v41 = vmax.f32 %v4177_v43, 0.0  ;;  %v4775_v54 = vsel %vm12103_vm1, %v8947_v39, %v4774_v27  ;;  %v9935_v27 = vld [vmem:[#allocation10 + $0x100] ss:$8 sps:$4 sm:$0xff]  }
 0x3b2   :  { %v12292_v6 = vcombine.low %v4771_v53, %v4775_v54  ;;  %v4799_v34 = vrot.slane %v12267_v46, 6  ;;  %v12297_v59 = vcombine.high %v12281_v50, %v12281_v50  ;;  %v4819_v8 = vcombine.low %v4767_v14, %v4771_v53 }
 0x3b3   :  { %v4536_v49 = vrot.slane %v4522_v52, %v11034_v57  ;;  %v4537_v4 = vcombine.high %v4529_v44, %v4529_v44  ;;  %v8936_v26 = vrot.slane %v4529_v44, 9  ;;  %v4483_v55 = vmax.f32 %v4192_v33, %v4193_v41 }
 0x3b4   :  { %v4780_v17 = vpack.c.bf16 %v12292_v6, %v4776_v42  ;;  %v8952_v48 = vrot.slane %v12281_v50, 9  ;;  %v4817_v35 = vrot.slane %v12297_v59, 5  ;;  %v4747_v13 = vcombine.low %v12066_v2, %v12238_v19 }
 0x3b5   :  { %v4538_v18 = vcombine.high %v4536_v49, %v4536_v49  ;;  %v8937_v47 = vrot.slane %v4537_v4, 9  ;;  %v8938_v36 = vrot.slane %v4536_v49, 9  ;;  %v4628_v5 = vmax.f32 %v4529_v44, %v8936_v26  ;;  %v9945_v44 = vld [vmem:[#allocation10 + $0x114] ss:$8 sps:$4 sm:$0xff]  }
 0x3b6   :  { %v4539_v37 = vcombine.high %v4483_v55, %v4483_v55  ;;  %v4546_v0 = vrot.slane %v4483_v55, %v11034_v57  ;;  %v12308_v62 = vsel %vm12103_vm1, %v8952_v48, %v4817_v35  ;;  %5886 = vmatprep.mubr.bf16.mxu1 %v4780_v17  ;;  %v12312_v31 = vcombine.low %v12244_v30, %v12246_v28  ;;  %v9943_v35 = vld [vmem:[#allocation10 + $0x110] ss:$8 sps:$4 sm:$0xff]  }
 0x3b7   :  { %v8939_v60 = vrot.slane %v4538_v18, 9  ;;  %v4629_v23 = vmax.f32 %v4537_v4, %v8937_v47  ;;  %v4630_v14 = vmax.f32 %v4536_v49, %v8938_v36  ;;  %v4687_v12 = vrot.slane %v4628_v5, %v11039_v1  ;;  %v12326_v5 = vld [vmem:[#allocation4 + $0x38] sm:$0x3f] }
 0x3b8   :  { %v4553_v21 = vrot.slane %v4539_v37, %v11034_v57  ;;  %v4554_v51 = vcombine.high %v4546_v0, %v4546_v0  ;;  %v8940_v43 = vrot.slane %v4546_v0, 9  ;;  %v4820_v39 = vcombine.low %v4775_v54, %v12308_v62  ;;  %v12328_v37 = vld [vmem:[#allocation4 + $0x40] sm:$0x3f] }
 0x3b9   :  { %v4631_v33 = vmax.f32 %v4538_v18, %v8939_v60  ;;  %v4691_v53 = vrot.slane %v4629_v23, %v11039_v1  ;;  %v4695_v42 = vrot.slane %v4630_v14, %v11039_v1  ;;  %v4751_v52 = vpack.c.bf16 %v12312_v31, %v4747_v13  ;;  %v9949_v23 = vld [vmem:[#allocation10 + $0x124] ss:$8 sps:$4 sm:$0xff]  }
 0x3ba   :  { %v4555_v41 = vcombine.high %v4553_v21, %v4553_v21  ;;  %v8941_v4 = vrot.slane %v4554_v51, 9  ;;  %v8942_v49 = vrot.slane %v4553_v21, 9  ;;  %v4632_v26 = vmax.f32 %v4546_v0, %v8940_v43 }
 0x3bb   :  { %v4699_v55 = vrot.slane %v4631_v33, %v11039_v1  ;;  %v4722_v17 = vsel %vm1918_vm5, %v4691_v53, %v4687_v12  ;;  %v12322_v48 = vpack.c.bf16 %v4820_v39, %v4819_v8  ;;  %v4827_v54 = vrot.slane %v12297_v59, 6  ;;  %5887 = vmatmul.mubr.bf16.vlgmr.msra.gmra.mrb[32].mxu1 %v4751_v52  ;;  %v9947_v52 = vld [vmem:[#allocation10 + $0x120] ss:$8 sps:$4 sm:$0xff]  }
 0x3bc   :  { %v4723_v18 = vsel %vm1920_vm6, %v4695_v42, %v4722_v17  ;;  %v8943_v47 = vrot.slane %v4555_v41, 9  ;;  %v4633_v36 = vmax.f32 %v4554_v51, %v8941_v4  ;;  %v4634_v13 = vmax.f32 %v4553_v21, %v8942_v49  ;;  %5908 = vmatpush1.bf16.msra.mxu1 %v9935_v27 }
 0x3bd   :  { %v4724_v0 = vsel %vm1922_vm7, %v4699_v55, %v4723_v18  ;;  %v4703_v60 = vrot.slane %v4632_v26, %v11039_v1  ;;  %5909 = vmatprep.subr.bf16.mxu1 %v9945_v44  ;;  %v8950_v8 = vrot.slane %v12244_v30, 10  ;;  %v8951_v59 = vrot.slane %v12246_v28, 10 }
 0x3be   :  { %4735 = vst [vmem:[#allocation4 + $0x49] sm:$0xf] %v4724_v0  ;;  %v4635_v14 = vmax.f32 %v4555_v41, %v8943_v47  ;;  %v4707_v12 = vrot.slane %v4633_v36, %v11039_v1  ;;  %v4711_v21 = vrot.slane %v4634_v13, %v11039_v1  ;;  %v8953_v51 = vrot.slane %v12281_v50, 10 }
 0x3bf   :  { %v12341_v43 = vsel %vm12121_vm3, %v8951_v59, %v4799_v34  ;;  %v12345_v39 = vcombine.high %v12326_v5, %v12326_v5  ;;  %v4876_v27 = vcombine.high %v12328_v37, %v12328_v37  ;;  %v8948_v33 = vrot.slane %v12066_v2, 10  ;;  %v9953_v59 = vld [vmem:[#allocation10 + $0x140] ss:$8 sps:$4 sm:$0xff]  }
 0x3c0   :  { %v4715_v53 = vrot.slane %v4635_v14, %v11039_v1  ;;  %v4725_v42 = vsel %vm1918_vm5, %v4707_v12, %v4703_v60  ;;  %5910 = vmatpush1.bf16.msra.mxu1 %v9943_v35  ;;  %v12356_v46 = vsel %vm12121_vm3, %v8950_v8, %v4795_v20  ;;  %v12360_v34 = vsel %vm12121_vm3, %v8953_v51, %v4827_v54 }
 0x3c1   :  { %v4726_v44 = vsel %vm1920_vm6, %v4711_v21, %v4725_v42  ;;  %v12365_v2 = vcombine.low %v12356_v46, %v12341_v43  ;;  %v4853_v41 = vcombine.low %v12360_v34, %v12128_v15  ;;  %5911 = vmatprep.subr.bf16.mxu1 %v9949_v23  ;;  %v4884_v20 = vrot.slane %v12345_v39, 5  ;;  %v9950_v15 = vld [vmem:[#allocation10 + $0x130] ss:$8 sps:$4 sm:$0xff]  }
 0x3c2   :  { %v4727_v4 = vsel %vm1922_vm7, %v4715_v53, %v4726_v44  ;;  %v4888_v49 = vrot.slane %v4876_v27, 5  ;;  %v4791_v26 = vrot.slane %v12250_v9, 6  ;;  %v4881_v17 = vsel %vm12103_vm1, %v8956_v7, %v4880_v38  ;;  %v9955_v7 = vld [vmem:[#allocation10 + $0x144] ss:$8 sps:$4 sm:$0xff]  }
 0x3c3   :  { %4736 = vst [vmem:[#allocation4 + $0x51] sm:$0xf] %v4727_v4  ;;  %v4855_v55 = vpack.c.bf16 %v4853_v41, %v12365_v2  ;;  %v8957_v54 = vrot.slane %v12326_v5, 9  ;;  %v8958_v35 = vrot.slane %v12328_v37, 9  ;;  %v12387_v9 = vsel %vm12121_vm3, %v8967_v63, %v4966_v56 }
 0x3c4   :  { %5912 = vmatpush1.bf16.msra.mxu1 %v9947_v52  ;;  %v12393_v18 = vsel %vm12121_vm3, %v8948_v33, %v4787_v11  ;;  %v4868_v47 = vcombine.low %v12112_v24, %v12326_v5  ;;  %v4808_v36 = vcombine.low %v12238_v19, %v12244_v30  ;;  %v4910_v13 = vrot.slane %v4876_v27, 6 }
 0x3c5   :  { %6099 = vmatmul.mubr.bf16.vlgmr.msra.gmra.mrb[112].mxu0 %v4855_v55  ;;  %5913 = vmatprep.subr.bf16.mxu1 %v9952_v22  ;;  %v12395_v38 = vld [vmem:[#allocation4 + $0x48] sm:$0x3f]  ;;  %v8949_v63 = vrot.slane %v12238_v19, 10  ;;  %v12406_v11 = vsel %vm12103_vm1, %v8957_v54, %v4884_v20  ;;  %v12410_v56 = vsel %vm12103_vm1, %v8958_v35, %v4888_v49  ;;  %v4809_v0 = vcombine.low %v12246_v28, %v12281_v50  ;;  %v9961_v54 = vld [vmem:[#allocation10 + $0x164] ss:$8 sps:$4 sm:$0xff]  }
 0x3c6   :  { %v4877_v10 = vcombine.high %v12395_v38, %v12395_v38  ;;  %6108 = vmatprep.mubr.bf16.mxu0 %v10639_v3  ;;  %v8959_v30 = vrot.slane %v12395_v38, 9  ;;  %v8962_v19 = vrot.slane %v12328_v37, 10  ;;  %v4906_v8 = vrot.slane %v12345_v39, 6  ;;  %v9958_v28 = vld [vmem:[#allocation10 + $0x154] ss:$8 sps:$4 sm:$0xff]  }
 0x3c7   :  { %v12419_v60 = vsel %vm12121_vm3, %v8949_v63, %v4791_v26  ;;  %v4869_v14 = vcombine.low %v12328_v37, %v12395_v38  ;;  %v8963_v51 = vrot.slane %v12395_v38, 10  ;;  %v8961_v27 = vrot.slane %v12326_v5, 10  ;;  %v9956_v49 = vld [vmem:[#allocation10 + $0x150] ss:$8 sps:$4 sm:$0xff]  }
 0x3c8   :  { %5914 = vmatpush1.bf16.msra.mxu1 %v9950_v15  ;;  %v4892_v23 = vrot.slane %v4877_v10, 5  ;;  %v4914_v12 = vrot.slane %v4877_v10, 6  ;;  %v4801_v3 = vcombine.low %v12393_v18, %v12419_v60  ;;  %v4911_v21 = vsel %vm12121_vm3, %v8962_v19, %v4910_v13  ;;  %v9959_v19 = vld [vmem:[#allocation10 + $0x160] ss:$8 sps:$4 sm:$0xff]  }
 0x3c9   :  { %5915 = vmatprep.subr.bf16.mxu1 %v9955_v7  ;;  %v4934_v39 = vcombine.low %v12406_v11, %v12410_v56  ;;  %v4894_v53 = vcombine.low %v4881_v17, %v12406_v11  ;;  %v4812_v42 = vpack.c.bf16 %v4809_v0, %v4808_v36  ;;  %v8954_v44 = vrot.slane %v12074_v16, 9 }
 0x3ca   :  { %v4893_v33 = vsel %vm12103_vm1, %v8959_v30, %v4892_v23  ;;  %v12435_v52 = vld [vmem:[#allocation4 + $0x50] sm:$0x3f]  ;;  %v4915_v22 = vsel %vm12121_vm3, %v8963_v51, %v4914_v12  ;;  %v12445_v20 = vsel %vm12121_vm3, %v8961_v27, %v4906_v8  ;;  %v4872_v26 = vpack.c.bf16 %v4869_v14, %v4868_v47  ;;  %v9962_v27 = vld [vmem:[#allocation10 + $0x170] ss:$8 sps:$4 sm:$0xff]  }
 0x3cb   :  { %v4895_v41 = vcombine.low %v12410_v56, %v4893_v33  ;;  %v4929_v4 = vcombine.high %v12435_v52, %v12435_v52  ;;  %v8965_v55 = vrot.slane %v12435_v52, 10  ;;  %v4944_v17 = vcombine.low %v12445_v20, %v4911_v21 }
 0x3cc   :  { %5916 = vmatpush1.bf16.msra.mxu1 %v9953_v59  ;;  %v4843_v15 = vrot.slane %v12089_v40, 5  ;;  %v8964_v36 = vrot.slane %v12435_v52, 9  ;;  %v12451_v63 = vcombine.low %v4911_v21, %v4915_v22  ;;  %v4836_v47 = vcombine.low %v12281_v50, %v12074_v16  ;;  %v9964_v50 = vld [vmem:[#allocation10 + $0x174] ss:$8 sps:$4 sm:$0xff]  }
 0x3cd   :  { %5917 = vmatprep.subr.bf16.mxu1 %v9958_v28  ;;  %v4898_v35 = vpack.c.bf16 %v4895_v41, %v4894_v53  ;;  %v4942_v7 = vrot.slane %v4929_v4, 6  ;;  %v4932_v13 = vrot.slane %v4929_v4, 5  ;;  %v8966_v11 = vrot.slane %v12168_v58, 9  ;;  %v9976_v53 = vld [vmem:[#allocation10 + $0x190] ss:$8 sps:$4 sm:$0xff]  }
 0x3ce   :  { %v4844_v10 = vsel %vm12103_vm1, %v8954_v44, %v4843_v15  ;;  %v4958_v30 = vrot.slane %v12184_v61, 5  ;;  %v12466_v16 = vpack.c.bf16 %v4836_v47, %v12312_v31  ;;  %v4951_v61 = vcombine.low %v12435_v52, %v12168_v58  ;;  %v9978_v58 = vld [vmem:[#allocation10 + $0x194] ss:$8 sps:$4 sm:$0xff]   ;;  %v9984_v44 = vld [vmem:[#allocation10 + $0x1b0] ss:$8 sps:$4 sm:$0xff]  }
 0x3cf   :  { %5896 = vmatprep.mubr.bf16.mxu1 %v4898_v35  ;;  %v4943_v40 = vsel %vm12121_vm3, %v8965_v55, %v4942_v7  ;;  %v4933_v56 = vsel %vm12103_vm1, %v8964_v36, %v4932_v13  ;;  %v4845_v0 = vcombine.low %v12308_v62, %v4844_v10  ;;  %v9992_v4 = vld [vmem:[#allocation10 + $0x1d4] ss:$8 sps:$4 sm:$0xff]   ;;  %v9993_v55 = vld [vmem:[#allocation10 + $0x1e0] ss:$8 sps:$4 sm:$0xff]   ;;  %v9996_v15 = vld [vmem:[#allocation10 + $0x1f0] ss:$8 sps:$4 sm:$0xff]   ;;  %v4924_v35 = vcombine.low %v12395_v38, %v12435_v52 }
 0x3d0   :  { %5918 = vmatpush1.bf16.msra.mxu1 %v9956_v49  ;;  %v4968_v8 = vcombine.low %v4943_v40, %v12387_v9  ;;  %v4945_v59 = vcombine.low %v4915_v22, %v4943_v40  ;;  %v4935_v23 = vcombine.low %v4893_v33, %v4933_v56  ;;  %v4959_v62 = vsel %vm12103_vm1, %v8966_v11, %v4958_v30  ;;  %v9971_v33 = vld [vmem:[#allocation10 + $0x180] ss:$8 sps:$4 sm:$0xff]   ;;  %v9989_v22 = vld [vmem:[#allocation10 + $0x1c4] ss:$8 sps:$4 sm:$0xff]   ;;  %v9990_v49 = vld [vmem:[#allocation10 + $0x1d0] ss:$8 sps:$4 sm:$0xff]  }
 0x3d1   :  { %5919 = vmatprep.subr.bf16.mxu1 %v9961_v54  ;;  %5897 = vmatmul.mubr.bf16.gmra.mrb[36].mxu1 %v4872_v26  ;;  %v12469_v12 = vpack.c.bf16 %v4845_v0, %v12292_v6  ;;  %v4960_v31 = vcombine.low %v4933_v56, %v4959_v62  ;;  %v12480_v51 = vpack.c.bf16 %v4951_v61, %v4869_v14  ;;  %v9986_v14 = vld [vmem:[#allocation10 + $0x1b4] ss:$8 sps:$4 sm:$0xff]   ;;  %v9995_v26 = vld [vmem:[#allocation10 + $0x1e4] ss:$8 sps:$4 sm:$0xff]   ;;  %v9999_v7 = vld [vmem:[#allocation10 + $0x200] ss:$8 sps:$4 sm:$0xff]  }
 0x3d2   :  { %5939 = vmatprep.mubr.bf16.mxu1 %v4812_v42  ;;  %v4970_v9 = vpack.c.bf16 %v4968_v8, %v12451_v63  ;;  %v12476_v28 = vpack.c.bf16 %v4945_v59, %v4944_v17  ;;  %v12478_v21 = vpack.c.bf16 %v4935_v23, %v4934_v39  ;;  %v9983_v42 = vld [vmem:[#allocation10 + $0x1a4] ss:$8 sps:$4 sm:$0xff]   ;;  %v9981_v39 = vld [vmem:[#allocation10 + $0x1a0] ss:$8 sps:$4 sm:$0xff]   ;;  %v9998_v17 = vld [vmem:[#allocation10 + $0x1f4] ss:$8 sps:$4 sm:$0xff]   ;;  %v4923_v36 = vcombine.low %v12326_v5, %v12328_v37 }
 0x3d3   :  { %v12482_v6 = vpack.c.bf16 %v4960_v31, %v4895_v41  ;;  %v9987_v41 = vld [vmem:[#allocation10 + $0x1c0] ss:$8 sps:$4 sm:$0xff]   ;;  %v10001_v54 = vld [vmem:[#allocation10 + $0x204] ss:$8 sps:$4 sm:$0xff]   ;;  %v8960_v13 = vrot.slane %v12112_v24, 10  ;;  %v4902_v10 = vrot.slane %v12133_v29, 6  ;;  %v4805_v47 = vpack.c.bf16 %v12365_v2, %v4801_v3 }
 0x3d4   :  { %5920 = vmatpush1.bf16.msra.mxu1 %v9959_v19  ;;  %6109 = vmatmul.mubr.bf16.gmra.mrb[116].mxu0 %v4970_v9  ;;  %v10006_v11 = vld [vmem:[#allocation10 + $0x214] ss:$8 sps:$4 sm:$0xff]   ;;  %v4927_v40 = vpack.c.bf16 %v4924_v35, %v4923_v36  ;;  %v10004_v38 = vld [vmem:[#allocation10 + $0x210] ss:$8 sps:$4 sm:$0xff]   ;;  %v10009_v5 = vld [vmem:[#allocation10 + $0x224] ss:$8 sps:$4 sm:$0xff]   ;;  %v4830_v24 = vcombine.low %v12341_v43, %v12360_v34  ;;  %v4829_v2 = vcombine.low %v12419_v60, %v12356_v46 }
 0x3d5   :  { %5921 = vmatprep.subr.bf16.mxu1 %v9964_v50  ;;  %v4903_v52 = vsel %vm12121_vm3, %v8960_v13, %v4902_v10  ;;  %v10007_v37 = vld [vmem:[#allocation10 + $0x220] ss:$8 sps:$4 sm:$0xff]   ;;  %v10012_v3 = vld [vmem:[#allocation10 + $0x234] ss:$8 sps:$4 sm:$0xff]   ;;  %v10015_v0 = vld [vmem:[#allocation10 + $0x244] ss:$8 sps:$4 sm:$0xff]  }
 0x3d6   :  { %v4916_v29 = vcombine.low %v4903_v52, %v12445_v20  ;;  %v4833_v56 = vpack.c.bf16 %v4830_v24, %v4829_v2  ;;  %v10013_v43 = vld [vmem:[#allocation10 + $0x240] ss:$8 sps:$4 sm:$0xff]   ;;  %v10018_v34 = vld [vmem:[#allocation10 + $0x254] ss:$8 sps:$4 sm:$0xff]   ;;  %v10016_v20 = vld [vmem:[#allocation10 + $0x250] ss:$8 sps:$4 sm:$0xff]  }
 0x3d7   :  { %v10021_v30 = vld [vmem:[#allocation10 + $0x264] ss:$8 sps:$4 sm:$0xff]   ;;  %v10019_v46 = vld [vmem:[#allocation10 + $0x260] ss:$8 sps:$4 sm:$0xff]   ;;  %v10024_v60 = vld [vmem:[#allocation10 + $0x274] ss:$8 sps:$4 sm:$0xff]  }
 0x3d8   :  { %5922 = vmatpush1.bf16.msra.mxu1 %v9962_v27  ;;  %v4920_v18 = vpack.c.bf16 %v12451_v63, %v4916_v29  ;;  %v10022_v63 = vld [vmem:[#allocation10 + $0x270] ss:$8 sps:$4 sm:$0xff]   ;;  %v10027_v19 = vld [vmem:[#allocation10 + $0x284] ss:$8 sps:$4 sm:$0xff]   ;;  %v10025_v8 = vld [vmem:[#allocation10 + $0x280] ss:$8 sps:$4 sm:$0xff]  }
 0x3d9   :  { %5923 = vmatprep.subr.bf16.mxu1 %v9973_v25  ;;  %v10030_v59 = vld [vmem:[#allocation10 + $0x294] ss:$8 sps:$4 sm:$0xff]   ;;  %v10028_v23 = vld [vmem:[#allocation10 + $0x290] ss:$8 sps:$4 sm:$0xff]   ;;  %v10033_v50 = vld [vmem:[#allocation10 + $0x2a4] ss:$8 sps:$4 sm:$0xff]  }
 0x3da   :  { %v10031_v62 = vld [vmem:[#allocation10 + $0x2a0] ss:$8 sps:$4 sm:$0xff]   ;;  %v10036_v61 = vld [vmem:[#allocation10 + $0x2b4] ss:$8 sps:$4 sm:$0xff]   ;;  %v10034_v9 = vld [vmem:[#allocation10 + $0x2b0] ss:$8 sps:$4 sm:$0xff]  }
 0x3db   :  { %v10039_v31 = vld [vmem:[#allocation10 + $0x2c4] ss:$8 sps:$4 sm:$0xff]   ;;  %v10037_v27 = vld [vmem:[#allocation10 + $0x2c0] ss:$8 sps:$4 sm:$0xff]   ;;  %v10042_v25 = vld [vmem:[#allocation10 + $0x2d4] ss:$8 sps:$4 sm:$0xff]  }
 0x3dc   :  { %5924 = vmatpush1.bf16.msra.mxu1 %v9971_v33  ;;  %v10099_v33 = vld [vmem:[%s13399_s10] ss:$16 sps:$4 sm:$0xff]   ;;  %v10054_v35 = vld [vmem:[#allocation10 + $0x314] ss:$8 sps:$4 sm:$0xff]   ;;  %v10057_v13 = vld [vmem:[#allocation10 + $0x324] ss:$8 sps:$4 sm:$0xff]  }
 0x3dd   :  { %5925 = vmatprep.subr.bf16.mxu1 %v9978_v58  ;;  %v10101_v58 = vld [vmem:[%s13399_s10 + $0x4] ss:$16 sps:$4 sm:$0xff]   ;;  %v10052_v36 = vld [vmem:[#allocation10 + $0x310] ss:$8 sps:$4 sm:$0xff]   ;;  %v10055_v10 = vld [vmem:[#allocation10 + $0x320] ss:$8 sps:$4 sm:$0xff]  }
 0x3de   :  { %7974 = vmatprep.subr.bf16.mxu0 %v10101_v58  ;;  %v10069_v52 = vld [vmem:[#allocation10 + $0x364] ss:$8 sps:$4 sm:$0xff]   ;;  %v10072_v24 = vld [vmem:[#allocation10 + $0x374] ss:$8 sps:$4 sm:$0xff]   ;;  %v10076_v2 = vld [vmem:[#allocation10 + $0x390] ss:$8 sps:$4 sm:$0xff]  }
 0x3df   :  { %7975 = vmatpush1.bf16.msra.mxu0 %v10099_v33  ;;  %v10075_v29 = vld [vmem:[#allocation10 + $0x384] ss:$8 sps:$4 sm:$0xff]  }
 0x3e0   :  { %5926 = vmatpush1.bf16.msra.mxu1 %v9976_v53  ;;  %v10107_v53 = vld [vmem:[%s13399_s10 + $0x24] ss:$16 sps:$4 sm:$0xff]  }
 0x3e1   :  { %5927 = vmatprep.subr.bf16.mxu1 %v9983_v42  ;;  %v10040_v42 = vld [vmem:[#allocation10 + $0x2d0] ss:$8 sps:$4 sm:$0xff]   ;;  %7976 = vmatprep.subr.bf16.mxu0 %v10107_v53 }
 0x3e4   :  { %5928 = vmatpush1.bf16.msra.mxu1 %v9981_v39  ;;  %v10045_v39 = vld [vmem:[#allocation10 + $0x2e4] ss:$8 sps:$4 sm:$0xff]  }
 0x3e5   :  { %5929 = vmatprep.subr.bf16.mxu1 %v9986_v14  ;;  %v10105_v14 = vld [vmem:[%s13399_s10 + $0x20] ss:$16 sps:$4 sm:$0xff]  }
 0x3e6   :  { %7977 = vmatpush1.bf16.msra.mxu0 %v10105_v14  ;;  %v10131_v14 = vld [vmem:[%s13399_s10 + $0xa4] ss:$16 sps:$4 sm:$0xff]  }
 0x3e8   :  { %5930 = vmatpush1.bf16.msra.mxu1 %v9984_v44  ;;  %v10113_v44 = vld [vmem:[%s13399_s10 + $0x44] ss:$16 sps:$4 sm:$0xff]  }
 0x3e9   :  { %5931 = vmatprep.subr.bf16.mxu1 %v9989_v22  ;;  %v10043_v22 = vld [vmem:[#allocation10 + $0x2e0] ss:$8 sps:$4 sm:$0xff]   ;;  %7978 = vmatprep.subr.bf16.mxu0 %v10113_v44 }
 0x3ea   :  { %v10132_v44 = vld [vmem:[%s13399_s10 + $0xa8] ss:$16 sps:$4 sm:$0xff]  }
 0x3ec   :  { %5932 = vmatpush1.bf16.msra.mxu1 %v9987_v41  ;;  %v10048_v41 = vld [vmem:[#allocation10 + $0x2f4] ss:$8 sps:$4 sm:$0xff]  }
 0x3ed   :  { %5933 = vmatprep.subr.bf16.mxu1 %v9992_v4  ;;  %v10111_v4 = vld [vmem:[%s13399_s10 + $0x40] ss:$16 sps:$4 sm:$0xff]  }
 0x3ee   :  { %7979 = vmatpush1.bf16.msra.mxu0 %v10111_v4  ;;  %v10135_v4 = vld [vmem:[%s13399_s10 + $0xc0] ss:$16 sps:$4 sm:$0xff]  }
 0x3f0   :  { %5934 = vmatpush1.bf16.msra.mxu1 %v9990_v49  ;;  %v10119_v49 = vld [vmem:[%s13399_s10 + $0x64] ss:$16 sps:$4 sm:$0xff]  }
 0x3f1   :  { %5935 = vmatprep.subr.bf16.mxu1 %v9995_v26  ;;  %v10046_v26 = vld [vmem:[#allocation10 + $0x2f0] ss:$8 sps:$4 sm:$0xff]   ;;  %7980 = vmatprep.subr.bf16.mxu0 %v10119_v49  ;;  %v10140_v49 = vld [vmem:[%s13399_s10 + $0xcc] ss:$16 sps:$4 sm:$0xff]  }
 0x3f4   :  { %5936 = vmatpush1.bf16.msra.mxu1 %v9993_v55  ;;  %v10051_v55 = vld [vmem:[#allocation10 + $0x304] ss:$8 sps:$4 sm:$0xff]  }
 0x3f5   :  { %5937 = vmatprep.subr.bf16.mxu1 %v9998_v17  ;;  %v10117_v17 = vld [vmem:[%s13399_s10 + $0x60] ss:$16 sps:$4 sm:$0xff]  }
 0x3f6   :  { %7981 = vmatpush1.bf16.msra.mxu0 %v10117_v17  ;;  %v10143_v17 = vld [vmem:[%s13399_s10 + $0xe4] ss:$16 sps:$4 sm:$0xff]  }
 0x3f8   :  { %5938 = vmatpush1.bf16.msra.mxu1 %v9996_v15  ;;  %v10125_v15 = vld [vmem:[%s13399_s10 + $0x84] ss:$16 sps:$4 sm:$0xff]  }
 0x3f9   :  { %5960 = vmatprep.subr.bf16.mxu1 %v10001_v54  ;;  %v10049_v54 = vld [vmem:[#allocation10 + $0x300] ss:$8 sps:$4 sm:$0xff]   ;;  %7982 = vmatprep.subr.bf16.mxu0 %v10125_v15 }
 0x3fa   :  { %v10144_v15 = vld [vmem:[%s13399_s10 + $0xe8] ss:$16 sps:$4 sm:$0xff]  }
 0x3fb   :  { %5940 = vmatmul.mubr.bf16.vlgmr.msra.gmra.mrb[32].mxu1 %v4805_v47  ;;  %v10060_v47 = vld [vmem:[#allocation10 + $0x334] ss:$8 sps:$4 sm:$0xff]  }
 0x3fc   :  { %5949 = vmatprep.mubr.bf16.mxu1 %v4927_v40  ;;  %5961 = vmatpush1.bf16.msra.mxu1 %v9999_v7  ;;  %v10123_v7 = vld [vmem:[%s13399_s10 + $0x80] ss:$16 sps:$4 sm:$0xff]   ;;  %v10063_v40 = vld [vmem:[#allocation10 + $0x344] ss:$8 sps:$4 sm:$0xff]  }
 0x3fd   :  { %5962 = vmatprep.subr.bf16.mxu1 %v10006_v11  ;;  %7983 = vmatpush1.bf16.msra.mxu0 %v10123_v7  ;;  %v10058_v11 = vld [vmem:[#allocation10 + $0x330] ss:$8 sps:$4 sm:$0xff]  }
 0x3fe   :  { %7984 = vmatprep.subr.bf16.mxu0 %v10131_v14  ;;  %v10147_v7 = vld [vmem:[%s13399_s10 + $0x100] ss:$16 sps:$4 sm:$0xff]  }
 0x400   :  { %5963 = vmatpush1.bf16.msra.mxu1 %v10004_v38  ;;  %v10064_v38 = vld [vmem:[#allocation10 + $0x350] ss:$8 sps:$4 sm:$0xff]  }
 0x401   :  { %5964 = vmatprep.subr.bf16.mxu1 %v10009_v5  ;;  %v10067_v5 = vld [vmem:[#allocation10 + $0x360] ss:$8 sps:$4 sm:$0xff]  }
 0x403   :  { %5950 = vmatmul.mubr.bf16.gmra.mrb[36].mxu1 %v4920_v18  ;;  %v10081_v18 = vld [vmem:[#allocation10 + $0x3a4] ss:$8 sps:$4 sm:$0xff]  }
 0x404   :  { %5965 = vmatpush1.bf16.msra.mxu1 %v10007_v37  ;;  %5992 = vmatprep.mubr.bf16.mxu1 %v4833_v56  ;;  %v10078_v37 = vld [vmem:[#allocation10 + $0x394] ss:$8 sps:$4 sm:$0xff]  }
 0x405   :  { %5966 = vmatprep.subr.bf16.mxu1 %v10012_v3  ;;  %v10079_v3 = vld [vmem:[#allocation10 + $0x3a0] ss:$8 sps:$4 sm:$0xff]   ;;  %v10084_v56 = vld [vmem:[#allocation10 + $0x3b4] ss:$8 sps:$4 sm:$0xff]  }
 0x408   :  { %5967 = vmatpush1.bf16.msra.mxu1 %v10010_v32  ;;  %v10082_v32 = vld [vmem:[#allocation10 + $0x3b0] ss:$8 sps:$4 sm:$0xff]  }
 0x409   :  { %5968 = vmatprep.subr.bf16.mxu1 %v10015_v0  ;;  %v10087_v0 = vld [vmem:[#allocation10 + $0x3c4] ss:$8 sps:$4 sm:$0xff]  }
 0x40c   :  { %5969 = vmatpush1.bf16.msra.mxu1 %v10013_v43  ;;  %v10085_v43 = vld [vmem:[#allocation10 + $0x3c0] ss:$8 sps:$4 sm:$0xff]  }
 0x40d   :  { %5970 = vmatprep.subr.bf16.mxu1 %v10018_v34  ;;  %v10090_v34 = vld [vmem:[#allocation10 + $0x3d4] ss:$8 sps:$4 sm:$0xff]  }
 0x410   :  { %5971 = vmatpush1.bf16.msra.mxu1 %v10016_v20  ;;  %v10088_v20 = vld [vmem:[#allocation10 + $0x3d0] ss:$8 sps:$4 sm:$0xff]  }
 0x411   :  { %5972 = vmatprep.subr.bf16.mxu1 %v10021_v30  ;;  %v10093_v30 = vld [vmem:[#allocation10 + $0x3e4] ss:$8 sps:$4 sm:$0xff]  }
 0x414   :  { %5973 = vmatpush1.bf16.msra.mxu1 %v10019_v46  ;;  %v10091_v46 = vld [vmem:[#allocation10 + $0x3e0] ss:$8 sps:$4 sm:$0xff]  }
 0x415   :  { %5974 = vmatprep.subr.bf16.mxu1 %v10024_v60  ;;  %v10096_v60 = vld [vmem:[#allocation10 + $0x3f4] ss:$8 sps:$4 sm:$0xff]  }
 0x418   :  { %5975 = vmatpush1.bf16.msra.mxu1 %v10022_v63  ;;  %v10094_v63 = vld [vmem:[#allocation10 + $0x3f0] ss:$8 sps:$4 sm:$0xff]  }
 0x419   :  { %5976 = vmatprep.subr.bf16.mxu1 %v10027_v19  ;;  %v10104_v19 = vld [vmem:[%s13399_s10 + $0xc] ss:$16 sps:$4 sm:$0xff]  }
 0x41c   :  { %5977 = vmatpush1.bf16.msra.mxu1 %v10025_v8  ;;  %v10102_v8 = vld [vmem:[%s13399_s10 + $0x8] ss:$16 sps:$4 sm:$0xff]  }
 0x41d   :  { %5978 = vmatprep.subr.bf16.mxu1 %v10030_v59  ;;  %v10110_v59 = vld [vmem:[%s13399_s10 + $0x2c] ss:$16 sps:$4 sm:$0xff]  }
 0x420   :  { %5979 = vmatpush1.bf16.msra.mxu1 %v10028_v23  ;;  %v10108_v23 = vld [vmem:[%s13399_s10 + $0x28] ss:$16 sps:$4 sm:$0xff]  }
 0x421   :  { %5980 = vmatprep.subr.bf16.mxu1 %v10033_v50  ;;  %v10116_v50 = vld [vmem:[%s13399_s10 + $0x4c] ss:$16 sps:$4 sm:$0xff]  }
 0x424   :  { %5981 = vmatpush1.bf16.msra.mxu1 %v10031_v62  ;;  %v10114_v62 = vld [vmem:[%s13399_s10 + $0x48] ss:$16 sps:$4 sm:$0xff]  }
 0x425   :  { %5982 = vmatprep.subr.bf16.mxu1 %v10036_v61  ;;  %v10128_v61 = vld [vmem:[%s13399_s10 + $0x8c] ss:$16 sps:$4 sm:$0xff]  }
 0x428   :  { %5983 = vmatpush1.bf16.msra.mxu1 %v10034_v9  ;;  %v10126_v9 = vld [vmem:[%s13399_s10 + $0x88] ss:$16 sps:$4 sm:$0xff]  }
 0x429   :  { %5984 = vmatprep.subr.bf16.mxu1 %v10039_v31 }
 0x42c   :  { %5985 = vmatpush1.bf16.msra.mxu1 %v10037_v27 }
 0x42d   :  { %5986 = vmatprep.subr.bf16.mxu1 %v10042_v25 }
 0x430   :  { %5987 = vmatpush1.bf16.msra.mxu1 %v10040_v42 }
 0x431   :  { %5988 = vmatprep.subr.bf16.mxu1 %v10045_v39  ;;  %v10129_v39 = vld [vmem:[%s13399_s10 + $0xa0] ss:$16 sps:$4 sm:$0xff]  }
 0x432   :  { %7985 = vmatpush1.bf16.msra.mxu0 %v10129_v39 }
 0x434   :  { %5989 = vmatpush1.bf16.msra.mxu1 %v10043_v22  ;;  %v10134_v22 = vld [vmem:[%s13399_s10 + $0xac] ss:$16 sps:$4 sm:$0xff]  }
 0x435   :  { %5990 = vmatprep.subr.bf16.mxu1 %v10048_v41  ;;  %v10137_v41 = vld [vmem:[%s13399_s10 + $0xc4] ss:$16 sps:$4 sm:$0xff]  }
 0x436   :  { %7986 = vmatprep.subr.bf16.mxu0 %v10137_v41 }
 0x437   :  { %7987 = vmatpush1.bf16.msra.mxu0 %v10135_v4 }
 0x438   :  { %5991 = vmatpush1.bf16.msra.mxu1 %v10046_v26  ;;  %v10138_v26 = vld [vmem:[%s13399_s10 + $0xc8] ss:$16 sps:$4 sm:$0xff]   ;;  %7988 = vmatprep.subr.bf16.mxu0 %v10143_v17 }
 0x439   :  { %6013 = vmatprep.subr.bf16.mxu1 %v10051_v55  ;;  %v10141_v55 = vld [vmem:[%s13399_s10 + $0xe0] ss:$16 sps:$4 sm:$0xff]  }
 0x43b   :  { %5993 = vmatmul.mubr.bf16.vlgmr.msra.gmra.mrb[32].mxu1 %v12322_v48  ;;  %v10061_v48 = vld [vmem:[#allocation10 + $0x340] ss:$8 sps:$4 sm:$0xff]   ;;  %7989 = vmatpush1.bf16.msra.mxu0 %v10141_v55 }
 0x43c   :  { %6002 = vmatprep.mubr.bf16.mxu1 %v12476_v28  ;;  %6014 = vmatpush1.bf16.msra.mxu1 %v10049_v54  ;;  %v10066_v28 = vld [vmem:[#allocation10 + $0x354] ss:$8 sps:$4 sm:$0xff]  }
 0x43d   :  { %6015 = vmatprep.subr.bf16.mxu1 %v10054_v35  ;;  %v10146_v54 = vld [vmem:[%s13399_s10 + $0xec] ss:$16 sps:$4 sm:$0xff]   ;;  %v10149_v35 = vld [vmem:[%s13399_s10 + $0x104] ss:$16 sps:$4 sm:$0xff]  }
 0x43e   :  { %7990 = vmatprep.subr.bf16.mxu0 %v10149_v35 }
 0x43f   :  { %7991 = vmatpush1.bf16.msra.mxu0 %v10147_v7 }
 0x440   :  { %6016 = vmatpush1.bf16.msra.mxu1 %v10052_v36  ;;  %v10152_v36 = vld [vmem:[%s13399_s10 + $0x10c] ss:$16 sps:$4 sm:$0xff]  }
 0x441   :  { %6017 = vmatprep.subr.bf16.mxu1 %v10057_v13  ;;  %v10150_v13 = vld [vmem:[%s13399_s10 + $0x108] ss:$16 sps:$4 sm:$0xff]  }
 0x443   :  { %6003 = vmatmul.mubr.bf16.gmra.mrb[36].mxu1 %v12478_v21  ;;  %v10070_v21 = vld [vmem:[#allocation10 + $0x370] ss:$8 sps:$4 sm:$0xff]  }
 0x444   :  { %6018 = vmatpush1.bf16.msra.mxu1 %v10055_v10  ;;  %6045 = vmatprep.mubr.bf16.mxu1 %v12469_v12  ;;  %v10073_v12 = vld [vmem:[#allocation10 + $0x380] ss:$8 sps:$4 sm:$0xff]   ;;  %v10155_v10 = vld [vmem:[%s13399_s10 + $0x124] ss:$16 sps:$4 sm:$0xff]  }
 0x445   :  { %6019 = vmatprep.subr.bf16.mxu1 %v10060_v47  ;;  %v10158_v47 = vld [vmem:[%s13399_s10 + $0x12c] ss:$16 sps:$4 sm:$0xff]   ;;  %7992 = vmatprep.subr.bf16.mxu0 %v10155_v10 }
 0x448   :  { %6020 = vmatpush1.bf16.msra.mxu1 %v10058_v11  ;;  %v10153_v11 = vld [vmem:[%s13399_s10 + $0x120] ss:$16 sps:$4 sm:$0xff]  }
 0x449   :  { %6021 = vmatprep.subr.bf16.mxu1 %v10063_v40  ;;  %v10156_v40 = vld [vmem:[%s13399_s10 + $0x128] ss:$16 sps:$4 sm:$0xff]   ;;  %7993 = vmatpush1.bf16.msra.mxu0 %v10153_v11 }
 0x44c   :  { %6022 = vmatpush1.bf16.msra.mxu1 %v10061_v48  ;;  %v10161_v48 = vld [vmem:[%s13399_s10 + $0x144] ss:$16 sps:$4 sm:$0xff]  }
 0x44d   :  { %6023 = vmatprep.subr.bf16.mxu1 %v10066_v28  ;;  %v10164_v28 = vld [vmem:[%s13399_s10 + $0x14c] ss:$16 sps:$4 sm:$0xff]   ;;  %7994 = vmatprep.subr.bf16.mxu0 %v10161_v48 }
 0x450   :  { %6024 = vmatpush1.bf16.msra.mxu1 %v10064_v38  ;;  %v10159_v38 = vld [vmem:[%s13399_s10 + $0x140] ss:$16 sps:$4 sm:$0xff]  }
 0x451   :  { %6025 = vmatprep.subr.bf16.mxu1 %v10069_v52  ;;  %v10162_v52 = vld [vmem:[%s13399_s10 + $0x148] ss:$16 sps:$4 sm:$0xff]   ;;  %7995 = vmatpush1.bf16.msra.mxu0 %v10159_v38 }
 0x454   :  { %6026 = vmatpush1.bf16.msra.mxu1 %v10067_v5  ;;  %v10167_v5 = vld [vmem:[%s13399_s10 + $0x164] ss:$16 sps:$4 sm:$0xff]  }
 0x455   :  { %6027 = vmatprep.subr.bf16.mxu1 %v10072_v24  ;;  %v10170_v24 = vld [vmem:[%s13399_s10 + $0x16c] ss:$16 sps:$4 sm:$0xff]   ;;  %7996 = vmatprep.subr.bf16.mxu0 %v10167_v5 }
 0x458   :  { %6028 = vmatpush1.bf16.msra.mxu1 %v10070_v21  ;;  %v10165_v21 = vld [vmem:[%s13399_s10 + $0x160] ss:$16 sps:$4 sm:$0xff]  }
 0x459   :  { %6029 = vmatprep.subr.bf16.mxu1 %v10075_v29  ;;  %v10168_v29 = vld [vmem:[%s13399_s10 + $0x168] ss:$16 sps:$4 sm:$0xff]   ;;  %7997 = vmatpush1.bf16.msra.mxu0 %v10165_v21 }
 0x45c   :  { %6030 = vmatpush1.bf16.msra.mxu1 %v10073_v12  ;;  %v10173_v12 = vld [vmem:[%s13399_s10 + $0x184] ss:$16 sps:$4 sm:$0xff]  }
 0x45d   :  { %6031 = vmatprep.subr.bf16.mxu1 %v10078_v37  ;;  %v10176_v37 = vld [vmem:[%s13399_s10 + $0x18c] ss:$16 sps:$4 sm:$0xff]   ;;  %7998 = vmatprep.subr.bf16.mxu0 %v10173_v12 }
 0x460   :  { %6032 = vmatpush1.bf16.msra.mxu1 %v10076_v2  ;;  %v10171_v2 = vld [vmem:[%s13399_s10 + $0x180] ss:$16 sps:$4 sm:$0xff]  }
 0x461   :  { %6033 = vmatprep.subr.bf16.mxu1 %v10081_v18  ;;  %v10174_v18 = vld [vmem:[%s13399_s10 + $0x188] ss:$16 sps:$4 sm:$0xff]   ;;  %7999 = vmatpush1.bf16.msra.mxu0 %v10171_v2 }
 0x464   :  { %6034 = vmatpush1.bf16.msra.mxu1 %v10079_v3  ;;  %v10179_v3 = vld [vmem:[%s13399_s10 + $0x1a4] ss:$16 sps:$4 sm:$0xff]  }
 0x465   :  { %6035 = vmatprep.subr.bf16.mxu1 %v10084_v56  ;;  %v10182_v56 = vld [vmem:[%s13399_s10 + $0x1ac] ss:$16 sps:$4 sm:$0xff]   ;;  %8000 = vmatprep.subr.bf16.mxu0 %v10179_v3 }
 0x468   :  { %6036 = vmatpush1.bf16.msra.mxu1 %v10082_v32  ;;  %v10177_v32 = vld [vmem:[%s13399_s10 + $0x1a0] ss:$16 sps:$4 sm:$0xff]  }
 0x469   :  { %6037 = vmatprep.subr.bf16.mxu1 %v10087_v0  ;;  %v10180_v0 = vld [vmem:[%s13399_s10 + $0x1a8] ss:$16 sps:$4 sm:$0xff]   ;;  %8001 = vmatpush1.bf16.msra.mxu0 %v10177_v32 }
 0x46c   :  { %6038 = vmatpush1.bf16.msra.mxu1 %v10085_v43  ;;  %v10185_v43 = vld [vmem:[%s13399_s10 + $0x1c4] ss:$16 sps:$4 sm:$0xff]  }
 0x46d   :  { %6039 = vmatprep.subr.bf16.mxu1 %v10090_v34  ;;  %v10188_v34 = vld [vmem:[%s13399_s10 + $0x1cc] ss:$16 sps:$4 sm:$0xff]   ;;  %8002 = vmatprep.subr.bf16.mxu0 %v10185_v43 }
 0x470   :  { %6040 = vmatpush1.bf16.msra.mxu1 %v10088_v20  ;;  %v10183_v20 = vld [vmem:[%s13399_s10 + $0x1c0] ss:$16 sps:$4 sm:$0xff]  }
 0x471   :  { %6041 = vmatprep.subr.bf16.mxu1 %v10093_v30  ;;  %v10186_v30 = vld [vmem:[%s13399_s10 + $0x1c8] ss:$16 sps:$4 sm:$0xff]   ;;  %8003 = vmatpush1.bf16.msra.mxu0 %v10183_v20 }
 0x474   :  { %6042 = vmatpush1.bf16.msra.mxu1 %v10091_v46  ;;  %v10191_v46 = vld [vmem:[%s13399_s10 + $0x1e4] ss:$16 sps:$4 sm:$0xff]  }
 0x475   :  { %6043 = vmatprep.subr.bf16.mxu1 %v10096_v60  ;;  %v10194_v60 = vld [vmem:[%s13399_s10 + $0x1ec] ss:$16 sps:$4 sm:$0xff]   ;;  %8004 = vmatprep.subr.bf16.mxu0 %v10191_v46 }
 0x478   :  { %6044 = vmatpush1.bf16.msra.mxu1 %v10094_v63  ;;  %v10189_v63 = vld [vmem:[%s13399_s10 + $0x1e0] ss:$16 sps:$4 sm:$0xff]  }
 0x479   :  { %8138 = vmatprep.subr.bf16.mxu1 %v10104_v19  ;;  %v10192_v19 = vld [vmem:[%s13399_s10 + $0x1e8] ss:$16 sps:$4 sm:$0xff]   ;;  %8005 = vmatpush1.bf16.msra.mxu0 %v10189_v63 }
 0x47b   :  { %6046 = vmatmul.mubr.bf16.vlgmr.msra.gmra.mrb[32].mxu1 %v12466_v16  ;;  %v10122_v16 = vld [vmem:[%s13399_s10 + $0x6c] ss:$16 sps:$4 sm:$0xff]  }
 0x47c   :  { %6055 = vmatprep.mubr.bf16.mxu1 %v12482_v6  ;;  %8139 = vmatpush1.bf16.msra.mxu1 %v10102_v8  ;;  %v10120_v6 = vld [vmem:[%s13399_s10 + $0x68] ss:$16 sps:$4 sm:$0xff]   ;;  %v10197_v8 = vld [vmem:[%s13399_s10 + $0x204] ss:$16 sps:$4 sm:$0xff]  }
 0x47d   :  { %8140 = vmatprep.subr.bf16.mxu1 %v10110_v59  ;;  %v10200_v59 = vld [vmem:[%s13399_s10 + $0x20c] ss:$16 sps:$4 sm:$0xff]   ;;  %8015 = vmatprep.subr.bf16.mxu0 %v10197_v8 }
 0x480   :  { %8141 = vmatpush1.bf16.msra.mxu1 %v10108_v23  ;;  %v6119_v23 = vld [vmem:[%s13397_s8] sm:$0x3] }
 0x481   :  { %8142 = vmatprep.subr.bf16.mxu1 %v10116_v50  ;;  %v12727_v50 = vsub.s32 1, %v11024_v45 }
 0x483   :  { %6056 = vmatmul.mubr.bf16.gmra.mrb[36].mxu1 %v12480_v51 }
 0x484   :  { %8143 = vmatpush1.bf16.msra.mxu1 %v10114_v62  ;;  %v6139_v62 = vld [vmem:[%s13398_s9] sm:$0x3] }
 0x485   :  { %8144 = vmatprep.subr.bf16.mxu1 %v10122_v16  ;;  %v6124_v16 = vrot.slane %v6119_v23, %v11039_v1  ;;  %v6144_v39 = vrot.slane %v6139_v62, %v11039_v1 }
 0x488   :  { %8145 = vmatpush1.bf16.msra.mxu1 %v10120_v6 }
 0x489   :  { %8146 = vmatprep.subr.bf16.mxu1 %v10128_v61  ;;  %v6128_v61 = vrot.slane %v6119_v23, %v12727_v50 }
 0x48c   :  { %8147 = vmatpush1.bf16.msra.mxu1 %v10126_v9 }
 0x48d   :  { %8148 = vmatprep.subr.bf16.mxu1 %v10134_v22  ;;  %v6148_v22 = vrot.slane %v6139_v62, %v12727_v50 }
 0x490   :  { %8149 = vmatpush1.bf16.msra.mxu1 %v10132_v44 }
 0x491   :  { %8150 = vmatprep.subr.bf16.mxu1 %v10140_v49 }
 0x494   :  { %8151 = vmatpush1.bf16.msra.mxu1 %v10138_v26 }
 0x495   :  { %8152 = vmatprep.subr.bf16.mxu1 %v10146_v54 }
 0x498   :  { %v12569_v31 = vpop.f32.mrb[112].mxu0  ;;  %8153 = vmatpush1.bf16.msra.mxu1 %v10144_v15 }
 0x499   :  { %v12571_v51 = vpop.f32.mrb[113].mxu0  ;;  %8154 = vmatprep.subr.bf16.mxu1 %v10152_v36  ;;  %v10640_v36 = vmov 1966171168  }
 0x49a   :  { %v12573_v27 = vpop.f32.mrb[114].mxu0 }
 0x49b   :  { %v12575_v25 = vpop.f32.mrb[115].mxu0 }
 0x49c   :  { %8155 = vmatpush1.bf16.msra.mxu1 %v10150_v13  ;;  %v6221_v13 = vunpack.c.l.s4 %v10640_v36 }
 0x49d   :  { %8156 = vmatprep.subr.bf16.mxu1 %v10158_v47 }
 0x4a0   :  { %8157 = vmatpush1.bf16.msra.mxu1 %v10156_v40 }
 0x4a1   :  { %8158 = vmatprep.subr.bf16.mxu1 %v10164_v28 }
 0x4a4   :  { %8159 = vmatpush1.bf16.msra.mxu1 %v10162_v52 }
 0x4a5   :  { %8160 = vmatprep.subr.bf16.mxu1 %v10170_v24  ;;  %v6222_v24 = vunpack.c.0.s8 %v6221_v13 }
 0x4a7   :  { %v12577_v33 = vpop.f32.mrb[116].mxu0 }
 0x4a8   :  { %v12579_v58 = vpop.f32.mrb[117].mxu0  ;;  %8161 = vmatpush1.bf16.msra.mxu1 %v10168_v29 }
 0x4a9   :  { %v12581_v53 = vpop.f32.mrb[118].mxu0  ;;  %8162 = vmatprep.subr.bf16.mxu1 %v10176_v37 }
 0x4aa   :  { %v12583_v42 = vpop.f32.mrb[119].mxu0 }
 0x4ac   :  { %8163 = vmatpush1.bf16.msra.mxu1 %v10174_v18 }
 0x4ad   :  { %8164 = vmatprep.subr.bf16.mxu1 %v10182_v56 }
 0x4b0   :  { %8165 = vmatpush1.bf16.msra.mxu1 %v10180_v0 }
 0x4b1   :  { %8166 = vmatprep.subr.bf16.mxu1 %v10188_v34 }
 0x4b4   :  { %8167 = vmatpush1.bf16.msra.mxu1 %v10186_v30 }
 0x4b5   :  { %8168 = vmatprep.subr.bf16.mxu1 %v10194_v60 }
 0x4b8   :  { %8169 = vmatpush1.bf16.msra.mxu1 %v10192_v19 }
 0x4b9   :  { %8179 = vmatprep.subr.bf16.mxu1 %v10200_v59 }
 0x54e   :  { %v6047_v6 = vpop.f32.mrb[32].mxu1 }
 0x54f   :  { %v9719_v9 = vadd.f32 %v12569_v31, %v6047_v6  ;;  %v6049_v14 = vpop.f32.mrb[33].mxu1  ;;  %v13409_v6 = vlaneseq }
 0x550   :  { %v9720_v44 = vadd.f32 %v12571_v51, %v6049_v14  ;;  %v6051_v41 = vpop.f32.mrb[34].mxu1 }
 0x551   :  { %v6131_v4 = vmul.f32 %v9719_v9, %v6124_v16  ;;  %v9721_v49 = vadd.f32 %v12573_v27, %v6051_v41  ;;  %v6053_v26 = vpop.f32.mrb[35].mxu1  ;;  %vm12748_vm4 = vcmp.lt.s32.totalorder %v13409_v6, 256  ;;  %v10228_v6 = vld [vmem:[%s13399_s10 + $0x2a4] ss:$16 sps:$4 sm:$0xff]   ;;  %v10231_v9 = vld [vmem:[%s13399_s10 + $0x2ac] ss:$16 sps:$4 sm:$0xff]  }
 0x552   :  { %v6132_v55 = vmul.f32 %v9720_v44, %v6128_v61  ;;  %v9722_v17 = vadd.f32 %v12575_v25, %v6053_v26 }
 0x553   :  { %v6151_v15 = vadd.f32 %v6144_v39, %v6131_v4  ;;  %v6133_v54 = vmul.f32 %v9721_v49, %v6124_v16 }
 0x554   :  { %v6152_v35 = vadd.f32 %v6148_v22, %v6132_v55  ;;  %v6134_v7 = vmul.f32 %v9722_v17, %v6128_v61 }
 0x555   :  { %v6159_v31 = vmax.f32 %v6151_v15, 0.0  ;;  %v6153_v10 = vadd.f32 %v6144_v39, %v6133_v54 }
 0x556   :  { %v6160_v47 = vmax.f32 %v6152_v35, 0.0  ;;  %v6154_v51 = vadd.f32 %v6148_v22, %v6134_v7  ;;  %v6057_v11 = vpop.f32.mrb[36].mxu1 }
 0x557   :  { %v6161_v40 = vmax.f32 %v6153_v10, 0.0  ;;  %v9723_v48 = vadd.f32 %v12577_v33, %v6057_v11  ;;  %v6059_v28 = vpop.f32.mrb[37].mxu1 }
 0x558   :  { %v6171_v27 = vcombine.low %v6159_v31, %v6160_v47  ;;  %v6172_v38 = vcombine.high %v6159_v31, %v6160_v47  ;;  %v6162_v52 = vmax.f32 %v6154_v51, 0.0  ;;  %v9724_v25 = vadd.f32 %v12579_v58, %v6059_v28  ;;  %v6061_v5 = vpop.f32.mrb[38].mxu1 }
 0x559   :  { %v6135_v21 = vmul.f32 %v9723_v48, %v6124_v16  ;;  %v9725_v29 = vadd.f32 %v12581_v53, %v6061_v5  ;;  %v6063_v12 = vpop.f32.mrb[39].mxu1  ;;  %v6225_v58 = vsub.s32 %v6222_v24, %v11024_v45 }
 0x55a   :  { %v6179_v37 = vmax.f32 %v6171_v27, %v6172_v38  ;;  %v6173_v2 = vcombine.low %v6161_v40, %v6162_v52  ;;  %v6174_v18 = vcombine.high %v6161_v40, %v6162_v52  ;;  %v6136_v3 = vmul.f32 %v9724_v25, %v6128_v61 }
 0x55b   :  { %v6155_v56 = vadd.f32 %v6144_v39, %v6135_v21  ;;  %v6137_v32 = vmul.f32 %v9725_v29, %v6124_v16  ;;  %v9726_v33 = vadd.f32 %v12583_v42, %v6063_v12 }
 0x55c   :  { %v6189_v0 = vrot.slane %v6179_v37, %v11034_v57  ;;  %v6180_v43 = vmax.f32 %v6173_v2, %v6174_v18  ;;  %v6156_v34 = vadd.f32 %v6148_v22, %v6136_v3  ;;  %v10195_v3 = vld [vmem:[%s13399_s10 + $0x200] ss:$16 sps:$4 sm:$0xff]  }
 0x55d   :  { %v6163_v20 = vmax.f32 %v6155_v56, 0.0  ;;  %v6157_v30 = vadd.f32 %v6144_v39, %v6137_v32  ;;  %v6138_v46 = vmul.f32 %v9726_v33, %v6128_v61  ;;  %v10198_v56 = vld [vmem:[%s13399_s10 + $0x208] ss:$16 sps:$4 sm:$0xff]  }
 0x55e   :  { %v6190_v60 = vcombine.high %v6189_v0, %v6189_v0  ;;  %v9112_v53 = vrot.slane %v6189_v0, 9  ;;  %v6197_v63 = vrot.slane %v6180_v43, %v11034_v57  ;;  %v6164_v19 = vmax.f32 %v6156_v34, 0.0  ;;  %v10204_v43 = vld [vmem:[%s13399_s10 + $0x224] ss:$16 sps:$4 sm:$0xff]   ;;  %v10207_v34 = vld [vmem:[%s13399_s10 + $0x22c] ss:$16 sps:$4 sm:$0xff]  }
 0x55f   :  { %v6165_v8 = vmax.f32 %v6157_v30, 0.0  ;;  %v6158_v59 = vadd.f32 %v6148_v22, %v6138_v46  ;;  %v10210_v30 = vld [vmem:[%s13399_s10 + $0x244] ss:$16 sps:$4 sm:$0xff]   ;;  %v10213_v46 = vld [vmem:[%s13399_s10 + $0x24c] ss:$16 sps:$4 sm:$0xff]  }
 0x560   :  { %v9113_v23 = vrot.slane %v6190_v60, 9  ;;  %v6215_v62 = vmax.f32 %v6189_v0, %v9112_v53  ;;  %v6198_v16 = vcombine.high %v6197_v63, %v6197_v63  ;;  %v9114_v42 = vrot.slane %v6197_v63, 9  ;;  %v10211_v53 = vld [vmem:[%s13399_s10 + $0x248] ss:$16 sps:$4 sm:$0xff]  }
 0x561   :  { %v6270_v14 = vcombine.low %v6163_v20, %v6164_v19  ;;  %v6271_v44 = vcombine.high %v6163_v20, %v6164_v19  ;;  %v6166_v39 = vmax.f32 %v6158_v59, 0.0  ;;  %v10205_v20 = vld [vmem:[%s13399_s10 + $0x228] ss:$16 sps:$4 sm:$0xff]   ;;  %v10219_v19 = vld [vmem:[%s13399_s10 + $0x26c] ss:$16 sps:$4 sm:$0xff]  }
 0x562   :  { %v6216_v61 = vmax.f32 %v6190_v60, %v9113_v23  ;;  %v6226_v41 = vrot.slane %v6215_v62, %v6225_v58  ;;  %v9115_v4 = vrot.slane %v6198_v16, 9  ;;  %v6217_v49 = vmax.f32 %v6197_v63, %v9114_v42  ;;  %v10208_v60 = vld [vmem:[%s13399_s10 + $0x240] ss:$16 sps:$4 sm:$0xff]   ;;  %v10216_v63 = vld [vmem:[%s13399_s10 + $0x264] ss:$16 sps:$4 sm:$0xff]  }
 0x563   :  { %v6278_v26 = vmax.f32 %v6270_v14, %v6271_v44  ;;  %v6272_v55 = vcombine.low %v6165_v8, %v6166_v39  ;;  %v6273_v17 = vcombine.high %v6165_v8, %v6166_v39  ;;  %v10214_v8 = vld [vmem:[%s13399_s10 + $0x260] ss:$16 sps:$4 sm:$0xff]   ;;  %v10217_v59 = vld [vmem:[%s13399_s10 + $0x268] ss:$16 sps:$4 sm:$0xff]   ;;  %v10222_v23 = vld [vmem:[%s13399_s10 + $0x284] ss:$16 sps:$4 sm:$0xff]  }
 0x564   :  { %6232 = vst.msk [vmem:[#allocation6] ss:$2 sm:$0x3] %vm12748_vm4, %v6226_v41  ;;  %v6240_v22 = vrot.slane %v6216_v61, %v6225_v58  ;;  %v6218_v15 = vmax.f32 %v6198_v16, %v9115_v4  ;;  %v6251_v54 = vrot.slane %v6217_v49, %v6225_v58  ;;  %v10225_v62 = vld [vmem:[%s13399_s10 + $0x28c] ss:$16 sps:$4 sm:$0xff]  }
 0x565   :  { %v6288_v35 = vrot.slane %v6278_v26, %v11034_v57  ;;  %v6279_v7 = vmax.f32 %v6272_v55, %v6273_v17  ;;  %v10220_v16 = vld [vmem:[%s13399_s10 + $0x280] ss:$16 sps:$4 sm:$0xff]   ;;  %v10223_v42 = vld [vmem:[%s13399_s10 + $0x288] ss:$16 sps:$4 sm:$0xff]   ;;  %v10234_v39 = vld [vmem:[%s13399_s10 + $0x2c4] ss:$16 sps:$4 sm:$0xff]  }
 0x566   :  { %6243 = vst.msk [vmem:[#allocation6 + $0x4] ss:$2 sm:$0x3] %vm12748_vm4, %v6240_v22  ;;  %6254 = vst.msk [vmem:[#allocation6 + $0x8] ss:$2 sm:$0x3] %vm12748_vm4, %v6251_v54  ;;  %v6262_v31 = vrot.slane %v6218_v15, %v6225_v58 }
 0x567   :  { %v6289_v36 = vcombine.high %v6288_v35, %v6288_v35  ;;  %v9116_v13 = vrot.slane %v6288_v35, 9  ;;  %v6296_v10 = vrot.slane %v6279_v7, %v11034_v57  ;;  %v10226_v14 = vld [vmem:[%s13399_s10 + $0x2a0] ss:$16 sps:$4 sm:$0xff]   ;;  %v10229_v44 = vld [vmem:[%s13399_s10 + $0x2a8] ss:$16 sps:$4 sm:$0xff]  }
 0x568   :  { %6265 = vst.msk [vmem:[#allocation6 + $0xc] ss:$2 sm:$0x3] %vm12748_vm4, %v6262_v31  ;;  %v10237_v61 = vld [vmem:[%s13399_s10 + $0x2cc] ss:$16 sps:$4 sm:$0xff]  }
 0x569   :  { %v9117_v47 = vrot.slane %v6289_v36, 9  ;;  %v6314_v51 = vmax.f32 %v6288_v35, %v9116_v13  ;;  %v6297_v11 = vcombine.high %v6296_v10, %v6296_v10  ;;  %v9118_v40 = vrot.slane %v6296_v10, 9  ;;  %v10232_v41 = vld [vmem:[%s13399_s10 + $0x2c0] ss:$16 sps:$4 sm:$0xff]   ;;  %v10235_v4 = vld [vmem:[%s13399_s10 + $0x2c8] ss:$16 sps:$4 sm:$0xff]  }
 0x56a   :  { %v10240_v49 = vld [vmem:[%s13399_s10 + $0x2e4] ss:$16 sps:$4 sm:$0xff]   ;;  %v10243_v26 = vld [vmem:[%s13399_s10 + $0x2ec] ss:$16 sps:$4 sm:$0xff]   ;;  %v10238_v55 = vld [vmem:[%s13399_s10 + $0x2e0] ss:$16 sps:$4 sm:$0xff]  }
 0x56b   :  { %v6315_v48 = vmax.f32 %v6289_v36, %v9117_v47  ;;  %v6325_v28 = vrot.slane %v6314_v51, %v6225_v58  ;;  %v9119_v27 = vrot.slane %v6297_v11, 9  ;;  %v6316_v38 = vmax.f32 %v6296_v10, %v9118_v40  ;;  %v10241_v17 = vld [vmem:[%s13399_s10 + $0x2e8] ss:$16 sps:$4 sm:$0xff]   ;;  %v10246_v22 = vld [vmem:[%s13399_s10 + $0x304] ss:$16 sps:$4 sm:$0xff]  }
 0x56c   :  { %v10249_v15 = vld [vmem:[%s13399_s10 + $0x30c] ss:$16 sps:$4 sm:$0xff]   ;;  %v10244_v54 = vld [vmem:[%s13399_s10 + $0x300] ss:$16 sps:$4 sm:$0xff]   ;;  %v10247_v35 = vld [vmem:[%s13399_s10 + $0x308] ss:$16 sps:$4 sm:$0xff]  }
 0x56d   :  { %6328 = vst.msk [vmem:[#allocation6 + $0x1] ss:$2 sm:$0x3] %vm12748_vm4, %v6325_v28  ;;  %v6336_v52 = vrot.slane %v6315_v48, %v6225_v58  ;;  %v6317_v25 = vmax.f32 %v6297_v11, %v9119_v27  ;;  %v6347_v5 = vrot.slane %v6316_v38, %v6225_v58  ;;  %v10252_v7 = vld [vmem:[%s13399_s10 + $0x324] ss:$16 sps:$4 sm:$0xff]  }
 0x56e   :  { %v10255_v31 = vld [vmem:[%s13399_s10 + $0x32c] ss:$16 sps:$4 sm:$0xff]   ;;  %v10250_v36 = vld [vmem:[%s13399_s10 + $0x320] ss:$16 sps:$4 sm:$0xff]   ;;  %v10253_v13 = vld [vmem:[%s13399_s10 + $0x328] ss:$16 sps:$4 sm:$0xff]  }
 0x56f   :  { %6339 = vst.msk [vmem:[#allocation6 + $0x5] ss:$2 sm:$0x3] %vm12748_vm4, %v6336_v52  ;;  %6350 = vst.msk [vmem:[#allocation6 + $0x9] ss:$2 sm:$0x3] %vm12748_vm4, %v6347_v5  ;;  %v6358_v24 = vrot.slane %v6317_v25, %v6225_v58 }
 0x570   :  { %v10202_v58 = vld [vmem:[%s13399_s10 + $0x220] ss:$16 sps:$4 sm:$0xff]   ;;  %v10258_v10 = vld [vmem:[%s13399_s10 + $0x344] ss:$16 sps:$4 sm:$0xff]   ;;  %v10261_v47 = vld [vmem:[%s13399_s10 + $0x34c] ss:$16 sps:$4 sm:$0xff]  }
 0x571   :  { %6361 = vst.msk [vmem:[#allocation6 + $0xd] ss:$2 sm:$0x3] %vm12748_vm4, %v6358_v24  ;;  %v10256_v51 = vld [vmem:[%s13399_s10 + $0x340] ss:$16 sps:$4 sm:$0xff]  }
 0x572   :  { %v10259_v11 = vld [vmem:[%s13399_s10 + $0x348] ss:$16 sps:$4 sm:$0xff]   ;;  %v10264_v40 = vld [vmem:[%s13399_s10 + $0x364] ss:$16 sps:$4 sm:$0xff]   ;;  %v10267_v48 = vld [vmem:[%s13399_s10 + $0x36c] ss:$16 sps:$4 sm:$0xff]  }
 0x573   :  { %v10262_v28 = vld [vmem:[%s13399_s10 + $0x360] ss:$16 sps:$4 sm:$0xff]   ;;  %v10265_v27 = vld [vmem:[%s13399_s10 + $0x368] ss:$16 sps:$4 sm:$0xff]   ;;  %v10270_v38 = vld [vmem:[%s13399_s10 + $0x384] ss:$16 sps:$4 sm:$0xff]  }
 0x574   :  { %v10273_v52 = vld [vmem:[%s13399_s10 + $0x38c] ss:$16 sps:$4 sm:$0xff]   ;;  %v10268_v25 = vld [vmem:[%s13399_s10 + $0x380] ss:$16 sps:$4 sm:$0xff]   ;;  %v10271_v5 = vld [vmem:[%s13399_s10 + $0x388] ss:$16 sps:$4 sm:$0xff]  }
 0x575   :  { %v10276_v24 = vld [vmem:[%s13399_s10 + $0x3a4] ss:$16 sps:$4 sm:$0xff]  }
 0x576   :  { %v6362_v21 = vld [vmem:[#allocation6] sm:$0xff] }
 0x577   :  { %v6373_v29 = vrot.slane %v6362_v21, %v11034_v57  ;;  %v6366_v12 = vcombine.high %v6362_v21, %v6362_v21  ;;  %v10279_v21 = vld [vmem:[%s13399_s10 + $0x3ac] ss:$16 sps:$4 sm:$0xff]  }
 0x579   :  { %v6381_v37 = vcombine.high %v6373_v29, %v6373_v29  ;;  %v12772_v2 = vrot.slane %v6366_v12, %v11034_v57  ;;  %v6408_v33 = vpack.c.bf16 %v6373_v29, %v6373_v29  ;;  %v10274_v29 = vld [vmem:[%s13399_s10 + $0x3a0] ss:$16 sps:$4 sm:$0xff]   ;;  %v10277_v12 = vld [vmem:[%s13399_s10 + $0x3a8] ss:$16 sps:$4 sm:$0xff]  }
 0x57b   :  { %v6409_v18 = vpack.c.bf16 %v6381_v37, %v6381_v37  ;;  %v6382_v32 = vcombine.high %v12772_v2, %v12772_v2  ;;  %v10282_v37 = vld [vmem:[%s13399_s10 + $0x3c4] ss:$16 sps:$4 sm:$0xff]  }
 0x57d   :  { %8006 = vmatprep.mubr.bf16.mxu0 %v6409_v18  ;;  %8170 = vmatprep.mubr.bf16.mxu1 %v6409_v18  ;;  %v6411_v0 = vpack.c.bf16 %v6382_v32, %v6382_v32  ;;  %v10285_v18 = vld [vmem:[%s13399_s10 + $0x3cc] ss:$16 sps:$4 sm:$0xff]   ;;  %v10283_v32 = vld [vmem:[%s13399_s10 + $0x3c8] ss:$16 sps:$4 sm:$0xff]  }
 0x57e   :  { %8007 = vmatmul.mubr.bf16.vlgmr.msra.gmra.mrb[120].mxu0 %v6408_v33  ;;  %8171 = vmatmul.mubr.bf16.vlgmr.msra.gmra.mrb[40].mxu1 %v6408_v33  ;;  %v10288_v33 = vld [vmem:[%s13399_s10 + $0x3e4] ss:$16 sps:$4 sm:$0xff]  }
 0x57f   :  { %8016 = vmatpush1.bf16.msra.mxu0 %v10195_v3  ;;  %8180 = vmatpush1.bf16.msra.mxu1 %v10198_v56  ;;  %v12944_v3 = vld [vmem:[#allocation6 + $0x8] sm:$0xff]  ;;  %v10280_v56 = vld [vmem:[%s13399_s10 + $0x3c0] ss:$16 sps:$4 sm:$0xff]  }
 0x580   :  { %8047 = vmatprep.mubr.bf16.mxu0 %v6411_v0  ;;  %8211 = vmatprep.mubr.bf16.mxu1 %v6411_v0  ;;  %v10291_v0 = vld [vmem:[%s13399_s10 + $0x3ec] ss:$16 sps:$4 sm:$0xff]  }
 0x581   :  { %8017 = vmatprep.subr.bf16.mxu0 %v10204_v43  ;;  %8181 = vmatprep.subr.bf16.mxu1 %v10207_v34  ;;  %v12960_v43 = vrot.slane %v12944_v3, %v11034_v57  ;;  %v10286_v34 = vld [vmem:[%s13399_s10 + $0x3e0] ss:$16 sps:$4 sm:$0xff]  }
 0x583   :  { %8018 = vmatpush1.bf16.msra.mxu0 %v10202_v58  ;;  %8182 = vmatpush1.bf16.msra.mxu1 %v10205_v20  ;;  %v10289_v58 = vld [vmem:[%s13399_s10 + $0x3e8] ss:$16 sps:$4 sm:$0xff]   ;;  %v10294_v20 = vld [vmem:[%s13399_s10 + $0x404] ss:$16 sps:$4 sm:$0xff]  }
 0x584   :  { %8019 = vmatprep.subr.bf16.mxu0 %v10210_v30  ;;  %8183 = vmatprep.subr.bf16.mxu1 %v10213_v46  ;;  %v10297_v30 = vld [vmem:[%s13399_s10 + $0x40c] ss:$16 sps:$4 sm:$0xff]   ;;  %v6398_v46 = vcombine.high %v12960_v43, %v12960_v43 }
 0x587   :  { %8020 = vmatpush1.bf16.msra.mxu0 %v10208_v60  ;;  %8184 = vmatpush1.bf16.msra.mxu1 %v10211_v53  ;;  %v10292_v60 = vld [vmem:[%s13399_s10 + $0x400] ss:$16 sps:$4 sm:$0xff]   ;;  %v6410_v53 = vpack.c.bf16 %v12772_v2, %v12772_v2 }
 0x588   :  { %8021 = vmatprep.subr.bf16.mxu0 %v10216_v63  ;;  %8185 = vmatprep.subr.bf16.mxu1 %v10219_v19  ;;  %v10295_v63 = vld [vmem:[%s13399_s10 + $0x408] ss:$16 sps:$4 sm:$0xff]   ;;  %v6413_v19 = vpack.c.bf16 %v6398_v46, %v6398_v46  ;;  %v10298_v2 = vld [vmem:[%s13399_s10 + $0x420] ss:$16 sps:$4 sm:$0xff]   ;;  %v10381_v46 = vld [vmem:[%s13399_s10 + $0x5cc] ss:$16 sps:$4 sm:$0xff]  }
 0x58b   :  { %8022 = vmatpush1.bf16.msra.mxu0 %v10214_v8  ;;  %8186 = vmatpush1.bf16.msra.mxu1 %v10217_v59  ;;  %v10300_v8 = vld [vmem:[%s13399_s10 + $0x424] ss:$16 sps:$4 sm:$0xff]   ;;  %v10303_v59 = vld [vmem:[%s13399_s10 + $0x42c] ss:$16 sps:$4 sm:$0xff]  }
 0x58c   :  { %8023 = vmatprep.subr.bf16.mxu0 %v10222_v23  ;;  %8187 = vmatprep.subr.bf16.mxu1 %v10225_v62  ;;  %v10301_v23 = vld [vmem:[%s13399_s10 + $0x428] ss:$16 sps:$4 sm:$0xff]   ;;  %v10306_v62 = vld [vmem:[%s13399_s10 + $0x444] ss:$16 sps:$4 sm:$0xff]  }
 0x58f   :  { %8024 = vmatpush1.bf16.msra.mxu0 %v10220_v16  ;;  %8188 = vmatpush1.bf16.msra.mxu1 %v10223_v42  ;;  %v10309_v16 = vld [vmem:[%s13399_s10 + $0x44c] ss:$16 sps:$4 sm:$0xff]   ;;  %v10304_v42 = vld [vmem:[%s13399_s10 + $0x440] ss:$16 sps:$4 sm:$0xff]  }
 0x590   :  { %8025 = vmatprep.subr.bf16.mxu0 %v10228_v6  ;;  %8189 = vmatprep.subr.bf16.mxu1 %v10231_v9  ;;  %v10307_v6 = vld [vmem:[%s13399_s10 + $0x448] ss:$16 sps:$4 sm:$0xff]   ;;  %v10312_v9 = vld [vmem:[%s13399_s10 + $0x464] ss:$16 sps:$4 sm:$0xff]  }
 0x593   :  { %8026 = vmatpush1.bf16.msra.mxu0 %v10226_v14  ;;  %8190 = vmatpush1.bf16.msra.mxu1 %v10229_v44  ;;  %v10315_v14 = vld [vmem:[%s13399_s10 + $0x46c] ss:$16 sps:$4 sm:$0xff]   ;;  %v10310_v44 = vld [vmem:[%s13399_s10 + $0x460] ss:$16 sps:$4 sm:$0xff]  }
 0x594   :  { %8027 = vmatprep.subr.bf16.mxu0 %v10234_v39  ;;  %8191 = vmatprep.subr.bf16.mxu1 %v10237_v61  ;;  %v10313_v39 = vld [vmem:[%s13399_s10 + $0x468] ss:$16 sps:$4 sm:$0xff]   ;;  %v10318_v61 = vld [vmem:[%s13399_s10 + $0x484] ss:$16 sps:$4 sm:$0xff]  }
 0x597   :  { %8028 = vmatpush1.bf16.msra.mxu0 %v10232_v41  ;;  %8192 = vmatpush1.bf16.msra.mxu1 %v10235_v4  ;;  %v10321_v41 = vld [vmem:[%s13399_s10 + $0x48c] ss:$16 sps:$4 sm:$0xff]   ;;  %v10316_v4 = vld [vmem:[%s13399_s10 + $0x480] ss:$16 sps:$4 sm:$0xff]  }
 0x598   :  { %8029 = vmatprep.subr.bf16.mxu0 %v10240_v49  ;;  %8193 = vmatprep.subr.bf16.mxu1 %v10243_v26  ;;  %v10319_v49 = vld [vmem:[%s13399_s10 + $0x488] ss:$16 sps:$4 sm:$0xff]   ;;  %v10324_v26 = vld [vmem:[%s13399_s10 + $0x4a4] ss:$16 sps:$4 sm:$0xff]  }
 0x59b   :  { %8030 = vmatpush1.bf16.msra.mxu0 %v10238_v55  ;;  %8194 = vmatpush1.bf16.msra.mxu1 %v10241_v17  ;;  %v10327_v55 = vld [vmem:[%s13399_s10 + $0x4ac] ss:$16 sps:$4 sm:$0xff]   ;;  %v10322_v17 = vld [vmem:[%s13399_s10 + $0x4a0] ss:$16 sps:$4 sm:$0xff]  }
 0x59c   :  { %8031 = vmatprep.subr.bf16.mxu0 %v10246_v22  ;;  %8195 = vmatprep.subr.bf16.mxu1 %v10249_v15  ;;  %v10325_v22 = vld [vmem:[%s13399_s10 + $0x4a8] ss:$16 sps:$4 sm:$0xff]   ;;  %v10330_v15 = vld [vmem:[%s13399_s10 + $0x4c4] ss:$16 sps:$4 sm:$0xff]  }
 0x59f   :  { %8032 = vmatpush1.bf16.msra.mxu0 %v10244_v54  ;;  %8196 = vmatpush1.bf16.msra.mxu1 %v10247_v35  ;;  %v10333_v54 = vld [vmem:[%s13399_s10 + $0x4cc] ss:$16 sps:$4 sm:$0xff]   ;;  %v10328_v35 = vld [vmem:[%s13399_s10 + $0x4c0] ss:$16 sps:$4 sm:$0xff]  }
 0x5a0   :  { %8033 = vmatprep.subr.bf16.mxu0 %v10252_v7  ;;  %8197 = vmatprep.subr.bf16.mxu1 %v10255_v31  ;;  %v10331_v7 = vld [vmem:[%s13399_s10 + $0x4c8] ss:$16 sps:$4 sm:$0xff]   ;;  %v10336_v31 = vld [vmem:[%s13399_s10 + $0x4e4] ss:$16 sps:$4 sm:$0xff]  }
 0x5a3   :  { %8034 = vmatpush1.bf16.msra.mxu0 %v10250_v36  ;;  %8198 = vmatpush1.bf16.msra.mxu1 %v10253_v13  ;;  %v10339_v36 = vld [vmem:[%s13399_s10 + $0x4ec] ss:$16 sps:$4 sm:$0xff]   ;;  %v10334_v13 = vld [vmem:[%s13399_s10 + $0x4e0] ss:$16 sps:$4 sm:$0xff]  }
 0x5a4   :  { %8035 = vmatprep.subr.bf16.mxu0 %v10258_v10  ;;  %8199 = vmatprep.subr.bf16.mxu1 %v10261_v47  ;;  %v10337_v10 = vld [vmem:[%s13399_s10 + $0x4e8] ss:$16 sps:$4 sm:$0xff]   ;;  %v10342_v47 = vld [vmem:[%s13399_s10 + $0x504] ss:$16 sps:$4 sm:$0xff]  }
 0x5a7   :  { %8036 = vmatpush1.bf16.msra.mxu0 %v10256_v51  ;;  %8200 = vmatpush1.bf16.msra.mxu1 %v10259_v11  ;;  %v10345_v51 = vld [vmem:[%s13399_s10 + $0x50c] ss:$16 sps:$4 sm:$0xff]   ;;  %v10340_v11 = vld [vmem:[%s13399_s10 + $0x500] ss:$16 sps:$4 sm:$0xff]  }
 0x5a8   :  { %8037 = vmatprep.subr.bf16.mxu0 %v10264_v40  ;;  %8201 = vmatprep.subr.bf16.mxu1 %v10267_v48  ;;  %v10343_v40 = vld [vmem:[%s13399_s10 + $0x508] ss:$16 sps:$4 sm:$0xff]   ;;  %v10348_v48 = vld [vmem:[%s13399_s10 + $0x524] ss:$16 sps:$4 sm:$0xff]  }
 0x5ab   :  { %8038 = vmatpush1.bf16.msra.mxu0 %v10262_v28  ;;  %8202 = vmatpush1.bf16.msra.mxu1 %v10265_v27  ;;  %v10351_v28 = vld [vmem:[%s13399_s10 + $0x52c] ss:$16 sps:$4 sm:$0xff]   ;;  %v10346_v27 = vld [vmem:[%s13399_s10 + $0x520] ss:$16 sps:$4 sm:$0xff]  }
 0x5ac   :  { %8039 = vmatprep.subr.bf16.mxu0 %v10270_v38  ;;  %8203 = vmatprep.subr.bf16.mxu1 %v10273_v52  ;;  %v10349_v38 = vld [vmem:[%s13399_s10 + $0x528] ss:$16 sps:$4 sm:$0xff]   ;;  %v10354_v52 = vld [vmem:[%s13399_s10 + $0x544] ss:$16 sps:$4 sm:$0xff]  }
 0x5af   :  { %8040 = vmatpush1.bf16.msra.mxu0 %v10268_v25  ;;  %8204 = vmatpush1.bf16.msra.mxu1 %v10271_v5  ;;  %v10357_v25 = vld [vmem:[%s13399_s10 + $0x54c] ss:$16 sps:$4 sm:$0xff]   ;;  %v10352_v5 = vld [vmem:[%s13399_s10 + $0x540] ss:$16 sps:$4 sm:$0xff]  }
 0x5b0   :  { %8041 = vmatprep.subr.bf16.mxu0 %v10276_v24  ;;  %8205 = vmatprep.subr.bf16.mxu1 %v10279_v21  ;;  %v10355_v24 = vld [vmem:[%s13399_s10 + $0x548] ss:$16 sps:$4 sm:$0xff]   ;;  %v10360_v21 = vld [vmem:[%s13399_s10 + $0x564] ss:$16 sps:$4 sm:$0xff]  }
 0x5b3   :  { %8042 = vmatpush1.bf16.msra.mxu0 %v10274_v29  ;;  %8206 = vmatpush1.bf16.msra.mxu1 %v10277_v12  ;;  %v10363_v29 = vld [vmem:[%s13399_s10 + $0x56c] ss:$16 sps:$4 sm:$0xff]   ;;  %v10358_v12 = vld [vmem:[%s13399_s10 + $0x560] ss:$16 sps:$4 sm:$0xff]  }
 0x5b4   :  { %8043 = vmatprep.subr.bf16.mxu0 %v10282_v37  ;;  %8207 = vmatprep.subr.bf16.mxu1 %v10285_v18  ;;  %v10361_v37 = vld [vmem:[%s13399_s10 + $0x568] ss:$16 sps:$4 sm:$0xff]   ;;  %v10366_v18 = vld [vmem:[%s13399_s10 + $0x584] ss:$16 sps:$4 sm:$0xff]  }
 0x5b7   :  { %8044 = vmatpush1.bf16.msra.mxu0 %v10280_v56  ;;  %8208 = vmatpush1.bf16.msra.mxu1 %v10283_v32  ;;  %v10369_v56 = vld [vmem:[%s13399_s10 + $0x58c] ss:$16 sps:$4 sm:$0xff]   ;;  %v10364_v32 = vld [vmem:[%s13399_s10 + $0x580] ss:$16 sps:$4 sm:$0xff]  }
 0x5b8   :  { %8045 = vmatprep.subr.bf16.mxu0 %v10288_v33  ;;  %8209 = vmatprep.subr.bf16.mxu1 %v10291_v0  ;;  %v10367_v33 = vld [vmem:[%s13399_s10 + $0x588] ss:$16 sps:$4 sm:$0xff]   ;;  %v10372_v0 = vld [vmem:[%s13399_s10 + $0x5a4] ss:$16 sps:$4 sm:$0xff]  }
 0x5bb   :  { %8046 = vmatpush1.bf16.msra.mxu0 %v10286_v34  ;;  %8210 = vmatpush1.bf16.msra.mxu1 %v10289_v58  ;;  %v10375_v34 = vld [vmem:[%s13399_s10 + $0x5ac] ss:$16 sps:$4 sm:$0xff]   ;;  %v10370_v58 = vld [vmem:[%s13399_s10 + $0x5a0] ss:$16 sps:$4 sm:$0xff]  }
 0x5bc   :  { %8056 = vmatprep.subr.bf16.mxu0 %v10294_v20  ;;  %8220 = vmatprep.subr.bf16.mxu1 %v10297_v30  ;;  %v10373_v20 = vld [vmem:[%s13399_s10 + $0x5a8] ss:$16 sps:$4 sm:$0xff]   ;;  %v10378_v30 = vld [vmem:[%s13399_s10 + $0x5c4] ss:$16 sps:$4 sm:$0xff]  }
 0x5be   :  { %8048 = vmatmul.mubr.bf16.vlgmr.msra.gmra.mrb[120].mxu0 %v6410_v53  ;;  %8212 = vmatmul.mubr.bf16.vlgmr.msra.gmra.mrb[40].mxu1 %v6410_v53  ;;  %v10376_v53 = vld [vmem:[%s13399_s10 + $0x5c0] ss:$16 sps:$4 sm:$0xff]  }
 0x5bf   :  { %8057 = vmatpush1.bf16.msra.mxu0 %v10292_v60  ;;  %8088 = vmatprep.mubr.bf16.mxu0 %v6413_v19  ;;  %v6383_v60 = vcombine.high %v12944_v3, %v12944_v3  ;;  %v10387_v3 = vld [vmem:[%s13399_s10 + $0x5ec] ss:$16 sps:$4 sm:$0xff]  }
 0x5c0   :  { %8221 = vmatpush1.bf16.msra.mxu1 %v10295_v63  ;;  %8252 = vmatprep.mubr.bf16.mxu1 %v6413_v19  ;;  %v10379_v63 = vld [vmem:[%s13399_s10 + $0x5c8] ss:$16 sps:$4 sm:$0xff]   ;;  %v10384_v19 = vld [vmem:[%s13399_s10 + $0x5e4] ss:$16 sps:$4 sm:$0xff]  }
 0x5c1   :  { %8058 = vmatprep.subr.bf16.mxu0 %v10300_v8  ;;  %8222 = vmatprep.subr.bf16.mxu1 %v10303_v59  ;;  %v13161_v8 = vrot.slane %v6383_v60, %v11034_v57  ;;  %v10382_v59 = vld [vmem:[%s13399_s10 + $0x5e0] ss:$16 sps:$4 sm:$0xff]   ;;  %v10393_v57 = vld [vmem:[%s13399_s10 + $0x60c] ss:$16 sps:$4 sm:$0xff]  }
 0x5c2   :  { %v10461_v60 = vld [vmem:[%s13399_s10 + $0x780] ss:$16 sps:$4 sm:$0xff]  }
 0x5c3   :  { %8059 = vmatpush1.bf16.msra.mxu0 %v10298_v2  ;;  %v10385_v2 = vld [vmem:[%s13399_s10 + $0x5e8] ss:$16 sps:$4 sm:$0xff]  }
 0x5c4   :  { %8223 = vmatpush1.bf16.msra.mxu1 %v10301_v23  ;;  %8060 = vmatprep.subr.bf16.mxu0 %v10306_v62  ;;  %v10390_v23 = vld [vmem:[%s13399_s10 + $0x604] ss:$16 sps:$4 sm:$0xff]   ;;  %v6399_v62 = vcombine.high %v13161_v8, %v13161_v8 }
 0x5c5   :  { %8224 = vmatprep.subr.bf16.mxu1 %v10309_v16  ;;  %v10388_v16 = vld [vmem:[%s13399_s10 + $0x600] ss:$16 sps:$4 sm:$0xff]  }
 0x5c7   :  { %8061 = vmatpush1.bf16.msra.mxu0 %v10304_v42  ;;  %v6412_v42 = vpack.c.bf16 %v12960_v43, %v12960_v43  ;;  %v10395_v43 = vld [vmem:[%s13399_s10 + $0x620] ss:$16 sps:$4 sm:$0xff]  }
 0x5c8   :  { %8225 = vmatpush1.bf16.msra.mxu1 %v10307_v6  ;;  %8062 = vmatprep.subr.bf16.mxu0 %v10312_v9  ;;  %v10391_v6 = vld [vmem:[%s13399_s10 + $0x608] ss:$16 sps:$4 sm:$0xff]   ;;  %v10397_v9 = vld [vmem:[%s13399_s10 + $0x624] ss:$16 sps:$4 sm:$0xff]  }
 0x5c9   :  { %8226 = vmatprep.subr.bf16.mxu1 %v10315_v14  ;;  %v6415_v14 = vpack.c.bf16 %v6399_v62, %v6399_v62  ;;  %v10476_v62 = vld [vmem:[%s13399_s10 + $0x7c8] ss:$16 sps:$4 sm:$0xff]  }
 0x5cb   :  { %8063 = vmatpush1.bf16.msra.mxu0 %v10310_v44  ;;  %v10400_v44 = vld [vmem:[%s13399_s10 + $0x62c] ss:$16 sps:$4 sm:$0xff]  }
 0x5cc   :  { %8227 = vmatpush1.bf16.msra.mxu1 %v10313_v39  ;;  %8064 = vmatprep.subr.bf16.mxu0 %v10318_v61  ;;  %v10398_v39 = vld [vmem:[%s13399_s10 + $0x628] ss:$16 sps:$4 sm:$0xff]   ;;  %v10403_v61 = vld [vmem:[%s13399_s10 + $0x644] ss:$16 sps:$4 sm:$0xff]  }
 0x5cd   :  { %8228 = vmatprep.subr.bf16.mxu1 %v10321_v41  ;;  %v10406_v41 = vld [vmem:[%s13399_s10 + $0x64c] ss:$16 sps:$4 sm:$0xff]  }
 0x5cf   :  { %8065 = vmatpush1.bf16.msra.mxu0 %v10316_v4  ;;  %v10401_v4 = vld [vmem:[%s13399_s10 + $0x640] ss:$16 sps:$4 sm:$0xff]  }
 0x5d0   :  { %8229 = vmatpush1.bf16.msra.mxu1 %v10319_v49  ;;  %8066 = vmatprep.subr.bf16.mxu0 %v10324_v26  ;;  %v10404_v49 = vld [vmem:[%s13399_s10 + $0x648] ss:$16 sps:$4 sm:$0xff]   ;;  %v10409_v26 = vld [vmem:[%s13399_s10 + $0x664] ss:$16 sps:$4 sm:$0xff]  }
 0x5d1   :  { %8230 = vmatprep.subr.bf16.mxu1 %v10327_v55  ;;  %v10412_v55 = vld [vmem:[%s13399_s10 + $0x66c] ss:$16 sps:$4 sm:$0xff]  }
 0x5d3   :  { %8067 = vmatpush1.bf16.msra.mxu0 %v10322_v17  ;;  %v10407_v17 = vld [vmem:[%s13399_s10 + $0x660] ss:$16 sps:$4 sm:$0xff]  }
 0x5d4   :  { %8231 = vmatpush1.bf16.msra.mxu1 %v10325_v22  ;;  %8068 = vmatprep.subr.bf16.mxu0 %v10330_v15  ;;  %v10410_v22 = vld [vmem:[%s13399_s10 + $0x668] ss:$16 sps:$4 sm:$0xff]   ;;  %v10415_v15 = vld [vmem:[%s13399_s10 + $0x684] ss:$16 sps:$4 sm:$0xff]  }
 0x5d5   :  { %8232 = vmatprep.subr.bf16.mxu1 %v10333_v54  ;;  %v10418_v54 = vld [vmem:[%s13399_s10 + $0x68c] ss:$16 sps:$4 sm:$0xff]  }
 0x5d7   :  { %8069 = vmatpush1.bf16.msra.mxu0 %v10328_v35  ;;  %v10413_v35 = vld [vmem:[%s13399_s10 + $0x680] ss:$16 sps:$4 sm:$0xff]  }
 0x5d8   :  { %8233 = vmatpush1.bf16.msra.mxu1 %v10331_v7  ;;  %8070 = vmatprep.subr.bf16.mxu0 %v10336_v31  ;;  %v10416_v7 = vld [vmem:[%s13399_s10 + $0x688] ss:$16 sps:$4 sm:$0xff]   ;;  %v10421_v31 = vld [vmem:[%s13399_s10 + $0x6a4] ss:$16 sps:$4 sm:$0xff]  }
 0x5d9   :  { %8234 = vmatprep.subr.bf16.mxu1 %v10339_v36  ;;  %v10424_v36 = vld [vmem:[%s13399_s10 + $0x6ac] ss:$16 sps:$4 sm:$0xff]  }
 0x5db   :  { %8071 = vmatpush1.bf16.msra.mxu0 %v10334_v13  ;;  %v10419_v13 = vld [vmem:[%s13399_s10 + $0x6a0] ss:$16 sps:$4 sm:$0xff]  }
 0x5dc   :  { %8235 = vmatpush1.bf16.msra.mxu1 %v10337_v10  ;;  %8072 = vmatprep.subr.bf16.mxu0 %v10342_v47  ;;  %v10422_v10 = vld [vmem:[%s13399_s10 + $0x6a8] ss:$16 sps:$4 sm:$0xff]   ;;  %v10427_v47 = vld [vmem:[%s13399_s10 + $0x6c4] ss:$16 sps:$4 sm:$0xff]  }
 0x5dd   :  { %8236 = vmatprep.subr.bf16.mxu1 %v10345_v51  ;;  %v10430_v51 = vld [vmem:[%s13399_s10 + $0x6cc] ss:$16 sps:$4 sm:$0xff]  }
 0x5df   :  { %8073 = vmatpush1.bf16.msra.mxu0 %v10340_v11  ;;  %v10425_v11 = vld [vmem:[%s13399_s10 + $0x6c0] ss:$16 sps:$4 sm:$0xff]  }
 0x5e0   :  { %8237 = vmatpush1.bf16.msra.mxu1 %v10343_v40  ;;  %8074 = vmatprep.subr.bf16.mxu0 %v10348_v48  ;;  %v10428_v40 = vld [vmem:[%s13399_s10 + $0x6c8] ss:$16 sps:$4 sm:$0xff]   ;;  %v10433_v48 = vld [vmem:[%s13399_s10 + $0x6e4] ss:$16 sps:$4 sm:$0xff]  }
 0x5e1   :  { %8238 = vmatprep.subr.bf16.mxu1 %v10351_v28  ;;  %v10436_v28 = vld [vmem:[%s13399_s10 + $0x6ec] ss:$16 sps:$4 sm:$0xff]  }
 0x5e3   :  { %8075 = vmatpush1.bf16.msra.mxu0 %v10346_v27  ;;  %v10431_v27 = vld [vmem:[%s13399_s10 + $0x6e0] ss:$16 sps:$4 sm:$0xff]  }
 0x5e4   :  { %8239 = vmatpush1.bf16.msra.mxu1 %v10349_v38  ;;  %8076 = vmatprep.subr.bf16.mxu0 %v10354_v52  ;;  %v10434_v38 = vld [vmem:[%s13399_s10 + $0x6e8] ss:$16 sps:$4 sm:$0xff]   ;;  %v10439_v52 = vld [vmem:[%s13399_s10 + $0x704] ss:$16 sps:$4 sm:$0xff]  }
 0x5e5   :  { %8240 = vmatprep.subr.bf16.mxu1 %v10357_v25  ;;  %v10442_v25 = vld [vmem:[%s13399_s10 + $0x70c] ss:$16 sps:$4 sm:$0xff]  }
 0x5e7   :  { %8077 = vmatpush1.bf16.msra.mxu0 %v10352_v5  ;;  %v10437_v5 = vld [vmem:[%s13399_s10 + $0x700] ss:$16 sps:$4 sm:$0xff]  }
 0x5e8   :  { %8241 = vmatpush1.bf16.msra.mxu1 %v10355_v24  ;;  %8078 = vmatprep.subr.bf16.mxu0 %v10360_v21  ;;  %v10440_v24 = vld [vmem:[%s13399_s10 + $0x708] ss:$16 sps:$4 sm:$0xff]   ;;  %v10445_v21 = vld [vmem:[%s13399_s10 + $0x724] ss:$16 sps:$4 sm:$0xff]  }
 0x5e9   :  { %8242 = vmatprep.subr.bf16.mxu1 %v10363_v29  ;;  %v10448_v29 = vld [vmem:[%s13399_s10 + $0x72c] ss:$16 sps:$4 sm:$0xff]  }
 0x5eb   :  { %8079 = vmatpush1.bf16.msra.mxu0 %v10358_v12  ;;  %v10443_v12 = vld [vmem:[%s13399_s10 + $0x720] ss:$16 sps:$4 sm:$0xff]  }
 0x5ec   :  { %8243 = vmatpush1.bf16.msra.mxu1 %v10361_v37  ;;  %8080 = vmatprep.subr.bf16.mxu0 %v10366_v18  ;;  %v10446_v37 = vld [vmem:[%s13399_s10 + $0x728] ss:$16 sps:$4 sm:$0xff]   ;;  %v10451_v18 = vld [vmem:[%s13399_s10 + $0x744] ss:$16 sps:$4 sm:$0xff]  }
 0x5ed   :  { %8244 = vmatprep.subr.bf16.mxu1 %v10369_v56  ;;  %v10454_v56 = vld [vmem:[%s13399_s10 + $0x74c] ss:$16 sps:$4 sm:$0xff]  }
 0x5ef   :  { %8081 = vmatpush1.bf16.msra.mxu0 %v10364_v32  ;;  %v10449_v32 = vld [vmem:[%s13399_s10 + $0x740] ss:$16 sps:$4 sm:$0xff]  }
 0x5f0   :  { %8245 = vmatpush1.bf16.msra.mxu1 %v10367_v33  ;;  %8082 = vmatprep.subr.bf16.mxu0 %v10372_v0  ;;  %v10452_v33 = vld [vmem:[%s13399_s10 + $0x748] ss:$16 sps:$4 sm:$0xff]   ;;  %v10457_v0 = vld [vmem:[%s13399_s10 + $0x764] ss:$16 sps:$4 sm:$0xff]  }
 0x5f1   :  { %8246 = vmatprep.subr.bf16.mxu1 %v10375_v34  ;;  %v10460_v34 = vld [vmem:[%s13399_s10 + $0x76c] ss:$16 sps:$4 sm:$0xff]  }
 0x5f3   :  { %8083 = vmatpush1.bf16.msra.mxu0 %v10370_v58  ;;  %v10455_v58 = vld [vmem:[%s13399_s10 + $0x760] ss:$16 sps:$4 sm:$0xff]  }
 0x5f4   :  { %8247 = vmatpush1.bf16.msra.mxu1 %v10373_v20  ;;  %8084 = vmatprep.subr.bf16.mxu0 %v10378_v30  ;;  %v10458_v20 = vld [vmem:[%s13399_s10 + $0x768] ss:$16 sps:$4 sm:$0xff]   ;;  %v10463_v30 = vld [vmem:[%s13399_s10 + $0x784] ss:$16 sps:$4 sm:$0xff]  }
 0x5f5   :  { %8248 = vmatprep.subr.bf16.mxu1 %v10381_v46  ;;  %v10466_v46 = vld [vmem:[%s13399_s10 + $0x78c] ss:$16 sps:$4 sm:$0xff]  }
 0x5f7   :  { %8085 = vmatpush1.bf16.msra.mxu0 %v10376_v53  ;;  %v10464_v53 = vld [vmem:[%s13399_s10 + $0x788] ss:$16 sps:$4 sm:$0xff]  }
 0x5f8   :  { %8249 = vmatpush1.bf16.msra.mxu1 %v10379_v63  ;;  %8086 = vmatprep.subr.bf16.mxu0 %v10384_v19  ;;  %v10469_v63 = vld [vmem:[%s13399_s10 + $0x7a4] ss:$16 sps:$4 sm:$0xff]   ;;  %v10472_v19 = vld [vmem:[%s13399_s10 + $0x7ac] ss:$16 sps:$4 sm:$0xff]  }
 0x5f9   :  { %8250 = vmatprep.subr.bf16.mxu1 %v10387_v3  ;;  %v10467_v3 = vld [vmem:[%s13399_s10 + $0x7a0] ss:$16 sps:$4 sm:$0xff]  }
 0x5fb   :  { %8087 = vmatpush1.bf16.msra.mxu0 %v10382_v59  ;;  %v10470_v59 = vld [vmem:[%s13399_s10 + $0x7a8] ss:$16 sps:$4 sm:$0xff]  }
 0x5fc   :  { %8251 = vmatpush1.bf16.msra.mxu1 %v10385_v2  ;;  %8097 = vmatprep.subr.bf16.mxu0 %v10390_v23  ;;  %v10475_v2 = vld [vmem:[%s13399_s10 + $0x7c4] ss:$16 sps:$4 sm:$0xff]   ;;  %v10478_v23 = vld [vmem:[%s13399_s10 + $0x7cc] ss:$16 sps:$4 sm:$0xff]  }
 0x5fd   :  { %8261 = vmatprep.subr.bf16.mxu1 %v10393_v57  ;;  %v10473_v57 = vld [vmem:[%s13399_s10 + $0x7c0] ss:$16 sps:$4 sm:$0xff]  }
 0x5fe   :  { %8089 = vmatmul.mubr.bf16.vlgmr.msra.gmra.mrb[120].mxu0 %v6412_v42 }
 0x5ff   :  { %8253 = vmatmul.mubr.bf16.vlgmr.msra.gmra.mrb[40].mxu1 %v6412_v42  ;;  %8098 = vmatpush1.bf16.msra.mxu0 %v10388_v16  ;;  %v10481_v16 = vld [vmem:[%s13399_s10 + $0x7e4] ss:$16 sps:$4 sm:$0xff]   ;;  %v10484_v42 = vld [vmem:[%s13399_s10 + $0x7ec] ss:$16 sps:$4 sm:$0xff]  }
 0x600   :  { %8129 = vmatprep.mubr.bf16.mxu0 %v6415_v14  ;;  %8262 = vmatpush1.bf16.msra.mxu1 %v10391_v6  ;;  %v10479_v6 = vld [vmem:[%s13399_s10 + $0x7e0] ss:$16 sps:$4 sm:$0xff]  }
 0x601   :  { %8293 = vmatprep.mubr.bf16.mxu1 %v6415_v14  ;;  %8099 = vmatprep.subr.bf16.mxu0 %v10397_v9  ;;  %v10482_v9 = vld [vmem:[%s13399_s10 + $0x7e8] ss:$16 sps:$4 sm:$0xff]   ;;  %v10485_v14 = vld [vmem:[#allocation12 + $0x40] sm:$0xff]  }
 0x602   :  { %8263 = vmatprep.subr.bf16.mxu1 %v10400_v44  ;;  %v10486_v44 = vld [vmem:[#allocation12] sm:$0xff]  }
 0x603   :  { %8100 = vmatpush1.bf16.msra.mxu0 %v10395_v43  ;;  %v6414_v43 = vpack.c.bf16 %v13161_v8, %v13161_v8  ;;  %v10495_v8 = vld [vmem:[#allocation12 + $0x68] sm:$0xff]  }
 0x604   :  { %8264 = vmatpush1.bf16.msra.mxu1 %v10398_v39  ;;  %8101 = vmatprep.subr.bf16.mxu0 %v10403_v61  ;;  %v10487_v39 = vld [vmem:[#allocation12 + $0x48] sm:$0xff]  }
 0x605   :  { %8265 = vmatprep.subr.bf16.mxu1 %v10406_v41  ;;  %v10488_v61 = vld [vmem:[#allocation12 + $0x8] sm:$0xff]   ;;  %v10489_v41 = vld [vmem:[#allocation12 + $0x50] sm:$0xff]  }
 0x607   :  { %8102 = vmatpush1.bf16.msra.mxu0 %v10401_v4  ;;  %v10490_v4 = vld [vmem:[#allocation12 + $0x10] sm:$0xff]  }
 0x608   :  { %8266 = vmatpush1.bf16.msra.mxu1 %v10404_v49  ;;  %8103 = vmatprep.subr.bf16.mxu0 %v10409_v26  ;;  %v10491_v49 = vld [vmem:[#allocation12 + $0x58] sm:$0xff]  }
 0x609   :  { %8267 = vmatprep.subr.bf16.mxu1 %v10412_v55  ;;  %v10492_v26 = vld [vmem:[#allocation12 + $0x18] sm:$0xff]   ;;  %v10493_v55 = vld [vmem:[#allocation12 + $0x60] sm:$0xff]  }
 0x60b   :  { %8104 = vmatpush1.bf16.msra.mxu0 %v10407_v17  ;;  %v10494_v17 = vld [vmem:[#allocation12 + $0x20] sm:$0xff]  }
 0x60c   :  { %8268 = vmatpush1.bf16.msra.mxu1 %v10410_v22  ;;  %8105 = vmatprep.subr.bf16.mxu0 %v10415_v15  ;;  %v10496_v22 = vld [vmem:[#allocation12 + $0x28] sm:$0xff]   ;;  %v10497_v15 = vld [vmem:[#allocation12 + $0x70] sm:$0xff]  }
 0x60d   :  { %8269 = vmatprep.subr.bf16.mxu1 %v10418_v54  ;;  %v10498_v54 = vld [vmem:[#allocation12 + $0x30] sm:$0xff]  }
 0x60f   :  { %8106 = vmatpush1.bf16.msra.mxu0 %v10413_v35  ;;  %v10499_v35 = vld [vmem:[#allocation12 + $0x78] sm:$0xff]  }
 0x610   :  { %8270 = vmatpush1.bf16.msra.mxu1 %v10416_v7  ;;  %8107 = vmatprep.subr.bf16.mxu0 %v10421_v31  ;;  %v10500_v7 = vld [vmem:[#allocation12 + $0x38] sm:$0xff]   ;;  %v10501_v31 = vld [vmem:[#allocation12 + $0xc0] sm:$0xff]  }
 0x611   :  { %8271 = vmatprep.subr.bf16.mxu1 %v10424_v36  ;;  %v6672_v36 = vld [vmem:[%s13400_s11] sm:$0xf] }
 0x613   :  { %8108 = vmatpush1.bf16.msra.mxu0 %v10419_v13  ;;  %v6688_v13 = vsub.s32 3, %v11024_v45 }
 0x614   :  { %8272 = vmatpush1.bf16.msra.mxu1 %v10422_v10  ;;  %8109 = vmatprep.subr.bf16.mxu0 %v10427_v47  ;;  %v6677_v10 = vrot.slane %v6672_v36, %v11039_v1  ;;  %v6681_v47 = vrot.slane %v6672_v36, %v12727_v50 }
 0x615   :  { %8273 = vmatprep.subr.bf16.mxu1 %v10430_v51  ;;  %v6689_v51 = vrot.slane %v6672_v36, %v6688_v13 }
 0x617   :  { %8110 = vmatpush1.bf16.msra.mxu0 %v10425_v11 }
 0x618   :  { %8274 = vmatpush1.bf16.msra.mxu1 %v10428_v40  ;;  %8111 = vmatprep.subr.bf16.mxu0 %v10433_v48 }
 0x619   :  { %8275 = vmatprep.subr.bf16.mxu1 %v10436_v28 }
 0x61b   :  { %8112 = vmatpush1.bf16.msra.mxu0 %v10431_v27 }
 0x61c   :  { %8276 = vmatpush1.bf16.msra.mxu1 %v10434_v38  ;;  %8113 = vmatprep.subr.bf16.mxu0 %v10439_v52 }
 0x61d   :  { %8277 = vmatprep.subr.bf16.mxu1 %v10442_v25 }
 0x61f   :  { %8114 = vmatpush1.bf16.msra.mxu0 %v10437_v5 }
 0x620   :  { %8278 = vmatpush1.bf16.msra.mxu1 %v10440_v24  ;;  %8115 = vmatprep.subr.bf16.mxu0 %v10445_v21 }
 0x621   :  { %8279 = vmatprep.subr.bf16.mxu1 %v10448_v29 }
 0x623   :  { %8116 = vmatpush1.bf16.msra.mxu0 %v10443_v12 }
 0x624   :  { %8280 = vmatpush1.bf16.msra.mxu1 %v10446_v37  ;;  %8117 = vmatprep.subr.bf16.mxu0 %v10451_v18 }
 0x625   :  { %8281 = vmatprep.subr.bf16.mxu1 %v10454_v56  ;;  %v10502_v56 = vld [vmem:[#allocation12 + $0x80] sm:$0xff]  }
 0x627   :  { %8118 = vmatpush1.bf16.msra.mxu0 %v10449_v32  ;;  %v10503_v32 = vld [vmem:[#allocation12 + $0xc8] sm:$0xff]  }
 0x628   :  { %8282 = vmatpush1.bf16.msra.mxu1 %v10452_v33  ;;  %8119 = vmatprep.subr.bf16.mxu0 %v10457_v0  ;;  %v10504_v33 = vld [vmem:[#allocation12 + $0x88] sm:$0xff]   ;;  %v10505_v0 = vld [vmem:[#allocation12 + $0xd0] sm:$0xff]  }
 0x629   :  { %8283 = vmatprep.subr.bf16.mxu1 %v10460_v34  ;;  %v10506_v34 = vld [vmem:[#allocation12 + $0x90] sm:$0xff]  }
 0x62b   :  { %8120 = vmatpush1.bf16.msra.mxu0 %v10455_v58  ;;  %v10507_v58 = vld [vmem:[#allocation12 + $0xd8] sm:$0xff]  }
 0x62c   :  { %8284 = vmatpush1.bf16.msra.mxu1 %v10458_v20  ;;  %8121 = vmatprep.subr.bf16.mxu0 %v10463_v30  ;;  %v10508_v20 = vld [vmem:[#allocation12 + $0x98] sm:$0xff]   ;;  %v10509_v30 = vld [vmem:[#allocation12 + $0xe0] sm:$0xff]  }
 0x62d   :  { %8285 = vmatprep.subr.bf16.mxu1 %v10466_v46  ;;  %v10510_v46 = vld [vmem:[#allocation12 + $0xa0] sm:$0xff]  }
 0x62f   :  { %8122 = vmatpush1.bf16.msra.mxu0 %v10461_v60  ;;  %v6684_v60 = vsub.s32 2, %v11024_v45 }
 0x630   :  { %8286 = vmatpush1.bf16.msra.mxu1 %v10464_v53  ;;  %8123 = vmatprep.subr.bf16.mxu0 %v10469_v63  ;;  %v10511_v53 = vld [vmem:[#allocation12 + $0xe8] sm:$0xff]  }
 0x631   :  { %8287 = vmatprep.subr.bf16.mxu1 %v10472_v19  ;;  %v10512_v63 = vld [vmem:[#allocation12 + $0xa8] sm:$0xff]   ;;  %v6685_v19 = vrot.slane %v6672_v36, %v6684_v60 }
 0x633   :  { %8124 = vmatpush1.bf16.msra.mxu0 %v10467_v3  ;;  %v10513_v3 = vld [vmem:[#allocation12 + $0xf0] sm:$0xff]  }
 0x634   :  { %8288 = vmatpush1.bf16.msra.mxu1 %v10470_v59  ;;  %8125 = vmatprep.subr.bf16.mxu0 %v10475_v2  ;;  %v10514_v59 = vld [vmem:[#allocation12 + $0xb0] sm:$0xff]  }
 0x635   :  { %8289 = vmatprep.subr.bf16.mxu1 %v10478_v23  ;;  %v10515_v23 = vld [vmem:[#allocation12 + $0xf8] sm:$0xff]  }
 0x637   :  { %8126 = vmatpush1.bf16.msra.mxu0 %v10473_v57  ;;  %v10516_v57 = vld [vmem:[#allocation12 + $0xb8] sm:$0xff]  }
 0x638   :  { %8290 = vmatpush1.bf16.msra.mxu1 %v10476_v62  ;;  %8127 = vmatprep.subr.bf16.mxu0 %v10481_v16 }
 0x639   :  { %8291 = vmatprep.subr.bf16.mxu1 %v10484_v42 }
 0x63b   :  { %8128 = vmatpush1.bf16.msra.mxu0 %v10479_v6 }
 0x63c   :  { %8292 = vmatpush1.bf16.msra.mxu1 %v10482_v9  ;;  %9583 = vmatprep.subr.bf16.mxu0 %v10485_v14 }
 0x63e   :  { %8130 = vmatmul.mubr.bf16.vlgmr.msra.gmra.mrb[120].mxu0 %v6414_v43 }
 0x63f   :  { %8294 = vmatmul.mubr.bf16.vlgmr.msra.gmra.mrb[40].mxu1 %v6414_v43  ;;  %9584 = vmatpush3.bf16.msra.mxu0 %v10486_v44  ;;  %v9376_v44 = vld [vmem:[%s13402_s13] ss:$0 sm:$0xff] }
 0x640   :  { %9585 = vmatprep.subr.bf16.mxu0 %v10487_v39 }
 0x643   :  { %9586 = vmatpush3.bf16.msra.mxu0 %v10488_v61 }
 0x644   :  { %9587 = vmatprep.subr.bf16.mxu0 %v10489_v41 }
 0x647   :  { %9588 = vmatpush3.bf16.msra.mxu0 %v10490_v4 }
 0x648   :  { %9589 = vmatprep.subr.bf16.mxu0 %v10491_v49 }
 0x64b   :  { %9590 = vmatpush3.bf16.msra.mxu0 %v10492_v26 }
 0x64c   :  { %9591 = vmatprep.subr.bf16.mxu0 %v10493_v55 }
 0x64f   :  { %9592 = vmatpush3.bf16.msra.mxu0 %v10494_v17 }
 0x650   :  { %9593 = vmatprep.subr.bf16.mxu0 %v10495_v8 }
 0x653   :  { %9594 = vmatpush3.bf16.msra.mxu0 %v10496_v22 }
 0x654   :  { %9595 = vmatprep.subr.bf16.mxu0 %v10497_v15 }
 0x657   :  { %9596 = vmatpush3.bf16.msra.mxu0 %v10498_v54 }
 0x658   :  { %9597 = vmatprep.subr.bf16.mxu0 %v10499_v35 }
 0x65b   :  { %9598 = vmatpush3.bf16.msra.mxu0 %v10500_v7 }
 0x65c   :  { %9605 = vmatprep.subr.bf16.mxu0 %v10501_v31 }
 0x711   :  { %v8131_v11 = vpop.f32.mrb[120].mxu0 }
 0x712   :  { %v9727_v40 = vadd.f32 %v8131_v11, %v6677_v10  ;;  %v8295_v48 = vpop.f32.mrb[40].mxu1  ;;  %v8133_v28 = vpop.f32.mrb[121].mxu0 }
 0x713   :  { %v9728_v27 = vadd.f32 %v8133_v28, %v6681_v47  ;;  %v8297_v38 = vpop.f32.mrb[41].mxu1  ;;  %v8135_v52 = vpop.f32.mrb[122].mxu0  ;;  %v9729_v2 = vadd.f32 %v8295_v48, %v6685_v19 }
 0x714   :  { %v8302_v25 = vmax.f32 %v9727_v40, 0.0  ;;  %v9730_v5 = vadd.f32 %v8297_v38, %v6689_v51  ;;  %v8299_v24 = vpop.f32.mrb[42].mxu1  ;;  %v8136_v21 = vpop.f32.mrb[123].mxu0 }
 0x715   :  { %v8303_v29 = vmax.f32 %v9728_v27, 0.0  ;;  %v8300_v12 = vpop.f32.mrb[43].mxu1  ;;  %v8304_v62 = vmax.f32 %v9729_v2, 0.0 }
 0x716   :  { %v8305_v37 = vmax.f32 %v9730_v5, 0.0  ;;  %v8306_v1 = vpack.c.bf16 %v8302_v25, %v8302_v25 }
 0x717   :  { %v8307_v18 = vpack.c.bf16 %v8303_v29, %v8303_v29  ;;  %v8308_v16 = vpack.c.bf16 %v8304_v62, %v8304_v62 }
 0x718   :  { %v8309_v50 = vpack.c.bf16 %v8305_v37, %v8305_v37 }
 0x719   :  { %8605 = vmatprep.mubr.bf16.mxu0 %v8307_v18 }
 0x71a   :  { %8606 = vmatmul.mubr.bf16.vlgmr.msra.gmra.mrb[124].mxu0 %v8306_v1 }
 0x71b   :  { %9606 = vmatpush3.bf16.msra.mxu0 %v10502_v56  ;;  %8645 = vmatprep.mubr.bf16.mxu0 %v8309_v50 }
 0x71c   :  { %9607 = vmatprep.subr.bf16.mxu0 %v10503_v32 }
 0x71f   :  { %9608 = vmatpush3.bf16.msra.mxu0 %v10504_v33 }
 0x720   :  { %9609 = vmatprep.subr.bf16.mxu0 %v10505_v0 }
 0x723   :  { %9610 = vmatpush3.bf16.msra.mxu0 %v10506_v34 }
 0x724   :  { %9611 = vmatprep.subr.bf16.mxu0 %v10507_v58 }
 0x727   :  { %9612 = vmatpush3.bf16.msra.mxu0 %v10508_v20 }
 0x728   :  { %9613 = vmatprep.subr.bf16.mxu0 %v10509_v30 }
 0x72b   :  { %9614 = vmatpush3.bf16.msra.mxu0 %v10510_v46 }
 0x72c   :  { %9615 = vmatprep.subr.bf16.mxu0 %v10511_v53 }
 0x72f   :  { %9616 = vmatpush3.bf16.msra.mxu0 %v10512_v63 }
 0x730   :  { %9617 = vmatprep.subr.bf16.mxu0 %v10513_v3 }
 0x733   :  { %9618 = vmatpush3.bf16.msra.mxu0 %v10514_v59 }
 0x734   :  { %9619 = vmatprep.subr.bf16.mxu0 %v10515_v23 }
 0x737   :  { %9620 = vmatpush3.bf16.msra.mxu0 %v10516_v57 }
 0x73a   :  { %8646 = vmatmul.mubr.bf16.vlgmr.msra.gmra.mrb[128].mxu0 %v8308_v16 }
 0x7ed   :  { %v9599_v45 = vpop.f32.mrb[124].mxu0 }
 0x7ee   :  { %v9600_v42 = vpop.f32.mrb[125].mxu0 }
 0x7ef   :  { %v9601_v6 = vadd.f32 %v9600_v42, %v9599_v45  ;;  %v9602_v9 = vpop.f32.mrb[126].mxu0 }
 0x7f0   :  { %v9603_v14 = vpop.f32.mrb[127].mxu0 }
 0x7f1   :  { %v8608_v61 = vadd.f32 %v9601_v6, %v9376_v44 }
 0x80d   :  { %v9621_v43 = vpop.f32.mrb[128].mxu0 }
 0x80e   :  { %v9622_v39 = vpop.f32.mrb[129].mxu0 }
 0x80f   :  { %v9623_v41 = vadd.f32 %v9622_v39, %v9621_v43  ;;  %v9624_v4 = vpop.f32.mrb[130].mxu0 }
 0x810   :  { %v9625_v49 = vpop.f32.mrb[131].mxu0 }
 0x811   :  { %v8648_v26 = vadd.f32 %v9623_v41, %v8608_v61 }
 0x813   :  { %8653 = vst [vmem:[#allocation13] sm:$0x3] %v8648_v26 }
 0x814   :  { %10613 = shalt.err (!%p10610_p0)
}
 0x815   :  { %s10614_s28 = scalar_lea.hbm %s13403_s14, 32 }
 0x816   :  { %p10615_p1 = scmp.ne.s32.totalorder %s13403_s14, %s10614_s28  ;;  %p10618_p2 = scmp.lt.u32.totalorder %s10614_s28, %s13403_s14 }
 0x818   :  { %p10620_p3 = pnand %p10618_p2, %p10615_p1 }
 0x81a   :  { %10623 = shalt.err (!%p10620_p3)
}
 0x81b   :  { %8663 = dma.vmem_to_hbm [thread:$0]  %s8661_s18, 32, %s13403_s14, [#allocation9]  }
 0x81c   :  { %10628 = dma.done.wait [#allocation9], 32  }
 0x81d   :  { %10629 = vsyncadd [#allocation9], 4294967264 }
 0x81e   :  { %8667 = vsyncpa [#allocation8], 1 }
 0x81f   :  { %8668 = vsyncpa [#allocation11], 1 }
 0x820   :  { %8669 = vsyncpa [#allocation9], 1 }

</bundles_post_ra>
